<compile_context>
chip_gen: v7x
topology: tpu7x:2x2x1
jax: 0.10.0
libtpu: 0.0.40
codegen_flags: <defaults>
</compile_context>

<pallas_src>
import functools

import jax
import jax.numpy as jnp
from jax import lax
from jax.experimental import pallas as pl
from jax.experimental.pallas import tpu as pltpu


def _round_up(x, m):
    return (x + m - 1) // m * m


def _lstm_gmm_kernel(x_ref, w_ref, b_ref, wg_ref, bg_ref, out_ref, *,
                     seq_len, num_layers, h_pad, x_pad):
    """Whole sequence (all time steps, all LSTM layers + gmm head) in one call.

    x_ref  : (T, BP, XP)        padded inputs [actions | states | 0...]
    w_ref  : (L, XP+HP, 4*HP)   fused [W_ih^T ; W_hh^T] per layer; each gate's
                                H columns live in a 128-lane block (i, f, g, o)
    b_ref  : (L, BP, 4*HP)      b_ih + b_hh, pre-broadcast over batch sublanes
    wg_ref : (HP, GP)           gmm_linear weight (transposed, zero padded)
    bg_ref : (BP, GP)           gmm_linear bias (pre-broadcast, zero padded)
    out_ref: (T, BP, GP)        lane-dense gmm outputs, single HBM writeback
    """
    L, HP, XP = num_layers, h_pad, x_pad
    BP = x_ref.shape[1]

    # (h, c) carries flow as traced values across the statically unrolled time
    # loop; zero-init matches the torch module's init_hidden().
    # TODO(synk): for long sequences switch to lax.fori_loop / a chunked grid.
    h = [jnp.zeros((BP, HP), jnp.float32) for _ in range(L)]
    c = [jnp.zeros((BP, HP), jnp.float32) for _ in range(L)]

    for t in range(seq_len):
        inp = x_ref[t]                                        # (BP, XP)
        for l in range(L):
            # One fused MXU dot per layer: [x | h_prev] @ [W_ih^T ; W_hh^T].
            xcat = jnp.concatenate([inp, h[l]], axis=-1)      # (BP, XP+HP)
            gates = jnp.dot(xcat, w_ref[l],
                            preferred_element_type=jnp.float32) + b_ref[l]
            # Gate blocks are 128-lane aligned -> plain lane-dense VPU/EUP ops.
            # PyTorch LSTM gate order: input, forget, cell(g), output.
            i_g = jax.nn.sigmoid(gates[:, 0 * HP:1 * HP])
            f_g = jax.nn.sigmoid(gates[:, 1 * HP:2 * HP])
            g_g = jnp.tanh(gates[:, 2 * HP:3 * HP])
            o_g = jax.nn.sigmoid(gates[:, 3 * HP:4 * HP])
            c[l] = f_g * c[l] + i_g * g_g
            h[l] = o_g * jnp.tanh(c[l])
            inp = h[l] if XP == HP else jnp.pad(h[l], ((0, 0), (0, XP - HP)))
        # Lane-dense (BP, GP) store into the resident output block.
        out_ref[t] = (jnp.dot(h[L - 1], wg_ref[...],
                              preferred_element_type=jnp.float32)
                      + bg_ref[...])


def simulated_world_model_forward(actions, cur_states, params, *,
                                  num_gaussians, state_dim,
                                  lstm_num_hidden_layers, lstm_num_hiddens):
    """Equivalent of SimulatedWorldModel.forward with zero initial hidden."""
    T, B, _ = actions.shape
    X = jnp.concatenate([actions, cur_states], axis=-1).astype(jnp.float32)
    D_in = X.shape[-1]
    L = lstm_num_hidden_layers
    H = lstm_num_hiddens
    Gout = state_dim * num_gaussians + 1

    HP = _round_up(H, 128)              # per-gate lane padding
    XP = _round_up(max(D_in, H), 128)   # uniform per-layer input lane width
    GP = _round_up(Gout, 128)           # lane-dense output width
    BP = _round_up(B, 8)                # sublane padding
    # TODO(synk): on v7x, split a batch-parallel leading grid axis across the
    # two TensorCores once B is non-trivial; B=2 here so a single core is used.

    # ---- host-side packing / zero-padding (one-time param prep) ------------
    Xp = jnp.zeros((T, BP, XP), jnp.float32).at[:, :B, :D_in].set(X)

    def pad_gate_cols(w_t):             # (K, 4H) -> (K, 4*HP), gate-block layout
        K = w_t.shape[0]
        out = jnp.zeros((K, 4 * HP), jnp.float32)
        for k in range(4):
            out = out.at[:, k * HP:k * HP + H].set(w_t[:, k * H:(k + 1) * H])
        return out

    w_layers, b_layers = [], []
    for l in range(L):
        in_dim = D_in if l == 0 else H
        wl = jnp.zeros((XP + HP, 4 * HP), jnp.float32)
        wl = wl.at[:in_dim, :].set(pad_gate_cols(params["w_ih"][l].T))
        wl = wl.at[XP:XP + H, :].set(pad_gate_cols(params["w_hh"][l].T))
        w_layers.append(wl)
        b = params["b_ih"][l] + params["b_hh"][l]            # (4H,)
        bl = jnp.zeros((4 * HP,), jnp.float32)
        for k in range(4):
            bl = bl.at[k * HP:k * HP + H].set(b[k * H:(k + 1) * H])
        b_layers.append(jnp.broadcast_to(bl, (BP, 4 * HP)))
    W = jnp.stack(w_layers)                                  # (L, XP+HP, 4HP)
    Bb = jnp.stack(b_layers)                                 # (L, BP, 4HP)

    Wg = jnp.zeros((HP, GP), jnp.float32).at[:H, :Gout].set(params["w_gmm"].T)
    bg = jnp.zeros((GP,), jnp.float32).at[:Gout].set(params["b_gmm"])
    Bg = jnp.broadcast_to(bg, (BP, GP))
    # ------------------------------------------------------------------------

    kernel = functools.partial(_lstm_gmm_kernel, seq_len=T, num_layers=L,
                               h_pad=HP, x_pad=XP)

    out = pl.pallas_call(
        kernel,
        out_shape=jax.ShapeDtypeStruct((T, BP, GP), jnp.float32),
        grid_spec=pltpu.PrefetchScalarGridSpec(
            num_scalar_prefetch=0,
            grid=(1,),   # whole recurrence inside a single grid step
            in_specs=[
                pl.BlockSpec((T, BP, XP), lambda i: (0, 0, 0)),
                pl.BlockSpec((L, XP + HP, 4 * HP), lambda i: (0, 0, 0)),
                pl.BlockSpec((L, BP, 4 * HP), lambda i: (0, 0, 0)),
                pl.BlockSpec((HP, GP), lambda i: (0, 0)),
                pl.BlockSpec((BP, GP), lambda i: (0, 0)),
            ],
            out_specs=pl.BlockSpec((T, BP, GP), lambda i: (0, 0, 0)),
        ),
        compiler_params=pltpu.CompilerParams(
            dimension_semantics=("arbitrary",)),
    )(Xp, W, Bb, Wg, Bg)

    gmm_outs = out[:, :B, :Gout]                             # strip padding
    mus = gmm_outs[:, :, :-1].reshape(T, B, num_gaussians, state_dim)
    rewards = gmm_outs[:, :, -1]
    # TODO(synk): the torch module also stores the updated (h, c) in
    # self.hidden as a side effect; only (mus, rewards) are returned here.
    return mus, rewards


def init_params(key, action_dim, state_dim, num_gaussians, L, H):
    """Deterministic N(0,1) init mirroring init_weight() shapes."""
    D_in = action_dim + state_dim
    Gout = state_dim * num_gaussians + 1
    keys = jax.random.split(key, 4 * L + 2)
    w_ih, w_hh, b_ih, b_hh = [], [], [], []
    for l in range(L):
        in_dim = D_in if l == 0 else H
        w_ih.append(jax.random.normal(keys[4 * l + 0], (4 * H, in_dim), jnp.float32))
        w_hh.append(jax.random.normal(keys[4 * l + 1], (4 * H, H), jnp.float32))
        b_ih.append(jax.random.normal(keys[4 * l + 2], (4 * H,), jnp.float32))
        b_hh.append(jax.random.normal(keys[4 * l + 3], (4 * H,), jnp.float32))
    w_gmm = jax.random.normal(keys[-2], (Gout, H), jnp.float32)
    b_gmm = jax.random.normal(keys[-1], (Gout,), jnp.float32)
    return dict(w_ih=w_ih, w_hh=w_hh, b_ih=b_ih, b_hh=b_hh,
                w_gmm=w_gmm, b_gmm=b_gmm)


def forward_ref(actions, cur_states, params, *, num_gaussians, state_dim, L, H):
    """Pure-JAX reference (torch nn.LSTM semantics, default matmul precision)."""
    T, B, _ = actions.shape
    inp = jnp.concatenate([actions, cur_states], axis=-1).astype(jnp.float32)
    for l in range(L):
        w_ih, w_hh = params["w_ih"][l], params["w_hh"][l]
        b = params["b_ih"][l] + params["b_hh"][l]

        def step(carry, x_t, w_ih=w_ih, w_hh=w_hh, b=b):
            h, c = carry
            gates = jnp.dot(x_t, w_ih.T) + jnp.dot(h, w_hh.T) + b
            i = jax.nn.sigmoid(gates[:, 0 * H:1 * H])
            f = jax.nn.sigmoid(gates[:, 1 * H:2 * H])
            g = jnp.tanh(gates[:, 2 * H:3 * H])
            o = jax.nn.sigmoid(gates[:, 3 * H:4 * H])
            c = f * c + i * g
            h = o * jnp.tanh(c)
            return (h, c), h

        init = (jnp.zeros((B, H), jnp.float32), jnp.zeros((B, H), jnp.float32))
        _, inp = lax.scan(step, init, inp)
    gmm = jnp.dot(inp, params["w_gmm"].T) + params["b_gmm"]
    mus = gmm[:, :, :-1].reshape(T, B, num_gaussians, state_dim)
    rewards = gmm[:, :, -1]
    return mus, rewards


if __name__ == "__main__":
    action_dim, state_dim = 4, 5
    num_gaussians = 3
    lstm_num_hidden_layers = 2
    lstm_num_hiddens = 32
    seq_len, batch = 8, 2

    key = jax.random.PRNGKey(0)
    k_a, k_s, k_p = jax.random.split(key, 3)
    actions = jax.random.normal(k_a, (seq_len, batch, action_dim), jnp.float32)
    cur_states = jax.random.normal(k_s, (seq_len, batch, state_dim), jnp.float32)
    params = init_params(k_p, action_dim, state_dim, num_gaussians,
                         lstm_num_hidden_layers, lstm_num_hiddens)

    mus, rewards = simulated_world_model_forward(
        actions, cur_states, params,
        num_gaussians=num_gaussians, state_dim=state_dim,
        lstm_num_hidden_layers=lstm_num_hidden_layers,
        lstm_num_hiddens=lstm_num_hiddens)
    jax.block_until_ready((mus, rewards))

    mus_ref, rewards_ref = forward_ref(
        actions, cur_states, params,
        num_gaussians=num_gaussians, state_dim=state_dim,
        L=lstm_num_hidden_layers, H=lstm_num_hiddens)

    assert mus.shape == (seq_len, batch, num_gaussians, state_dim)
    assert rewards.shape == (seq_len, batch)
    # Both paths use default (bf16-on-MXU) matmul precision -> tight agreement.
    assert jnp.allclose(mus, mus_ref, atol=1e-2, rtol=1e-2), \
        float(jnp.max(jnp.abs(mus - mus_ref)))
    assert jnp.allclose(rewards, rewards_ref, atol=1e-2, rtol=1e-2), \
        float(jnp.max(jnp.abs(rewards - rewards_ref)))
    print("KERNEL_OK")
</pallas_src>

<mosaic_0001>
module attributes {stable_mosaic.version = 11 : i64} {
  func.func @_lstm_gmm_kernel(%arg0: i32, %arg1: memref<8x8x128xf32, #tpu.memory_space<vmem>>, %arg2: memref<2x256x512xf32, #tpu.memory_space<vmem>>, %arg3: memref<2x8x512xf32, #tpu.memory_space<vmem>>, %arg4: memref<128x128xf32, #tpu.memory_space<vmem>>, %arg5: memref<8x128xf32, #tpu.memory_space<vmem>>, %arg6: memref<8x8x128xf32, #tpu.memory_space<vmem>>) attributes {dimension_semantics = [#tpu.dimension_semantics<arbitrary>], iteration_bounds = array<i64: 1>, scalar_prefetch = 0 : i64, scratch_operands = 0 : i64, tpu.core_type = #tpu.core_type<tc>, window_params = [{pipeline_mode = #tpu.pipeline_mode<synchronous>, transform_indices = @transform_0, window_bounds = array<i64: 8, 8, 128>}, {pipeline_mode = #tpu.pipeline_mode<synchronous>, transform_indices = @transform_1, window_bounds = array<i64: 2, 256, 512>}, {pipeline_mode = #tpu.pipeline_mode<synchronous>, transform_indices = @transform_2, window_bounds = array<i64: 2, 8, 512>}, {pipeline_mode = #tpu.pipeline_mode<synchronous>, transform_indices = @transform_3, window_bounds = array<i64: 128, 128>}, {pipeline_mode = #tpu.pipeline_mode<synchronous>, transform_indices = @transform_4, window_bounds = array<i64: 8, 128>}, {pipeline_mode = #tpu.pipeline_mode<synchronous>, transform_indices = @transform_5, window_bounds = array<i64: 8, 8, 128>}]} {
    %cst = arith.constant 0.000000e+00 : f32
    %0 = vector.broadcast %cst : f32 to vector<8x128xf32>
    %cst_0 = arith.constant 0.000000e+00 : f32
    %1 = vector.broadcast %cst_0 : f32 to vector<8x128xf32>
    %cst_1 = arith.constant 0.000000e+00 : f32
    %2 = vector.broadcast %cst_1 : f32 to vector<8x128xf32>
    %cst_2 = arith.constant 0.000000e+00 : f32
    %3 = vector.broadcast %cst_2 : f32 to vector<8x128xf32>
    %c0 = arith.constant 0 : index
    %c0_3 = arith.constant 0 : index
    %c0_4 = arith.constant 0 : index
    %4 = vector.load %arg1[%c0, %c0_3, %c0_4] : memref<8x8x128xf32, #tpu.memory_space<vmem>>, vector<1x8x128xf32>
    %5 = vector.shape_cast %4 : vector<1x8x128xf32> to vector<8x128xf32>
    %6 = tpu.concatenate %5, %0 in 1 : vector<8x128xf32>, vector<8x128xf32> -> vector<8x256xf32>
    %c0_5 = arith.constant 0 : index
    %c0_6 = arith.constant 0 : index
    %c0_7 = arith.constant 0 : index
    %7 = vector.load %arg2[%c0_5, %c0_6, %c0_7] : memref<2x256x512xf32, #tpu.memory_space<vmem>>, vector<1x256x512xf32>
    %8 = vector.shape_cast %7 : vector<1x256x512xf32> to vector<256x512xf32>
    %cst_8 = arith.constant dense<0.000000e+00> : vector<8x512xf32>
    %9 = tpu.matmul %6, %8, %cst_8 {dimension_numbers = #tpu.dot_dimension_numbers<[1], [0], [0], [1], [0, 0, 1, 1], [], []>} : vector<8x256xf32>, vector<256x512xf32>, vector<8x512xf32> -> vector<8x512xf32>
    %c0_9 = arith.constant 0 : index
    %c0_10 = arith.constant 0 : index
    %c0_11 = arith.constant 0 : index
    %10 = vector.load %arg3[%c0_9, %c0_10, %c0_11] : memref<2x8x512xf32, #tpu.memory_space<vmem>>, vector<1x8x512xf32>
    %11 = vector.shape_cast %10 : vector<1x8x512xf32> to vector<8x512xf32>
    %12 = arith.addf %9, %11 : vector<8x512xf32>
    %13 = vector.extract_strided_slice %12 {offsets = [0, 0], sizes = [8, 128], strides = [1, 1]} : vector<8x512xf32> to vector<8x128xf32>
    %14 = arith.negf %13 : vector<8x128xf32>
    %15 = math.exp %14 : vector<8x128xf32>
    %cst_12 = arith.constant 1.000000e+00 : f32
    %16 = vector.broadcast %cst_12 : f32 to vector<8x128xf32>
    %17 = arith.addf %16, %15 : vector<8x128xf32>
    %18 = arith.divf %16, %17 : vector<8x128xf32>
    %19 = vector.extract_strided_slice %12 {offsets = [0, 128], sizes = [8, 128], strides = [1, 1]} : vector<8x512xf32> to vector<8x128xf32>
    %20 = arith.negf %19 : vector<8x128xf32>
    %21 = math.exp %20 : vector<8x128xf32>
    %cst_13 = arith.constant 1.000000e+00 : f32
    %22 = vector.broadcast %cst_13 : f32 to vector<8x128xf32>
    %23 = arith.addf %22, %21 : vector<8x128xf32>
    %24 = arith.divf %22, %23 : vector<8x128xf32>
    %25 = vector.extract_strided_slice %12 {offsets = [0, 256], sizes = [8, 128], strides = [1, 1]} : vector<8x512xf32> to vector<8x128xf32>
    %26 = math.tanh %25 : vector<8x128xf32>
    %27 = vector.extract_strided_slice %12 {offsets = [0, 384], sizes = [8, 128], strides = [1, 1]} : vector<8x512xf32> to vector<8x128xf32>
    %28 = arith.negf %27 : vector<8x128xf32>
    %29 = math.exp %28 : vector<8x128xf32>
    %cst_14 = arith.constant 1.000000e+00 : f32
    %30 = vector.broadcast %cst_14 : f32 to vector<8x128xf32>
    %31 = arith.addf %30, %29 : vector<8x128xf32>
    %32 = arith.divf %30, %31 : vector<8x128xf32>
    %33 = arith.mulf %24, %2 : vector<8x128xf32>
    %34 = arith.mulf %18, %26 : vector<8x128xf32>
    %35 = arith.addf %33, %34 : vector<8x128xf32>
    %36 = math.tanh %35 : vector<8x128xf32>
    %37 = arith.mulf %32, %36 : vector<8x128xf32>
    %38 = tpu.concatenate %37, %1 in 1 : vector<8x128xf32>, vector<8x128xf32> -> vector<8x256xf32>
    %c1 = arith.constant 1 : index
    %c0_15 = arith.constant 0 : index
    %c0_16 = arith.constant 0 : index
    %39 = vector.load %arg2[%c1, %c0_15, %c0_16] : memref<2x256x512xf32, #tpu.memory_space<vmem>>, vector<1x256x512xf32>
    %40 = vector.shape_cast %39 : vector<1x256x512xf32> to vector<256x512xf32>
    %cst_17 = arith.constant dense<0.000000e+00> : vector<8x512xf32>
    %41 = tpu.matmul %38, %40, %cst_17 {dimension_numbers = #tpu.dot_dimension_numbers<[1], [0], [0], [1], [0, 0, 1, 1], [], []>} : vector<8x256xf32>, vector<256x512xf32>, vector<8x512xf32> -> vector<8x512xf32>
    %c1_18 = arith.constant 1 : index
    %c0_19 = arith.constant 0 : index
    %c0_20 = arith.constant 0 : index
    %42 = vector.load %arg3[%c1_18, %c0_19, %c0_20] : memref<2x8x512xf32, #tpu.memory_space<vmem>>, vector<1x8x512xf32>
    %43 = vector.shape_cast %42 : vector<1x8x512xf32> to vector<8x512xf32>
    %44 = arith.addf %41, %43 : vector<8x512xf32>
    %45 = vector.extract_strided_slice %44 {offsets = [0, 0], sizes = [8, 128], strides = [1, 1]} : vector<8x512xf32> to vector<8x128xf32>
    %46 = arith.negf %45 : vector<8x128xf32>
    %47 = math.exp %46 : vector<8x128xf32>
    %cst_21 = arith.constant 1.000000e+00 : f32
    %48 = vector.broadcast %cst_21 : f32 to vector<8x128xf32>
    %49 = arith.addf %48, %47 : vector<8x128xf32>
    %50 = arith.divf %48, %49 : vector<8x128xf32>
    %51 = vector.extract_strided_slice %44 {offsets = [0, 128], sizes = [8, 128], strides = [1, 1]} : vector<8x512xf32> to vector<8x128xf32>
    %52 = arith.negf %51 : vector<8x128xf32>
    %53 = math.exp %52 : vector<8x128xf32>
    %cst_22 = arith.constant 1.000000e+00 : f32
    %54 = vector.broadcast %cst_22 : f32 to vector<8x128xf32>
    %55 = arith.addf %54, %53 : vector<8x128xf32>
    %56 = arith.divf %54, %55 : vector<8x128xf32>
    %57 = vector.extract_strided_slice %44 {offsets = [0, 256], sizes = [8, 128], strides = [1, 1]} : vector<8x512xf32> to vector<8x128xf32>
    %58 = math.tanh %57 : vector<8x128xf32>
    %59 = vector.extract_strided_slice %44 {offsets = [0, 384], sizes = [8, 128], strides = [1, 1]} : vector<8x512xf32> to vector<8x128xf32>
    %60 = arith.negf %59 : vector<8x128xf32>
    %61 = math.exp %60 : vector<8x128xf32>
    %cst_23 = arith.constant 1.000000e+00 : f32
    %62 = vector.broadcast %cst_23 : f32 to vector<8x128xf32>
    %63 = arith.addf %62, %61 : vector<8x128xf32>
    %64 = arith.divf %62, %63 : vector<8x128xf32>
    %65 = arith.mulf %56, %3 : vector<8x128xf32>
    %66 = arith.mulf %50, %58 : vector<8x128xf32>
    %67 = arith.addf %65, %66 : vector<8x128xf32>
    %68 = math.tanh %67 : vector<8x128xf32>
    %69 = arith.mulf %64, %68 : vector<8x128xf32>
    %c0_24 = arith.constant 0 : index
    %c0_25 = arith.constant 0 : index
    %70 = vector.load %arg4[%c0_24, %c0_25] : memref<128x128xf32, #tpu.memory_space<vmem>>, vector<128x128xf32>
    %cst_26 = arith.constant dense<0.000000e+00> : vector<8x128xf32>
    %71 = tpu.matmul %69, %70, %cst_26 {dimension_numbers = #tpu.dot_dimension_numbers<[1], [0], [0], [1], [0, 0, 1, 1], [], []>} : vector<8x128xf32>, vector<128x128xf32>, vector<8x128xf32> -> vector<8x128xf32>
    %c0_27 = arith.constant 0 : index
    %c0_28 = arith.constant 0 : index
    %72 = vector.load %arg5[%c0_27, %c0_28] : memref<8x128xf32, #tpu.memory_space<vmem>>, vector<8x128xf32>
    %73 = arith.addf %71, %72 : vector<8x128xf32>
    %c0_29 = arith.constant 0 : index
    %c0_30 = arith.constant 0 : index
    %c0_31 = arith.constant 0 : index
    %74 = vector.load %arg6[%c0_29, %c0_30, %c0_31] : memref<8x8x128xf32, #tpu.memory_space<vmem>>, vector<1x8x128xf32>
    %75 = vector.shape_cast %74 : vector<1x8x128xf32> to vector<8x128xf32>
    %76 = vector.shape_cast %73 : vector<8x128xf32> to vector<1x8x128xf32>
    tpu.vector_store %arg6[%c0_29, %c0_30, %c0_31], %76 {strides = array<i32>} : memref<8x8x128xf32, #tpu.memory_space<vmem>>, vector<1x8x128xf32>,
    %c1_32 = arith.constant 1 : index
    %c0_33 = arith.constant 0 : index
    %c0_34 = arith.constant 0 : index
    %77 = vector.load %arg1[%c1_32, %c0_33, %c0_34] : memref<8x8x128xf32, #tpu.memory_space<vmem>>, vector<1x8x128xf32>
    %78 = vector.shape_cast %77 : vector<1x8x128xf32> to vector<8x128xf32>
    %79 = tpu.concatenate %78, %37 in 1 : vector<8x128xf32>, vector<8x128xf32> -> vector<8x256xf32>
    %c0_35 = arith.constant 0 : index
    %c0_36 = arith.constant 0 : index
    %c0_37 = arith.constant 0 : index
    %80 = vector.load %arg2[%c0_35, %c0_36, %c0_37] : memref<2x256x512xf32, #tpu.memory_space<vmem>>, vector<1x256x512xf32>
    %81 = vector.shape_cast %80 : vector<1x256x512xf32> to vector<256x512xf32>
    %cst_38 = arith.constant dense<0.000000e+00> : vector<8x512xf32>
    %82 = tpu.matmul %79, %81, %cst_38 {dimension_numbers = #tpu.dot_dimension_numbers<[1], [0], [0], [1], [0, 0, 1, 1], [], []>} : vector<8x256xf32>, vector<256x512xf32>, vector<8x512xf32> -> vector<8x512xf32>
    %c0_39 = arith.constant 0 : index
    %c0_40 = arith.constant 0 : index
    %c0_41 = arith.constant 0 : index
    %83 = vector.load %arg3[%c0_39, %c0_40, %c0_41] : memref<2x8x512xf32, #tpu.memory_space<vmem>>, vector<1x8x512xf32>
    %84 = vector.shape_cast %83 : vector<1x8x512xf32> to vector<8x512xf32>
    %85 = arith.addf %82, %84 : vector<8x512xf32>
    %86 = vector.extract_strided_slice %85 {offsets = [0, 0], sizes = [8, 128], strides = [1, 1]} : vector<8x512xf32> to vector<8x128xf32>
    %87 = arith.negf %86 : vector<8x128xf32>
    %88 = math.exp %87 : vector<8x128xf32>
    %cst_42 = arith.constant 1.000000e+00 : f32
    %89 = vector.broadcast %cst_42 : f32 to vector<8x128xf32>
    %90 = arith.addf %89, %88 : vector<8x128xf32>
    %91 = arith.divf %89, %90 : vector<8x128xf32>
    %92 = vector.extract_strided_slice %85 {offsets = [0, 128], sizes = [8, 128], strides = [1, 1]} : vector<8x512xf32> to vector<8x128xf32>
    %93 = arith.negf %92 : vector<8x128xf32>
    %94 = math.exp %93 : vector<8x128xf32>
    %cst_43 = arith.constant 1.000000e+00 : f32
    %95 = vector.broadcast %cst_43 : f32 to vector<8x128xf32>
    %96 = arith.addf %95, %94 : vector<8x128xf32>
    %97 = arith.divf %95, %96 : vector<8x128xf32>
    %98 = vector.extract_strided_slice %85 {offsets = [0, 256], sizes = [8, 128], strides = [1, 1]} : vector<8x512xf32> to vector<8x128xf32>
    %99 = math.tanh %98 : vector<8x128xf32>
    %100 = vector.extract_strided_slice %85 {offsets = [0, 384], sizes = [8, 128], strides = [1, 1]} : vector<8x512xf32> to vector<8x128xf32>
    %101 = arith.negf %100 : vector<8x128xf32>
    %102 = math.exp %101 : vector<8x128xf32>
    %cst_44 = arith.constant 1.000000e+00 : f32
    %103 = vector.broadcast %cst_44 : f32 to vector<8x128xf32>
    %104 = arith.addf %103, %102 : vector<8x128xf32>
    %105 = arith.divf %103, %104 : vector<8x128xf32>
    %106 = arith.mulf %97, %35 : vector<8x128xf32>
    %107 = arith.mulf %91, %99 : vector<8x128xf32>
    %108 = arith.addf %106, %107 : vector<8x128xf32>
    %109 = math.tanh %108 : vector<8x128xf32>
    %110 = arith.mulf %105, %109 : vector<8x128xf32>
    %111 = tpu.concatenate %110, %69 in 1 : vector<8x128xf32>, vector<8x128xf32> -> vector<8x256xf32>
    %c1_45 = arith.constant 1 : index
    %c0_46 = arith.constant 0 : index
    %c0_47 = arith.constant 0 : index
    %112 = vector.load %arg2[%c1_45, %c0_46, %c0_47] : memref<2x256x512xf32, #tpu.memory_space<vmem>>, vector<1x256x512xf32>
    %113 = vector.shape_cast %112 : vector<1x256x512xf32> to vector<256x512xf32>
    %cst_48 = arith.constant dense<0.000000e+00> : vector<8x512xf32>
    %114 = tpu.matmul %111, %113, %cst_48 {dimension_numbers = #tpu.dot_dimension_numbers<[1], [0], [0], [1], [0, 0, 1, 1], [], []>} : vector<8x256xf32>, vector<256x512xf32>, vector<8x512xf32> -> vector<8x512xf32>
    %c1_49 = arith.constant 1 : index
    %c0_50 = arith.constant 0 : index
    %c0_51 = arith.constant 0 : index
    %115 = vector.load %arg3[%c1_49, %c0_50, %c0_51] : memref<2x8x512xf32, #tpu.memory_space<vmem>>, vector<1x8x512xf32>
    %116 = vector.shape_cast %115 : vector<1x8x512xf32> to vector<8x512xf32>
    %117 = arith.addf %114, %116 : vector<8x512xf32>
    %118 = vector.extract_strided_slice %117 {offsets = [0, 0], sizes = [8, 128], strides = [1, 1]} : vector<8x512xf32> to vector<8x128xf32>
    %119 = arith.negf %118 : vector<8x128xf32>
    %120 = math.exp %119 : vector<8x128xf32>
    %cst_52 = arith.constant 1.000000e+00 : f32
    %121 = vector.broadcast %cst_52 : f32 to vector<8x128xf32>
    %122 = arith.addf %121, %120 : vector<8x128xf32>
    %123 = arith.divf %121, %122 : vector<8x128xf32>
    %124 = vector.extract_strided_slice %117 {offsets = [0, 128], sizes = [8, 128], strides = [1, 1]} : vector<8x512xf32> to vector<8x128xf32>
    %125 = arith.negf %124 : vector<8x128xf32>
    %126 = math.exp %125 : vector<8x128xf32>
    %cst_53 = arith.constant 1.000000e+00 : f32
    %127 = vector.broadcast %cst_53 : f32 to vector<8x128xf32>
    %128 = arith.addf %127, %126 : vector<8x128xf32>
    %129 = arith.divf %127, %128 : vector<8x128xf32>
    %130 = vector.extract_strided_slice %117 {offsets = [0, 256], sizes = [8, 128], strides = [1, 1]} : vector<8x512xf32> to vector<8x128xf32>
    %131 = math.tanh %130 : vector<8x128xf32>
    %132 = vector.extract_strided_slice %117 {offsets = [0, 384], sizes = [8, 128], strides = [1, 1]} : vector<8x512xf32> to vector<8x128xf32>
    %133 = arith.negf %132 : vector<8x128xf32>
    %134 = math.exp %133 : vector<8x128xf32>
    %cst_54 = arith.constant 1.000000e+00 : f32
    %135 = vector.broadcast %cst_54 : f32 to vector<8x128xf32>
    %136 = arith.addf %135, %134 : vector<8x128xf32>
    %137 = arith.divf %135, %136 : vector<8x128xf32>
    %138 = arith.mulf %129, %67 : vector<8x128xf32>
    %139 = arith.mulf %123, %131 : vector<8x128xf32>
    %140 = arith.addf %138, %139 : vector<8x128xf32>
    %141 = math.tanh %140 : vector<8x128xf32>
    %142 = arith.mulf %137, %141 : vector<8x128xf32>
    %c0_55 = arith.constant 0 : index
    %c0_56 = arith.constant 0 : index
    %143 = vector.load %arg4[%c0_55, %c0_56] : memref<128x128xf32, #tpu.memory_space<vmem>>, vector<128x128xf32>
    %cst_57 = arith.constant dense<0.000000e+00> : vector<8x128xf32>
    %144 = tpu.matmul %142, %143, %cst_57 {dimension_numbers = #tpu.dot_dimension_numbers<[1], [0], [0], [1], [0, 0, 1, 1], [], []>} : vector<8x128xf32>, vector<128x128xf32>, vector<8x128xf32> -> vector<8x128xf32>
    %c0_58 = arith.constant 0 : index
    %c0_59 = arith.constant 0 : index
    %145 = vector.load %arg5[%c0_58, %c0_59] : memref<8x128xf32, #tpu.memory_space<vmem>>, vector<8x128xf32>
    %146 = arith.addf %144, %145 : vector<8x128xf32>
    %c1_60 = arith.constant 1 : index
    %c0_61 = arith.constant 0 : index
    %c0_62 = arith.constant 0 : index
    %147 = vector.load %arg6[%c1_60, %c0_61, %c0_62] : memref<8x8x128xf32, #tpu.memory_space<vmem>>, vector<1x8x128xf32>
    %148 = vector.shape_cast %147 : vector<1x8x128xf32> to vector<8x128xf32>
    %149 = vector.shape_cast %146 : vector<8x128xf32> to vector<1x8x128xf32>
    tpu.vector_store %arg6[%c1_60, %c0_61, %c0_62], %149 {strides = array<i32>} : memref<8x8x128xf32, #tpu.memory_space<vmem>>, vector<1x8x128xf32>,
    %c2 = arith.constant 2 : index
    %c0_63 = arith.constant 0 : index
    %c0_64 = arith.constant 0 : index
    %150 = vector.load %arg1[%c2, %c0_63, %c0_64] : memref<8x8x128xf32, #tpu.memory_space<vmem>>, vector<1x8x128xf32>
    %151 = vector.shape_cast %150 : vector<1x8x128xf32> to vector<8x128xf32>
    %152 = tpu.concatenate %151, %110 in 1 : vector<8x128xf32>, vector<8x128xf32> -> vector<8x256xf32>
    %c0_65 = arith.constant 0 : index
    %c0_66 = arith.constant 0 : index
    %c0_67 = arith.constant 0 : index
    %153 = vector.load %arg2[%c0_65, %c0_66, %c0_67] : memref<2x256x512xf32, #tpu.memory_space<vmem>>, vector<1x256x512xf32>
    %154 = vector.shape_cast %153 : vector<1x256x512xf32> to vector<256x512xf32>
    %cst_68 = arith.constant dense<0.000000e+00> : vector<8x512xf32>
    %155 = tpu.matmul %152, %154, %cst_68 {dimension_numbers = #tpu.dot_dimension_numbers<[1], [0], [0], [1], [0, 0, 1, 1], [], []>} : vector<8x256xf32>, vector<256x512xf32>, vector<8x512xf32> -> vector<8x512xf32>
    %c0_69 = arith.constant 0 : index
    %c0_70 = arith.constant 0 : index
    %c0_71 = arith.constant 0 : index
    %156 = vector.load %arg3[%c0_69, %c0_70, %c0_71] : memref<2x8x512xf32, #tpu.memory_space<vmem>>, vector<1x8x512xf32>
    %157 = vector.shape_cast %156 : vector<1x8x512xf32> to vector<8x512xf32>
    %158 = arith.addf %155, %157 : vector<8x512xf32>
    %159 = vector.extract_strided_slice %158 {offsets = [0, 0], sizes = [8, 128], strides = [1, 1]} : vector<8x512xf32> to vector<8x128xf32>
    %160 = arith.negf %159 : vector<8x128xf32>
    %161 = math.exp %160 : vector<8x128xf32>
    %cst_72 = arith.constant 1.000000e+00 : f32
    %162 = vector.broadcast %cst_72 : f32 to vector<8x128xf32>
    %163 = arith.addf %162, %161 : vector<8x128xf32>
    %164 = arith.divf %162, %163 : vector<8x128xf32>
    %165 = vector.extract_strided_slice %158 {offsets = [0, 128], sizes = [8, 128], strides = [1, 1]} : vector<8x512xf32> to vector<8x128xf32>
    %166 = arith.negf %165 : vector<8x128xf32>
    %167 = math.exp %166 : vector<8x128xf32>
    %cst_73 = arith.constant 1.000000e+00 : f32
    %168 = vector.broadcast %cst_73 : f32 to vector<8x128xf32>
    %169 = arith.addf %168, %167 : vector<8x128xf32>
    %170 = arith.divf %168, %169 : vector<8x128xf32>
    %171 = vector.extract_strided_slice %158 {offsets = [0, 256], sizes = [8, 128], strides = [1, 1]} : vector<8x512xf32> to vector<8x128xf32>
    %172 = math.tanh %171 : vector<8x128xf32>
    %173 = vector.extract_strided_slice %158 {offsets = [0, 384], sizes = [8, 128], strides = [1, 1]} : vector<8x512xf32> to vector<8x128xf32>
    %174 = arith.negf %173 : vector<8x128xf32>
    %175 = math.exp %174 : vector<8x128xf32>
    %cst_74 = arith.constant 1.000000e+00 : f32
    %176 = vector.broadcast %cst_74 : f32 to vector<8x128xf32>
    %177 = arith.addf %176, %175 : vector<8x128xf32>
    %178 = arith.divf %176, %177 : vector<8x128xf32>
    %179 = arith.mulf %170, %108 : vector<8x128xf32>
    %180 = arith.mulf %164, %172 : vector<8x128xf32>
    %181 = arith.addf %179, %180 : vector<8x128xf32>
    %182 = math.tanh %181 : vector<8x128xf32>
    %183 = arith.mulf %178, %182 : vector<8x128xf32>
    %184 = tpu.concatenate %183, %142 in 1 : vector<8x128xf32>, vector<8x128xf32> -> vector<8x256xf32>
    %c1_75 = arith.constant 1 : index
    %c0_76 = arith.constant 0 : index
    %c0_77 = arith.constant 0 : index
    %185 = vector.load %arg2[%c1_75, %c0_76, %c0_77] : memref<2x256x512xf32, #tpu.memory_space<vmem>>, vector<1x256x512xf32>
    %186 = vector.shape_cast %185 : vector<1x256x512xf32> to vector<256x512xf32>
    %cst_78 = arith.constant dense<0.000000e+00> : vector<8x512xf32>
    %187 = tpu.matmul %184, %186, %cst_78 {dimension_numbers = #tpu.dot_dimension_numbers<[1], [0], [0], [1], [0, 0, 1, 1], [], []>} : vector<8x256xf32>, vector<256x512xf32>, vector<8x512xf32> -> vector<8x512xf32>
    %c1_79 = arith.constant 1 : index
    %c0_80 = arith.constant 0 : index
    %c0_81 = arith.constant 0 : index
    %188 = vector.load %arg3[%c1_79, %c0_80, %c0_81] : memref<2x8x512xf32, #tpu.memory_space<vmem>>, vector<1x8x512xf32>
    %189 = vector.shape_cast %188 : vector<1x8x512xf32> to vector<8x512xf32>
    %190 = arith.addf %187, %189 : vector<8x512xf32>
    %191 = vector.extract_strided_slice %190 {offsets = [0, 0], sizes = [8, 128], strides = [1, 1]} : vector<8x512xf32> to vector<8x128xf32>
    %192 = arith.negf %191 : vector<8x128xf32>
    %193 = math.exp %192 : vector<8x128xf32>
    %cst_82 = arith.constant 1.000000e+00 : f32
    %194 = vector.broadcast %cst_82 : f32 to vector<8x128xf32>
    %195 = arith.addf %194, %193 : vector<8x128xf32>
    %196 = arith.divf %194, %195 : vector<8x128xf32>
    %197 = vector.extract_strided_slice %190 {offsets = [0, 128], sizes = [8, 128], strides = [1, 1]} : vector<8x512xf32> to vector<8x128xf32>
    %198 = arith.negf %197 : vector<8x128xf32>
    %199 = math.exp %198 : vector<8x128xf32>
    %cst_83 = arith.constant 1.000000e+00 : f32
    %200 = vector.broadcast %cst_83 : f32 to vector<8x128xf32>
    %201 = arith.addf %200, %199 : vector<8x128xf32>
    %202 = arith.divf %200, %201 : vector<8x128xf32>
    %203 = vector.extract_strided_slice %190 {offsets = [0, 256], sizes = [8, 128], strides = [1, 1]} : vector<8x512xf32> to vector<8x128xf32>
    %204 = math.tanh %203 : vector<8x128xf32>
    %205 = vector.extract_strided_slice %190 {offsets = [0, 384], sizes = [8, 128], strides = [1, 1]} : vector<8x512xf32> to vector<8x128xf32>
    %206 = arith.negf %205 : vector<8x128xf32>
    %207 = math.exp %206 : vector<8x128xf32>
    %cst_84 = arith.constant 1.000000e+00 : f32
    %208 = vector.broadcast %cst_84 : f32 to vector<8x128xf32>
    %209 = arith.addf %208, %207 : vector<8x128xf32>
    %210 = arith.divf %208, %209 : vector<8x128xf32>
    %211 = arith.mulf %202, %140 : vector<8x128xf32>
    %212 = arith.mulf %196, %204 : vector<8x128xf32>
    %213 = arith.addf %211, %212 : vector<8x128xf32>
    %214 = math.tanh %213 : vector<8x128xf32>
    %215 = arith.mulf %210, %214 : vector<8x128xf32>
    %c0_85 = arith.constant 0 : index
    %c0_86 = arith.constant 0 : index
    %216 = vector.load %arg4[%c0_85, %c0_86] : memref<128x128xf32, #tpu.memory_space<vmem>>, vector<128x128xf32>
    %cst_87 = arith.constant dense<0.000000e+00> : vector<8x128xf32>
    %217 = tpu.matmul %215, %216, %cst_87 {dimension_numbers = #tpu.dot_dimension_numbers<[1], [0], [0], [1], [0, 0, 1, 1], [], []>} : vector<8x128xf32>, vector<128x128xf32>, vector<8x128xf32> -> vector<8x128xf32>
    %c0_88 = arith.constant 0 : index
    %c0_89 = arith.constant 0 : index
    %218 = vector.load %arg5[%c0_88, %c0_89] : memref<8x128xf32, #tpu.memory_space<vmem>>, vector<8x128xf32>
    %219 = arith.addf %217, %218 : vector<8x128xf32>
    %c2_90 = arith.constant 2 : index
    %c0_91 = arith.constant 0 : index
    %c0_92 = arith.constant 0 : index
    %220 = vector.load %arg6[%c2_90, %c0_91, %c0_92] : memref<8x8x128xf32, #tpu.memory_space<vmem>>, vector<1x8x128xf32>
    %221 = vector.shape_cast %220 : vector<1x8x128xf32> to vector<8x128xf32>
    %222 = vector.shape_cast %219 : vector<8x128xf32> to vector<1x8x128xf32>
    tpu.vector_store %arg6[%c2_90, %c0_91, %c0_92], %222 {strides = array<i32>} : memref<8x8x128xf32, #tpu.memory_space<vmem>>, vector<1x8x128xf32>,
    %c3 = arith.constant 3 : index
    %c0_93 = arith.constant 0 : index
    %c0_94 = arith.constant 0 : index
    %223 = vector.load %arg1[%c3, %c0_93, %c0_94] : memref<8x8x128xf32, #tpu.memory_space<vmem>>, vector<1x8x128xf32>
    %224 = vector.shape_cast %223 : vector<1x8x128xf32> to vector<8x128xf32>
    %225 = tpu.concatenate %224, %183 in 1 : vector<8x128xf32>, vector<8x128xf32> -> vector<8x256xf32>
    %c0_95 = arith.constant 0 : index
    %c0_96 = arith.constant 0 : index
    %c0_97 = arith.constant 0 : index
    %226 = vector.load %arg2[%c0_95, %c0_96, %c0_97] : memref<2x256x512xf32, #tpu.memory_space<vmem>>, vector<1x256x512xf32>
    %227 = vector.shape_cast %226 : vector<1x256x512xf32> to vector<256x512xf32>
    %cst_98 = arith.constant dense<0.000000e+00> : vector<8x512xf32>
    %228 = tpu.matmul %225, %227, %cst_98 {dimension_numbers = #tpu.dot_dimension_numbers<[1], [0], [0], [1], [0, 0, 1, 1], [], []>} : vector<8x256xf32>, vector<256x512xf32>, vector<8x512xf32> -> vector<8x512xf32>
    %c0_99 = arith.constant 0 : index
    %c0_100 = arith.constant 0 : index
    %c0_101 = arith.constant 0 : index
    %229 = vector.load %arg3[%c0_99, %c0_100, %c0_101] : memref<2x8x512xf32, #tpu.memory_space<vmem>>, vector<1x8x512xf32>
    %230 = vector.shape_cast %229 : vector<1x8x512xf32> to vector<8x512xf32>
    %231 = arith.addf %228, %230 : vector<8x512xf32>
    %232 = vector.extract_strided_slice %231 {offsets = [0, 0], sizes = [8, 128], strides = [1, 1]} : vector<8x512xf32> to vector<8x128xf32>
    %233 = arith.negf %232 : vector<8x128xf32>
    %234 = math.exp %233 : vector<8x128xf32>
    %cst_102 = arith.constant 1.000000e+00 : f32
    %235 = vector.broadcast %cst_102 : f32 to vector<8x128xf32>
    %236 = arith.addf %235, %234 : vector<8x128xf32>
    %237 = arith.divf %235, %236 : vector<8x128xf32>
    %238 = vector.extract_strided_slice %231 {offsets = [0, 128], sizes = [8, 128], strides = [1, 1]} : vector<8x512xf32> to vector<8x128xf32>
    %239 = arith.negf %238 : vector<8x128xf32>
    %240 = math.exp %239 : vector<8x128xf32>
    %cst_103 = arith.constant 1.000000e+00 : f32
    %241 = vector.broadcast %cst_103 : f32 to vector<8x128xf32>
    %242 = arith.addf %241, %240 : vector<8x128xf32>
    %243 = arith.divf %241, %242 : vector<8x128xf32>
    %244 = vector.extract_strided_slice %231 {offsets = [0, 256], sizes = [8, 128], strides = [1, 1]} : vector<8x512xf32> to vector<8x128xf32>
    %245 = math.tanh %244 : vector<8x128xf32>
    %246 = vector.extract_strided_slice %231 {offsets = [0, 384], sizes = [8, 128], strides = [1, 1]} : vector<8x512xf32> to vector<8x128xf32>
    %247 = arith.negf %246 : vector<8x128xf32>
    %248 = math.exp %247 : vector<8x128xf32>
    %cst_104 = arith.constant 1.000000e+00 : f32
    %249 = vector.broadcast %cst_104 : f32 to vector<8x128xf32>
    %250 = arith.addf %249, %248 : vector<8x128xf32>
    %251 = arith.divf %249, %250 : vector<8x128xf32>
    %252 = arith.mulf %243, %181 : vector<8x128xf32>
    %253 = arith.mulf %237, %245 : vector<8x128xf32>
    %254 = arith.addf %252, %253 : vector<8x128xf32>
    %255 = math.tanh %254 : vector<8x128xf32>
    %256 = arith.mulf %251, %255 : vector<8x128xf32>
    %257 = tpu.concatenate %256, %215 in 1 : vector<8x128xf32>, vector<8x128xf32> -> vector<8x256xf32>
    %c1_105 = arith.constant 1 : index
    %c0_106 = arith.constant 0 : index
    %c0_107 = arith.constant 0 : index
    %258 = vector.load %arg2[%c1_105, %c0_106, %c0_107] : memref<2x256x512xf32, #tpu.memory_space<vmem>>, vector<1x256x512xf32>
    %259 = vector.shape_cast %258 : vector<1x256x512xf32> to vector<256x512xf32>
    %cst_108 = arith.constant dense<0.000000e+00> : vector<8x512xf32>
    %260 = tpu.matmul %257, %259, %cst_108 {dimension_numbers = #tpu.dot_dimension_numbers<[1], [0], [0], [1], [0, 0, 1, 1], [], []>} : vector<8x256xf32>, vector<256x512xf32>, vector<8x512xf32> -> vector<8x512xf32>
    %c1_109 = arith.constant 1 : index
    %c0_110 = arith.constant 0 : index
    %c0_111 = arith.constant 0 : index
    %261 = vector.load %arg3[%c1_109, %c0_110, %c0_111] : memref<2x8x512xf32, #tpu.memory_space<vmem>>, vector<1x8x512xf32>
    %262 = vector.shape_cast %261 : vector<1x8x512xf32> to vector<8x512xf32>
    %263 = arith.addf %260, %262 : vector<8x512xf32>
    %264 = vector.extract_strided_slice %263 {offsets = [0, 0], sizes = [8, 128], strides = [1, 1]} : vector<8x512xf32> to vector<8x128xf32>
    %265 = arith.negf %264 : vector<8x128xf32>
    %266 = math.exp %265 : vector<8x128xf32>
    %cst_112 = arith.constant 1.000000e+00 : f32
    %267 = vector.broadcast %cst_112 : f32 to vector<8x128xf32>
    %268 = arith.addf %267, %266 : vector<8x128xf32>
    %269 = arith.divf %267, %268 : vector<8x128xf32>
    %270 = vector.extract_strided_slice %263 {offsets = [0, 128], sizes = [8, 128], strides = [1, 1]} : vector<8x512xf32> to vector<8x128xf32>
    %271 = arith.negf %270 : vector<8x128xf32>
    %272 = math.exp %271 : vector<8x128xf32>
    %cst_113 = arith.constant 1.000000e+00 : f32
    %273 = vector.broadcast %cst_113 : f32 to vector<8x128xf32>
    %274 = arith.addf %273, %272 : vector<8x128xf32>
    %275 = arith.divf %273, %274 : vector<8x128xf32>
    %276 = vector.extract_strided_slice %263 {offsets = [0, 256], sizes = [8, 128], strides = [1, 1]} : vector<8x512xf32> to vector<8x128xf32>
    %277 = math.tanh %276 : vector<8x128xf32>
    %278 = vector.extract_strided_slice %263 {offsets = [0, 384], sizes = [8, 128], strides = [1, 1]} : vector<8x512xf32> to vector<8x128xf32>
    %279 = arith.negf %278 : vector<8x128xf32>
    %280 = math.exp %279 : vector<8x128xf32>
    %cst_114 = arith.constant 1.000000e+00 : f32
    %281 = vector.broadcast %cst_114 : f32 to vector<8x128xf32>
    %282 = arith.addf %281, %280 : vector<8x128xf32>
    %283 = arith.divf %281, %282 : vector<8x128xf32>
    %284 = arith.mulf %275, %213 : vector<8x128xf32>
    %285 = arith.mulf %269, %277 : vector<8x128xf32>
    %286 = arith.addf %284, %285 : vector<8x128xf32>
    %287 = math.tanh %286 : vector<8x128xf32>
    %288 = arith.mulf %283, %287 : vector<8x128xf32>
    %c0_115 = arith.constant 0 : index
    %c0_116 = arith.constant 0 : index
    %289 = vector.load %arg4[%c0_115, %c0_116] : memref<128x128xf32, #tpu.memory_space<vmem>>, vector<128x128xf32>
    %cst_117 = arith.constant dense<0.000000e+00> : vector<8x128xf32>
    %290 = tpu.matmul %288, %289, %cst_117 {dimension_numbers = #tpu.dot_dimension_numbers<[1], [0], [0], [1], [0, 0, 1, 1], [], []>} : vector<8x128xf32>, vector<128x128xf32>, vector<8x128xf32> -> vector<8x128xf32>
    %c0_118 = arith.constant 0 : index
    %c0_119 = arith.constant 0 : index
    %291 = vector.load %arg5[%c0_118, %c0_119] : memref<8x128xf32, #tpu.memory_space<vmem>>, vector<8x128xf32>
    %292 = arith.addf %290, %291 : vector<8x128xf32>
    %c3_120 = arith.constant 3 : index
    %c0_121 = arith.constant 0 : index
    %c0_122 = arith.constant 0 : index
    %293 = vector.load %arg6[%c3_120, %c0_121, %c0_122] : memref<8x8x128xf32, #tpu.memory_space<vmem>>, vector<1x8x128xf32>
    %294 = vector.shape_cast %293 : vector<1x8x128xf32> to vector<8x128xf32>
    %295 = vector.shape_cast %292 : vector<8x128xf32> to vector<1x8x128xf32>
    tpu.vector_store %arg6[%c3_120, %c0_121, %c0_122], %295 {strides = array<i32>} : memref<8x8x128xf32, #tpu.memory_space<vmem>>, vector<1x8x128xf32>,
    %c4 = arith.constant 4 : index
    %c0_123 = arith.constant 0 : index
    %c0_124 = arith.constant 0 : index
    %296 = vector.load %arg1[%c4, %c0_123, %c0_124] : memref<8x8x128xf32, #tpu.memory_space<vmem>>, vector<1x8x128xf32>
    %297 = vector.shape_cast %296 : vector<1x8x128xf32> to vector<8x128xf32>
    %298 = tpu.concatenate %297, %256 in 1 : vector<8x128xf32>, vector<8x128xf32> -> vector<8x256xf32>
    %c0_125 = arith.constant 0 : index
    %c0_126 = arith.constant 0 : index
    %c0_127 = arith.constant 0 : index
    %299 = vector.load %arg2[%c0_125, %c0_126, %c0_127] : memref<2x256x512xf32, #tpu.memory_space<vmem>>, vector<1x256x512xf32>
    %300 = vector.shape_cast %299 : vector<1x256x512xf32> to vector<256x512xf32>
    %cst_128 = arith.constant dense<0.000000e+00> : vector<8x512xf32>
    %301 = tpu.matmul %298, %300, %cst_128 {dimension_numbers = #tpu.dot_dimension_numbers<[1], [0], [0], [1], [0, 0, 1, 1], [], []>} : vector<8x256xf32>, vector<256x512xf32>, vector<8x512xf32> -> vector<8x512xf32>
    %c0_129 = arith.constant 0 : index
    %c0_130 = arith.constant 0 : index
    %c0_131 = arith.constant 0 : index
    %302 = vector.load %arg3[%c0_129, %c0_130, %c0_131] : memref<2x8x512xf32, #tpu.memory_space<vmem>>, vector<1x8x512xf32>
    %303 = vector.shape_cast %302 : vector<1x8x512xf32> to vector<8x512xf32>
    %304 = arith.addf %301, %303 : vector<8x512xf32>
    %305 = vector.extract_strided_slice %304 {offsets = [0, 0], sizes = [8, 128], strides = [1, 1]} : vector<8x512xf32> to vector<8x128xf32>
    %306 = arith.negf %305 : vector<8x128xf32>
    %307 = math.exp %306 : vector<8x128xf32>
    %cst_132 = arith.constant 1.000000e+00 : f32
    %308 = vector.broadcast %cst_132 : f32 to vector<8x128xf32>
    %309 = arith.addf %308, %307 : vector<8x128xf32>
    %310 = arith.divf %308, %309 : vector<8x128xf32>
    %311 = vector.extract_strided_slice %304 {offsets = [0, 128], sizes = [8, 128], strides = [1, 1]} : vector<8x512xf32> to vector<8x128xf32>
    %312 = arith.negf %311 : vector<8x128xf32>
    %313 = math.exp %312 : vector<8x128xf32>
    %cst_133 = arith.constant 1.000000e+00 : f32
    %314 = vector.broadcast %cst_133 : f32 to vector<8x128xf32>
    %315 = arith.addf %314, %313 : vector<8x128xf32>
    %316 = arith.divf %314, %315 : vector<8x128xf32>
    %317 = vector.extract_strided_slice %304 {offsets = [0, 256], sizes = [8, 128], strides = [1, 1]} : vector<8x512xf32> to vector<8x128xf32>
    %318 = math.tanh %317 : vector<8x128xf32>
    %319 = vector.extract_strided_slice %304 {offsets = [0, 384], sizes = [8, 128], strides = [1, 1]} : vector<8x512xf32> to vector<8x128xf32>
    %320 = arith.negf %319 : vector<8x128xf32>
    %321 = math.exp %320 : vector<8x128xf32>
    %cst_134 = arith.constant 1.000000e+00 : f32
    %322 = vector.broadcast %cst_134 : f32 to vector<8x128xf32>
    %323 = arith.addf %322, %321 : vector<8x128xf32>
    %324 = arith.divf %322, %323 : vector<8x128xf32>
    %325 = arith.mulf %316, %254 : vector<8x128xf32>
    %326 = arith.mulf %310, %318 : vector<8x128xf32>
    %327 = arith.addf %325, %326 : vector<8x128xf32>
    %328 = math.tanh %327 : vector<8x128xf32>
    %329 = arith.mulf %324, %328 : vector<8x128xf32>
    %330 = tpu.concatenate %329, %288 in 1 : vector<8x128xf32>, vector<8x128xf32> -> vector<8x256xf32>
    %c1_135 = arith.constant 1 : index
    %c0_136 = arith.constant 0 : index
    %c0_137 = arith.constant 0 : index
    %331 = vector.load %arg2[%c1_135, %c0_136, %c0_137] : memref<2x256x512xf32, #tpu.memory_space<vmem>>, vector<1x256x512xf32>
    %332 = vector.shape_cast %331 : vector<1x256x512xf32> to vector<256x512xf32>
    %cst_138 = arith.constant dense<0.000000e+00> : vector<8x512xf32>
    %333 = tpu.matmul %330, %332, %cst_138 {dimension_numbers = #tpu.dot_dimension_numbers<[1], [0], [0], [1], [0, 0, 1, 1], [], []>} : vector<8x256xf32>, vector<256x512xf32>, vector<8x512xf32> -> vector<8x512xf32>
    %c1_139 = arith.constant 1 : index
    %c0_140 = arith.constant 0 : index
    %c0_141 = arith.constant 0 : index
    %334 = vector.load %arg3[%c1_139, %c0_140, %c0_141] : memref<2x8x512xf32, #tpu.memory_space<vmem>>, vector<1x8x512xf32>
    %335 = vector.shape_cast %334 : vector<1x8x512xf32> to vector<8x512xf32>
    %336 = arith.addf %333, %335 : vector<8x512xf32>
    %337 = vector.extract_strided_slice %336 {offsets = [0, 0], sizes = [8, 128], strides = [1, 1]} : vector<8x512xf32> to vector<8x128xf32>
    %338 = arith.negf %337 : vector<8x128xf32>
    %339 = math.exp %338 : vector<8x128xf32>
    %cst_142 = arith.constant 1.000000e+00 : f32
    %340 = vector.broadcast %cst_142 : f32 to vector<8x128xf32>
    %341 = arith.addf %340, %339 : vector<8x128xf32>
    %342 = arith.divf %340, %341 : vector<8x128xf32>
    %343 = vector.extract_strided_slice %336 {offsets = [0, 128], sizes = [8, 128], strides = [1, 1]} : vector<8x512xf32> to vector<8x128xf32>
    %344 = arith.negf %343 : vector<8x128xf32>
    %345 = math.exp %344 : vector<8x128xf32>
    %cst_143 = arith.constant 1.000000e+00 : f32
    %346 = vector.broadcast %cst_143 : f32 to vector<8x128xf32>
    %347 = arith.addf %346, %345 : vector<8x128xf32>
    %348 = arith.divf %346, %347 : vector<8x128xf32>
    %349 = vector.extract_strided_slice %336 {offsets = [0, 256], sizes = [8, 128], strides = [1, 1]} : vector<8x512xf32> to vector<8x128xf32>
    %350 = math.tanh %349 : vector<8x128xf32>
    %351 = vector.extract_strided_slice %336 {offsets = [0, 384], sizes = [8, 128], strides = [1, 1]} : vector<8x512xf32> to vector<8x128xf32>
    %352 = arith.negf %351 : vector<8x128xf32>
    %353 = math.exp %352 : vector<8x128xf32>
    %cst_144 = arith.constant 1.000000e+00 : f32
    %354 = vector.broadcast %cst_144 : f32 to vector<8x128xf32>
    %355 = arith.addf %354, %353 : vector<8x128xf32>
    %356 = arith.divf %354, %355 : vector<8x128xf32>
    %357 = arith.mulf %348, %286 : vector<8x128xf32>
    %358 = arith.mulf %342, %350 : vector<8x128xf32>
    %359 = arith.addf %357, %358 : vector<8x128xf32>
    %360 = math.tanh %359 : vector<8x128xf32>
    %361 = arith.mulf %356, %360 : vector<8x128xf32>
    %c0_145 = arith.constant 0 : index
    %c0_146 = arith.constant 0 : index
    %362 = vector.load %arg4[%c0_145, %c0_146] : memref<128x128xf32, #tpu.memory_space<vmem>>, vector<128x128xf32>
    %cst_147 = arith.constant dense<0.000000e+00> : vector<8x128xf32>
    %363 = tpu.matmul %361, %362, %cst_147 {dimension_numbers = #tpu.dot_dimension_numbers<[1], [0], [0], [1], [0, 0, 1, 1], [], []>} : vector<8x128xf32>, vector<128x128xf32>, vector<8x128xf32> -> vector<8x128xf32>
    %c0_148 = arith.constant 0 : index
    %c0_149 = arith.constant 0 : index
    %364 = vector.load %arg5[%c0_148, %c0_149] : memref<8x128xf32, #tpu.memory_space<vmem>>, vector<8x128xf32>
    %365 = arith.addf %363, %364 : vector<8x128xf32>
    %c4_150 = arith.constant 4 : index
    %c0_151 = arith.constant 0 : index
    %c0_152 = arith.constant 0 : index
    %366 = vector.load %arg6[%c4_150, %c0_151, %c0_152] : memref<8x8x128xf32, #tpu.memory_space<vmem>>, vector<1x8x128xf32>
    %367 = vector.shape_cast %366 : vector<1x8x128xf32> to vector<8x128xf32>
    %368 = vector.shape_cast %365 : vector<8x128xf32> to vector<1x8x128xf32>
    tpu.vector_store %arg6[%c4_150, %c0_151, %c0_152], %368 {strides = array<i32>} : memref<8x8x128xf32, #tpu.memory_space<vmem>>, vector<1x8x128xf32>,
    %c5 = arith.constant 5 : index
    %c0_153 = arith.constant 0 : index
    %c0_154 = arith.constant 0 : index
    %369 = vector.load %arg1[%c5, %c0_153, %c0_154] : memref<8x8x128xf32, #tpu.memory_space<vmem>>, vector<1x8x128xf32>
    %370 = vector.shape_cast %369 : vector<1x8x128xf32> to vector<8x128xf32>
    %371 = tpu.concatenate %370, %329 in 1 : vector<8x128xf32>, vector<8x128xf32> -> vector<8x256xf32>
    %c0_155 = arith.constant 0 : index
    %c0_156 = arith.constant 0 : index
    %c0_157 = arith.constant 0 : index
    %372 = vector.load %arg2[%c0_155, %c0_156, %c0_157] : memref<2x256x512xf32, #tpu.memory_space<vmem>>, vector<1x256x512xf32>
    %373 = vector.shape_cast %372 : vector<1x256x512xf32> to vector<256x512xf32>
    %cst_158 = arith.constant dense<0.000000e+00> : vector<8x512xf32>
    %374 = tpu.matmul %371, %373, %cst_158 {dimension_numbers = #tpu.dot_dimension_numbers<[1], [0], [0], [1], [0, 0, 1, 1], [], []>} : vector<8x256xf32>, vector<256x512xf32>, vector<8x512xf32> -> vector<8x512xf32>
    %c0_159 = arith.constant 0 : index
    %c0_160 = arith.constant 0 : index
    %c0_161 = arith.constant 0 : index
    %375 = vector.load %arg3[%c0_159, %c0_160, %c0_161] : memref<2x8x512xf32, #tpu.memory_space<vmem>>, vector<1x8x512xf32>
    %376 = vector.shape_cast %375 : vector<1x8x512xf32> to vector<8x512xf32>
    %377 = arith.addf %374, %376 : vector<8x512xf32>
    %378 = vector.extract_strided_slice %377 {offsets = [0, 0], sizes = [8, 128], strides = [1, 1]} : vector<8x512xf32> to vector<8x128xf32>
    %379 = arith.negf %378 : vector<8x128xf32>
    %380 = math.exp %379 : vector<8x128xf32>
    %cst_162 = arith.constant 1.000000e+00 : f32
    %381 = vector.broadcast %cst_162 : f32 to vector<8x128xf32>
    %382 = arith.addf %381, %380 : vector<8x128xf32>
    %383 = arith.divf %381, %382 : vector<8x128xf32>
    %384 = vector.extract_strided_slice %377 {offsets = [0, 128], sizes = [8, 128], strides = [1, 1]} : vector<8x512xf32> to vector<8x128xf32>
    %385 = arith.negf %384 : vector<8x128xf32>
    %386 = math.exp %385 : vector<8x128xf32>
    %cst_163 = arith.constant 1.000000e+00 : f32
    %387 = vector.broadcast %cst_163 : f32 to vector<8x128xf32>
    %388 = arith.addf %387, %386 : vector<8x128xf32>
    %389 = arith.divf %387, %388 : vector<8x128xf32>
    %390 = vector.extract_strided_slice %377 {offsets = [0, 256], sizes = [8, 128], strides = [1, 1]} : vector<8x512xf32> to vector<8x128xf32>
    %391 = math.tanh %390 : vector<8x128xf32>
    %392 = vector.extract_strided_slice %377 {offsets = [0, 384], sizes = [8, 128], strides = [1, 1]} : vector<8x512xf32> to vector<8x128xf32>
    %393 = arith.negf %392 : vector<8x128xf32>
    %394 = math.exp %393 : vector<8x128xf32>
    %cst_164 = arith.constant 1.000000e+00 : f32
    %395 = vector.broadcast %cst_164 : f32 to vector<8x128xf32>
    %396 = arith.addf %395, %394 : vector<8x128xf32>
    %397 = arith.divf %395, %396 : vector<8x128xf32>
    %398 = arith.mulf %389, %327 : vector<8x128xf32>
    %399 = arith.mulf %383, %391 : vector<8x128xf32>
    %400 = arith.addf %398, %399 : vector<8x128xf32>
    %401 = math.tanh %400 : vector<8x128xf32>
    %402 = arith.mulf %397, %401 : vector<8x128xf32>
    %403 = tpu.concatenate %402, %361 in 1 : vector<8x128xf32>, vector<8x128xf32> -> vector<8x256xf32>
    %c1_165 = arith.constant 1 : index
    %c0_166 = arith.constant 0 : index
    %c0_167 = arith.constant 0 : index
    %404 = vector.load %arg2[%c1_165, %c0_166, %c0_167] : memref<2x256x512xf32, #tpu.memory_space<vmem>>, vector<1x256x512xf32>
    %405 = vector.shape_cast %404 : vector<1x256x512xf32> to vector<256x512xf32>
    %cst_168 = arith.constant dense<0.000000e+00> : vector<8x512xf32>
    %406 = tpu.matmul %403, %405, %cst_168 {dimension_numbers = #tpu.dot_dimension_numbers<[1], [0], [0], [1], [0, 0, 1, 1], [], []>} : vector<8x256xf32>, vector<256x512xf32>, vector<8x512xf32> -> vector<8x512xf32>
    %c1_169 = arith.constant 1 : index
    %c0_170 = arith.constant 0 : index
    %c0_171 = arith.constant 0 : index
    %407 = vector.load %arg3[%c1_169, %c0_170, %c0_171] : memref<2x8x512xf32, #tpu.memory_space<vmem>>, vector<1x8x512xf32>
    %408 = vector.shape_cast %407 : vector<1x8x512xf32> to vector<8x512xf32>
    %409 = arith.addf %406, %408 : vector<8x512xf32>
    %410 = vector.extract_strided_slice %409 {offsets = [0, 0], sizes = [8, 128], strides = [1, 1]} : vector<8x512xf32> to vector<8x128xf32>
    %411 = arith.negf %410 : vector<8x128xf32>
    %412 = math.exp %411 : vector<8x128xf32>
    %cst_172 = arith.constant 1.000000e+00 : f32
    %413 = vector.broadcast %cst_172 : f32 to vector<8x128xf32>
    %414 = arith.addf %413, %412 : vector<8x128xf32>
    %415 = arith.divf %413, %414 : vector<8x128xf32>
    %416 = vector.extract_strided_slice %409 {offsets = [0, 128], sizes = [8, 128], strides = [1, 1]} : vector<8x512xf32> to vector<8x128xf32>
    %417 = arith.negf %416 : vector<8x128xf32>
    %418 = math.exp %417 : vector<8x128xf32>
    %cst_173 = arith.constant 1.000000e+00 : f32
    %419 = vector.broadcast %cst_173 : f32 to vector<8x128xf32>
    %420 = arith.addf %419, %418 : vector<8x128xf32>
    %421 = arith.divf %419, %420 : vector<8x128xf32>
    %422 = vector.extract_strided_slice %409 {offsets = [0, 256], sizes = [8, 128], strides = [1, 1]} : vector<8x512xf32> to vector<8x128xf32>
    %423 = math.tanh %422 : vector<8x128xf32>
    %424 = vector.extract_strided_slice %409 {offsets = [0, 384], sizes = [8, 128], strides = [1, 1]} : vector<8x512xf32> to vector<8x128xf32>
    %425 = arith.negf %424 : vector<8x128xf32>
    %426 = math.exp %425 : vector<8x128xf32>
    %cst_174 = arith.constant 1.000000e+00 : f32
    %427 = vector.broadcast %cst_174 : f32 to vector<8x128xf32>
    %428 = arith.addf %427, %426 : vector<8x128xf32>
    %429 = arith.divf %427, %428 : vector<8x128xf32>
    %430 = arith.mulf %421, %359 : vector<8x128xf32>
    %431 = arith.mulf %415, %423 : vector<8x128xf32>
    %432 = arith.addf %430, %431 : vector<8x128xf32>
    %433 = math.tanh %432 : vector<8x128xf32>
    %434 = arith.mulf %429, %433 : vector<8x128xf32>
    %c0_175 = arith.constant 0 : index
    %c0_176 = arith.constant 0 : index
    %435 = vector.load %arg4[%c0_175, %c0_176] : memref<128x128xf32, #tpu.memory_space<vmem>>, vector<128x128xf32>
    %cst_177 = arith.constant dense<0.000000e+00> : vector<8x128xf32>
    %436 = tpu.matmul %434, %435, %cst_177 {dimension_numbers = #tpu.dot_dimension_numbers<[1], [0], [0], [1], [0, 0, 1, 1], [], []>} : vector<8x128xf32>, vector<128x128xf32>, vector<8x128xf32> -> vector<8x128xf32>
    %c0_178 = arith.constant 0 : index
    %c0_179 = arith.constant 0 : index
    %437 = vector.load %arg5[%c0_178, %c0_179] : memref<8x128xf32, #tpu.memory_space<vmem>>, vector<8x128xf32>
    %438 = arith.addf %436, %437 : vector<8x128xf32>
    %c5_180 = arith.constant 5 : index
    %c0_181 = arith.constant 0 : index
    %c0_182 = arith.constant 0 : index
    %439 = vector.load %arg6[%c5_180, %c0_181, %c0_182] : memref<8x8x128xf32, #tpu.memory_space<vmem>>, vector<1x8x128xf32>
    %440 = vector.shape_cast %439 : vector<1x8x128xf32> to vector<8x128xf32>
    %441 = vector.shape_cast %438 : vector<8x128xf32> to vector<1x8x128xf32>
    tpu.vector_store %arg6[%c5_180, %c0_181, %c0_182], %441 {strides = array<i32>} : memref<8x8x128xf32, #tpu.memory_space<vmem>>, vector<1x8x128xf32>,
    %c6 = arith.constant 6 : index
    %c0_183 = arith.constant 0 : index
    %c0_184 = arith.constant 0 : index
    %442 = vector.load %arg1[%c6, %c0_183, %c0_184] : memref<8x8x128xf32, #tpu.memory_space<vmem>>, vector<1x8x128xf32>
    %443 = vector.shape_cast %442 : vector<1x8x128xf32> to vector<8x128xf32>
    %444 = tpu.concatenate %443, %402 in 1 : vector<8x128xf32>, vector<8x128xf32> -> vector<8x256xf32>
    %c0_185 = arith.constant 0 : index
    %c0_186 = arith.constant 0 : index
    %c0_187 = arith.constant 0 : index
    %445 = vector.load %arg2[%c0_185, %c0_186, %c0_187] : memref<2x256x512xf32, #tpu.memory_space<vmem>>, vector<1x256x512xf32>
    %446 = vector.shape_cast %445 : vector<1x256x512xf32> to vector<256x512xf32>
    %cst_188 = arith.constant dense<0.000000e+00> : vector<8x512xf32>
    %447 = tpu.matmul %444, %446, %cst_188 {dimension_numbers = #tpu.dot_dimension_numbers<[1], [0], [0], [1], [0, 0, 1, 1], [], []>} : vector<8x256xf32>, vector<256x512xf32>, vector<8x512xf32> -> vector<8x512xf32>
    %c0_189 = arith.constant 0 : index
    %c0_190 = arith.constant 0 : index
    %c0_191 = arith.constant 0 : index
    %448 = vector.load %arg3[%c0_189, %c0_190, %c0_191] : memref<2x8x512xf32, #tpu.memory_space<vmem>>, vector<1x8x512xf32>
    %449 = vector.shape_cast %448 : vector<1x8x512xf32> to vector<8x512xf32>
    %450 = arith.addf %447, %449 : vector<8x512xf32>
    %451 = vector.extract_strided_slice %450 {offsets = [0, 0], sizes = [8, 128], strides = [1, 1]} : vector<8x512xf32> to vector<8x128xf32>
    %452 = arith.negf %451 : vector<8x128xf32>
    %453 = math.exp %452 : vector<8x128xf32>
    %cst_192 = arith.constant 1.000000e+00 : f32
    %454 = vector.broadcast %cst_192 : f32 to vector<8x128xf32>
    %455 = arith.addf %454, %453 : vector<8x128xf32>
    %456 = arith.divf %454, %455 : vector<8x128xf32>
    %457 = vector.extract_strided_slice %450 {offsets = [0, 128], sizes = [8, 128], strides = [1, 1]} : vector<8x512xf32> to vector<8x128xf32>
    %458 = arith.negf %457 : vector<8x128xf32>
    %459 = math.exp %458 : vector<8x128xf32>
    %cst_193 = arith.constant 1.000000e+00 : f32
    %460 = vector.broadcast %cst_193 : f32 to vector<8x128xf32>
    %461 = arith.addf %460, %459 : vector<8x128xf32>
    %462 = arith.divf %460, %461 : vector<8x128xf32>
    %463 = vector.extract_strided_slice %450 {offsets = [0, 256], sizes = [8, 128], strides = [1, 1]} : vector<8x512xf32> to vector<8x128xf32>
    %464 = math.tanh %463 : vector<8x128xf32>
    %465 = vector.extract_strided_slice %450 {offsets = [0, 384], sizes = [8, 128], strides = [1, 1]} : vector<8x512xf32> to vector<8x128xf32>
    %466 = arith.negf %465 : vector<8x128xf32>
    %467 = math.exp %466 : vector<8x128xf32>
    %cst_194 = arith.constant 1.000000e+00 : f32
    %468 = vector.broadcast %cst_194 : f32 to vector<8x128xf32>
    %469 = arith.addf %468, %467 : vector<8x128xf32>
    %470 = arith.divf %468, %469 : vector<8x128xf32>
    %471 = arith.mulf %462, %400 : vector<8x128xf32>
    %472 = arith.mulf %456, %464 : vector<8x128xf32>
    %473 = arith.addf %471, %472 : vector<8x128xf32>
    %474 = math.tanh %473 : vector<8x128xf32>
    %475 = arith.mulf %470, %474 : vector<8x128xf32>
    %476 = tpu.concatenate %475, %434 in 1 : vector<8x128xf32>, vector<8x128xf32> -> vector<8x256xf32>
    %c1_195 = arith.constant 1 : index
    %c0_196 = arith.constant 0 : index
    %c0_197 = arith.constant 0 : index
    %477 = vector.load %arg2[%c1_195, %c0_196, %c0_197] : memref<2x256x512xf32, #tpu.memory_space<vmem>>, vector<1x256x512xf32>
    %478 = vector.shape_cast %477 : vector<1x256x512xf32> to vector<256x512xf32>
    %cst_198 = arith.constant dense<0.000000e+00> : vector<8x512xf32>
    %479 = tpu.matmul %476, %478, %cst_198 {dimension_numbers = #tpu.dot_dimension_numbers<[1], [0], [0], [1], [0, 0, 1, 1], [], []>} : vector<8x256xf32>, vector<256x512xf32>, vector<8x512xf32> -> vector<8x512xf32>
    %c1_199 = arith.constant 1 : index
    %c0_200 = arith.constant 0 : index
    %c0_201 = arith.constant 0 : index
    %480 = vector.load %arg3[%c1_199, %c0_200, %c0_201] : memref<2x8x512xf32, #tpu.memory_space<vmem>>, vector<1x8x512xf32>
    %481 = vector.shape_cast %480 : vector<1x8x512xf32> to vector<8x512xf32>
    %482 = arith.addf %479, %481 : vector<8x512xf32>
    %483 = vector.extract_strided_slice %482 {offsets = [0, 0], sizes = [8, 128], strides = [1, 1]} : vector<8x512xf32> to vector<8x128xf32>
    %484 = arith.negf %483 : vector<8x128xf32>
    %485 = math.exp %484 : vector<8x128xf32>
    %cst_202 = arith.constant 1.000000e+00 : f32
    %486 = vector.broadcast %cst_202 : f32 to vector<8x128xf32>
    %487 = arith.addf %486, %485 : vector<8x128xf32>
    %488 = arith.divf %486, %487 : vector<8x128xf32>
    %489 = vector.extract_strided_slice %482 {offsets = [0, 128], sizes = [8, 128], strides = [1, 1]} : vector<8x512xf32> to vector<8x128xf32>
    %490 = arith.negf %489 : vector<8x128xf32>
    %491 = math.exp %490 : vector<8x128xf32>
    %cst_203 = arith.constant 1.000000e+00 : f32
    %492 = vector.broadcast %cst_203 : f32 to vector<8x128xf32>
    %493 = arith.addf %492, %491 : vector<8x128xf32>
    %494 = arith.divf %492, %493 : vector<8x128xf32>
    %495 = vector.extract_strided_slice %482 {offsets = [0, 256], sizes = [8, 128], strides = [1, 1]} : vector<8x512xf32> to vector<8x128xf32>
    %496 = math.tanh %495 : vector<8x128xf32>
    %497 = vector.extract_strided_slice %482 {offsets = [0, 384], sizes = [8, 128], strides = [1, 1]} : vector<8x512xf32> to vector<8x128xf32>
    %498 = arith.negf %497 : vector<8x128xf32>
    %499 = math.exp %498 : vector<8x128xf32>
    %cst_204 = arith.constant 1.000000e+00 : f32
    %500 = vector.broadcast %cst_204 : f32 to vector<8x128xf32>
    %501 = arith.addf %500, %499 : vector<8x128xf32>
    %502 = arith.divf %500, %501 : vector<8x128xf32>
    %503 = arith.mulf %494, %432 : vector<8x128xf32>
    %504 = arith.mulf %488, %496 : vector<8x128xf32>
    %505 = arith.addf %503, %504 : vector<8x128xf32>
    %506 = math.tanh %505 : vector<8x128xf32>
    %507 = arith.mulf %502, %506 : vector<8x128xf32>
    %c0_205 = arith.constant 0 : index
    %c0_206 = arith.constant 0 : index
    %508 = vector.load %arg4[%c0_205, %c0_206] : memref<128x128xf32, #tpu.memory_space<vmem>>, vector<128x128xf32>
    %cst_207 = arith.constant dense<0.000000e+00> : vector<8x128xf32>
    %509 = tpu.matmul %507, %508, %cst_207 {dimension_numbers = #tpu.dot_dimension_numbers<[1], [0], [0], [1], [0, 0, 1, 1], [], []>} : vector<8x128xf32>, vector<128x128xf32>, vector<8x128xf32> -> vector<8x128xf32>
    %c0_208 = arith.constant 0 : index
    %c0_209 = arith.constant 0 : index
    %510 = vector.load %arg5[%c0_208, %c0_209] : memref<8x128xf32, #tpu.memory_space<vmem>>, vector<8x128xf32>
    %511 = arith.addf %509, %510 : vector<8x128xf32>
    %c6_210 = arith.constant 6 : index
    %c0_211 = arith.constant 0 : index
    %c0_212 = arith.constant 0 : index
    %512 = vector.load %arg6[%c6_210, %c0_211, %c0_212] : memref<8x8x128xf32, #tpu.memory_space<vmem>>, vector<1x8x128xf32>
    %513 = vector.shape_cast %512 : vector<1x8x128xf32> to vector<8x128xf32>
    %514 = vector.shape_cast %511 : vector<8x128xf32> to vector<1x8x128xf32>
    tpu.vector_store %arg6[%c6_210, %c0_211, %c0_212], %514 {strides = array<i32>} : memref<8x8x128xf32, #tpu.memory_space<vmem>>, vector<1x8x128xf32>,
    %c7 = arith.constant 7 : index
    %c0_213 = arith.constant 0 : index
    %c0_214 = arith.constant 0 : index
    %515 = vector.load %arg1[%c7, %c0_213, %c0_214] : memref<8x8x128xf32, #tpu.memory_space<vmem>>, vector<1x8x128xf32>
    %516 = vector.shape_cast %515 : vector<1x8x128xf32> to vector<8x128xf32>
    %517 = tpu.concatenate %516, %475 in 1 : vector<8x128xf32>, vector<8x128xf32> -> vector<8x256xf32>
    %c0_215 = arith.constant 0 : index
    %c0_216 = arith.constant 0 : index
    %c0_217 = arith.constant 0 : index
    %518 = vector.load %arg2[%c0_215, %c0_216, %c0_217] : memref<2x256x512xf32, #tpu.memory_space<vmem>>, vector<1x256x512xf32>
    %519 = vector.shape_cast %518 : vector<1x256x512xf32> to vector<256x512xf32>
    %cst_218 = arith.constant dense<0.000000e+00> : vector<8x512xf32>
    %520 = tpu.matmul %517, %519, %cst_218 {dimension_numbers = #tpu.dot_dimension_numbers<[1], [0], [0], [1], [0, 0, 1, 1], [], []>} : vector<8x256xf32>, vector<256x512xf32>, vector<8x512xf32> -> vector<8x512xf32>
    %c0_219 = arith.constant 0 : index
    %c0_220 = arith.constant 0 : index
    %c0_221 = arith.constant 0 : index
    %521 = vector.load %arg3[%c0_219, %c0_220, %c0_221] : memref<2x8x512xf32, #tpu.memory_space<vmem>>, vector<1x8x512xf32>
    %522 = vector.shape_cast %521 : vector<1x8x512xf32> to vector<8x512xf32>
    %523 = arith.addf %520, %522 : vector<8x512xf32>
    %524 = vector.extract_strided_slice %523 {offsets = [0, 0], sizes = [8, 128], strides = [1, 1]} : vector<8x512xf32> to vector<8x128xf32>
    %525 = arith.negf %524 : vector<8x128xf32>
    %526 = math.exp %525 : vector<8x128xf32>
    %cst_222 = arith.constant 1.000000e+00 : f32
    %527 = vector.broadcast %cst_222 : f32 to vector<8x128xf32>
    %528 = arith.addf %527, %526 : vector<8x128xf32>
    %529 = arith.divf %527, %528 : vector<8x128xf32>
    %530 = vector.extract_strided_slice %523 {offsets = [0, 128], sizes = [8, 128], strides = [1, 1]} : vector<8x512xf32> to vector<8x128xf32>
    %531 = arith.negf %530 : vector<8x128xf32>
    %532 = math.exp %531 : vector<8x128xf32>
    %cst_223 = arith.constant 1.000000e+00 : f32
    %533 = vector.broadcast %cst_223 : f32 to vector<8x128xf32>
    %534 = arith.addf %533, %532 : vector<8x128xf32>
    %535 = arith.divf %533, %534 : vector<8x128xf32>
    %536 = vector.extract_strided_slice %523 {offsets = [0, 256], sizes = [8, 128], strides = [1, 1]} : vector<8x512xf32> to vector<8x128xf32>
    %537 = math.tanh %536 : vector<8x128xf32>
    %538 = vector.extract_strided_slice %523 {offsets = [0, 384], sizes = [8, 128], strides = [1, 1]} : vector<8x512xf32> to vector<8x128xf32>
    %539 = arith.negf %538 : vector<8x128xf32>
    %540 = math.exp %539 : vector<8x128xf32>
    %cst_224 = arith.constant 1.000000e+00 : f32
    %541 = vector.broadcast %cst_224 : f32 to vector<8x128xf32>
    %542 = arith.addf %541, %540 : vector<8x128xf32>
    %543 = arith.divf %541, %542 : vector<8x128xf32>
    %544 = arith.mulf %535, %473 : vector<8x128xf32>
    %545 = arith.mulf %529, %537 : vector<8x128xf32>
    %546 = arith.addf %544, %545 : vector<8x128xf32>
    %547 = math.tanh %546 : vector<8x128xf32>
    %548 = arith.mulf %543, %547 : vector<8x128xf32>
    %549 = tpu.concatenate %548, %507 in 1 : vector<8x128xf32>, vector<8x128xf32> -> vector<8x256xf32>
    %c1_225 = arith.constant 1 : index
    %c0_226 = arith.constant 0 : index
    %c0_227 = arith.constant 0 : index
    %550 = vector.load %arg2[%c1_225, %c0_226, %c0_227] : memref<2x256x512xf32, #tpu.memory_space<vmem>>, vector<1x256x512xf32>
    %551 = vector.shape_cast %550 : vector<1x256x512xf32> to vector<256x512xf32>
    %cst_228 = arith.constant dense<0.000000e+00> : vector<8x512xf32>
    %552 = tpu.matmul %549, %551, %cst_228 {dimension_numbers = #tpu.dot_dimension_numbers<[1], [0], [0], [1], [0, 0, 1, 1], [], []>} : vector<8x256xf32>, vector<256x512xf32>, vector<8x512xf32> -> vector<8x512xf32>
    %c1_229 = arith.constant 1 : index
    %c0_230 = arith.constant 0 : index
    %c0_231 = arith.constant 0 : index
    %553 = vector.load %arg3[%c1_229, %c0_230, %c0_231] : memref<2x8x512xf32, #tpu.memory_space<vmem>>, vector<1x8x512xf32>
    %554 = vector.shape_cast %553 : vector<1x8x512xf32> to vector<8x512xf32>
    %555 = arith.addf %552, %554 : vector<8x512xf32>
    %556 = vector.extract_strided_slice %555 {offsets = [0, 0], sizes = [8, 128], strides = [1, 1]} : vector<8x512xf32> to vector<8x128xf32>
    %557 = arith.negf %556 : vector<8x128xf32>
    %558 = math.exp %557 : vector<8x128xf32>
    %cst_232 = arith.constant 1.000000e+00 : f32
    %559 = vector.broadcast %cst_232 : f32 to vector<8x128xf32>
    %560 = arith.addf %559, %558 : vector<8x128xf32>
    %561 = arith.divf %559, %560 : vector<8x128xf32>
    %562 = vector.extract_strided_slice %555 {offsets = [0, 128], sizes = [8, 128], strides = [1, 1]} : vector<8x512xf32> to vector<8x128xf32>
    %563 = arith.negf %562 : vector<8x128xf32>
    %564 = math.exp %563 : vector<8x128xf32>
    %cst_233 = arith.constant 1.000000e+00 : f32
    %565 = vector.broadcast %cst_233 : f32 to vector<8x128xf32>
    %566 = arith.addf %565, %564 : vector<8x128xf32>
    %567 = arith.divf %565, %566 : vector<8x128xf32>
    %568 = vector.extract_strided_slice %555 {offsets = [0, 256], sizes = [8, 128], strides = [1, 1]} : vector<8x512xf32> to vector<8x128xf32>
    %569 = math.tanh %568 : vector<8x128xf32>
    %570 = vector.extract_strided_slice %555 {offsets = [0, 384], sizes = [8, 128], strides = [1, 1]} : vector<8x512xf32> to vector<8x128xf32>
    %571 = arith.negf %570 : vector<8x128xf32>
    %572 = math.exp %571 : vector<8x128xf32>
    %cst_234 = arith.constant 1.000000e+00 : f32
    %573 = vector.broadcast %cst_234 : f32 to vector<8x128xf32>
    %574 = arith.addf %573, %572 : vector<8x128xf32>
    %575 = arith.divf %573, %574 : vector<8x128xf32>
    %576 = arith.mulf %567, %505 : vector<8x128xf32>
    %577 = arith.mulf %561, %569 : vector<8x128xf32>
    %578 = arith.addf %576, %577 : vector<8x128xf32>
    %579 = math.tanh %578 : vector<8x128xf32>
    %580 = arith.mulf %575, %579 : vector<8x128xf32>
    %c0_235 = arith.constant 0 : index
    %c0_236 = arith.constant 0 : index
    %581 = vector.load %arg4[%c0_235, %c0_236] : memref<128x128xf32, #tpu.memory_space<vmem>>, vector<128x128xf32>
    %cst_237 = arith.constant dense<0.000000e+00> : vector<8x128xf32>
    %582 = tpu.matmul %580, %581, %cst_237 {dimension_numbers = #tpu.dot_dimension_numbers<[1], [0], [0], [1], [0, 0, 1, 1], [], []>} : vector<8x128xf32>, vector<128x128xf32>, vector<8x128xf32> -> vector<8x128xf32>
    %c0_238 = arith.constant 0 : index
    %c0_239 = arith.constant 0 : index
    %583 = vector.load %arg5[%c0_238, %c0_239] : memref<8x128xf32, #tpu.memory_space<vmem>>, vector<8x128xf32>
    %584 = arith.addf %582, %583 : vector<8x128xf32>
    %c7_240 = arith.constant 7 : index
    %c0_241 = arith.constant 0 : index
    %c0_242 = arith.constant 0 : index
    %585 = vector.load %arg6[%c7_240, %c0_241, %c0_242] : memref<8x8x128xf32, #tpu.memory_space<vmem>>, vector<1x8x128xf32>
    %586 = vector.shape_cast %585 : vector<1x8x128xf32> to vector<8x128xf32>
    %587 = vector.shape_cast %584 : vector<8x128xf32> to vector<1x8x128xf32>
    tpu.vector_store %arg6[%c7_240, %c0_241, %c0_242], %587 {strides = array<i32>} : memref<8x8x128xf32, #tpu.memory_space<vmem>>, vector<1x8x128xf32>,
    return
  }
  func.func @transform_0(%arg0: i32) -> (i32, i32, i32) {
    %c0_i32 = arith.constant 0 : i32
    %c0_i32_0 = arith.constant 0 : i32
    %c0_i32_1 = arith.constant 0 : i32
    %c0_i32_2 = arith.constant 0 : i32
    return %c0_i32, %c0_i32_0, %c0_i32_1 : i32, i32, i32
  }
  func.func @transform_1(%arg0: i32) -> (i32, i32, i32) {
    %c0_i32 = arith.constant 0 : i32
    %c0_i32_0 = arith.constant 0 : i32
    %c0_i32_1 = arith.constant 0 : i32
    %c0_i32_2 = arith.constant 0 : i32
    return %c0_i32, %c0_i32_0, %c0_i32_1 : i32, i32, i32
  }
  func.func @transform_2(%arg0: i32) -> (i32, i32, i32) {
    %c0_i32 = arith.constant 0 : i32
    %c0_i32_0 = arith.constant 0 : i32
    %c0_i32_1 = arith.constant 0 : i32
    %c0_i32_2 = arith.constant 0 : i32
    return %c0_i32, %c0_i32_0, %c0_i32_1 : i32, i32, i32
  }
  func.func @transform_3(%arg0: i32) -> (i32, i32) {
    %c0_i32 = arith.constant 0 : i32
    %c0_i32_0 = arith.constant 0 : i32
    %c0_i32_1 = arith.constant 0 : i32
    return %c0_i32, %c0_i32_0 : i32, i32
  }
  func.func @transform_4(%arg0: i32) -> (i32, i32) {
    %c0_i32 = arith.constant 0 : i32
    %c0_i32_0 = arith.constant 0 : i32
    %c0_i32_1 = arith.constant 0 : i32
    return %c0_i32, %c0_i32_0 : i32, i32
  }
  func.func @transform_5(%arg0: i32) -> (i32, i32, i32) {
    %c0_i32 = arith.constant 0 : i32
    %c0_i32_0 = arith.constant 0 : i32
    %c0_i32_1 = arith.constant 0 : i32
    %c0_i32_2 = arith.constant 0 : i32
    return %c0_i32, %c0_i32_0, %c0_i32_1 : i32, i32, i32
  }
}

</mosaic_0001>

<bundles_post_ra>
// kernel: tpu_custom_call.1
= control target key start
LH: loop header
LB: loop body
LE: loop exit
PB: predicated region body
PF: predicated region fallthrough
CT: control target
= control target key end

     0   :  { %10 = vsyncpa [#allocation3], 0  ;;  %s9223_s0 = inlined_call_operand.hbm [shape: f32[8,8,128], index: 0, kind: input, shape index: {}]   ;;  %s9224_s1 = inlined_call_operand.hbm [shape: f32[2,256,512], index: 1, kind: input, shape index: {}]   ;;  %s9225_s2 = inlined_call_operand.hbm [shape: f32[2,8,512], index: 2, kind: input, shape index: {}]   ;;  %s9226_s3 = inlined_call_operand.hbm [shape: f32[128,128], index: 3, kind: input, shape index: {}]   ;;  %s9227_s4 = inlined_call_operand.vmem [shape: f32[8,128], index: 4, kind: input, shape index: {}]   ;;  %s9228_s5 = inlined_call_operand.hbm [shape: f32[8,8,128], index: 5, kind: output, shape index: {}]  }
   0x1   :  { %11 = vsyncpa [#allocation6], 0 }
   0x2   :  { %12 = vsyncpa [#allocation9], 0 }
   0x3   :  { %13 = vsyncpa [#allocation4], 0  ;;  %s8683_s18 = smov [#allocation5]   ;;  %s8565_s22 = scalar_lea.hbm %s9224_s1, 32768 }
   0x4   :  { %s31_s19 = sshll.u32 %s8683_s18, 4  ;;  %p8566_p0 = scmp.ne.s32.totalorder %s9224_s1, %s8565_s22  ;;  %s32_s19 = int_to_ptr.vmem [resolvable:$true] %s31_s19 }
   0x5   :  { %p8569_p1 = scmp.lt.u32.totalorder %s8565_s22, %s9224_s1 }
   0x7   :  { %p8571_p2 = pnand %p8569_p1, %p8566_p0 }
   0x9   :  { %8574 = shalt.err (!%p8571_p2)
}
   0xa   :  { %s8575_s27 = scalar_lea.vmem %s32_s19, 32768  ;;  %p8580_p4 = scmp.lt.s32.totalorder %s32_s19, %s32_s19 }
   0xb   :  { %p8576_p3 = scmp.ne.s32.totalorder %s32_s19, %s8575_s27  ;;  %p8581_p5 = scmp.lt.s32.totalorder %s8575_s27, %s8575_s27 }
   0xd   :  { %p8582_p6 = por %p8581_p5, %p8580_p4 }
   0xf   :  { %p8583_p7 = pnand %p8582_p6, %p8576_p3 }
  0x11   :  { %8586 = shalt.err (!%p8583_p7)
}
  0x12   :  { %s8684_s28 = smov 512   ;;  %s8685_s29 = smov 32  }
  0x13   :  { %37 = dma.hbm_to_vmem [thread:$0]  %s9224_s1, 32768, %s32_s19, [#allocation6], %s8684_s28, %s8684_s28, %s8685_s29  }
  0x14   :  { %s8686_s7 = smov [#allocation2]   ;;  %s8587_s11 = scalar_lea.hbm %s9223_s0, 1024 }
  0x15   :  { %s19_s8 = sshll.u32 %s8686_s7, 4  ;;  %p8588_p8 = scmp.ne.s32.totalorder %s9223_s0, %s8587_s11  ;;  %s20_s8 = int_to_ptr.vmem [resolvable:$true] %s19_s8 }
  0x16   :  { %p8591_p9 = scmp.lt.u32.totalorder %s8587_s11, %s9223_s0 }
  0x18   :  { %p8593_p10 = pnand %p8591_p9, %p8588_p8 }
  0x1a   :  { %8596 = shalt.err (!%p8593_p10)
}
  0x1b   :  { %s8597_s16 = scalar_lea.vmem %s20_s8, 1024  ;;  %p8602_p12 = scmp.lt.s32.totalorder %s20_s8, %s20_s8 }
  0x1c   :  { %p8598_p11 = scmp.ne.s32.totalorder %s20_s8, %s8597_s16  ;;  %p8603_p13 = scmp.lt.s32.totalorder %s8597_s16, %s8597_s16 }
  0x1e   :  { %p8604_p0 = por %p8603_p13, %p8602_p12 }
  0x20   :  { %p8605_p1 = pnand %p8604_p0, %p8598_p11 }
  0x22   :  { %8608 = shalt.err (!%p8605_p1)
}
  0x23   :  { %s8687_s1 = smov 128   ;;  %s8688_s17 = smov 8  }
  0x24   :  { %25 = dma.hbm_to_vmem [thread:$0]  %s9223_s0, 1024, %s20_s8, [#allocation3], %s8687_s1, %s8687_s1, %s8688_s17  }
  0x25   :  { %s8689_s20 = smov [#allocation7]   ;;  %s8690_s22 = smov [#allocation8]  }
  0x26   :  { %s43_s21 = sshll.u32 %s8689_s20, 4  ;;  %s55_s23 = sshll.u32 %s8690_s22, 4  ;;  %s44_s21 = int_to_ptr.vmem [resolvable:$true] %s43_s21  ;;  %s8755_s23 = int_to_ptr.vmem [resolvable:$true] %s55_s23 }
  0x27   :  { %s8609_s26 = scalar_lea.hbm %s9225_s2, 1024 }
  0x28   :  { %p8610_p2 = scmp.ne.s32.totalorder %s9225_s2, %s8609_s26  ;;  %p8613_p3 = scmp.lt.u32.totalorder %s8609_s26, %s9225_s2 }
  0x2a   :  { %p8615_p4 = pnand %p8613_p3, %p8610_p2 }
  0x2c   :  { %8618 = shalt.err (!%p8615_p4)
}
  0x2d   :  { %s8619_s0 = scalar_lea.vmem %s44_s21, 1024  ;;  %p8624_p6 = scmp.lt.s32.totalorder %s44_s21, %s44_s21 }
  0x2e   :  { %p8620_p5 = scmp.ne.s32.totalorder %s44_s21, %s8619_s0  ;;  %p8625_p7 = scmp.lt.s32.totalorder %s8619_s0, %s8619_s0 }
  0x30   :  { %p8626_p8 = por %p8625_p7, %p8624_p6 }
  0x32   :  { %p8627_p9 = pnand %p8626_p8, %p8620_p5 }
  0x34   :  { %8630 = shalt.err (!%p8627_p9)
}
  0x35   :  { %49 = dma.hbm_to_vmem [thread:$0]  %s9225_s2, 1024, %s44_s21, [#allocation6], %s8684_s28, %s8684_s28, %s8685_s29  }
  0x36   :  { %s8631_s12 = scalar_lea.hbm %s9226_s3, 2048 }
  0x37   :  { %p8632_p10 = scmp.ne.s32.totalorder %s9226_s3, %s8631_s12  ;;  %p8635_p11 = scmp.lt.u32.totalorder %s8631_s12, %s9226_s3 }
  0x39   :  { %p8637_p12 = pnand %p8635_p11, %p8632_p10 }
  0x3b   :  { %8640 = shalt.err (!%p8637_p12)
}
  0x3c   :  { %s8641_s18 = scalar_lea.vmem %s8755_s23, 2048  ;;  %p8646_p0 = scmp.lt.s32.totalorder %s8755_s23, %s8755_s23 }
  0x3d   :  { %p8642_p13 = scmp.ne.s32.totalorder %s8755_s23, %s8641_s18  ;;  %p8647_p1 = scmp.lt.s32.totalorder %s8641_s18, %s8641_s18 }
  0x3f   :  { %p8648_p2 = por %p8647_p1, %p8646_p0 }
  0x41   :  { %p8649_p3 = pnand %p8648_p2, %p8642_p13 }
  0x43   :  { %8652 = shalt.err (!%p8649_p3)
}
  0x44   :  { %61 = dma.hbm_to_vmem [thread:$0]  %s9226_s3, 2048, %s8755_s23, [#allocation9], %s8687_s1, %s8687_s1, %s8688_s17  }
  0x45   :  { %8675 = dma.done.wait [#allocation3], 1024  }
  0x46   :  { %8676 = vsyncadd [#allocation3], 4294966272 }
  0x47   :  { %8677 = dma.done.wait [#allocation6], 33792  }
  0x48   :  { %8678 = vsyncadd [#allocation6], 4294933504 }
  0x49   :  { %8679 = dma.done.wait [#allocation9], 2048  }
  0x4a   :  { %8680 = vsyncadd [#allocation9], 4294965248  ;;  %v8691_v0 = vmov 0.0   ;;  %v78_v1 = vld [vmem:[#allocation5 + $0x8] sm:$0xff]  ;;  %v77_v3 = vld [vmem:[#allocation5] sm:$0xff]  ;;  %vm8693_vm0 = vmmov 0  }
  0x4b   :  { %273 = vmatprep.mubr.f32.mxu0 %v8691_v0  ;;  %344 = vmatprep.mubr.f32.mxu1 %v8691_v0  ;;  %v82_v2 = vld [vmem:[#allocation5 + $0x28] sm:$0xff]  ;;  %v81_v5 = vld [vmem:[#allocation5 + $0x20] sm:$0xff]  ;;  %v80_v19 = vld [vmem:[#allocation5 + $0x18] sm:$0xff] }
  0x4c   :  { %v6055_v4 = vpack.c.bf16 %v82_v2, %v78_v1  ;;  %v86_v6 = vld [vmem:[#allocation5 + $0x48] sm:$0xff]  ;;  %v6057_v8 = vpack.c.bf16 %v81_v5, %v77_v3  ;;  %v85_v10 = vld [vmem:[#allocation5 + $0x40] sm:$0xff]  ;;  %v84_v20 = vld [vmem:[#allocation5 + $0x38] sm:$0xff] }
  0x4d   :  { %v90_v7 = vld [vmem:[#allocation5 + $0x68] sm:$0xff]  ;;  %v89_v11 = vld [vmem:[#allocation5 + $0x60] sm:$0xff]  ;;  %v6119_v22 = vpack.c.bf16 %v84_v20, %v80_v19  ;;  %v79_v23 = vld [vmem:[#allocation5 + $0x10] sm:$0xff] }
  0x4e   :  { %v6059_v9 = vpack.c.bf16 %v90_v7, %v86_v6  ;;  %v94_v12 = vld [vmem:[#allocation5 + $0x88] sm:$0xff]  ;;  %6056 = vmatprep.subr.bf16.mxu0 %v6055_v4  ;;  %v6061_v14 = vpack.c.bf16 %v89_v11, %v85_v10  ;;  %v93_v15 = vld [vmem:[#allocation5 + $0x80] sm:$0xff]  ;;  %v83_v24 = vld [vmem:[#allocation5 + $0x30] sm:$0xff] }
  0x4f   :  { %v98_v13 = vld [vmem:[#allocation5 + $0xa8] sm:$0xff]  ;;  %6058 = vmatpush1.bf16.msra.mxu0 %v6057_v8  ;;  %v97_v16 = vld [vmem:[#allocation5 + $0xa0] sm:$0xff]  ;;  %v6121_v25 = vpack.c.bf16 %v83_v24, %v79_v23  ;;  %6120 = vmatprep.subr.bf16.mxu1 %v6119_v22  ;;  %v88_v27 = vld [vmem:[#allocation5 + $0x58] sm:$0xff] }
  0x50   :  { %6060 = vmatprep.subr.bf16.mxu0 %v6059_v9  ;;  %v6063_v17 = vpack.c.bf16 %v98_v13, %v94_v12  ;;  %v102_v18 = vld [vmem:[#allocation5 + $0xc8] sm:$0xff]  ;;  %v6065_v26 = vpack.c.bf16 %v97_v16, %v93_v15  ;;  %v92_v28 = vld [vmem:[#allocation5 + $0x78] sm:$0xff]  ;;  %v87_v29 = vld [vmem:[#allocation5 + $0x50] sm:$0xff] }
  0x51   :  { %v106_v21 = vld [vmem:[#allocation5 + $0xe8] sm:$0xff]  ;;  %v101_v31 = vld [vmem:[#allocation5 + $0xc0] sm:$0xff]  ;;  %6122 = vmatpush1.bf16.msra.mxu1 %v6121_v25  ;;  %v6123_v33 = vpack.c.bf16 %v92_v28, %v88_v27  ;;  %v91_v34 = vld [vmem:[#allocation5 + $0x70] sm:$0xff] }
  0x52   :  { %v6067_v30 = vpack.c.bf16 %v106_v21, %v102_v18  ;;  %v105_v32 = vld [vmem:[#allocation5 + $0xe0] sm:$0xff]  ;;  %v110_v35 = vld [vmem:[#allocation5 + $0x108] sm:$0xff]  ;;  %v6125_v37 = vpack.c.bf16 %v91_v34, %v87_v29  ;;  %v96_v38 = vld [vmem:[#allocation5 + $0x98] sm:$0xff] }
  0x53   :  { %6062 = vmatpush1.bf16.msra.mxu0 %v6061_v14  ;;  %v114_v36 = vld [vmem:[#allocation5 + $0x128] sm:$0xff]  ;;  %6124 = vmatprep.subr.bf16.mxu1 %v6123_v33  ;;  %v100_v39 = vld [vmem:[#allocation5 + $0xb8] sm:$0xff]  ;;  %v95_v40 = vld [vmem:[#allocation5 + $0x90] sm:$0xff]  ;;  %v6069_v42 = vpack.c.bf16 %v105_v32, %v101_v31 }
  0x54   :  { %6064 = vmatprep.subr.bf16.mxu0 %v6063_v17  ;;  %v99_v41 = vld [vmem:[#allocation5 + $0xb0] sm:$0xff]  ;;  %v109_v43 = vld [vmem:[#allocation5 + $0x100] sm:$0xff]  ;;  %v6127_v45 = vpack.c.bf16 %v100_v39, %v96_v38  ;;  %v6071_v46 = vpack.c.bf16 %v114_v36, %v110_v35  ;;  %v118_v47 = vld [vmem:[#allocation5 + $0x148] sm:$0xff] }
  0x55   :  { %v113_v44 = vld [vmem:[#allocation5 + $0x120] sm:$0xff]  ;;  %6126 = vmatpush1.bf16.msra.mxu1 %v6125_v37  ;;  %v6129_v48 = vpack.c.bf16 %v99_v41, %v95_v40  ;;  %v104_v49 = vld [vmem:[#allocation5 + $0xd8] sm:$0xff]  ;;  %v122_v51 = vld [vmem:[#allocation5 + $0x168] sm:$0xff] }
  0x56   :  { %v108_v50 = vld [vmem:[#allocation5 + $0xf8] sm:$0xff]  ;;  %6128 = vmatprep.subr.bf16.mxu1 %v6127_v45  ;;  %v103_v53 = vld [vmem:[#allocation5 + $0xd0] sm:$0xff]  ;;  %v6073_v55 = vpack.c.bf16 %v113_v44, %v109_v43  ;;  %v6075_v58 = vpack.c.bf16 %v122_v51, %v118_v47  ;;  %v117_v59 = vld [vmem:[#allocation5 + $0x140] sm:$0xff] }
  0x57   :  { %6066 = vmatpush1.bf16.msra.mxu0 %v6065_v26  ;;  %v6131_v52 = vpack.c.bf16 %v108_v50, %v104_v49  ;;  %v107_v54 = vld [vmem:[#allocation5 + $0xf0] sm:$0xff]  ;;  %v112_v56 = vld [vmem:[#allocation5 + $0x118] sm:$0xff]  ;;  %v121_v60 = vld [vmem:[#allocation5 + $0x160] sm:$0xff] }
  0x58   :  { %6068 = vmatprep.subr.bf16.mxu0 %v6067_v30  ;;  %v116_v57 = vld [vmem:[#allocation5 + $0x138] sm:$0xff]  ;;  %v126_v61 = vld [vmem:[#allocation5 + $0x188] sm:$0xff]  ;;  %v6133_v62 = vpack.c.bf16 %v107_v54, %v103_v53  ;;  %v111_v2 = vld [vmem:[#allocation5 + $0x110] sm:$0xff]  ;;  %v6077_v6 = vpack.c.bf16 %v121_v60, %v117_v59 }
  0x59   :  { %6130 = vmatpush1.bf16.msra.mxu1 %v6129_v48  ;;  %v130_v63 = vld [vmem:[#allocation5 + $0x1a8] sm:$0xff]  ;;  %v6135_v1 = vpack.c.bf16 %v116_v57, %v112_v56  ;;  %v115_v3 = vld [vmem:[#allocation5 + $0x130] sm:$0xff]  ;;  %v120_v4 = vld [vmem:[#allocation5 + $0x158] sm:$0xff] }
  0x5a   :  { %6132 = vmatprep.subr.bf16.mxu1 %v6131_v52  ;;  %v124_v5 = vld [vmem:[#allocation5 + $0x178] sm:$0xff]  ;;  %v6079_v7 = vpack.c.bf16 %v130_v63, %v126_v61  ;;  %v125_v8 = vld [vmem:[#allocation5 + $0x180] sm:$0xff]  ;;  %v134_v10 = vld [vmem:[#allocation5 + $0x1c8] sm:$0xff]  ;;  %v6137_v11 = vpack.c.bf16 %v115_v3, %v111_v2 }
  0x5b   :  { %6070 = vmatpush1.bf16.msra.mxu0 %v6069_v42  ;;  %v129_v9 = vld [vmem:[#allocation5 + $0x1a0] sm:$0xff]  ;;  %v138_v12 = vld [vmem:[#allocation5 + $0x1e8] sm:$0xff]  ;;  %v6139_v13 = vpack.c.bf16 %v124_v5, %v120_v4  ;;  %v119_v14 = vld [vmem:[#allocation5 + $0x150] sm:$0xff] }
  0x5c   :  { %6072 = vmatprep.subr.bf16.mxu0 %v6071_v46  ;;  %v123_v15 = vld [vmem:[#allocation5 + $0x170] sm:$0xff]  ;;  %v128_v16 = vld [vmem:[#allocation5 + $0x198] sm:$0xff]  ;;  %v6081_v18 = vpack.c.bf16 %v129_v9, %v125_v8  ;;  %v6083_v19 = vpack.c.bf16 %v138_v12, %v134_v10  ;;  %v133_v20 = vld [vmem:[#allocation5 + $0x1c0] sm:$0xff] }
  0x5d   :  { %6134 = vmatpush1.bf16.msra.mxu1 %v6133_v62  ;;  %v132_v17 = vld [vmem:[#allocation5 + $0x1b8] sm:$0xff]  ;;  %v137_v21 = vld [vmem:[#allocation5 + $0x1e0] sm:$0xff]  ;;  %v142_v22 = vld [vmem:[#allocation5 + $0x208] sm:$0xff]  ;;  %v6141_v23 = vpack.c.bf16 %v123_v15, %v119_v14 }
  0x5e   :  { %6136 = vmatprep.subr.bf16.mxu1 %v6135_v1  ;;  %v146_v24 = vld [vmem:[#allocation5 + $0x228] sm:$0xff]  ;;  %v6143_v25 = vpack.c.bf16 %v132_v17, %v128_v16  ;;  %v127_v26 = vld [vmem:[#allocation5 + $0x190] sm:$0xff]  ;;  %v136_v28 = vld [vmem:[#allocation5 + $0x1d8] sm:$0xff]  ;;  %v6085_v30 = vpack.c.bf16 %v137_v21, %v133_v20 }
  0x5f   :  { %6074 = vmatpush1.bf16.msra.mxu0 %v6073_v55  ;;  %v131_v27 = vld [vmem:[#allocation5 + $0x1b0] sm:$0xff]  ;;  %v140_v29 = vld [vmem:[#allocation5 + $0x1f8] sm:$0xff]  ;;  %v6087_v31 = vpack.c.bf16 %v146_v24, %v142_v22  ;;  %v141_v32 = vld [vmem:[#allocation5 + $0x200] sm:$0xff] }
  0x60   :  { %6076 = vmatprep.subr.bf16.mxu0 %v6075_v58  ;;  %v145_v33 = vld [vmem:[#allocation5 + $0x220] sm:$0xff]  ;;  %v150_v34 = vld [vmem:[#allocation5 + $0x248] sm:$0xff]  ;;  %v6145_v35 = vpack.c.bf16 %v131_v27, %v127_v26  ;;  %v6147_v37 = vpack.c.bf16 %v140_v29, %v136_v28  ;;  %v135_v38 = vld [vmem:[#allocation5 + $0x1d0] sm:$0xff] }
  0x61   :  { %6138 = vmatpush1.bf16.msra.mxu1 %v6137_v11  ;;  %v154_v36 = vld [vmem:[#allocation5 + $0x268] sm:$0xff]  ;;  %v139_v39 = vld [vmem:[#allocation5 + $0x1f0] sm:$0xff]  ;;  %v144_v40 = vld [vmem:[#allocation5 + $0x218] sm:$0xff]  ;;  %v6089_v42 = vpack.c.bf16 %v145_v33, %v141_v32 }
  0x62   :  { %6140 = vmatprep.subr.bf16.mxu1 %v6139_v13  ;;  %v148_v41 = vld [vmem:[#allocation5 + $0x238] sm:$0xff]  ;;  %v8794_v43 = vpack.c.bf16 %v154_v36, %v150_v34  ;;  %v149_v44 = vld [vmem:[#allocation5 + $0x240] sm:$0xff]  ;;  %v158_v46 = vld [vmem:[#allocation5 + $0x288] sm:$0xff]  ;;  %v6149_v47 = vpack.c.bf16 %v139_v39, %v135_v38 }
  0x63   :  { %6078 = vmatpush1.bf16.msra.mxu0 %v6077_v6  ;;  %v153_v45 = vld [vmem:[#allocation5 + $0x260] sm:$0xff]  ;;  %v162_v48 = vld [vmem:[#allocation5 + $0x2a8] sm:$0xff]  ;;  %v6151_v49 = vpack.c.bf16 %v148_v41, %v144_v40  ;;  %v143_v50 = vld [vmem:[#allocation5 + $0x210] sm:$0xff] }
  0x64   :  { %6080 = vmatprep.subr.bf16.mxu0 %v6079_v7  ;;  %v147_v51 = vld [vmem:[#allocation5 + $0x230] sm:$0xff]  ;;  %v152_v52 = vld [vmem:[#allocation5 + $0x258] sm:$0xff]  ;;  %v8796_v54 = vpack.c.bf16 %v153_v45, %v149_v44  ;;  %v8799_v55 = vpack.c.bf16 %v162_v48, %v158_v46  ;;  %v157_v56 = vld [vmem:[#allocation5 + $0x280] sm:$0xff] }
  0x65   :  { %6142 = vmatpush1.bf16.msra.mxu1 %v6141_v23  ;;  %v156_v53 = vld [vmem:[#allocation5 + $0x278] sm:$0xff]  ;;  %v161_v57 = vld [vmem:[#allocation5 + $0x2a0] sm:$0xff]  ;;  %v166_v58 = vld [vmem:[#allocation5 + $0x2c8] sm:$0xff]  ;;  %v6153_v59 = vpack.c.bf16 %v147_v51, %v143_v50 }
  0x66   :  { %6144 = vmatprep.subr.bf16.mxu1 %v6143_v25  ;;  %v170_v60 = vld [vmem:[#allocation5 + $0x2e8] sm:$0xff]  ;;  %v6155_v61 = vpack.c.bf16 %v156_v53, %v152_v52  ;;  %v151_v62 = vld [vmem:[#allocation5 + $0x250] sm:$0xff]  ;;  %v160_v1 = vld [vmem:[#allocation5 + $0x298] sm:$0xff]  ;;  %v8802_v3 = vpack.c.bf16 %v161_v57, %v157_v56 }
  0x67   :  { %6082 = vmatpush1.bf16.msra.mxu0 %v6081_v18  ;;  %v155_v63 = vld [vmem:[#allocation5 + $0x270] sm:$0xff]  ;;  %v164_v2 = vld [vmem:[#allocation5 + $0x2b8] sm:$0xff]  ;;  %v8805_v4 = vpack.c.bf16 %v170_v60, %v166_v58  ;;  %v165_v5 = vld [vmem:[#allocation5 + $0x2c0] sm:$0xff] }
  0x68   :  { %6084 = vmatprep.subr.bf16.mxu0 %v6083_v19  ;;  %v169_v6 = vld [vmem:[#allocation5 + $0x2e0] sm:$0xff]  ;;  %v174_v7 = vld [vmem:[#allocation5 + $0x308] sm:$0xff]  ;;  %v6157_v8 = vpack.c.bf16 %v155_v63, %v151_v62  ;;  %v6159_v10 = vpack.c.bf16 %v164_v2, %v160_v1  ;;  %v159_v11 = vld [vmem:[#allocation5 + $0x290] sm:$0xff] }
  0x69   :  { %6146 = vmatpush1.bf16.msra.mxu1 %v6145_v35  ;;  %v178_v9 = vld [vmem:[#allocation5 + $0x328] sm:$0xff]  ;;  %v163_v12 = vld [vmem:[#allocation5 + $0x2b0] sm:$0xff]  ;;  %v168_v13 = vld [vmem:[#allocation5 + $0x2d8] sm:$0xff]  ;;  %v8808_v15 = vpack.c.bf16 %v169_v6, %v165_v5 }
  0x6a   :  { %6148 = vmatprep.subr.bf16.mxu1 %v6147_v37  ;;  %v172_v14 = vld [vmem:[#allocation5 + $0x2f8] sm:$0xff]  ;;  %v8811_v16 = vpack.c.bf16 %v178_v9, %v174_v7  ;;  %v173_v17 = vld [vmem:[#allocation5 + $0x300] sm:$0xff]  ;;  %v182_v19 = vld [vmem:[#allocation5 + $0x348] sm:$0xff]  ;;  %v6161_v20 = vpack.c.bf16 %v163_v12, %v159_v11 }
  0x6b   :  { %6086 = vmatpush1.bf16.msra.mxu0 %v6085_v30  ;;  %v177_v18 = vld [vmem:[#allocation5 + $0x320] sm:$0xff]  ;;  %v186_v21 = vld [vmem:[#allocation5 + $0x368] sm:$0xff]  ;;  %v6163_v22 = vpack.c.bf16 %v172_v14, %v168_v13  ;;  %v167_v23 = vld [vmem:[#allocation5 + $0x2d0] sm:$0xff] }
  0x6c   :  { %6088 = vmatprep.subr.bf16.mxu0 %v6087_v31  ;;  %v171_v24 = vld [vmem:[#allocation5 + $0x2f0] sm:$0xff]  ;;  %v176_v25 = vld [vmem:[#allocation5 + $0x318] sm:$0xff]  ;;  %v8814_v27 = vpack.c.bf16 %v177_v18, %v173_v17  ;;  %v8817_v28 = vpack.c.bf16 %v186_v21, %v182_v19  ;;  %v181_v29 = vld [vmem:[#allocation5 + $0x340] sm:$0xff] }
  0x6d   :  { %6150 = vmatpush1.bf16.msra.mxu1 %v6149_v47  ;;  %v180_v26 = vld [vmem:[#allocation5 + $0x338] sm:$0xff]  ;;  %v185_v30 = vld [vmem:[#allocation5 + $0x360] sm:$0xff]  ;;  %v190_v31 = vld [vmem:[#allocation5 + $0x388] sm:$0xff]  ;;  %v6165_v32 = vpack.c.bf16 %v171_v24, %v167_v23 }
  0x6e   :  { %6152 = vmatprep.subr.bf16.mxu1 %v6151_v49  ;;  %v194_v33 = vld [vmem:[#allocation5 + $0x3a8] sm:$0xff]  ;;  %v6167_v34 = vpack.c.bf16 %v180_v26, %v176_v25  ;;  %v175_v35 = vld [vmem:[#allocation5 + $0x310] sm:$0xff]  ;;  %v184_v37 = vld [vmem:[#allocation5 + $0x358] sm:$0xff]  ;;  %v8820_v39 = vpack.c.bf16 %v185_v30, %v181_v29 }
  0x6f   :  { %6090 = vmatpush1.bf16.msra.mxu0 %v6089_v42  ;;  %v179_v36 = vld [vmem:[#allocation5 + $0x330] sm:$0xff]  ;;  %v188_v38 = vld [vmem:[#allocation5 + $0x378] sm:$0xff]  ;;  %v8823_v40 = vpack.c.bf16 %v194_v33, %v190_v31  ;;  %v189_v41 = vld [vmem:[#allocation5 + $0x380] sm:$0xff] }
  0x70   :  { %6092 = vmatprep.subr.bf16.mxu0 %v8794_v43  ;;  %v193_v42 = vld [vmem:[#allocation5 + $0x3a0] sm:$0xff]  ;;  %v198_v44 = vld [vmem:[#allocation5 + $0x3c8] sm:$0xff]  ;;  %v6169_v45 = vpack.c.bf16 %v179_v36, %v175_v35  ;;  %v6171_v47 = vpack.c.bf16 %v188_v38, %v184_v37  ;;  %v183_v48 = vld [vmem:[#allocation5 + $0x350] sm:$0xff] }
  0x71   :  { %6154 = vmatpush1.bf16.msra.mxu1 %v6153_v59  ;;  %v202_v46 = vld [vmem:[#allocation5 + $0x3e8] sm:$0xff]  ;;  %v187_v49 = vld [vmem:[#allocation5 + $0x370] sm:$0xff]  ;;  %v192_v50 = vld [vmem:[#allocation5 + $0x398] sm:$0xff]  ;;  %v8826_v52 = vpack.c.bf16 %v193_v42, %v189_v41 }
  0x72   :  { %6156 = vmatprep.subr.bf16.mxu1 %v6155_v61  ;;  %v196_v51 = vld [vmem:[#allocation5 + $0x3b8] sm:$0xff]  ;;  %v8829_v53 = vpack.c.bf16 %v202_v46, %v198_v44  ;;  %v197_v56 = vld [vmem:[#allocation5 + $0x3c0] sm:$0xff]  ;;  %v6173_v58 = vpack.c.bf16 %v187_v49, %v183_v48  ;;  %v191_v59 = vld [vmem:[#allocation5 + $0x390] sm:$0xff] }
  0x73   :  { %6094 = vmatpush1.bf16.msra.mxu0 %v8796_v54  ;;  %v201_v57 = vld [vmem:[#allocation5 + $0x3e0] sm:$0xff]  ;;  %v6175_v60 = vpack.c.bf16 %v196_v51, %v192_v50  ;;  %v195_v61 = vld [vmem:[#allocation5 + $0x3b0] sm:$0xff]  ;;  %v377_v62 = vld [vmem:[#allocation5 + $0x408] sm:$0xff] }
  0x74   :  { %6096 = vmatprep.subr.bf16.mxu0 %v8799_v55  ;;  %v381_v63 = vld [vmem:[#allocation5 + $0x428] sm:$0xff]  ;;  %v200_v1 = vld [vmem:[#allocation5 + $0x3d8] sm:$0xff]  ;;  %v8832_v5 = vpack.c.bf16 %v201_v57, %v197_v56  ;;  %v6177_v6 = vpack.c.bf16 %v195_v61, %v191_v59  ;;  %v199_v7 = vld [vmem:[#allocation5 + $0x3d0] sm:$0xff] }
  0x75   :  { %6158 = vmatpush1.bf16.msra.mxu1 %v6157_v8  ;;  %v204_v2 = vld [vmem:[#allocation5 + $0x3f8] sm:$0xff]  ;;  %v6183_v8 = vpack.c.bf16 %v381_v63, %v377_v62  ;;  %v376_v9 = vld [vmem:[#allocation5 + $0x400] sm:$0xff]  ;;  %v203_v12 = vld [vmem:[#allocation5 + $0x3f0] sm:$0xff] }
  0x76   :  { %6160 = vmatprep.subr.bf16.mxu1 %v6159_v10  ;;  %v380_v10 = vld [vmem:[#allocation5 + $0x420] sm:$0xff]  ;;  %v6179_v11 = vpack.c.bf16 %v204_v2, %v200_v1  ;;  %v385_v13 = vld [vmem:[#allocation5 + $0x448] sm:$0xff]  ;;  %v379_v17 = vld [vmem:[#allocation5 + $0x418] sm:$0xff]  ;;  %v6181_v21 = vpack.c.bf16 %v203_v12, %v199_v7 }
  0x77   :  { %6098 = vmatpush1.bf16.msra.mxu0 %v8802_v3  ;;  %v389_v14 = vld [vmem:[#allocation5 + $0x468] sm:$0xff]  ;;  %v383_v18 = vld [vmem:[#allocation5 + $0x438] sm:$0xff]  ;;  %v76_v19 = vld [vmem:[#allocation2] sm:$0xff] }
  0x78   :  { %6100 = vmatprep.subr.bf16.mxu0 %v8805_v4  ;;  %v6187_v23 = vpack.c.bf16 %v389_v14, %v385_v13  ;;  %v384_v24 = vld [vmem:[#allocation5 + $0x440] sm:$0xff]  ;;  %v6247_v26 = vpack.c.bf16 %v383_v18, %v379_v17  ;;  %v382_v29 = vld [vmem:[#allocation5 + $0x430] sm:$0xff]  ;;  %v393_v30 = vld [vmem:[#allocation5 + $0x488] sm:$0xff] }
  0x79   :  { %6162 = vmatpush1.bf16.msra.mxu1 %v6161_v20  ;;  %v6185_v20 = vpack.c.bf16 %v380_v10, %v376_v9  ;;  %v388_v25 = vld [vmem:[#allocation5 + $0x460] sm:$0xff]  ;;  %v397_v31 = vld [vmem:[#allocation5 + $0x4a8] sm:$0xff]  ;;  %v391_v33 = vld [vmem:[#allocation5 + $0x478] sm:$0xff] }
  0x7a   :  { %6164 = vmatprep.subr.bf16.mxu1 %v6163_v22  ;;  %v378_v22 = vld [vmem:[#allocation5 + $0x410] sm:$0xff]  ;;  %v6191_v37 = vpack.c.bf16 %v397_v31, %v393_v30  ;;  %v392_v38 = vld [vmem:[#allocation5 + $0x480] sm:$0xff]  ;;  %v405_v46 = vld [vmem:[#allocation5 + $0x4e8] sm:$0xff] }
  0x7b   :  { %6102 = vmatpush1.bf16.msra.mxu0 %v8808_v15  ;;  %v6249_v35 = vpack.c.bf16 %v382_v29, %v378_v22  ;;  %v386_v36 = vld [vmem:[#allocation5 + $0x450] sm:$0xff]  ;;  %v396_v41 = vld [vmem:[#allocation5 + $0x4a0] sm:$0xff]  ;;  %v399_v48 = vld [vmem:[#allocation5 + $0x4b8] sm:$0xff] }
  0x7c   :  { %6104 = vmatprep.subr.bf16.mxu0 %v8811_v16  ;;  %v390_v44 = vld [vmem:[#allocation5 + $0x470] sm:$0xff]  ;;  %v6193_v49 = vpack.c.bf16 %v396_v41, %v392_v38  ;;  %v400_v57 = vld [vmem:[#allocation5 + $0x4c0] sm:$0xff]  ;;  %v409_v61 = vld [vmem:[#allocation5 + $0x508] sm:$0xff] }
  0x7d   :  { %6166 = vmatpush1.bf16.msra.mxu1 %v6165_v32  ;;  %v387_v32 = vld [vmem:[#allocation5 + $0x458] sm:$0xff]  ;;  %v6253_v50 = vpack.c.bf16 %v390_v44, %v386_v36  ;;  %v394_v51 = vld [vmem:[#allocation5 + $0x490] sm:$0xff]  ;;  %v413_v62 = vld [vmem:[#allocation5 + $0x528] sm:$0xff] }
  0x7e   :  { %6168 = vmatprep.subr.bf16.mxu1 %v6167_v34  ;;  %v6189_v34 = vpack.c.bf16 %v388_v25, %v384_v24  ;;  %v6251_v42 = vpack.c.bf16 %v391_v33, %v387_v32  ;;  %v403_v63 = vld [vmem:[#allocation5 + $0x4d8] sm:$0xff]  ;;  %v6199_v7 = vpack.c.bf16 %v413_v62, %v409_v61  ;;  %v402_v9 = vld [vmem:[#allocation5 + $0x4d0] sm:$0xff]  ;;  %v421_v29 = vld [vmem:[#allocation5 + $0x568] sm:$0xff] }
  0x7f   :  { %6106 = vmatpush1.bf16.msra.mxu0 %v8814_v27  ;;  %v407_v1 = vld [vmem:[#allocation5 + $0x4f8] sm:$0xff]  ;;  %v406_v10 = vld [vmem:[#allocation5 + $0x4f0] sm:$0xff]  ;;  %v416_v33 = vld [vmem:[#allocation5 + $0x540] sm:$0xff] }
  0x80   :  { %6108 = vmatprep.subr.bf16.mxu0 %v8817_v28  ;;  %v415_v12 = vld [vmem:[#allocation5 + $0x538] sm:$0xff]  ;;  %v6261_v13 = vpack.c.bf16 %v406_v10, %v402_v9  ;;  %v410_v17 = vld [vmem:[#allocation5 + $0x510] sm:$0xff]  ;;  %v429_v44 = vld [vmem:[#allocation5 + $0x5a8] sm:$0xff] }
  0x81   :  { %6170 = vmatpush1.bf16.msra.mxu1 %v6169_v45  ;;  %v401_v45 = vld [vmem:[#allocation5 + $0x4c8] sm:$0xff]  ;;  %v414_v18 = vld [vmem:[#allocation5 + $0x530] sm:$0xff]  ;;  %v423_v24 = vld [vmem:[#allocation5 + $0x578] sm:$0xff] }
  0x82   :  { %6172 = vmatprep.subr.bf16.mxu1 %v6171_v47  ;;  %v395_v47 = vld [vmem:[#allocation5 + $0x498] sm:$0xff]  ;;  %v6195_v56 = vpack.c.bf16 %v405_v46, %v401_v45  ;;  %v418_v30 = vld [vmem:[#allocation5 + $0x550] sm:$0xff] }
  0x83   :  { %6110 = vmatpush1.bf16.msra.mxu0 %v8820_v39  ;;  %v6255_v59 = vpack.c.bf16 %v399_v48, %v395_v47  ;;  %v422_v32 = vld [vmem:[#allocation5 + $0x570] sm:$0xff]  ;;  %v431_v38 = vld [vmem:[#allocation5 + $0x5b8] sm:$0xff]  ;;  %v424_v48 = vld [vmem:[#allocation5 + $0x580] sm:$0xff] }
  0x84   :  { %6112 = vmatprep.subr.bf16.mxu0 %v8823_v40  ;;  %v426_v45 = vld [vmem:[#allocation5 + $0x590] sm:$0xff]  ;;  %v447_v9 = vld [vmem:[#allocation5 + $0x638] sm:$0xff] }
  0x85   :  { %6174 = vmatpush1.bf16.msra.mxu1 %v6173_v58  ;;  %v404_v58 = vld [vmem:[#allocation5 + $0x4e0] sm:$0xff]  ;;  %v430_v47 = vld [vmem:[#allocation5 + $0x5b0] sm:$0xff] }
  0x86   :  { %6176 = vmatprep.subr.bf16.mxu1 %v6175_v60  ;;  %v398_v60 = vld [vmem:[#allocation5 + $0x4b0] sm:$0xff]  ;;  %v6197_v2 = vpack.c.bf16 %v404_v58, %v400_v57  ;;  %v439_v57 = vld [vmem:[#allocation5 + $0x5f8] sm:$0xff] }
  0x87   :  { %6114 = vmatpush1.bf16.msra.mxu0 %v8826_v52  ;;  %v434_v61 = vld [vmem:[#allocation5 + $0x5d0] sm:$0xff] }
  0x88   :  { %6116 = vmatprep.subr.bf16.mxu0 %v8829_v53 }
  0x89   :  { %6178 = vmatpush1.bf16.msra.mxu1 %v6177_v6  ;;  %v6257_v6 = vpack.c.bf16 %v398_v60, %v394_v51  ;;  %v437_v60 = vld [vmem:[#allocation5 + $0x5e8] sm:$0xff] }
  0x8a   :  { %6180 = vmatprep.subr.bf16.mxu1 %v6179_v11  ;;  %v411_v11 = vld [vmem:[#allocation5 + $0x518] sm:$0xff] }
  0x8b   :  { %6118 = vmatpush1.bf16.msra.mxu0 %v8832_v5  ;;  %v6263_v14 = vpack.c.bf16 %v415_v12, %v411_v11  ;;  %v441_v11 = vld [vmem:[#allocation5 + $0x608] sm:$0xff] }
  0x8c   :  { %6184 = vmatprep.subr.bf16.mxu0 %v6183_v8  ;;  %v6259_v8 = vpack.c.bf16 %v407_v1, %v403_v63  ;;  %v438_v63 = vld [vmem:[#allocation5 + $0x5f0] sm:$0xff]  ;;  %v432_v1 = vld [vmem:[#allocation5 + $0x5c0] sm:$0xff]  ;;  %v445_v12 = vld [vmem:[#allocation5 + $0x628] sm:$0xff] }
  0x8d   :  { %6182 = vmatpush1.bf16.msra.mxu1 %v6181_v21  ;;  %v412_v21 = vld [vmem:[#allocation5 + $0x520] sm:$0xff] }
  0x8e   :  { %274 = vmatmul.mubr.f32.vlgmr.msra.gmra.mrb[0].mxu0 %v76_v19  ;;  %6248 = vmatprep.subr.bf16.mxu1 %v6247_v26  ;;  %v417_v26 = vld [vmem:[#allocation5 + $0x548] sm:$0xff] }
  0x8f   :  { %6186 = vmatpush1.bf16.msra.mxu0 %v6185_v20  ;;  %573 = vmatprep.mubr.f32.mxu0 %v8691_v0  ;;  %v408_v20 = vld [vmem:[#allocation5 + $0x500] sm:$0xff]  ;;  %v6203_v31 = vpack.c.bf16 %v421_v29, %v417_v26 }
  0x90   :  { %6188 = vmatprep.subr.bf16.mxu0 %v6187_v23  ;;  %345 = vmatmul.mubr.f32.vlgmr.msra.gmra.mrb[0].mxu1 %v76_v19  ;;  %v6265_v19 = vpack.c.bf16 %v414_v18, %v410_v17  ;;  %v6201_v22 = vpack.c.bf16 %v412_v21, %v408_v20  ;;  %v419_v23 = vld [vmem:[#allocation5 + $0x558] sm:$0xff]  ;;  %v446_v17 = vld [vmem:[#allocation5 + $0x630] sm:$0xff]  ;;  %v440_v18 = vld [vmem:[#allocation5 + $0x600] sm:$0xff] }
  0x91   :  { %6250 = vmatpush1.bf16.msra.mxu1 %v6249_v35  ;;  %644 = vmatprep.mubr.f32.mxu1 %v8691_v0  ;;  %v6267_v25 = vpack.c.bf16 %v423_v24, %v419_v23  ;;  %v420_v35 = vld [vmem:[#allocation5 + $0x560] sm:$0xff]  ;;  %v455_v23 = vld [vmem:[#allocation5 + $0x678] sm:$0xff]  ;;  %v449_v24 = vld [vmem:[#allocation5 + $0x648] sm:$0xff] }
  0x92   :  { %6252 = vmatprep.subr.bf16.mxu1 %v6251_v42  ;;  %v6205_v36 = vpack.c.bf16 %v420_v35, %v416_v33  ;;  %v425_v42 = vld [vmem:[#allocation5 + $0x588] sm:$0xff] }
  0x93   :  { %6190 = vmatpush1.bf16.msra.mxu0 %v6189_v34  ;;  %v6269_v34 = vpack.c.bf16 %v422_v32, %v418_v30  ;;  %v6207_v46 = vpack.c.bf16 %v429_v44, %v425_v42  ;;  %v450_v30 = vld [vmem:[#allocation5 + $0x650] sm:$0xff]  ;;  %v448_v32 = vld [vmem:[#allocation5 + $0x640] sm:$0xff]  ;;  %v461_v42 = vld [vmem:[#allocation5 + $0x6a8] sm:$0xff] }
  0x94   :  { %6192 = vmatprep.subr.bf16.mxu0 %v6191_v37  ;;  %v427_v37 = vld [vmem:[#allocation5 + $0x598] sm:$0xff]  ;;  %v458_v44 = vld [vmem:[#allocation5 + $0x690] sm:$0xff] }
  0x95   :  { %6254 = vmatpush1.bf16.msra.mxu1 %v6253_v50  ;;  %v6271_v41 = vpack.c.bf16 %v431_v38, %v427_v37  ;;  %v6273_v50 = vpack.c.bf16 %v430_v47, %v426_v45  ;;  %v463_v37 = vld [vmem:[#allocation5 + $0x6b8] sm:$0xff]  ;;  %v456_v47 = vld [vmem:[#allocation5 + $0x680] sm:$0xff] }
  0x96   :  { %6256 = vmatprep.subr.bf16.mxu1 %v6255_v59  ;;  %v433_v59 = vld [vmem:[#allocation5 + $0x5c8] sm:$0xff] }
  0x97   :  { %6194 = vmatpush1.bf16.msra.mxu0 %v6193_v49  ;;  %v428_v49 = vld [vmem:[#allocation5 + $0x5a0] sm:$0xff]  ;;  %v6211_v62 = vpack.c.bf16 %v437_v60, %v433_v59  ;;  %v469_v59 = vld [vmem:[#allocation5 + $0x6e8] sm:$0xff]  ;;  %v466_v60 = vld [vmem:[#allocation5 + $0x6d0] sm:$0xff] }
  0x98   :  { %6196 = vmatprep.subr.bf16.mxu0 %v6195_v56  ;;  %v6209_v51 = vpack.c.bf16 %v428_v49, %v424_v48  ;;  %v435_v56 = vld [vmem:[#allocation5 + $0x5d8] sm:$0xff]  ;;  %v460_v48 = vld [vmem:[#allocation5 + $0x6a0] sm:$0xff] }
  0x99   :  { %6258 = vmatpush1.bf16.msra.mxu1 %v6257_v6  ;;  %v6275_v58 = vpack.c.bf16 %v439_v57, %v435_v56  ;;  %v6277_v6 = vpack.c.bf16 %v438_v63, %v434_v61  ;;  %v471_v56 = vld [vmem:[#allocation5 + $0x6f8] sm:$0xff]  ;;  %v464_v63 = vld [vmem:[#allocation5 + $0x6c0] sm:$0xff] }
  0x9a   :  { %6260 = vmatprep.subr.bf16.mxu1 %v6259_v8  ;;  %v443_v8 = vld [vmem:[#allocation5 + $0x618] sm:$0xff] }
  0x9b   :  { %6198 = vmatpush1.bf16.msra.mxu0 %v6197_v2  ;;  %v436_v2 = vld [vmem:[#allocation5 + $0x5e0] sm:$0xff]  ;;  %v6279_v10 = vpack.c.bf16 %v447_v9, %v443_v8  ;;  %v479_v8 = vld [vmem:[#allocation5 + $0x738] sm:$0xff] }
  0x9c   :  { %6200 = vmatprep.subr.bf16.mxu0 %v6199_v7  ;;  %v6213_v7 = vpack.c.bf16 %v436_v2, %v432_v1  ;;  %v468_v1 = vld [vmem:[#allocation5 + $0x6e0] sm:$0xff] }
  0x9d   :  { %6262 = vmatpush1.bf16.msra.mxu1 %v6261_v13  ;;  %v442_v13 = vld [vmem:[#allocation5 + $0x610] sm:$0xff] }
  0x9e   :  { %6264 = vmatprep.subr.bf16.mxu1 %v6263_v14  ;;  %v6215_v14 = vpack.c.bf16 %v445_v12, %v441_v11  ;;  %v6281_v20 = vpack.c.bf16 %v446_v17, %v442_v13  ;;  %v477_v11 = vld [vmem:[#allocation5 + $0x728] sm:$0xff]  ;;  %v474_v12 = vld [vmem:[#allocation5 + $0x710] sm:$0xff]  ;;  %v472_v17 = vld [vmem:[#allocation5 + $0x700] sm:$0xff] }
  0x9f   :  { %6202 = vmatpush1.bf16.msra.mxu0 %v6201_v22  ;;  %v451_v22 = vld [vmem:[#allocation5 + $0x658] sm:$0xff] }
  0xa0   :  { %6204 = vmatprep.subr.bf16.mxu0 %v6203_v31  ;;  %v6283_v26 = vpack.c.bf16 %v455_v23, %v451_v22  ;;  %v454_v31 = vld [vmem:[#allocation5 + $0x670] sm:$0xff]  ;;  %v487_v22 = vld [vmem:[#allocation5 + $0x778] sm:$0xff] }
  0xa1   :  { %6266 = vmatpush1.bf16.msra.mxu1 %v6265_v19  ;;  %v444_v19 = vld [vmem:[#allocation5 + $0x620] sm:$0xff]  ;;  %v6285_v33 = vpack.c.bf16 %v454_v31, %v450_v30  ;;  %v486_v30 = vld [vmem:[#allocation5 + $0x770] sm:$0xff] }
  0xa2   :  { %6268 = vmatprep.subr.bf16.mxu1 %v6267_v25  ;;  %v6217_v21 = vpack.c.bf16 %v444_v19, %v440_v18  ;;  %v453_v25 = vld [vmem:[#allocation5 + $0x668] sm:$0xff]  ;;  %v476_v18 = vld [vmem:[#allocation5 + $0x720] sm:$0xff] }
  0xa3   :  { %6206 = vmatpush1.bf16.msra.mxu0 %v6205_v36  ;;  %v6219_v29 = vpack.c.bf16 %v453_v25, %v449_v24  ;;  %v459_v36 = vld [vmem:[#allocation5 + $0x698] sm:$0xff]  ;;  %v481_v24 = vld [vmem:[#allocation5 + $0x748] sm:$0xff]  ;;  %v480_v31 = vld [vmem:[#allocation5 + $0x740] sm:$0xff] }
  0xa4   :  { %6208 = vmatprep.subr.bf16.mxu0 %v6207_v46  ;;  %v6287_v38 = vpack.c.bf16 %v463_v37, %v459_v36  ;;  %v462_v46 = vld [vmem:[#allocation5 + $0x6b0] sm:$0xff]  ;;  %v485_v25 = vld [vmem:[#allocation5 + $0x768] sm:$0xff]  ;;  %v495_v36 = vld [vmem:[#allocation5 + $0x7b8] sm:$0xff] }
  0xa5   :  { %6270 = vmatpush1.bf16.msra.mxu1 %v6269_v34  ;;  %v452_v34 = vld [vmem:[#allocation5 + $0x660] sm:$0xff]  ;;  %v6289_v49 = vpack.c.bf16 %v462_v46, %v458_v44  ;;  %v489_v37 = vld [vmem:[#allocation5 + $0x788] sm:$0xff]  ;;  %v494_v44 = vld [vmem:[#allocation5 + $0x7b0] sm:$0xff] }
  0xa6   :  { %6272 = vmatprep.subr.bf16.mxu1 %v6271_v41  ;;  %v6221_v35 = vpack.c.bf16 %v452_v34, %v448_v32  ;;  %v457_v41 = vld [vmem:[#allocation5 + $0x688] sm:$0xff]  ;;  %v484_v32 = vld [vmem:[#allocation5 + $0x760] sm:$0xff] }
  0xa7   :  { %6210 = vmatpush1.bf16.msra.mxu0 %v6209_v51  ;;  %v6223_v45 = vpack.c.bf16 %v461_v42, %v457_v41  ;;  %v467_v51 = vld [vmem:[#allocation5 + $0x6d8] sm:$0xff]  ;;  %v6237_v34 = vpack.c.bf16 %v484_v32, %v480_v31  ;;  %v493_v41 = vld [vmem:[#allocation5 + $0x7a8] sm:$0xff]  ;;  %v490_v42 = vld [vmem:[#allocation5 + $0x790] sm:$0xff] }
  0xa8   :  { %6212 = vmatprep.subr.bf16.mxu0 %v6211_v62  ;;  %v6291_v57 = vpack.c.bf16 %v471_v56, %v467_v51  ;;  %v470_v62 = vld [vmem:[#allocation5 + $0x6f0] sm:$0xff]  ;;  %v6305_v46 = vpack.c.bf16 %v494_v44, %v490_v42  ;;  %v503_v51 = vld [vmem:[#allocation5 + $0x7f8] sm:$0xff]  ;;  %v497_v56 = vld [vmem:[#allocation5 + $0x7c8] sm:$0xff] }
  0xa9   :  { %6274 = vmatpush1.bf16.msra.mxu1 %v6273_v50  ;;  %v6225_v50 = vpack.c.bf16 %v460_v48, %v456_v47  ;;  %v6293_v2 = vpack.c.bf16 %v470_v62, %v466_v60  ;;  %v488_v47 = vld [vmem:[#allocation5 + $0x780] sm:$0xff]  ;;  %v498_v60 = vld [vmem:[#allocation5 + $0x7d0] sm:$0xff] }
  0xaa   :  { %6276 = vmatprep.subr.bf16.mxu1 %v6275_v58  ;;  %v465_v58 = vld [vmem:[#allocation5 + $0x6c8] sm:$0xff]  ;;  %v492_v48 = vld [vmem:[#allocation5 + $0x7a0] sm:$0xff] }
  0xab   :  { %6214 = vmatpush1.bf16.msra.mxu0 %v6213_v7  ;;  %v6227_v61 = vpack.c.bf16 %v469_v59, %v465_v58  ;;  %v475_v7 = vld [vmem:[#allocation5 + $0x718] sm:$0xff]  ;;  %v496_v62 = vld [vmem:[#allocation5 + $0x7c0] sm:$0xff] }
  0xac   :  { %6216 = vmatprep.subr.bf16.mxu0 %v6215_v14  ;;  %v6295_v9 = vpack.c.bf16 %v479_v8, %v475_v7  ;;  %v478_v14 = vld [vmem:[#allocation5 + $0x730] sm:$0xff]  ;;  %v765_v42 = vld [vmem:[#allocation5] sm:$0xff] }
  0xad   :  { %6278 = vmatpush1.bf16.msra.mxu1 %v6277_v6  ;;  %v6229_v6 = vpack.c.bf16 %v468_v1, %v464_v63  ;;  %v6297_v19 = vpack.c.bf16 %v478_v14, %v474_v12  ;;  %v500_v63 = vld [vmem:[#allocation5 + $0x7e0] sm:$0xff]  ;;  %v766_v1 = vld [vmem:[#allocation5 + $0x8] sm:$0xff] }
  0xae   :  { %6280 = vmatprep.subr.bf16.mxu1 %v6279_v10  ;;  %v473_v10 = vld [vmem:[#allocation5 + $0x708] sm:$0xff]  ;;  %v6245_v7 = vpack.c.bf16 %v500_v63, %v496_v62  ;;  %v769_v44 = vld [vmem:[#allocation5 + $0x20] sm:$0xff] }
  0xaf   :  { %6218 = vmatpush1.bf16.msra.mxu0 %v6217_v21  ;;  %v6231_v13 = vpack.c.bf16 %v477_v11, %v473_v10  ;;  %v483_v21 = vld [vmem:[#allocation5 + $0x758] sm:$0xff]  ;;  %v206_v10 = vld [vmem:[#allocation7 + $0x8] sm:$0xff]  ;;  %v781_v62 = vld [vmem:[#allocation5 + $0x80] sm:$0xff] }
  0xb0   :  { %6220 = vmatprep.subr.bf16.mxu0 %v6219_v29  ;;  %v6299_v23 = vpack.c.bf16 %v487_v22, %v483_v21  ;;  %v6235_v29 = vpack.c.bf16 %v485_v25, %v481_v24  ;;  %v785_v63 = vld [vmem:[#allocation5 + $0xa0] sm:$0xff] }
  0xb1   :  { %6282 = vmatpush1.bf16.msra.mxu1 %v6281_v20  ;;  %v6233_v20 = vpack.c.bf16 %v476_v18, %v472_v17 }
  0xb2   :  { %6284 = vmatprep.subr.bf16.mxu1 %v6283_v26  ;;  %v482_v26 = vld [vmem:[#allocation5 + $0x750] sm:$0xff] }
  0xb3   :  { %6222 = vmatpush1.bf16.msra.mxu0 %v6221_v35  ;;  %v491_v35 = vld [vmem:[#allocation5 + $0x798] sm:$0xff] }
  0xb4   :  { %6224 = vmatprep.subr.bf16.mxu0 %v6223_v45  ;;  %v6239_v45 = vpack.c.bf16 %v493_v41, %v489_v37 }
  0xb5   :  { %6286 = vmatpush1.bf16.msra.mxu1 %v6285_v33  ;;  %v6301_v33 = vpack.c.bf16 %v486_v30, %v482_v26 }
  0xb6   :  { %6288 = vmatprep.subr.bf16.mxu1 %v6287_v38  ;;  %v6303_v38 = vpack.c.bf16 %v495_v36, %v491_v35 }
  0xb7   :  { %6226 = vmatpush1.bf16.msra.mxu0 %v6225_v50  ;;  %v6241_v50 = vpack.c.bf16 %v492_v48, %v488_v47  ;;  %v778_v47 = vld [vmem:[#allocation5 + $0x68] sm:$0xff] }
  0xb8   :  { %6228 = vmatprep.subr.bf16.mxu0 %v6227_v61  ;;  %v502_v61 = vld [vmem:[#allocation5 + $0x7f0] sm:$0xff] }
  0xb9   :  { %6290 = vmatpush1.bf16.msra.mxu1 %v6289_v49  ;;  %v499_v49 = vld [vmem:[#allocation5 + $0x7d8] sm:$0xff] }
  0xba   :  { %6292 = vmatprep.subr.bf16.mxu1 %v6291_v57  ;;  %v501_v57 = vld [vmem:[#allocation5 + $0x7e8] sm:$0xff]  ;;  %v6307_v58 = vpack.c.bf16 %v503_v51, %v499_v49  ;;  %v6337_v49 = vpack.c.bf16 %v769_v44, %v765_v42 }
  0xbb   :  { %6230 = vmatpush1.bf16.msra.mxu0 %v6229_v6  ;;  %v6243_v59 = vpack.c.bf16 %v501_v57, %v497_v56  ;;  %v6309_v6 = vpack.c.bf16 %v502_v61, %v498_v60  ;;  %v773_v56 = vld [vmem:[#allocation5 + $0x40] sm:$0xff]  ;;  %v834_v42 = vld [vmem:[#allocation5 + $0x228] sm:$0xff] }
  0xbc   :  { %6232 = vmatprep.subr.bf16.mxu0 %v6231_v13  ;;  %v777_v57 = vld [vmem:[#allocation5 + $0x60] sm:$0xff] }
  0xbd   :  { %6294 = vmatpush1.bf16.msra.mxu1 %v6293_v2  ;;  %v770_v2 = vld [vmem:[#allocation5 + $0x28] sm:$0xff]  ;;  %v6341_v60 = vpack.c.bf16 %v777_v57, %v773_v56  ;;  %v685_v57 = vld [vmem:[#allocation8 + $0x50] sm:$0xff] }
  0xbe   :  { %6296 = vmatprep.subr.bf16.mxu1 %v6295_v9  ;;  %v6335_v8 = vpack.c.bf16 %v770_v2, %v766_v1  ;;  %v205_v9 = vld [vmem:[#allocation7] sm:$0xff]  ;;  %v790_v1 = vld [vmem:[#allocation5 + $0xc8] sm:$0xff] }
  0xbf   :  { %6234 = vmatpush1.bf16.msra.mxu0 %v6233_v20  ;;  %v794_v2 = vld [vmem:[#allocation5 + $0xe8] sm:$0xff] }
  0xc0   :  { %6236 = vmatprep.subr.bf16.mxu0 %v6235_v29 }
  0xc1   :  { %6298 = vmatpush1.bf16.msra.mxu1 %v6297_v19  ;;  %v208_v19 = vld [vmem:[#allocation7 + $0x18] sm:$0xff] }
  0xc2   :  { %6300 = vmatprep.subr.bf16.mxu1 %v6299_v23  ;;  %v207_v23 = vld [vmem:[#allocation7 + $0x10] sm:$0xff] }
  0xc3   :  { %6238 = vmatpush1.bf16.msra.mxu0 %v6237_v34 }
  0xc4   :  { %6240 = vmatprep.subr.bf16.mxu0 %v6239_v45 }
  0xc5   :  { %6302 = vmatpush1.bf16.msra.mxu1 %v6301_v33 }
  0xc6   :  { %6304 = vmatprep.subr.bf16.mxu1 %v6303_v38 }
  0xc7   :  { %6242 = vmatpush1.bf16.msra.mxu0 %v6241_v50 }
  0xc8   :  { %6244 = vmatprep.subr.bf16.mxu0 %v6243_v59  ;;  %v786_v59 = vld [vmem:[#allocation5 + $0xa8] sm:$0xff] }
  0xc9   :  { %6306 = vmatpush1.bf16.msra.mxu1 %v6305_v46  ;;  %v774_v46 = vld [vmem:[#allocation5 + $0x48] sm:$0xff] }
  0xca   :  { %6308 = vmatprep.subr.bf16.mxu1 %v6307_v58  ;;  %v6339_v51 = vpack.c.bf16 %v778_v47, %v774_v46  ;;  %v782_v58 = vld [vmem:[#allocation5 + $0x88] sm:$0xff]  ;;  %v829_v46 = vld [vmem:[#allocation5 + $0x200] sm:$0xff] }
  0xcb   :  { %6246 = vmatpush1.bf16.msra.mxu0 %v6245_v7  ;;  %v6343_v61 = vpack.c.bf16 %v786_v59, %v782_v58  ;;  %v6347_v7 = vpack.c.bf16 %v794_v2, %v790_v1  ;;  %v833_v47 = vld [vmem:[#allocation5 + $0x220] sm:$0xff]  ;;  %v686_v58 = vld [vmem:[#allocation8 + $0x58] sm:$0xff] }
  0xcc   :  { %v6327_v59 = vpack.c.bf16 %v686_v58, %v685_v57  ;;  %v690_v1 = vld [vmem:[#allocation8 + $0x78] sm:$0xff]  ;;  %v791_v58 = vld [vmem:[#allocation5 + $0xd0] sm:$0xff] }
  0xcd   :  { %6310 = vmatpush1.bf16.msra.mxu1 %v6309_v6  ;;  %v6345_v6 = vpack.c.bf16 %v785_v63, %v781_v62  ;;  %v689_v63 = vld [vmem:[#allocation8 + $0x70] sm:$0xff]  ;;  %v768_v2 = vld [vmem:[#allocation5 + $0x18] sm:$0xff] }
  0xce   :  { %6336 = vmatprep.subr.bf16.mxu1 %v6335_v8  ;;  %v789_v8 = vld [vmem:[#allocation5 + $0xc0] sm:$0xff] }
 0x161   :  { %v275_v11 = vpop.f32.mrb[0].mxu0 }
 0x162   :  { %v276_v12 = vadd.f32 %v275_v11, %v205_v9  ;;  %v277_v13 = vpop.f32.mrb[1].mxu0  ;;  %v793_v9 = vld [vmem:[#allocation5 + $0xe0] sm:$0xff]  ;;  %v802_v11 = vld [vmem:[#allocation5 + $0x128] sm:$0xff] }
 0x163   :  { %v278_v14 = vadd.f32 %v277_v13, %v206_v10  ;;  %v346_v20 = vpop.f32.mrb[0].mxu1  ;;  %v798_v10 = vld [vmem:[#allocation5 + $0x108] sm:$0xff] }
 0x164   :  { %v5591_v17 = vmul.f32 -1.442695, %v276_v12  ;;  %v348_v21 = vpop.f32.mrb[1].mxu1  ;;  %v347_v25 = vadd.f32 %v346_v20, %v207_v23  ;;  %v6349_v12 = vpack.c.bf16 %v793_v9, %v789_v8  ;;  %v6351_v13 = vpack.c.bf16 %v802_v11, %v798_v10  ;;  %v809_v23 = vld [vmem:[#allocation5 + $0x160] sm:$0xff]  ;;  %v506_v10 = vld [vmem:[#allocation7 + $0x28] sm:$0xff] }
 0x165   :  { %v5592_v18 = vmul.f32 -1.442695, %v278_v14  ;;  %v349_v22 = vadd.f32 %v348_v21, %v208_v19  ;;  %v797_v14 = vld [vmem:[#allocation5 + $0x100] sm:$0xff]  ;;  %v810_v19 = vld [vmem:[#allocation5 + $0x168] sm:$0xff] }
 0x166   :  { %8307 = vpow2.f32 %v5591_v17  ;;  %v801_v17 = vld [vmem:[#allocation5 + $0x120] sm:$0xff] }
 0x167   :  { %8309 = vpow2.f32 %v5592_v18  ;;  %v5593_v24 = vmul.f32 -1.442695, %v349_v22  ;;  %v806_v18 = vld [vmem:[#allocation5 + $0x148] sm:$0xff]  ;;  %v6353_v20 = vpack.c.bf16 %v801_v17, %v797_v14  ;;  %v805_v22 = vld [vmem:[#allocation5 + $0x140] sm:$0xff] }
 0x168   :  { %v6355_v21 = vpack.c.bf16 %v810_v19, %v806_v18  ;;  %v505_v9 = vld [vmem:[#allocation7 + $0x20] sm:$0xff] }
 0x169   :  { %8311 = vpow2.f32 %v5593_v24  ;;  %v814_v24 = vld [vmem:[#allocation5 + $0x188] sm:$0xff] }
 0x16a   :  { %8313 = vtanh.f32 %v347_v25  ;;  %v818_v25 = vld [vmem:[#allocation5 + $0x1a8] sm:$0xff] }
 0x170   :  { %v8308_v26 = vpop.eup %8307 }
 0x171   :  { %v8310_v29 = vpop.eup %8309  ;;  %v354_v30 = vadd.f32 1.0, %v8308_v26  ;;  %v6357_v26 = vpack.c.bf16 %v809_v23, %v805_v22  ;;  %v507_v23 = vld [vmem:[#allocation7 + $0x30] sm:$0xff] }
 0x172   :  { %v360_v31 = vadd.f32 1.0, %v8310_v29  ;;  %v6359_v29 = vpack.c.bf16 %v818_v25, %v814_v24 }
 0x173   :  { %8315 = vrcp.f32 %v354_v30  ;;  %v8312_v32 = vpop.eup %8311  ;;  %v813_v30 = vld [vmem:[#allocation5 + $0x180] sm:$0xff] }
 0x174   :  { %8317 = vrcp.f32 %v360_v31  ;;  %v8314_v33 = vpop.eup %8313  ;;  %v367_v35 = vadd.f32 1.0, %v8312_v32  ;;  %v817_v31 = vld [vmem:[#allocation5 + $0x1a0] sm:$0xff]  ;;  %v822_v32 = vld [vmem:[#allocation5 + $0x1c8] sm:$0xff] }
 0x176   :  { %8319 = vrcp.f32 %v367_v35 }
 0x17d   :  { %v8316_v34 = vpop.eup %8315 }
 0x17e   :  { %v8318_v36 = vpop.eup %8317  ;;  %v371_v37 = vmul.f32 %v8316_v34, %v8314_v33  ;;  %v826_v33 = vld [vmem:[#allocation5 + $0x1e8] sm:$0xff]  ;;  %v6361_v34 = vpack.c.bf16 %v817_v31, %v813_v30 }
 0x17f   :  { %v370_v38 = vmul.f32 0.0, %v8318_v36  ;;  %v6363_v35 = vpack.c.bf16 %v826_v33, %v822_v32  ;;  %v821_v36 = vld [vmem:[#allocation5 + $0x1c0] sm:$0xff] }
 0x180   :  { %v8320_v45 = vpop.eup %8319 }
 0x181   :  { %v8838_v41 = vadd.f32 %v371_v37, %v370_v38  ;;  %v825_v37 = vld [vmem:[#allocation5 + $0x1e0] sm:$0xff]  ;;  %v830_v38 = vld [vmem:[#allocation5 + $0x208] sm:$0xff] }
 0x182   :  { %v6365_v44 = vpack.c.bf16 %v825_v37, %v821_v36 }
 0x183   :  { %8321 = vtanh.f32 %v8838_v41 }
 0x18d   :  { %v8322_v48 = vpop.eup %8321 }
 0x18e   :  { %v8841_v50 = vmul.f32 %v8322_v48, %v8320_v45  ;;  %v6367_v45 = vpack.c.bf16 %v834_v42, %v830_v38  ;;  %v6369_v48 = vpack.c.bf16 %v833_v47, %v829_v46  ;;  %v776_v46 = vld [vmem:[#allocation5 + $0x58] sm:$0xff] }
 0x18f   :  { %v780_v47 = vld [vmem:[#allocation5 + $0x78] sm:$0xff] }
 0x190   :  { %574 = vmatmul.mubr.f32.vlgmr.msra.gmra.mrb[2].mxu0 %v8841_v50  ;;  %645 = vmatmul.mubr.f32.vlgmr.msra.gmra.mrb[2].mxu1 %v8841_v50 }
 0x191   :  { %6338 = vmatpush1.bf16.msra.mxu1 %v6337_v49  ;;  %961 = vmatprep.mubr.f32.mxu1 %v8841_v50  ;;  %v683_v49 = vld [vmem:[#allocation8 + $0x40] sm:$0xff] }
 0x192   :  { %6340 = vmatprep.subr.bf16.mxu1 %v6339_v51  ;;  %v684_v51 = vld [vmem:[#allocation8 + $0x48] sm:$0xff]  ;;  %5807 = vmatprep.mubr.msk.f32.mxu0 %vm8693_vm0, %v8691_v0 }
 0x193   :  { %v6324_v56 = vpack.c.bf16 %v684_v51, %v683_v49  ;;  %v792_v49 = vld [vmem:[#allocation5 + $0xd8] sm:$0xff] }
 0x194   :  { %v796_v51 = vld [vmem:[#allocation5 + $0xf8] sm:$0xff] }
 0x195   :  { %6342 = vmatpush1.bf16.msra.mxu1 %v6341_v60  ;;  %v687_v60 = vld [vmem:[#allocation8 + $0x60] sm:$0xff]  ;;  %v6411_v57 = vpack.c.bf16 %v796_v51, %v792_v49 }
 0x196   :  { %6344 = vmatprep.subr.bf16.mxu1 %v6343_v61  ;;  %v688_v61 = vld [vmem:[#allocation8 + $0x68] sm:$0xff] }
 0x197   :  { %v6330_v62 = vpack.c.bf16 %v688_v61, %v687_v60  ;;  %v800_v60 = vld [vmem:[#allocation5 + $0x118] sm:$0xff] }
 0x198   :  { %v804_v61 = vld [vmem:[#allocation5 + $0x138] sm:$0xff] }
 0x199   :  { %6346 = vmatpush1.bf16.msra.mxu1 %v6345_v6  ;;  %v772_v6 = vld [vmem:[#allocation5 + $0x38] sm:$0xff] }
 0x19a   :  { %6348 = vmatprep.subr.bf16.mxu1 %v6347_v7  ;;  %v6333_v7 = vpack.c.bf16 %v690_v1, %v689_v63  ;;  %v6399_v8 = vpack.c.bf16 %v772_v6, %v768_v2  ;;  %v6415_v63 = vpack.c.bf16 %v804_v61, %v800_v60  ;;  %v803_v1 = vld [vmem:[#allocation5 + $0x130] sm:$0xff]  ;;  %v808_v2 = vld [vmem:[#allocation5 + $0x158] sm:$0xff] }
 0x19b   :  { %v812_v6 = vld [vmem:[#allocation5 + $0x178] sm:$0xff] }
 0x19d   :  { %6350 = vmatpush1.bf16.msra.mxu1 %v6349_v12 }
 0x19e   :  { %6352 = vmatprep.subr.bf16.mxu1 %v6351_v13 }
 0x1a1   :  { %6354 = vmatpush1.bf16.msra.mxu1 %v6353_v20 }
 0x1a2   :  { %6356 = vmatprep.subr.bf16.mxu1 %v6355_v21  ;;  %v508_v21 = vld [vmem:[#allocation7 + $0x38] sm:$0xff] }
 0x1a5   :  { %6358 = vmatpush1.bf16.msra.mxu1 %v6357_v26 }
 0x1a6   :  { %6360 = vmatprep.subr.bf16.mxu1 %v6359_v29 }
 0x1a9   :  { %6362 = vmatpush1.bf16.msra.mxu1 %v6361_v34 }
 0x1aa   :  { %6364 = vmatprep.subr.bf16.mxu1 %v6363_v35 }
 0x1ad   :  { %6366 = vmatpush1.bf16.msra.mxu1 %v6365_v44  ;;  %v767_v44 = vld [vmem:[#allocation5 + $0x10] sm:$0xff] }
 0x1ae   :  { %6368 = vmatprep.subr.bf16.mxu1 %v6367_v45  ;;  %v771_v45 = vld [vmem:[#allocation5 + $0x30] sm:$0xff] }
 0x1b1   :  { %6370 = vmatpush1.bf16.msra.mxu1 %v6369_v48 }
 0x1b2   :  { %6372 = vmatprep.subr.bf16.mxu1 %v8794_v43  ;;  %v8860_v43 = vld [vmem:[#allocation2 + $0x8] sm:$0xff] }
 0x1b5   :  { %6374 = vmatpush1.bf16.msra.mxu1 %v8796_v54  ;;  %v675_v54 = vld [vmem:[#allocation8] sm:$0xff] }
 0x1b6   :  { %6376 = vmatprep.subr.bf16.mxu1 %v8799_v55  ;;  %v676_v55 = vld [vmem:[#allocation8 + $0x8] sm:$0xff] }
 0x1b9   :  { %6378 = vmatpush1.bf16.msra.mxu1 %v8802_v3  ;;  %v6312_v3 = vpack.c.bf16 %v676_v55, %v675_v54  ;;  %v6401_v55 = vpack.c.bf16 %v771_v45, %v767_v44  ;;  %v839_v44 = vld [vmem:[#allocation5 + $0x250] sm:$0xff] }
 0x1ba   :  { %6380 = vmatprep.subr.bf16.mxu1 %v8805_v4  ;;  %v8692_v4 = vmov 0.0|0.0   ;;  %v843_v45 = vld [vmem:[#allocation5 + $0x270] sm:$0xff] }
 0x1bb   :  { %6311 = vmatprep.subr.bf16.mxu0 %v8692_v4 }
 0x1bc   :  { %6313 = vmatpush3.bf16.msra.mxu0 %v6312_v3 }
 0x1bd   :  { %6382 = vmatpush1.bf16.msra.mxu1 %v8808_v15  ;;  %6314 = vmatprep.subr.bf16.mxu0 %v8692_v4  ;;  %v677_v15 = vld [vmem:[#allocation8 + $0x10] sm:$0xff] }
 0x1be   :  { %6384 = vmatprep.subr.bf16.mxu1 %v8811_v16  ;;  %v678_v16 = vld [vmem:[#allocation8 + $0x18] sm:$0xff] }
 0x1c1   :  { %6386 = vmatpush1.bf16.msra.mxu1 %v8814_v27  ;;  %v6315_v27 = vpack.c.bf16 %v678_v16, %v677_v15  ;;  %v6403_v15 = vpack.c.bf16 %v780_v47, %v776_v46  ;;  %v775_v16 = vld [vmem:[#allocation5 + $0x50] sm:$0xff]  ;;  %v848_v46 = vld [vmem:[#allocation5 + $0x298] sm:$0xff] }
 0x1c2   :  { %6388 = vmatprep.subr.bf16.mxu1 %v8817_v28  ;;  %v679_v28 = vld [vmem:[#allocation8 + $0x20] sm:$0xff]  ;;  %v852_v47 = vld [vmem:[#allocation5 + $0x2b8] sm:$0xff] }
 0x1c3   :  { %6316 = vmatpush3.bf16.msra.mxu0 %v6315_v27  ;;  %v779_v27 = vld [vmem:[#allocation5 + $0x70] sm:$0xff] }
 0x1c4   :  { %6317 = vmatprep.subr.bf16.mxu0 %v8692_v4 }
 0x1c5   :  { %6390 = vmatpush1.bf16.msra.mxu1 %v8820_v39  ;;  %v680_v39 = vld [vmem:[#allocation8 + $0x28] sm:$0xff] }
 0x1c6   :  { %6392 = vmatprep.subr.bf16.mxu1 %v8823_v40  ;;  %v6318_v40 = vpack.c.bf16 %v680_v39, %v679_v28  ;;  %v784_v28 = vld [vmem:[#allocation5 + $0x98] sm:$0xff] }
 0x1c7   :  { %v788_v39 = vld [vmem:[#allocation5 + $0xb8] sm:$0xff] }
 0x1c8   :  { %6319 = vmatpush3.bf16.msra.mxu0 %v6318_v40  ;;  %v6405_v40 = vpack.c.bf16 %v779_v27, %v775_v16  ;;  %v856_v16 = vld [vmem:[#allocation5 + $0x2d8] sm:$0xff] }
 0x1c9   :  { %6394 = vmatpush1.bf16.msra.mxu1 %v8826_v52  ;;  %6320 = vmatprep.subr.bf16.mxu0 %v8692_v4  ;;  %v681_v52 = vld [vmem:[#allocation8 + $0x30] sm:$0xff]  ;;  %v860_v27 = vld [vmem:[#allocation5 + $0x2f8] sm:$0xff] }
 0x1ca   :  { %6396 = vmatprep.subr.bf16.mxu1 %v8829_v53  ;;  %v682_v53 = vld [vmem:[#allocation8 + $0x38] sm:$0xff] }
 0x1cd   :  { %6398 = vmatpush1.bf16.msra.mxu1 %v8832_v5  ;;  %v6321_v5 = vpack.c.bf16 %v682_v53, %v681_v52  ;;  %v6407_v52 = vpack.c.bf16 %v788_v39, %v784_v28  ;;  %v783_v53 = vld [vmem:[#allocation5 + $0x90] sm:$0xff]  ;;  %v6443_v39 = vpack.c.bf16 %v860_v27, %v856_v16  ;;  %v1080_v16 = vld [vmem:[#allocation5 + $0x488] sm:$0xff] }
 0x1ce   :  { %v1084_v27 = vld [vmem:[#allocation5 + $0x4a8] sm:$0xff] }
 0x1cf   :  { %6322 = vmatpush3.bf16.msra.mxu0 %v6321_v5  ;;  %v787_v5 = vld [vmem:[#allocation5 + $0xb0] sm:$0xff] }
 0x1d0   :  { %962 = vmatmul.mubr.f32.vlgmr.msra.gmra.mrb[4].mxu1 %v8860_v43  ;;  %6323 = vmatprep.subr.bf16.mxu0 %v8692_v4 }
 0x1d3   :  { %6325 = vmatpush3.bf16.msra.mxu0 %v6324_v56  ;;  %v6409_v56 = vpack.c.bf16 %v787_v5, %v783_v53  ;;  %v864_v53 = vld [vmem:[#allocation5 + $0x318] sm:$0xff] }
 0x1d4   :  { %6326 = vmatprep.subr.bf16.mxu0 %v8692_v4  ;;  %v868_v5 = vld [vmem:[#allocation5 + $0x338] sm:$0xff] }
 0x1d5   :  { %v6447_v51 = vpack.c.bf16 %v868_v5, %v864_v53  ;;  %v1083_v53 = vld [vmem:[#allocation5 + $0x4a0] sm:$0xff] }
 0x1d7   :  { %6328 = vmatpush3.bf16.msra.mxu0 %v6327_v59  ;;  %v795_v59 = vld [vmem:[#allocation5 + $0xf0] sm:$0xff] }
 0x1d8   :  { %6329 = vmatprep.subr.bf16.mxu0 %v8692_v4 }
 0x1db   :  { %6331 = vmatpush3.bf16.msra.mxu0 %v6330_v62  ;;  %v6413_v62 = vpack.c.bf16 %v795_v59, %v791_v58  ;;  %v872_v58 = vld [vmem:[#allocation5 + $0x358] sm:$0xff] }
 0x1dc   :  { %6332 = vmatprep.subr.bf16.mxu0 %v8692_v4  ;;  %v876_v59 = vld [vmem:[#allocation5 + $0x378] sm:$0xff] }
 0x1dd   :  { %v6451_v61 = vpack.c.bf16 %v876_v59, %v872_v58  ;;  %v1092_v59 = vld [vmem:[#allocation5 + $0x4e8] sm:$0xff] }
 0x1df   :  { %6334 = vmatpush3.bf16.msra.mxu0 %v6333_v7 }
 0x1e0   :  { %6400 = vmatprep.subr.bf16.mxu0 %v6399_v8  ;;  %v6419_v8 = vpack.c.bf16 %v812_v6, %v808_v2 }
 0x263   :  { %v575_v11 = vpop.f32.mrb[2].mxu0  ;;  %v646_v12 = vpop.f32.mrb[2].mxu1 }
 0x264   :  { %v576_v13 = vadd.f32 %v575_v11, %v505_v9  ;;  %v577_v14 = vpop.f32.mrb[3].mxu0  ;;  %v648_v17 = vpop.f32.mrb[3].mxu1  ;;  %v647_v25 = vadd.f32 %v646_v12, %v507_v23  ;;  %v807_v9 = vld [vmem:[#allocation5 + $0x150] sm:$0xff]  ;;  %v816_v11 = vld [vmem:[#allocation5 + $0x198] sm:$0xff] }
 0x265   :  { %v578_v18 = vadd.f32 %v577_v14, %v506_v10  ;;  %v649_v22 = vadd.f32 %v648_v17, %v508_v21  ;;  %v811_v10 = vld [vmem:[#allocation5 + $0x170] sm:$0xff]  ;;  %v820_v12 = vld [vmem:[#allocation5 + $0x1b8] sm:$0xff] }
 0x266   :  { %v5594_v19 = vmul.f32 -1.442695, %v576_v13  ;;  %v6421_v14 = vpack.c.bf16 %v811_v10, %v807_v9  ;;  %v824_v21 = vld [vmem:[#allocation5 + $0x1d8] sm:$0xff] }
 0x267   :  { %v5595_v20 = vmul.f32 -1.442695, %v578_v18  ;;  %v5596_v24 = vmul.f32 -1.442695, %v649_v22  ;;  %v6423_v18 = vpack.c.bf16 %v820_v12, %v816_v11  ;;  %v828_v22 = vld [vmem:[#allocation5 + $0x1f8] sm:$0xff] }
 0x268   :  { %8323 = vpow2.f32 %v5594_v19  ;;  %v815_v19 = vld [vmem:[#allocation5 + $0x190] sm:$0xff]  ;;  %v888_v9 = vld [vmem:[#allocation5 + $0x3d8] sm:$0xff] }
 0x269   :  { %8325 = vpow2.f32 %v5595_v20  ;;  %v819_v20 = vld [vmem:[#allocation5 + $0x1b0] sm:$0xff]  ;;  %v892_v10 = vld [vmem:[#allocation5 + $0x3f8] sm:$0xff] }
 0x26a   :  { %8327 = vpow2.f32 %v5596_v24  ;;  %v6425_v23 = vpack.c.bf16 %v819_v20, %v815_v19  ;;  %v6427_v24 = vpack.c.bf16 %v828_v22, %v824_v21  ;;  %v6459_v12 = vpack.c.bf16 %v892_v10, %v888_v9  ;;  %v1066_v20 = vld [vmem:[#allocation5 + $0x418] sm:$0xff]  ;;  %v1064_v22 = vld [vmem:[#allocation5 + $0x408] sm:$0xff] }
 0x26b   :  { %8329 = vtanh.f32 %v647_v25  ;;  %v823_v25 = vld [vmem:[#allocation5 + $0x1d0] sm:$0xff]  ;;  %v1070_v21 = vld [vmem:[#allocation5 + $0x438] sm:$0xff] }
 0x272   :  { %v8324_v26 = vpop.eup %8323 }
 0x273   :  { %v8326_v29 = vpop.eup %8325  ;;  %v654_v30 = vadd.f32 1.0, %v8324_v26  ;;  %v827_v26 = vld [vmem:[#allocation5 + $0x1f0] sm:$0xff] }
 0x274   :  { %v660_v31 = vadd.f32 1.0, %v8326_v29  ;;  %v8328_v32 = vpop.eup %8327  ;;  %v832_v29 = vld [vmem:[#allocation5 + $0x218] sm:$0xff] }
 0x275   :  { %8331 = vrcp.f32 %v654_v30  ;;  %v8330_v33 = vpop.eup %8329  ;;  %v667_v37 = vadd.f32 1.0, %v8328_v32  ;;  %v836_v30 = vld [vmem:[#allocation5 + $0x238] sm:$0xff] }
 0x276   :  { %8333 = vrcp.f32 %v660_v31  ;;  %v6429_v31 = vpack.c.bf16 %v827_v26, %v823_v25  ;;  %v6431_v32 = vpack.c.bf16 %v836_v30, %v832_v29  ;;  %v1065_v25 = vld [vmem:[#allocation5 + $0x410] sm:$0xff] }
 0x277   :  { %8335 = vrcp.f32 %v667_v37  ;;  %v1069_v26 = vld [vmem:[#allocation5 + $0x430] sm:$0xff] }
 0x278   :  { %v6529_v30 = vpack.c.bf16 %v1069_v26, %v1065_v25 }
 0x27f   :  { %v8332_v34 = vpop.eup %8331 }
 0x280   :  { %v8334_v35 = vpop.eup %8333  ;;  %v671_v36 = vmul.f32 %v8332_v34, %v8330_v33  ;;  %v831_v33 = vld [vmem:[#allocation5 + $0x210] sm:$0xff] }
 0x281   :  { %v670_v38 = vmul.f32 0.0, %v8334_v35  ;;  %v8336_v48 = vpop.eup %8335  ;;  %v835_v34 = vld [vmem:[#allocation5 + $0x230] sm:$0xff]  ;;  %v840_v35 = vld [vmem:[#allocation5 + $0x258] sm:$0xff] }
 0x282   :  { %v6433_v37 = vpack.c.bf16 %v835_v34, %v831_v33  ;;  %v1074_v33 = vld [vmem:[#allocation5 + $0x458] sm:$0xff] }
 0x283   :  { %v8873_v42 = vadd.f32 %v671_v36, %v670_v38  ;;  %v844_v36 = vld [vmem:[#allocation5 + $0x278] sm:$0xff] }
 0x284   :  { %v6435_v38 = vpack.c.bf16 %v844_v36, %v840_v35  ;;  %v1078_v35 = vld [vmem:[#allocation5 + $0x478] sm:$0xff]  ;;  %v1072_v36 = vld [vmem:[#allocation5 + $0x448] sm:$0xff] }
 0x285   :  { %8337 = vtanh.f32 %v8873_v42 }
 0x28f   :  { %v8338_v54 = vpop.eup %8337 }
 0x290   :  { %v8876_v3 = vmul.f32 %v8338_v54, %v8336_v48  ;;  %v6437_v48 = vpack.c.bf16 %v843_v45, %v839_v44  ;;  %v6439_v54 = vpack.c.bf16 %v852_v47, %v848_v46  ;;  %v1077_v44 = vld [vmem:[#allocation5 + $0x470] sm:$0xff]  ;;  %v1071_v45 = vld [vmem:[#allocation5 + $0x440] sm:$0xff] }
 0x291   :  { %v1075_v47 = vld [vmem:[#allocation5 + $0x460] sm:$0xff] }
 0x292   :  { %5808 = vmatmul.mubr.f32.vlgmr.msra.gmra.mrb[4].mxu0 %v8876_v3  ;;  %1259 = vmatprep.mubr.f32.mxu1 %v8876_v3 }
 0x293   :  { %6402 = vmatpush1.bf16.msra.mxu0 %v6401_v55  ;;  %1032 = vmatprep.mubr.f32.mxu0 %v8841_v50  ;;  %v799_v50 = vld [vmem:[#allocation5 + $0x110] sm:$0xff] }
 0x294   :  { %6404 = vmatprep.subr.bf16.mxu0 %v6403_v15  ;;  %v6417_v7 = vpack.c.bf16 %v803_v1, %v799_v50  ;;  %v847_v55 = vld [vmem:[#allocation5 + $0x290] sm:$0xff]  ;;  %v880_v50 = vld [vmem:[#allocation5 + $0x398] sm:$0xff] }
 0x295   :  { %v851_v15 = vld [vmem:[#allocation5 + $0x2b0] sm:$0xff]  ;;  %v884_v1 = vld [vmem:[#allocation5 + $0x3b8] sm:$0xff] }
 0x296   :  { %v6441_v28 = vpack.c.bf16 %v851_v15, %v847_v55  ;;  %v6455_v6 = vpack.c.bf16 %v884_v1, %v880_v50  ;;  %v6469_v55 = vpack.c.bf16 %v1075_v47, %v1071_v45  ;;  %v1091_v50 = vld [vmem:[#allocation5 + $0x4e0] sm:$0xff]  ;;  %v1098_v1 = vld [vmem:[#allocation5 + $0x518] sm:$0xff]  ;;  %v1117_v45 = vld [vmem:[#allocation5 + $0x5b0] sm:$0xff] }
 0x297   :  { %6406 = vmatpush1.bf16.msra.mxu0 %v6405_v40  ;;  %v855_v40 = vld [vmem:[#allocation5 + $0x2d0] sm:$0xff] }
 0x298   :  { %6408 = vmatprep.subr.bf16.mxu0 %v6407_v52  ;;  %v859_v52 = vld [vmem:[#allocation5 + $0x2f0] sm:$0xff] }
 0x299   :  { %v6445_v49 = vpack.c.bf16 %v859_v52, %v855_v40  ;;  %v1085_v40 = vld [vmem:[#allocation5 + $0x4b0] sm:$0xff]  ;;  %v1079_v52 = vld [vmem:[#allocation5 + $0x480] sm:$0xff] }
 0x29b   :  { %6410 = vmatpush1.bf16.msra.mxu0 %v6409_v56  ;;  %v863_v56 = vld [vmem:[#allocation5 + $0x310] sm:$0xff] }
 0x29c   :  { %6412 = vmatprep.subr.bf16.mxu0 %v6411_v57  ;;  %v867_v57 = vld [vmem:[#allocation5 + $0x330] sm:$0xff] }
 0x29d   :  { %v6449_v60 = vpack.c.bf16 %v867_v57, %v863_v56  ;;  %v1088_v56 = vld [vmem:[#allocation5 + $0x4c8] sm:$0xff]  ;;  %v6473_v57 = vpack.c.bf16 %v1083_v53, %v1079_v52  ;;  %v1125_v52 = vld [vmem:[#allocation5 + $0x5f0] sm:$0xff]  ;;  %v1119_v53 = vld [vmem:[#allocation5 + $0x5c0] sm:$0xff] }
 0x29f   :  { %6414 = vmatpush1.bf16.msra.mxu0 %v6413_v62  ;;  %v871_v62 = vld [vmem:[#allocation5 + $0x350] sm:$0xff] }
 0x2a0   :  { %6416 = vmatprep.subr.bf16.mxu0 %v6415_v63  ;;  %v875_v63 = vld [vmem:[#allocation5 + $0x370] sm:$0xff] }
 0x2a1   :  { %v6453_v2 = vpack.c.bf16 %v875_v63, %v871_v62  ;;  %v6475_v62 = vpack.c.bf16 %v1092_v59, %v1088_v56  ;;  %v1087_v63 = vld [vmem:[#allocation5 + $0x4c0] sm:$0xff]  ;;  %v1134_v56 = vld [vmem:[#allocation5 + $0x638] sm:$0xff] }
 0x2a2   :  { %v6477_v9 = vpack.c.bf16 %v1091_v50, %v1087_v63  ;;  %v1133_v50 = vld [vmem:[#allocation5 + $0x630] sm:$0xff] }
 0x2a3   :  { %v8881_v13 = vpop.f32.mrb[4].mxu1  ;;  %6418 = vmatpush1.bf16.msra.mxu0 %v6417_v7  ;;  %v879_v7 = vld [vmem:[#allocation5 + $0x390] sm:$0xff] }
 0x2a4   :  { %v8883_v17 = vpop.f32.mrb[5].mxu1  ;;  %6420 = vmatprep.subr.bf16.mxu0 %v6419_v8  ;;  %v883_v8 = vld [vmem:[#allocation5 + $0x3b0] sm:$0xff] }
 0x2a5   :  { %v6457_v11 = vpack.c.bf16 %v883_v8, %v879_v7  ;;  %v1100_v7 = vld [vmem:[#allocation5 + $0x528] sm:$0xff] }
 0x2a7   :  { %6422 = vmatpush1.bf16.msra.mxu0 %v6421_v14  ;;  %v887_v14 = vld [vmem:[#allocation5 + $0x3d0] sm:$0xff] }
 0x2a8   :  { %6424 = vmatprep.subr.bf16.mxu0 %v6423_v18  ;;  %v891_v18 = vld [vmem:[#allocation5 + $0x3f0] sm:$0xff] }
 0x2a9   :  { %v6461_v19 = vpack.c.bf16 %v891_v18, %v887_v14  ;;  %v1095_v14 = vld [vmem:[#allocation5 + $0x500] sm:$0xff] }
 0x2ab   :  { %6426 = vmatpush1.bf16.msra.mxu0 %v6425_v23  ;;  %v6527_v23 = vpack.c.bf16 %v1070_v21, %v1066_v20  ;;  %v1106_v20 = vld [vmem:[#allocation5 + $0x558] sm:$0xff] }
 0x2ac   :  { %6428 = vmatprep.subr.bf16.mxu0 %v6427_v24  ;;  %v1068_v24 = vld [vmem:[#allocation5 + $0x428] sm:$0xff]  ;;  %v1110_v21 = vld [vmem:[#allocation5 + $0x578] sm:$0xff] }
 0x2ad   :  { %v6463_v29 = vpack.c.bf16 %v1068_v24, %v1064_v22  ;;  %v1104_v22 = vld [vmem:[#allocation5 + $0x548] sm:$0xff]  ;;  %v6547_v26 = vpack.c.bf16 %v1110_v21, %v1106_v20  ;;  %v1135_v20 = vld [vmem:[#allocation5 + $0x640] sm:$0xff] }
 0x2af   :  { %6430 = vmatpush1.bf16.msra.mxu0 %v6429_v31  ;;  %v1063_v31 = vld [vmem:[#allocation5 + $0x400] sm:$0xff]  ;;  %6464 = vmatprep.subr.bf16.mxu1 %v6463_v29  ;;  %v1105_v29 = vld [vmem:[#allocation5 + $0x550] sm:$0xff] }
 0x2b0   :  { %6432 = vmatprep.subr.bf16.mxu0 %v6431_v32  ;;  %v1067_v32 = vld [vmem:[#allocation5 + $0x420] sm:$0xff] }
 0x2b1   :  { %v6465_v34 = vpack.c.bf16 %v1067_v32, %v1063_v31  ;;  %v1103_v31 = vld [vmem:[#allocation5 + $0x540] sm:$0xff] }
 0x2b3   :  { %6434 = vmatpush1.bf16.msra.mxu0 %v6433_v37  ;;  %v1076_v37 = vld [vmem:[#allocation5 + $0x468] sm:$0xff]  ;;  %6466 = vmatpush1.bf16.msra.mxu1 %v6465_v34  ;;  %v1114_v34 = vld [vmem:[#allocation5 + $0x598] sm:$0xff] }
 0x2b4   :  { %6436 = vmatprep.subr.bf16.mxu0 %v6435_v38  ;;  %v1073_v38 = vld [vmem:[#allocation5 + $0x450] sm:$0xff] }
 0x2b5   :  { %v6533_v46 = vpack.c.bf16 %v1077_v44, %v1073_v38  ;;  %v1113_v44 = vld [vmem:[#allocation5 + $0x590] sm:$0xff] }
 0x2b7   :  { %6438 = vmatpush1.bf16.msra.mxu0 %v6437_v48  ;;  %v1082_v48 = vld [vmem:[#allocation5 + $0x498] sm:$0xff] }
 0x2b8   :  { %6440 = vmatprep.subr.bf16.mxu0 %v6439_v54  ;;  %v1086_v54 = vld [vmem:[#allocation5 + $0x4b8] sm:$0xff] }
 0x2b9   :  { %v6535_v15 = vpack.c.bf16 %v1086_v54, %v1082_v48  ;;  %v1115_v48 = vld [vmem:[#allocation5 + $0x5a0] sm:$0xff]  ;;  %v1122_v54 = vld [vmem:[#allocation5 + $0x5d8] sm:$0xff] }
 0x2bb   :  { %6442 = vmatpush1.bf16.msra.mxu0 %v6441_v28  ;;  %v1081_v28 = vld [vmem:[#allocation5 + $0x490] sm:$0xff] }
 0x2bc   :  { %6444 = vmatprep.subr.bf16.mxu0 %v6443_v39  ;;  %v6471_v39 = vpack.c.bf16 %v1084_v27, %v1080_v16  ;;  %v6537_v5 = vpack.c.bf16 %v1085_v40, %v1081_v28  ;;  %v1124_v16 = vld [vmem:[#allocation5 + $0x5e8] sm:$0xff]  ;;  %v6553_v27 = vpack.c.bf16 %v1117_v45, %v1113_v44  ;;  %v1121_v40 = vld [vmem:[#allocation5 + $0x5d0] sm:$0xff] }
 0x2bd   :  { %v1152_v44 = vld [vmem:[#allocation5 + $0x6c8] sm:$0xff] }
 0x2be   :  { %v1156_v45 = vld [vmem:[#allocation5 + $0x6e8] sm:$0xff] }
 0x2bf   :  { %6446 = vmatpush1.bf16.msra.mxu0 %v6445_v49  ;;  %v1090_v49 = vld [vmem:[#allocation5 + $0x4d8] sm:$0xff] }
 0x2c0   :  { %6448 = vmatprep.subr.bf16.mxu0 %v6447_v51  ;;  %v1094_v51 = vld [vmem:[#allocation5 + $0x4f8] sm:$0xff] }
 0x2c1   :  { %v6539_v58 = vpack.c.bf16 %v1094_v51, %v1090_v49  ;;  %v1123_v49 = vld [vmem:[#allocation5 + $0x5e0] sm:$0xff]  ;;  %v1130_v51 = vld [vmem:[#allocation5 + $0x618] sm:$0xff] }
 0x2c2   :  { %v6559_v59 = vpack.c.bf16 %v1134_v56, %v1130_v51  ;;  %v1159_v51 = vld [vmem:[#allocation5 + $0x700] sm:$0xff] }
 0x2c3   :  { %6450 = vmatpush1.bf16.msra.mxu0 %v6449_v60  ;;  %v1089_v60 = vld [vmem:[#allocation5 + $0x4d0] sm:$0xff]  ;;  %v1163_v56 = vld [vmem:[#allocation5 + $0x720] sm:$0xff] }
 0x2c4   :  { %6452 = vmatprep.subr.bf16.mxu0 %v6451_v61  ;;  %v1093_v61 = vld [vmem:[#allocation5 + $0x4f0] sm:$0xff] }
 0x2c5   :  { %v6541_v8 = vpack.c.bf16 %v1093_v61, %v1089_v60  ;;  %v1128_v60 = vld [vmem:[#allocation5 + $0x608] sm:$0xff] }
 0x2c6   :  { %v1132_v61 = vld [vmem:[#allocation5 + $0x628] sm:$0xff] }
 0x2c7   :  { %6454 = vmatpush1.bf16.msra.mxu0 %v6453_v2  ;;  %v1102_v2 = vld [vmem:[#allocation5 + $0x538] sm:$0xff]  ;;  %v6495_v63 = vpack.c.bf16 %v1132_v61, %v1128_v60 }
 0x2c8   :  { %6456 = vmatprep.subr.bf16.mxu0 %v6455_v6  ;;  %v1096_v6 = vld [vmem:[#allocation5 + $0x508] sm:$0xff]  ;;  %v6543_v10 = vpack.c.bf16 %v1102_v2, %v1098_v1  ;;  %v1127_v1 = vld [vmem:[#allocation5 + $0x600] sm:$0xff]  ;;  %v1174_v60 = vld [vmem:[#allocation5 + $0x778] sm:$0xff] }
 0x2c9   :  { %v6479_v18 = vpack.c.bf16 %v1100_v7, %v1096_v6  ;;  %v1131_v2 = vld [vmem:[#allocation5 + $0x620] sm:$0xff] }
 0x2ca   :  { %v6497_v7 = vpack.c.bf16 %v1131_v2, %v1127_v1  ;;  %v1173_v2 = vld [vmem:[#allocation5 + $0x770] sm:$0xff] }
 0x2cb   :  { %6458 = vmatpush1.bf16.msra.mxu0 %v6457_v11  ;;  %v1097_v11 = vld [vmem:[#allocation5 + $0x510] sm:$0xff] }
 0x2cc   :  { %6460 = vmatprep.subr.bf16.mxu0 %v6459_v12  ;;  %v1101_v12 = vld [vmem:[#allocation5 + $0x530] sm:$0xff] }
 0x2cd   :  { %v6545_v24 = vpack.c.bf16 %v1101_v12, %v1097_v11  ;;  %v1136_v11 = vld [vmem:[#allocation5 + $0x648] sm:$0xff] }
 0x2ce   :  { %v1140_v12 = vld [vmem:[#allocation5 + $0x668] sm:$0xff] }
 0x2cf   :  { %6462 = vmatpush1.bf16.msra.mxu0 %v6461_v19  ;;  %v1099_v19 = vld [vmem:[#allocation5 + $0x520] sm:$0xff] }
 0x2d0   :  { %6528 = vmatprep.subr.bf16.mxu0 %v6527_v23  ;;  %v1108_v23 = vld [vmem:[#allocation5 + $0x568] sm:$0xff]  ;;  %v6481_v25 = vpack.c.bf16 %v1099_v19, %v1095_v14  ;;  %v6499_v14 = vpack.c.bf16 %v1140_v12, %v1136_v11  ;;  %v1141_v19 = vld [vmem:[#allocation5 + $0x670] sm:$0xff]  ;;  %v1182_v11 = vld [vmem:[#allocation5 + $0x7b8] sm:$0xff] }
 0x2d1   :  { %v6483_v32 = vpack.c.bf16 %v1108_v23, %v1104_v22  ;;  %v1139_v22 = vld [vmem:[#allocation5 + $0x660] sm:$0xff]  ;;  %v1176_v12 = vld [vmem:[#allocation5 + $0x788] sm:$0xff] }
 0x2d2   :  { %1033 = vmatmul.mubr.f32.vlgmr.msra.gmra.mrb[6].mxu0 %v8860_v43  ;;  %v6531_v43 = vpack.c.bf16 %v1078_v35, %v1074_v33  ;;  %v1107_v33 = vld [vmem:[#allocation5 + $0x560] sm:$0xff]  ;;  %v1118_v35 = vld [vmem:[#allocation5 + $0x5b8] sm:$0xff]  ;;  %v6501_v23 = vpack.c.bf16 %v1139_v22, %v1135_v20  ;;  %v1181_v20 = vld [vmem:[#allocation5 + $0x7b0] sm:$0xff] }
 0x2d3   :  { %1330 = vmatprep.mubr.f32.mxu0 %v8876_v3  ;;  %6530 = vmatpush1.bf16.msra.mxu0 %v6529_v30  ;;  %v6467_v3 = vpack.c.bf16 %v1076_v37, %v1072_v36  ;;  %v1109_v30 = vld [vmem:[#allocation5 + $0x570] sm:$0xff]  ;;  %v1112_v36 = vld [vmem:[#allocation5 + $0x588] sm:$0xff]  ;;  %v6551_v38 = vpack.c.bf16 %v1118_v35, %v1114_v34  ;;  %v1143_v34 = vld [vmem:[#allocation5 + $0x680] sm:$0xff] }
 0x2d4   :  { %6532 = vmatprep.subr.bf16.mxu0 %v6531_v43  ;;  %v1116_v37 = vld [vmem:[#allocation5 + $0x5a8] sm:$0xff]  ;;  %v6549_v43 = vpack.c.bf16 %v1109_v30, %v1105_v29  ;;  %v1147_v35 = vld [vmem:[#allocation5 + $0x6a0] sm:$0xff] }
 0x2d5   :  { %6468 = vmatprep.subr.bf16.mxu1 %v6467_v3  ;;  %v6485_v3 = vpack.c.bf16 %v1107_v33, %v1103_v31  ;;  %v6487_v47 = vpack.c.bf16 %v1116_v37, %v1112_v36  ;;  %v1144_v29 = vld [vmem:[#allocation5 + $0x688] sm:$0xff]  ;;  %v1145_v31 = vld [vmem:[#allocation5 + $0x690] sm:$0xff]  ;;  %v6505_v37 = vpack.c.bf16 %v1147_v35, %v1143_v34 }
 0x2d6   :  { %6470 = vmatpush1.bf16.msra.mxu1 %v6469_v55  ;;  %v1126_v55 = vld [vmem:[#allocation5 + $0x5f8] sm:$0xff]  ;;  %v1148_v30 = vld [vmem:[#allocation5 + $0x6a8] sm:$0xff]  ;;  %v1149_v33 = vld [vmem:[#allocation5 + $0x6b0] sm:$0xff] }
 0x2d7   :  { %6534 = vmatpush1.bf16.msra.mxu0 %v6533_v46  ;;  %6472 = vmatprep.subr.bf16.mxu1 %v6471_v39  ;;  %v1111_v46 = vld [vmem:[#allocation5 + $0x580] sm:$0xff]  ;;  %v6555_v39 = vpack.c.bf16 %v1126_v55, %v1122_v54  ;;  %v6569_v36 = vpack.c.bf16 %v1149_v33, %v1145_v31  ;;  %v1188_v31 = vld [vmem:[#allocation5 + $0x7e8] sm:$0xff]  ;;  %v1185_v34 = vld [vmem:[#allocation5 + $0x7d0] sm:$0xff] }
 0x2d8   :  { %6536 = vmatprep.subr.bf16.mxu0 %v6535_v15  ;;  %v1120_v15 = vld [vmem:[#allocation5 + $0x5c8] sm:$0xff]  ;;  %v6489_v28 = vpack.c.bf16 %v1115_v48, %v1111_v46  ;;  %v1153_v46 = vld [vmem:[#allocation5 + $0x6d0] sm:$0xff]  ;;  %v1151_v54 = vld [vmem:[#allocation5 + $0x6c0] sm:$0xff] }
 0x2d9   :  { %v1157_v48 = vld [vmem:[#allocation5 + $0x6f0] sm:$0xff]  ;;  %v1155_v55 = vld [vmem:[#allocation5 + $0x6e0] sm:$0xff] }
 0x2da   :  { %6474 = vmatpush1.bf16.msra.mxu1 %v6473_v57  ;;  %v6557_v57 = vpack.c.bf16 %v1125_v52, %v1121_v40  ;;  %v1160_v40 = vld [vmem:[#allocation5 + $0x708] sm:$0xff]  ;;  %v1189_v35 = vld [vmem:[#allocation5 + $0x7f0] sm:$0xff] }
 0x2db   :  { %6538 = vmatpush1.bf16.msra.mxu0 %v6537_v5  ;;  %6476 = vmatprep.subr.bf16.mxu1 %v6475_v62  ;;  %v6491_v5 = vpack.c.bf16 %v1124_v16, %v1120_v15  ;;  %v1129_v62 = vld [vmem:[#allocation5 + $0x610] sm:$0xff]  ;;  %v6573_v15 = vpack.c.bf16 %v1157_v48, %v1153_v46  ;;  %v6509_v16 = vpack.c.bf16 %v1155_v55, %v1151_v54  ;;  %v1164_v52 = vld [vmem:[#allocation5 + $0x728] sm:$0xff]  ;;  %v691_v46 = vld [vmem:[%s9227_s4] sm:$0xff] }
 0x2dc   :  { %6540 = vmatprep.subr.bf16.mxu0 %v6539_v58  ;;  %v6493_v58 = vpack.c.bf16 %v1123_v49, %v1119_v53  ;;  %v6561_v6 = vpack.c.bf16 %v1133_v50, %v1129_v62  ;;  %v1161_v53 = vld [vmem:[#allocation5 + $0x710] sm:$0xff]  ;;  %v1168_v62 = vld [vmem:[#allocation5 + $0x748] sm:$0xff]  ;;  %v8563_v55 = vld [vmem:[#allocation7] sm:$0xff] }
 0x2dd   :  { %v1165_v49 = vld [vmem:[#allocation5 + $0x730] sm:$0xff] }
 0x2de   :  { %6478 = vmatpush1.bf16.msra.mxu1 %v6477_v9  ;;  %v1142_v9 = vld [vmem:[#allocation5 + $0x678] sm:$0xff]  ;;  %v1169_v50 = vld [vmem:[#allocation5 + $0x750] sm:$0xff] }
 0x2df   :  { %6542 = vmatpush1.bf16.msra.mxu0 %v6541_v8  ;;  %6480 = vmatprep.subr.bf16.mxu1 %v6479_v18  ;;  %v1138_v8 = vld [vmem:[#allocation5 + $0x658] sm:$0xff]  ;;  %v1137_v18 = vld [vmem:[#allocation5 + $0x650] sm:$0xff] }
 0x2e0   :  { %6544 = vmatprep.subr.bf16.mxu0 %v6543_v10  ;;  %v6563_v10 = vpack.c.bf16 %v1142_v9, %v1138_v8  ;;  %v6565_v21 = vpack.c.bf16 %v1141_v19, %v1137_v18  ;;  %v6581_v8 = vpack.c.bf16 %v1173_v2, %v1169_v50  ;;  %v1180_v18 = vld [vmem:[#allocation5 + $0x7a8] sm:$0xff]  ;;  %v1177_v19 = vld [vmem:[#allocation5 + $0x790] sm:$0xff] }
 0x2e1   :  { %v6585_v22 = vpack.c.bf16 %v1181_v20, %v1177_v19  ;;  %v1460_v19 = vld [vmem:[#allocation5 + $0x40] sm:$0xff]  ;;  %v1469_v20 = vld [vmem:[#allocation5 + $0x88] sm:$0xff] }
 0x2e2   :  { %6482 = vmatpush1.bf16.msra.mxu1 %v6481_v25  ;;  %v1150_v25 = vld [vmem:[#allocation5 + $0x6b8] sm:$0xff] }
 0x2e3   :  { %6546 = vmatpush1.bf16.msra.mxu0 %v6545_v24  ;;  %6484 = vmatprep.subr.bf16.mxu1 %v6483_v32  ;;  %v1146_v24 = vld [vmem:[#allocation5 + $0x698] sm:$0xff]  ;;  %v6503_v32 = vpack.c.bf16 %v1148_v30, %v1144_v29  ;;  %v1184_v30 = vld [vmem:[#allocation5 + $0x7c8] sm:$0xff] }
 0x2e4   :  { %6548 = vmatprep.subr.bf16.mxu0 %v6547_v26  ;;  %v6567_v26 = vpack.c.bf16 %v1150_v25, %v1146_v24  ;;  %v1179_v24 = vld [vmem:[#allocation5 + $0x7a0] sm:$0xff]  ;;  %v1186_v25 = vld [vmem:[#allocation5 + $0x7d8] sm:$0xff]  ;;  %v6523_v33 = vpack.c.bf16 %v1188_v31, %v1184_v30 }
 0x2e5   :  { %v1190_v29 = vld [vmem:[#allocation5 + $0x7f8] sm:$0xff] }
 0x2e6   :  { %6486 = vmatpush1.bf16.msra.mxu1 %v6485_v3  ;;  %v1158_v3 = vld [vmem:[#allocation5 + $0x6f8] sm:$0xff] }
 0x2e7   :  { %6550 = vmatpush1.bf16.msra.mxu0 %v6549_v43  ;;  %6488 = vmatprep.subr.bf16.mxu1 %v6487_v47  ;;  %v1154_v43 = vld [vmem:[#allocation5 + $0x6d8] sm:$0xff]  ;;  %v6507_v47 = vpack.c.bf16 %v1156_v45, %v1152_v44 }
 0x2e8   :  { %6552 = vmatprep.subr.bf16.mxu0 %v6551_v38  ;;  %v6571_v38 = vpack.c.bf16 %v1158_v3, %v1154_v43  ;;  %v1453_v43 = vld [vmem:[#allocation5 + $0x8] sm:$0xff] }
 0x2e9   :  { %v1457_v3 = vld [vmem:[#allocation5 + $0x28] sm:$0xff] }
 0x2ea   :  { %6490 = vmatpush1.bf16.msra.mxu1 %v6489_v28  ;;  %v1166_v28 = vld [vmem:[#allocation5 + $0x738] sm:$0xff]  ;;  %v6615_v45 = vpack.c.bf16 %v1457_v3, %v1453_v43  ;;  %v1484_v43 = vld [vmem:[#allocation5 + $0x100] sm:$0xff] }
 0x2eb   :  { %6554 = vmatpush1.bf16.msra.mxu0 %v6553_v27  ;;  %6492 = vmatprep.subr.bf16.mxu1 %v6491_v5  ;;  %v1162_v27 = vld [vmem:[#allocation5 + $0x718] sm:$0xff]  ;;  %v6511_v5 = vpack.c.bf16 %v1164_v52, %v1160_v40  ;;  %v1488_v3 = vld [vmem:[#allocation5 + $0x120] sm:$0xff] }
 0x2ec   :  { %6556 = vmatprep.subr.bf16.mxu0 %v6555_v39  ;;  %v6575_v39 = vpack.c.bf16 %v1166_v28, %v1162_v27 }
 0x2ee   :  { %6494 = vmatpush1.bf16.msra.mxu1 %v6493_v58  ;;  %v6513_v58 = vpack.c.bf16 %v1163_v56, %v1159_v51  ;;  %v896_v51 = vld [vmem:[#allocation7 + $0x18] sm:$0xff] }
 0x2ef   :  { %6558 = vmatpush1.bf16.msra.mxu0 %v6557_v57  ;;  %6496 = vmatprep.subr.bf16.mxu1 %v6495_v63  ;;  %v6577_v57 = vpack.c.bf16 %v1165_v49, %v1161_v53  ;;  %v1172_v63 = vld [vmem:[#allocation5 + $0x768] sm:$0xff]  ;;  %v895_v49 = vld [vmem:[#allocation7 + $0x10] sm:$0xff] }
 0x2f0   :  { %6560 = vmatprep.subr.bf16.mxu0 %v6559_v59  ;;  %v1170_v59 = vld [vmem:[#allocation5 + $0x758] sm:$0xff]  ;;  %v6515_v1 = vpack.c.bf16 %v1172_v63, %v1168_v62 }
 0x2f1   :  { %v6579_v61 = vpack.c.bf16 %v1174_v60, %v1170_v59 }
 0x2f2   :  { %6498 = vmatpush1.bf16.msra.mxu1 %v6497_v7  ;;  %v1171_v7 = vld [vmem:[#allocation5 + $0x760] sm:$0xff] }
 0x2f3   :  { %6562 = vmatpush1.bf16.msra.mxu0 %v6561_v6  ;;  %6500 = vmatprep.subr.bf16.mxu1 %v6499_v14  ;;  %v1167_v6 = vld [vmem:[#allocation5 + $0x740] sm:$0xff] }
 0x2f4   :  { %6564 = vmatprep.subr.bf16.mxu0 %v6563_v10  ;;  %v6517_v9 = vpack.c.bf16 %v1171_v7, %v1167_v6  ;;  %v1178_v10 = vld [vmem:[#allocation5 + $0x798] sm:$0xff]  ;;  %v1452_v6 = vld [vmem:[#allocation5] sm:$0xff] }
 0x2f5   :  { %v6583_v14 = vpack.c.bf16 %v1182_v11, %v1178_v10  ;;  %v1456_v7 = vld [vmem:[#allocation5 + $0x20] sm:$0xff] }
 0x2f6   :  { %6502 = vmatpush1.bf16.msra.mxu1 %v6501_v23  ;;  %v1175_v23 = vld [vmem:[#allocation5 + $0x780] sm:$0xff] }
 0x2f7   :  { %6566 = vmatpush1.bf16.msra.mxu0 %v6565_v21  ;;  %6504 = vmatprep.subr.bf16.mxu1 %v6503_v32  ;;  %v6519_v21 = vpack.c.bf16 %v1180_v18, %v1176_v12  ;;  %v6587_v32 = vpack.c.bf16 %v1190_v29, %v1186_v25  ;;  %v6617_v12 = vpack.c.bf16 %v1456_v7, %v1452_v6  ;;  %v1472_v25 = vld [vmem:[#allocation5 + $0xa0] sm:$0xff]  ;;  %v1481_v29 = vld [vmem:[#allocation5 + $0xe8] sm:$0xff] }
 0x2f8   :  { %6568 = vmatprep.subr.bf16.mxu0 %v6567_v26  ;;  %v6521_v26 = vpack.c.bf16 %v1179_v24, %v1175_v23  ;;  %v1468_v24 = vld [vmem:[#allocation5 + $0x80] sm:$0xff]  ;;  %v1537_v6 = vld [vmem:[#allocation5 + $0x2a8] sm:$0xff] }
 0x2f9   :  { %v6625_v30 = vpack.c.bf16 %v1472_v25, %v1468_v24  ;;  %v1548_v25 = vld [vmem:[#allocation5 + $0x300] sm:$0xff] }
 0x2fa   :  { %6506 = vmatpush1.bf16.msra.mxu1 %v6505_v37  ;;  %v1187_v37 = vld [vmem:[#allocation5 + $0x7e0] sm:$0xff] }
 0x2fb   :  { %6570 = vmatpush1.bf16.msra.mxu0 %v6569_v36  ;;  %6508 = vmatprep.subr.bf16.mxu1 %v6507_v47  ;;  %v1183_v36 = vld [vmem:[#allocation5 + $0x7c0] sm:$0xff] }
 0x2fc   :  { %6572 = vmatprep.subr.bf16.mxu0 %v6571_v38  ;;  %v6589_v38 = vpack.c.bf16 %v1189_v35, %v1185_v34  ;;  %v6525_v44 = vpack.c.bf16 %v1187_v37, %v1183_v36  ;;  %v1485_v34 = vld [vmem:[#allocation5 + $0x108] sm:$0xff] }
 0x2fd   :  { %v1489_v35 = vld [vmem:[#allocation5 + $0x128] sm:$0xff] }
 0x2fe   :  { %6510 = vmatpush1.bf16.msra.mxu1 %v6509_v16  ;;  %v8564_v16 = vld [vmem:[#allocation7 + $0x8] sm:$0xff]  ;;  %v6631_v37 = vpack.c.bf16 %v1489_v35, %v1485_v34  ;;  %v1560_v34 = vld [vmem:[#allocation5 + $0x360] sm:$0xff] }
 0x2ff   :  { %6574 = vmatpush1.bf16.msra.mxu0 %v6573_v15  ;;  %6512 = vmatprep.subr.bf16.mxu1 %v6511_v5  ;;  %v964_v15 = vadd.f32 %v8563_v55, %v8881_v13  ;;  %v966_v27 = vadd.f32 %v8564_v16, %v8883_v17  ;;  %v1505_v55 = vld [vmem:[#allocation5 + $0x1a8] sm:$0xff] }
 0x300   :  { %6576 = vmatprep.subr.bf16.mxu0 %v6575_v39  ;;  %v1565_v35 = vld [vmem:[#allocation5 + $0x388] sm:$0xff] }
 0x301   :  { %v5597_v28 = vmul.f32 -1.442695, %v964_v15  ;;  %v5598_v39 = vmul.f32 -1.442695, %v966_v27  ;;  %v1500_v27 = vld [vmem:[#allocation5 + $0x180] sm:$0xff] }
 0x302   :  { %6514 = vmatpush1.bf16.msra.mxu1 %v6513_v58 }
 0x303   :  { %6578 = vmatpush1.bf16.msra.mxu0 %v6577_v57  ;;  %6516 = vmatprep.subr.bf16.mxu1 %v6515_v1  ;;  %8339 = vpow2.f32 %v5597_v28  ;;  %v1504_v28 = vld [vmem:[#allocation5 + $0x1a0] sm:$0xff] }
 0x304   :  { %6580 = vmatprep.subr.bf16.mxu0 %v6579_v61  ;;  %8341 = vpow2.f32 %v5598_v39  ;;  %v1509_v39 = vld [vmem:[#allocation5 + $0x1c8] sm:$0xff] }
 0x306   :  { %6518 = vmatpush1.bf16.msra.mxu1 %v6517_v9  ;;  %v1465_v9 = vld [vmem:[#allocation5 + $0x68] sm:$0xff] }
 0x307   :  { %6582 = vmatpush1.bf16.msra.mxu0 %v6581_v8  ;;  %6520 = vmatprep.subr.bf16.mxu1 %v6519_v21  ;;  %v1461_v8 = vld [vmem:[#allocation5 + $0x48] sm:$0xff] }
 0x308   :  { %6584 = vmatprep.subr.bf16.mxu0 %v6583_v14  ;;  %v6619_v18 = vpack.c.bf16 %v1465_v9, %v1461_v8  ;;  %v1473_v21 = vld [vmem:[#allocation5 + $0xa8] sm:$0xff]  ;;  %v1532_v9 = vld [vmem:[#allocation5 + $0x280] sm:$0xff] }
 0x309   :  { %v6623_v23 = vpack.c.bf16 %v1473_v21, %v1469_v20  ;;  %v1544_v20 = vld [vmem:[#allocation5 + $0x2e0] sm:$0xff]  ;;  %v1549_v21 = vld [vmem:[#allocation5 + $0x308] sm:$0xff] }
 0x30a   :  { %6522 = vmatpush1.bf16.msra.mxu1 %v6521_v26  ;;  %v1477_v26 = vld [vmem:[#allocation5 + $0xc8] sm:$0xff] }
 0x30b   :  { %6586 = vmatpush1.bf16.msra.mxu0 %v6585_v22  ;;  %6524 = vmatprep.subr.bf16.mxu1 %v6523_v33  ;;  %v6627_v31 = vpack.c.bf16 %v1481_v29, %v1477_v26  ;;  %v1480_v33 = vld [vmem:[#allocation5 + $0xe0] sm:$0xff]  ;;  %v1557_v29 = vld [vmem:[#allocation5 + $0x348] sm:$0xff] }
 0x30c   :  { %6588 = vmatprep.subr.bf16.mxu0 %v6587_v32  ;;  %v1476_v32 = vld [vmem:[#allocation5 + $0xc0] sm:$0xff] }
 0x30d   :  { %v8340_v40 = vpop.eup %8339  ;;  %v6629_v36 = vpack.c.bf16 %v1480_v33, %v1476_v32  ;;  %v1552_v26 = vld [vmem:[#allocation5 + $0x320] sm:$0xff] }
 0x30e   :  { %6526 = vmatpush1.bf16.msra.mxu1 %v6525_v44  ;;  %v8342_v52 = vpop.eup %8341  ;;  %v1042_v53 = vadd.f32 1.0, %v8340_v40  ;;  %v1497_v44 = vld [vmem:[#allocation5 + $0x168] sm:$0xff]  ;;  %v1556_v33 = vld [vmem:[#allocation5 + $0x340] sm:$0xff] }
 0x30f   :  { %6590 = vmatpush1.bf16.msra.mxu0 %v6589_v38  ;;  %6591 = vmatprep.subr.bf16.mxu1 %v8692_v4  ;;  %v1048_v5 = vadd.f32 1.0, %v8342_v52  ;;  %v1493_v38 = vld [vmem:[#allocation5 + $0x148] sm:$0xff]  ;;  %v6641_v52 = vpack.c.bf16 %v1504_v28, %v1500_v27 }
 0x310   :  { %6616 = vmatprep.subr.bf16.mxu0 %v6615_v45  ;;  %8343 = vrcp.f32 %v1042_v53  ;;  %v6633_v45 = vpack.c.bf16 %v1488_v3, %v1484_v43  ;;  %v1513_v40 = vld [vmem:[#allocation5 + $0x1e8] sm:$0xff]  ;;  %v1564_v3 = vld [vmem:[#allocation5 + $0x380] sm:$0xff] }
 0x311   :  { %8345 = vrcp.f32 %v1048_v5  ;;  %v6643_v53 = vpack.c.bf16 %v1513_v40, %v1509_v39  ;;  %v1508_v5 = vld [vmem:[#allocation5 + $0x1c0] sm:$0xff]  ;;  %v1362_v27 = vld [vmem:[#allocation8 + $0x8] sm:$0xff]  ;;  %v1363_v39 = vld [vmem:[#allocation8 + $0x10] sm:$0xff] }
 0x312   :  { %v1364_v40 = vld [vmem:[#allocation8 + $0x18] sm:$0xff] }
 0x31a   :  { %v8344_v17 = vpop.eup %8343 }
 0x31b   :  { %v8346_v60 = vpop.eup %8345 }
 0x31c   :  { %v1058_v62 = vmul.f32 %v8346_v60, %v8838_v41  ;;  %v1464_v41 = vld [vmem:[#allocation5 + $0x60] sm:$0xff]  ;;  %v1529_v60 = vld [vmem:[#allocation5 + $0x268] sm:$0xff] }
 0x31d   :  { %v6621_v22 = vpack.c.bf16 %v1464_v41, %v1460_v19  ;;  %v1540_v41 = vld [vmem:[#allocation5 + $0x2c0] sm:$0xff] }
 0x365   :  { %v758_v47 = vpop.f32.mrb[4].mxu0 }
 0x366   :  { %v759_v48 = vadd.f32 %v758_v47, %v691_v46  ;;  %v5809_v54 = vpop.f32.mrb[5].mxu0  ;;  %v6635_v46 = vpack.c.bf16 %v1497_v44, %v1493_v38  ;;  %v1492_v47 = vld [vmem:[#allocation5 + $0x140] sm:$0xff]  ;;  %v1573_v44 = vld [vmem:[#allocation5 + $0x3c8] sm:$0xff] }
 0x367   :  { %v1501_v54 = vld [vmem:[#allocation5 + $0x188] sm:$0xff]  ;;  %v1568_v38 = vld [vmem:[#allocation5 + $0x3a0] sm:$0xff] }
 0x368   :  { %762 = vst [vmem:[#allocation10] sm:$0xff] %v759_v48  ;;  %v1496_v48 = vld [vmem:[#allocation5 + $0x160] sm:$0xff]  ;;  %v6639_v16 = vpack.c.bf16 %v1505_v55, %v1501_v54 }
 0x369   :  { %v6637_v15 = vpack.c.bf16 %v1496_v48, %v1492_v47  ;;  %v1572_v48 = vld [vmem:[#allocation5 + $0x3c0] sm:$0xff] }
 0x36a   :  { %v1576_v54 = vld [vmem:[#allocation5 + $0x3e0] sm:$0xff] }
 0x36b   :  { %v6677_v55 = vpack.c.bf16 %v1576_v54, %v1572_v48  ;;  %v1458_v48 = vld [vmem:[#allocation5 + $0x30] sm:$0xff]  ;;  %v1463_v54 = vld [vmem:[#allocation5 + $0x58] sm:$0xff] }
 0x3a5   :  { %v1034_v56 = vpop.f32.mrb[6].mxu0 }
 0x3a6   :  { %v1035_v57 = vadd.f32 %v1034_v56, %v895_v49  ;;  %v1036_v58 = vpop.f32.mrb[7].mxu0  ;;  %v1512_v49 = vld [vmem:[#allocation5 + $0x1e0] sm:$0xff]  ;;  %v1521_v56 = vld [vmem:[#allocation5 + $0x228] sm:$0xff] }
 0x3a7   :  { %v1037_v59 = vadd.f32 %v1036_v58, %v896_v51  ;;  %v1517_v51 = vld [vmem:[#allocation5 + $0x208] sm:$0xff] }
 0x3a8   :  { %8347 = vtanh.f32 %v1035_v57  ;;  %v6645_v57 = vpack.c.bf16 %v1512_v49, %v1508_v5  ;;  %v6647_v58 = vpack.c.bf16 %v1521_v56, %v1517_v51  ;;  %v1366_v5 = vld [vmem:[#allocation8 + $0x28] sm:$0xff]  ;;  %v1367_v51 = vld [vmem:[#allocation8 + $0x30] sm:$0xff]  ;;  %v1368_v56 = vld [vmem:[#allocation8 + $0x38] sm:$0xff] }
 0x3a9   :  { %v5599_v13 = vmul.f32 -1.442695, %v1037_v59  ;;  %v1516_v59 = vld [vmem:[#allocation5 + $0x200] sm:$0xff] }
 0x3ab   :  { %8349 = vpow2.f32 %v5599_v13  ;;  %v1520_v13 = vld [vmem:[#allocation5 + $0x220] sm:$0xff] }
 0x3b2   :  { %v8348_v61 = vpop.eup %8347 }
 0x3b3   :  { %v1059_v63 = vmul.f32 %v8348_v61, %v8344_v17  ;;  %v1525_v17 = vld [vmem:[#allocation5 + $0x248] sm:$0xff]  ;;  %v6649_v61 = vpack.c.bf16 %v1520_v13, %v1516_v59 }
 0x3b4   :  { %v1370_v59 = vld [vmem:[#allocation8 + $0x48] sm:$0xff] }
 0x3b5   :  { %v8350_v50 = vpop.eup %8349  ;;  %v8894_v1 = vadd.f32 %v1059_v63, %v1058_v62  ;;  %v6651_v62 = vpack.c.bf16 %v1529_v60, %v1525_v17  ;;  %v1524_v63 = vld [vmem:[#allocation5 + $0x240] sm:$0xff]  ;;  %v1371_v17 = vld [vmem:[#allocation8 + $0x50] sm:$0xff]  ;;  %v1372_v60 = vld [vmem:[#allocation8 + $0x58] sm:$0xff] }
 0x3b6   :  { %v1055_v2 = vadd.f32 1.0, %v8350_v50  ;;  %v1528_v50 = vld [vmem:[#allocation5 + $0x260] sm:$0xff] }
 0x3b7   :  { %8351 = vtanh.f32 %v8894_v1  ;;  %v6653_v7 = vpack.c.bf16 %v1528_v50, %v1524_v63  ;;  %v1374_v63 = vld [vmem:[#allocation8 + $0x68] sm:$0xff] }
 0x3b8   :  { %8353 = vrcp.f32 %v1055_v2  ;;  %v1533_v2 = vld [vmem:[#allocation5 + $0x288] sm:$0xff] }
 0x3b9   :  { %v6655_v8 = vpack.c.bf16 %v1537_v6, %v1533_v2  ;;  %v1375_v2 = vld [vmem:[#allocation8 + $0x70] sm:$0xff]  ;;  %v1376_v6 = vld [vmem:[#allocation8 + $0x78] sm:$0xff] }
 0x3c1   :  { %v8352_v10 = vpop.eup %8351 }
 0x3c2   :  { %v8354_v11 = vpop.eup %8353 }
 0x3c3   :  { %v8897_v14 = vmul.f32 %v8354_v11, %v8352_v10  ;;  %v1536_v10 = vld [vmem:[#allocation5 + $0x2a0] sm:$0xff]  ;;  %v1541_v11 = vld [vmem:[#allocation5 + $0x2c8] sm:$0xff] }
 0x3c5   :  { %1260 = vmatmul.mubr.f32.vlgmr.msra.gmra.mrb[6].mxu1 %v8897_v14  ;;  %1331 = vmatmul.mubr.f32.vlgmr.msra.gmra.mrb[8].mxu0 %v8897_v14 }
 0x3c6   :  { %6618 = vmatpush1.bf16.msra.mxu0 %v6617_v12  ;;  %1648 = vmatprep.mubr.f32.mxu0 %v8897_v14  ;;  %v1545_v12 = vld [vmem:[#allocation5 + $0x2e8] sm:$0xff] }
 0x3c7   :  { %6620 = vmatprep.subr.bf16.mxu0 %v6619_v18  ;;  %5842 = vmatprep.mubr.msk.f32.mxu1 %vm8693_vm0, %v8691_v0  ;;  %v6657_v18 = vpack.c.bf16 %v1536_v10, %v1532_v9  ;;  %v6659_v19 = vpack.c.bf16 %v1545_v12, %v1541_v11  ;;  %v6613_v9 = vpack.c.bf16 %v1376_v6, %v1375_v2  ;;  %v1191_v11 = vld [vmem:[#allocation7 + $0x20] sm:$0xff]  ;;  %v1192_v12 = vld [vmem:[#allocation7 + $0x28] sm:$0xff]  ;;  %v1490_v6 = vld [vmem:[#allocation5 + $0x130] sm:$0xff] }
 0x3ca   :  { %6622 = vmatpush1.bf16.msra.mxu0 %v6621_v22  ;;  %v1553_v22 = vld [vmem:[#allocation5 + $0x328] sm:$0xff] }
 0x3cb   :  { %6624 = vmatprep.subr.bf16.mxu0 %v6623_v23  ;;  %v6661_v23 = vpack.c.bf16 %v1544_v20, %v1540_v41  ;;  %v6663_v24 = vpack.c.bf16 %v1553_v22, %v1549_v21 }
 0x3ce   :  { %6626 = vmatpush1.bf16.msra.mxu0 %v6625_v30  ;;  %v1561_v30 = vld [vmem:[#allocation5 + $0x368] sm:$0xff] }
 0x3cf   :  { %6628 = vmatprep.subr.bf16.mxu0 %v6627_v31  ;;  %v6665_v31 = vpack.c.bf16 %v1552_v26, %v1548_v25  ;;  %v6667_v32 = vpack.c.bf16 %v1561_v30, %v1557_v29  ;;  %v1194_v25 = vld [vmem:[#allocation7 + $0x38] sm:$0xff]  ;;  %v1193_v29 = vld [vmem:[#allocation7 + $0x30] sm:$0xff] }
 0x3d2   :  { %6630 = vmatpush1.bf16.msra.mxu0 %v6629_v36  ;;  %v1569_v36 = vld [vmem:[#allocation5 + $0x3a8] sm:$0xff] }
 0x3d3   :  { %6632 = vmatprep.subr.bf16.mxu0 %v6631_v37  ;;  %v6669_v37 = vpack.c.bf16 %v1560_v34, %v1556_v33  ;;  %v6671_v43 = vpack.c.bf16 %v1569_v36, %v1565_v35 }
 0x3d6   :  { %6634 = vmatpush1.bf16.msra.mxu0 %v6633_v45  ;;  %v1577_v45 = vld [vmem:[#allocation5 + $0x3e8] sm:$0xff] }
 0x3d7   :  { %6636 = vmatprep.subr.bf16.mxu0 %v6635_v46  ;;  %v6673_v46 = vpack.c.bf16 %v1568_v38, %v1564_v3  ;;  %v6675_v47 = vpack.c.bf16 %v1577_v45, %v1573_v44 }
 0x3da   :  { %6638 = vmatpush1.bf16.msra.mxu0 %v6637_v15  ;;  %v8904_v15 = vld [vmem:[#allocation2 + $0x10] sm:$0xff] }
 0x3db   :  { %6640 = vmatprep.subr.bf16.mxu0 %v6639_v16  ;;  %v1361_v16 = vld [vmem:[#allocation8] sm:$0xff] }
 0x3dc   :  { %v6592_v28 = vpack.c.bf16 %v1362_v27, %v1361_v16 }
 0x3de   :  { %6642 = vmatpush1.bf16.msra.mxu0 %v6641_v52  ;;  %6593 = vmatpush3.bf16.msra.mxu1 %v6592_v28  ;;  %v6595_v52 = vpack.c.bf16 %v1364_v40, %v1363_v39 }
 0x3df   :  { %6644 = vmatprep.subr.bf16.mxu0 %v6643_v53  ;;  %6594 = vmatprep.subr.bf16.mxu1 %v8692_v4  ;;  %v1365_v53 = vld [vmem:[#allocation8 + $0x20] sm:$0xff] }
 0x3e0   :  { %v6598_v49 = vpack.c.bf16 %v1366_v5, %v1365_v53  ;;  %v1466_v53 = vld [vmem:[#allocation5 + $0x70] sm:$0xff]  ;;  %v1471_v5 = vld [vmem:[#allocation5 + $0x98] sm:$0xff] }
 0x3e2   :  { %6646 = vmatpush1.bf16.msra.mxu0 %v6645_v57  ;;  %6596 = vmatpush3.bf16.msra.mxu1 %v6595_v52  ;;  %v6601_v57 = vpack.c.bf16 %v1368_v56, %v1367_v51  ;;  %v1462_v52 = vld [vmem:[#allocation5 + $0x50] sm:$0xff] }
 0x3e3   :  { %6648 = vmatprep.subr.bf16.mxu0 %v6647_v58  ;;  %6597 = vmatprep.subr.bf16.mxu1 %v8692_v4  ;;  %v1369_v58 = vld [vmem:[#allocation8 + $0x40] sm:$0xff]  ;;  %v1470_v56 = vld [vmem:[#allocation5 + $0x90] sm:$0xff] }
 0x3e4   :  { %v6604_v13 = vpack.c.bf16 %v1370_v59, %v1369_v58  ;;  %v1479_v58 = vld [vmem:[#allocation5 + $0xd8] sm:$0xff] }
 0x3e5   :  { %v1483_v59 = vld [vmem:[#allocation5 + $0xf8] sm:$0xff] }
 0x3e6   :  { %6650 = vmatpush1.bf16.msra.mxu0 %v6649_v61  ;;  %6599 = vmatpush3.bf16.msra.mxu1 %v6598_v49  ;;  %v6607_v61 = vpack.c.bf16 %v1372_v60, %v1371_v17  ;;  %v1475_v49 = vld [vmem:[#allocation5 + $0xb8] sm:$0xff]  ;;  %v6691_v17 = vpack.c.bf16 %v1483_v59, %v1479_v58  ;;  %v1478_v60 = vld [vmem:[#allocation5 + $0xd0] sm:$0xff] }
 0x3e7   :  { %6652 = vmatprep.subr.bf16.mxu0 %v6651_v62  ;;  %6600 = vmatprep.subr.bf16.mxu1 %v8692_v4  ;;  %v1373_v62 = vld [vmem:[#allocation8 + $0x60] sm:$0xff]  ;;  %v6687_v51 = vpack.c.bf16 %v1475_v49, %v1471_v5 }
 0x3e8   :  { %v6610_v50 = vpack.c.bf16 %v1374_v63, %v1373_v62  ;;  %v1487_v62 = vld [vmem:[#allocation5 + $0x118] sm:$0xff] }
 0x3e9   :  { %v1491_v63 = vld [vmem:[#allocation5 + $0x138] sm:$0xff] }
 0x3ea   :  { %6654 = vmatpush1.bf16.msra.mxu0 %v6653_v7  ;;  %6602 = vmatpush3.bf16.msra.mxu1 %v6601_v57  ;;  %v1455_v7 = vld [vmem:[#allocation5 + $0x18] sm:$0xff]  ;;  %v1474_v57 = vld [vmem:[#allocation5 + $0xb0] sm:$0xff]  ;;  %v6695_v2 = vpack.c.bf16 %v1491_v63, %v1487_v62 }
 0x3eb   :  { %6656 = vmatprep.subr.bf16.mxu0 %v6655_v8  ;;  %6603 = vmatprep.subr.bf16.mxu1 %v8692_v4  ;;  %v1459_v8 = vld [vmem:[#allocation5 + $0x38] sm:$0xff] }
 0x3ec   :  { %v6679_v10 = vpack.c.bf16 %v1459_v8, %v1455_v7  ;;  %v1495_v7 = vld [vmem:[#allocation5 + $0x158] sm:$0xff] }
 0x3ed   :  { %v1499_v8 = vld [vmem:[#allocation5 + $0x178] sm:$0xff] }
 0x3ee   :  { %6658 = vmatpush1.bf16.msra.mxu0 %v6657_v18  ;;  %6605 = vmatpush3.bf16.msra.mxu1 %v6604_v13  ;;  %v6689_v13 = vpack.c.bf16 %v1474_v57, %v1470_v56  ;;  %v1551_v56 = vld [vmem:[#allocation5 + $0x318] sm:$0xff] }
 0x3ef   :  { %6660 = vmatprep.subr.bf16.mxu0 %v6659_v19  ;;  %6606 = vmatprep.subr.bf16.mxu1 %v8692_v4  ;;  %v1555_v57 = vld [vmem:[#allocation5 + $0x338] sm:$0xff] }
 0x3f0   :  { %v6727_v59 = vpack.c.bf16 %v1555_v57, %v1551_v56  ;;  %v1770_v56 = vld [vmem:[#allocation5 + $0x4a0] sm:$0xff] }
 0x3f2   :  { %6662 = vmatpush1.bf16.msra.mxu0 %v6661_v23  ;;  %6608 = vmatpush3.bf16.msra.mxu1 %v6607_v61  ;;  %v1482_v61 = vld [vmem:[#allocation5 + $0xf0] sm:$0xff] }
 0x3f3   :  { %6664 = vmatprep.subr.bf16.mxu0 %v6663_v24  ;;  %6609 = vmatprep.subr.bf16.mxu1 %v8692_v4 }
 0x3f6   :  { %6666 = vmatpush1.bf16.msra.mxu0 %v6665_v31  ;;  %6611 = vmatpush3.bf16.msra.mxu1 %v6610_v50  ;;  %v6693_v50 = vpack.c.bf16 %v1482_v61, %v1478_v60  ;;  %v1559_v60 = vld [vmem:[#allocation5 + $0x358] sm:$0xff] }
 0x3f7   :  { %6668 = vmatprep.subr.bf16.mxu0 %v6667_v32  ;;  %6612 = vmatprep.subr.bf16.mxu1 %v8692_v4  ;;  %v1563_v61 = vld [vmem:[#allocation5 + $0x378] sm:$0xff] }
 0x3f8   :  { %v6731_v63 = vpack.c.bf16 %v1563_v61, %v1559_v60  ;;  %v1779_v61 = vld [vmem:[#allocation5 + $0x4e8] sm:$0xff] }
 0x3fa   :  { %6670 = vmatpush1.bf16.msra.mxu0 %v6669_v37  ;;  %6614 = vmatpush3.bf16.msra.mxu1 %v6613_v9 }
 0x3fb   :  { %6672 = vmatprep.subr.bf16.mxu0 %v6671_v43  ;;  %6680 = vmatprep.subr.bf16.mxu1 %v6679_v10  ;;  %v6699_v10 = vpack.c.bf16 %v1499_v8, %v1495_v7 }
 0x3fe   :  { %6674 = vmatpush1.bf16.msra.mxu0 %v6673_v46 }
 0x3ff   :  { %6676 = vmatprep.subr.bf16.mxu0 %v6675_v47  ;;  %v1454_v47 = vld [vmem:[#allocation5 + $0x10] sm:$0xff] }
 0x400   :  { %v6681_v28 = vpack.c.bf16 %v1458_v48, %v1454_v47  ;;  %v1526_v47 = vld [vmem:[#allocation5 + $0x250] sm:$0xff] }
 0x401   :  { %v1530_v48 = vld [vmem:[#allocation5 + $0x270] sm:$0xff] }
 0x402   :  { %6678 = vmatpush1.bf16.msra.mxu0 %v6677_v55  ;;  %v1467_v55 = vld [vmem:[#allocation5 + $0x78] sm:$0xff] }
 0x403   :  { %v6683_v40 = vpack.c.bf16 %v1467_v55, %v1463_v54  ;;  %v1535_v54 = vld [vmem:[#allocation5 + $0x298] sm:$0xff] }
 0x404   :  { %v1539_v55 = vld [vmem:[#allocation5 + $0x2b8] sm:$0xff] }
 0x405   :  { %1649 = vmatmul.mubr.f32.vlgmr.msra.gmra.mrb[10].mxu0 %v8904_v15 }
 0x498   :  { %v1261_v18 = vpop.f32.mrb[6].mxu1  ;;  %v1332_v19 = vpop.f32.mrb[8].mxu0 }
 0x499   :  { %v1262_v41 = vadd.f32 %v1261_v18, %v1191_v11  ;;  %v1263_v20 = vpop.f32.mrb[7].mxu1  ;;  %v1334_v21 = vpop.f32.mrb[9].mxu0  ;;  %v1333_v31 = vadd.f32 %v1332_v19, %v1193_v29  ;;  %v1494_v11 = vld [vmem:[#allocation5 + $0x150] sm:$0xff]  ;;  %v1503_v18 = vld [vmem:[#allocation5 + $0x198] sm:$0xff] }
 0x49a   :  { %v1264_v22 = vadd.f32 %v1263_v20, %v1192_v12  ;;  %v1335_v26 = vadd.f32 %v1334_v21, %v1194_v25  ;;  %v1498_v12 = vld [vmem:[#allocation5 + $0x170] sm:$0xff]  ;;  %v1507_v19 = vld [vmem:[#allocation5 + $0x1b8] sm:$0xff] }
 0x49b   :  { %v5600_v23 = vmul.f32 -1.442695, %v1262_v41  ;;  %v6701_v20 = vpack.c.bf16 %v1498_v12, %v1494_v11  ;;  %v1511_v25 = vld [vmem:[#allocation5 + $0x1d8] sm:$0xff] }
 0x49c   :  { %v5601_v24 = vmul.f32 -1.442695, %v1264_v22  ;;  %v5602_v30 = vmul.f32 -1.442695, %v1335_v26  ;;  %v6703_v22 = vpack.c.bf16 %v1507_v19, %v1503_v18  ;;  %v1515_v26 = vld [vmem:[#allocation5 + $0x1f8] sm:$0xff] }
 0x49d   :  { %8355 = vpow2.f32 %v5600_v23  ;;  %v1502_v23 = vld [vmem:[#allocation5 + $0x190] sm:$0xff]  ;;  %v1575_v11 = vld [vmem:[#allocation5 + $0x3d8] sm:$0xff] }
 0x49e   :  { %8357 = vpow2.f32 %v5601_v24  ;;  %v1506_v24 = vld [vmem:[#allocation5 + $0x1b0] sm:$0xff]  ;;  %v1579_v12 = vld [vmem:[#allocation5 + $0x3f8] sm:$0xff] }
 0x49f   :  { %8359 = vpow2.f32 %v5602_v30  ;;  %v6705_v29 = vpack.c.bf16 %v1506_v24, %v1502_v23  ;;  %v6707_v30 = vpack.c.bf16 %v1515_v26, %v1511_v25  ;;  %v6739_v19 = vpack.c.bf16 %v1579_v12, %v1575_v11  ;;  %v1753_v24 = vld [vmem:[#allocation5 + $0x418] sm:$0xff]  ;;  %v1751_v26 = vld [vmem:[#allocation5 + $0x408] sm:$0xff] }
 0x4a0   :  { %8361 = vtanh.f32 %v1333_v31  ;;  %v1510_v31 = vld [vmem:[#allocation5 + $0x1d0] sm:$0xff]  ;;  %v1757_v25 = vld [vmem:[#allocation5 + $0x438] sm:$0xff] }
 0x4a7   :  { %v8356_v32 = vpop.eup %8355 }
 0x4a8   :  { %v8358_v33 = vpop.eup %8357  ;;  %v1340_v34 = vadd.f32 1.0, %v8356_v32  ;;  %v1514_v32 = vld [vmem:[#allocation5 + $0x1f0] sm:$0xff] }
 0x4a9   :  { %v1346_v35 = vadd.f32 1.0, %v8358_v33  ;;  %v8360_v36 = vpop.eup %8359  ;;  %v1519_v33 = vld [vmem:[#allocation5 + $0x218] sm:$0xff] }
 0x4aa   :  { %8363 = vrcp.f32 %v1340_v34  ;;  %v8362_v37 = vpop.eup %8361  ;;  %v1353_v44 = vadd.f32 1.0, %v8360_v36  ;;  %v1523_v34 = vld [vmem:[#allocation5 + $0x238] sm:$0xff] }
 0x4ab   :  { %8365 = vrcp.f32 %v1346_v35  ;;  %v6709_v35 = vpack.c.bf16 %v1514_v32, %v1510_v31  ;;  %v6711_v36 = vpack.c.bf16 %v1523_v34, %v1519_v33  ;;  %v1752_v31 = vld [vmem:[#allocation5 + $0x410] sm:$0xff] }
 0x4ac   :  { %8367 = vrcp.f32 %v1353_v44  ;;  %v1756_v32 = vld [vmem:[#allocation5 + $0x430] sm:$0xff] }
 0x4ad   :  { %v6809_v34 = vpack.c.bf16 %v1756_v32, %v1752_v31 }
 0x4b4   :  { %v8364_v43 = vpop.eup %8363 }
 0x4b5   :  { %v8366_v3 = vpop.eup %8365  ;;  %v1357_v38 = vmul.f32 %v8364_v43, %v8362_v37  ;;  %v1518_v37 = vld [vmem:[#allocation5 + $0x210] sm:$0xff] }
 0x4b6   :  { %v1356_v45 = vmul.f32 %v8366_v3, %v8873_v42  ;;  %v8368_v16 = vpop.eup %8367  ;;  %v6685_v42 = vpack.c.bf16 %v1466_v53, %v1462_v52  ;;  %v1522_v43 = vld [vmem:[#allocation5 + $0x230] sm:$0xff]  ;;  %v1527_v3 = vld [vmem:[#allocation5 + $0x258] sm:$0xff] }
 0x4b7   :  { %v6713_v44 = vpack.c.bf16 %v1522_v43, %v1518_v37  ;;  %v1543_v52 = vld [vmem:[#allocation5 + $0x2d8] sm:$0xff] }
 0x4b8   :  { %v8915_v46 = vadd.f32 %v1357_v38, %v1356_v45  ;;  %v1531_v38 = vld [vmem:[#allocation5 + $0x278] sm:$0xff] }
 0x4b9   :  { %v6715_v45 = vpack.c.bf16 %v1531_v38, %v1527_v3  ;;  %v1547_v53 = vld [vmem:[#allocation5 + $0x2f8] sm:$0xff]  ;;  %v1759_v38 = vld [vmem:[#allocation5 + $0x448] sm:$0xff] }
 0x4ba   :  { %8369 = vtanh.f32 %v8915_v46  ;;  %v6723_v49 = vpack.c.bf16 %v1547_v53, %v1543_v52  ;;  %v1761_v37 = vld [vmem:[#allocation5 + $0x458] sm:$0xff]  ;;  %v1767_v52 = vld [vmem:[#allocation5 + $0x488] sm:$0xff] }
 0x4bb   :  { %v1765_v3 = vld [vmem:[#allocation5 + $0x478] sm:$0xff]  ;;  %v1771_v53 = vld [vmem:[#allocation5 + $0x4a8] sm:$0xff] }
 0x4c4   :  { %v8370_v27 = vpop.eup %8369 }
 0x4c5   :  { %v8918_v39 = vmul.f32 %v8370_v27, %v8368_v16  ;;  %v6717_v16 = vpack.c.bf16 %v1530_v48, %v1526_v47  ;;  %v6719_v27 = vpack.c.bf16 %v1539_v55, %v1535_v54  ;;  %v1764_v47 = vld [vmem:[#allocation5 + $0x470] sm:$0xff]  ;;  %v1758_v48 = vld [vmem:[#allocation5 + $0x440] sm:$0xff] }
 0x4c6   :  { %v1762_v55 = vld [vmem:[#allocation5 + $0x460] sm:$0xff] }
 0x4c7   :  { %5843 = vmatmul.mubr.f32.vlgmr.msra.gmra.mrb[8].mxu1 %v8918_v39  ;;  %1946 = vmatprep.mubr.f32.mxu0 %v8918_v39 }
 0x4c8   :  { %6682 = vmatpush1.bf16.msra.mxu1 %v6681_v28  ;;  %1719 = vmatprep.mubr.f32.mxu1 %v8897_v14  ;;  %v1486_v14 = vld [vmem:[#allocation5 + $0x110] sm:$0xff] }
 0x4c9   :  { %6684 = vmatprep.subr.bf16.mxu1 %v6683_v40  ;;  %v6697_v9 = vpack.c.bf16 %v1490_v6, %v1486_v14  ;;  %v1534_v28 = vld [vmem:[#allocation5 + $0x290] sm:$0xff]  ;;  %v1567_v14 = vld [vmem:[#allocation5 + $0x398] sm:$0xff] }
 0x4ca   :  { %v1538_v40 = vld [vmem:[#allocation5 + $0x2b0] sm:$0xff]  ;;  %v1571_v6 = vld [vmem:[#allocation5 + $0x3b8] sm:$0xff] }
 0x4cb   :  { %v6721_v5 = vpack.c.bf16 %v1538_v40, %v1534_v28  ;;  %v6735_v8 = vpack.c.bf16 %v1571_v6, %v1567_v14  ;;  %v6749_v28 = vpack.c.bf16 %v1762_v55, %v1758_v48  ;;  %v1778_v14 = vld [vmem:[#allocation5 + $0x4e0] sm:$0xff]  ;;  %v1785_v6 = vld [vmem:[#allocation5 + $0x518] sm:$0xff]  ;;  %v1804_v48 = vld [vmem:[#allocation5 + $0x5b0] sm:$0xff] }
 0x4cc   :  { %6686 = vmatpush1.bf16.msra.mxu1 %v6685_v42  ;;  %v1542_v42 = vld [vmem:[#allocation5 + $0x2d0] sm:$0xff] }
 0x4cd   :  { %6688 = vmatprep.subr.bf16.mxu1 %v6687_v51  ;;  %v1546_v51 = vld [vmem:[#allocation5 + $0x2f0] sm:$0xff] }
 0x4ce   :  { %v6725_v58 = vpack.c.bf16 %v1546_v51, %v1542_v42  ;;  %v1772_v42 = vld [vmem:[#allocation5 + $0x4b0] sm:$0xff]  ;;  %v1766_v51 = vld [vmem:[#allocation5 + $0x480] sm:$0xff] }
 0x4d0   :  { %6690 = vmatpush1.bf16.msra.mxu1 %v6689_v13  ;;  %v1550_v13 = vld [vmem:[#allocation5 + $0x310] sm:$0xff] }
 0x4d1   :  { %6692 = vmatprep.subr.bf16.mxu1 %v6691_v17  ;;  %v1554_v17 = vld [vmem:[#allocation5 + $0x330] sm:$0xff] }
 0x4d2   :  { %v6729_v62 = vpack.c.bf16 %v1554_v17, %v1550_v13  ;;  %v1775_v13 = vld [vmem:[#allocation5 + $0x4c8] sm:$0xff]  ;;  %v6753_v17 = vpack.c.bf16 %v1770_v56, %v1766_v51  ;;  %v1812_v51 = vld [vmem:[#allocation5 + $0x5f0] sm:$0xff]  ;;  %v1806_v56 = vld [vmem:[#allocation5 + $0x5c0] sm:$0xff] }
 0x4d4   :  { %6694 = vmatpush1.bf16.msra.mxu1 %v6693_v50  ;;  %v1558_v50 = vld [vmem:[#allocation5 + $0x350] sm:$0xff] }
 0x4d5   :  { %6696 = vmatprep.subr.bf16.mxu1 %v6695_v2  ;;  %v1562_v2 = vld [vmem:[#allocation5 + $0x370] sm:$0xff] }
 0x4d6   :  { %v6733_v7 = vpack.c.bf16 %v1562_v2, %v1558_v50  ;;  %v6755_v50 = vpack.c.bf16 %v1779_v61, %v1775_v13  ;;  %v1774_v2 = vld [vmem:[#allocation5 + $0x4c0] sm:$0xff]  ;;  %v1821_v13 = vld [vmem:[#allocation5 + $0x638] sm:$0xff] }
 0x4d7   :  { %v6757_v11 = vpack.c.bf16 %v1778_v14, %v1774_v2  ;;  %v1820_v14 = vld [vmem:[#allocation5 + $0x630] sm:$0xff] }
 0x4d8   :  { %v8923_v41 = vpop.f32.mrb[10].mxu0  ;;  %6698 = vmatpush1.bf16.msra.mxu1 %v6697_v9  ;;  %v1566_v9 = vld [vmem:[#allocation5 + $0x390] sm:$0xff] }
 0x4d9   :  { %v8925_v21 = vpop.f32.mrb[11].mxu0  ;;  %6700 = vmatprep.subr.bf16.mxu1 %v6699_v10  ;;  %v1570_v10 = vld [vmem:[#allocation5 + $0x3b0] sm:$0xff] }
 0x4da   :  { %v6737_v18 = vpack.c.bf16 %v1570_v10, %v1566_v9  ;;  %v1787_v9 = vld [vmem:[#allocation5 + $0x528] sm:$0xff] }
 0x4dc   :  { %6702 = vmatpush1.bf16.msra.mxu1 %v6701_v20  ;;  %v1574_v20 = vld [vmem:[#allocation5 + $0x3d0] sm:$0xff] }
 0x4dd   :  { %6704 = vmatprep.subr.bf16.mxu1 %v6703_v22  ;;  %v1578_v22 = vld [vmem:[#allocation5 + $0x3f0] sm:$0xff] }
 0x4de   :  { %v6741_v23 = vpack.c.bf16 %v1578_v22, %v1574_v20  ;;  %v1782_v20 = vld [vmem:[#allocation5 + $0x500] sm:$0xff] }
 0x4e0   :  { %6706 = vmatpush1.bf16.msra.mxu1 %v6705_v29  ;;  %v6807_v29 = vpack.c.bf16 %v1757_v25, %v1753_v24  ;;  %v1793_v24 = vld [vmem:[#allocation5 + $0x558] sm:$0xff] }
 0x4e1   :  { %6708 = vmatprep.subr.bf16.mxu1 %v6707_v30  ;;  %v1755_v30 = vld [vmem:[#allocation5 + $0x428] sm:$0xff]  ;;  %v1797_v25 = vld [vmem:[#allocation5 + $0x578] sm:$0xff] }
 0x4e2   :  { %v6743_v33 = vpack.c.bf16 %v1755_v30, %v1751_v26  ;;  %v1791_v26 = vld [vmem:[#allocation5 + $0x548] sm:$0xff]  ;;  %v6827_v32 = vpack.c.bf16 %v1797_v25, %v1793_v24  ;;  %v1822_v24 = vld [vmem:[#allocation5 + $0x640] sm:$0xff] }
 0x4e4   :  { %6710 = vmatpush1.bf16.msra.mxu1 %v6709_v35  ;;  %v1750_v35 = vld [vmem:[#allocation5 + $0x400] sm:$0xff]  ;;  %6744 = vmatprep.subr.bf16.mxu0 %v6743_v33  ;;  %v1792_v33 = vld [vmem:[#allocation5 + $0x550] sm:$0xff] }
 0x4e5   :  { %6712 = vmatprep.subr.bf16.mxu1 %v6711_v36  ;;  %v1754_v36 = vld [vmem:[#allocation5 + $0x420] sm:$0xff] }
 0x4e6   :  { %v6745_v43 = vpack.c.bf16 %v1754_v36, %v1750_v35  ;;  %v1790_v35 = vld [vmem:[#allocation5 + $0x540] sm:$0xff] }
 0x4e8   :  { %6714 = vmatpush1.bf16.msra.mxu1 %v6713_v44  ;;  %v1763_v44 = vld [vmem:[#allocation5 + $0x468] sm:$0xff]  ;;  %6746 = vmatpush1.bf16.msra.mxu0 %v6745_v43  ;;  %v1801_v43 = vld [vmem:[#allocation5 + $0x598] sm:$0xff] }
 0x4e9   :  { %6716 = vmatprep.subr.bf16.mxu1 %v6715_v45  ;;  %v1760_v45 = vld [vmem:[#allocation5 + $0x450] sm:$0xff] }
 0x4ea   :  { %v6813_v54 = vpack.c.bf16 %v1764_v47, %v1760_v45  ;;  %v1800_v47 = vld [vmem:[#allocation5 + $0x590] sm:$0xff] }
 0x4ec   :  { %6718 = vmatpush1.bf16.msra.mxu1 %v6717_v16  ;;  %v1769_v16 = vld [vmem:[#allocation5 + $0x498] sm:$0xff] }
 0x4ed   :  { %6720 = vmatprep.subr.bf16.mxu1 %v6719_v27  ;;  %v1773_v27 = vld [vmem:[#allocation5 + $0x4b8] sm:$0xff] }
 0x4ee   :  { %v6815_v40 = vpack.c.bf16 %v1773_v27, %v1769_v16  ;;  %v1802_v16 = vld [vmem:[#allocation5 + $0x5a0] sm:$0xff]  ;;  %v1809_v27 = vld [vmem:[#allocation5 + $0x5d8] sm:$0xff] }
 0x4f0   :  { %6722 = vmatpush1.bf16.msra.mxu1 %v6721_v5  ;;  %v1768_v5 = vld [vmem:[#allocation5 + $0x490] sm:$0xff] }
 0x4f1   :  { %6724 = vmatprep.subr.bf16.mxu1 %v6723_v49  ;;  %v6751_v49 = vpack.c.bf16 %v1771_v53, %v1767_v52  ;;  %v6817_v57 = vpack.c.bf16 %v1772_v42, %v1768_v5  ;;  %v1811_v52 = vld [vmem:[#allocation5 + $0x5e8] sm:$0xff]  ;;  %v6833_v53 = vpack.c.bf16 %v1804_v48, %v1800_v47  ;;  %v1808_v42 = vld [vmem:[#allocation5 + $0x5d0] sm:$0xff] }
 0x4f2   :  { %v1839_v47 = vld [vmem:[#allocation5 + $0x6c8] sm:$0xff] }
 0x4f3   :  { %v1843_v48 = vld [vmem:[#allocation5 + $0x6e8] sm:$0xff] }
 0x4f4   :  { %6726 = vmatpush1.bf16.msra.mxu1 %v6725_v58  ;;  %v1777_v58 = vld [vmem:[#allocation5 + $0x4d8] sm:$0xff] }
 0x4f5   :  { %6728 = vmatprep.subr.bf16.mxu1 %v6727_v59  ;;  %v1781_v59 = vld [vmem:[#allocation5 + $0x4f8] sm:$0xff] }
 0x4f6   :  { %v6819_v60 = vpack.c.bf16 %v1781_v59, %v1777_v58  ;;  %v1810_v58 = vld [vmem:[#allocation5 + $0x5e0] sm:$0xff]  ;;  %v1817_v59 = vld [vmem:[#allocation5 + $0x618] sm:$0xff] }
 0x4f7   :  { %v6839_v61 = vpack.c.bf16 %v1821_v13, %v1817_v59  ;;  %v1846_v59 = vld [vmem:[#allocation5 + $0x700] sm:$0xff] }
 0x4f8   :  { %6730 = vmatpush1.bf16.msra.mxu1 %v6729_v62  ;;  %v1776_v62 = vld [vmem:[#allocation5 + $0x4d0] sm:$0xff]  ;;  %v1850_v13 = vld [vmem:[#allocation5 + $0x720] sm:$0xff] }
 0x4f9   :  { %6732 = vmatprep.subr.bf16.mxu1 %v6731_v63  ;;  %v1780_v63 = vld [vmem:[#allocation5 + $0x4f0] sm:$0xff] }
 0x4fa   :  { %v6821_v10 = vpack.c.bf16 %v1780_v63, %v1776_v62  ;;  %v1815_v62 = vld [vmem:[#allocation5 + $0x608] sm:$0xff] }
 0x4fb   :  { %v1819_v63 = vld [vmem:[#allocation5 + $0x628] sm:$0xff] }
 0x4fc   :  { %6734 = vmatpush1.bf16.msra.mxu1 %v6733_v7  ;;  %v1789_v7 = vld [vmem:[#allocation5 + $0x538] sm:$0xff]  ;;  %v6775_v2 = vpack.c.bf16 %v1819_v63, %v1815_v62 }
 0x4fd   :  { %6736 = vmatprep.subr.bf16.mxu1 %v6735_v8  ;;  %v1783_v8 = vld [vmem:[#allocation5 + $0x508] sm:$0xff]  ;;  %v6823_v12 = vpack.c.bf16 %v1789_v7, %v1785_v6  ;;  %v1814_v6 = vld [vmem:[#allocation5 + $0x600] sm:$0xff]  ;;  %v1861_v62 = vld [vmem:[#allocation5 + $0x778] sm:$0xff] }
 0x4fe   :  { %v6759_v22 = vpack.c.bf16 %v1787_v9, %v1783_v8  ;;  %v1818_v7 = vld [vmem:[#allocation5 + $0x620] sm:$0xff] }
 0x4ff   :  { %v6777_v9 = vpack.c.bf16 %v1818_v7, %v1814_v6  ;;  %v1860_v7 = vld [vmem:[#allocation5 + $0x770] sm:$0xff] }
 0x500   :  { %6738 = vmatpush1.bf16.msra.mxu1 %v6737_v18  ;;  %v1784_v18 = vld [vmem:[#allocation5 + $0x510] sm:$0xff] }
 0x501   :  { %6740 = vmatprep.subr.bf16.mxu1 %v6739_v19  ;;  %v1788_v19 = vld [vmem:[#allocation5 + $0x530] sm:$0xff] }
 0x502   :  { %v6825_v30 = vpack.c.bf16 %v1788_v19, %v1784_v18  ;;  %v1823_v18 = vld [vmem:[#allocation5 + $0x648] sm:$0xff] }
 0x503   :  { %v1827_v19 = vld [vmem:[#allocation5 + $0x668] sm:$0xff] }
 0x504   :  { %6742 = vmatpush1.bf16.msra.mxu1 %v6741_v23  ;;  %v1786_v23 = vld [vmem:[#allocation5 + $0x520] sm:$0xff] }
 0x505   :  { %6808 = vmatprep.subr.bf16.mxu1 %v6807_v29  ;;  %v1795_v29 = vld [vmem:[#allocation5 + $0x568] sm:$0xff]  ;;  %v6761_v31 = vpack.c.bf16 %v1786_v23, %v1782_v20  ;;  %v6779_v20 = vpack.c.bf16 %v1827_v19, %v1823_v18  ;;  %v1828_v23 = vld [vmem:[#allocation5 + $0x670] sm:$0xff]  ;;  %v1869_v18 = vld [vmem:[#allocation5 + $0x7b8] sm:$0xff] }
 0x506   :  { %v6763_v36 = vpack.c.bf16 %v1795_v29, %v1791_v26  ;;  %v1826_v26 = vld [vmem:[#allocation5 + $0x660] sm:$0xff]  ;;  %v1863_v19 = vld [vmem:[#allocation5 + $0x788] sm:$0xff] }
 0x507   :  { %1720 = vmatmul.mubr.f32.vlgmr.msra.gmra.mrb[10].mxu1 %v8904_v15  ;;  %v6811_v15 = vpack.c.bf16 %v1765_v3, %v1761_v37  ;;  %v1794_v37 = vld [vmem:[#allocation5 + $0x560] sm:$0xff]  ;;  %v1805_v3 = vld [vmem:[#allocation5 + $0x5b8] sm:$0xff]  ;;  %v6781_v29 = vpack.c.bf16 %v1826_v26, %v1822_v24  ;;  %v1868_v24 = vld [vmem:[#allocation5 + $0x7b0] sm:$0xff] }
 0x508   :  { %2017 = vmatprep.mubr.f32.mxu1 %v8918_v39  ;;  %6810 = vmatpush1.bf16.msra.mxu1 %v6809_v34  ;;  %v6747_v39 = vpack.c.bf16 %v1763_v44, %v1759_v38  ;;  %v1796_v34 = vld [vmem:[#allocation5 + $0x570] sm:$0xff]  ;;  %v1799_v38 = vld [vmem:[#allocation5 + $0x588] sm:$0xff]  ;;  %v6831_v45 = vpack.c.bf16 %v1805_v3, %v1801_v43  ;;  %v1830_v43 = vld [vmem:[#allocation5 + $0x680] sm:$0xff] }
 0x509   :  { %6812 = vmatprep.subr.bf16.mxu1 %v6811_v15  ;;  %v1803_v44 = vld [vmem:[#allocation5 + $0x5a8] sm:$0xff]  ;;  %v6829_v15 = vpack.c.bf16 %v1796_v34, %v1792_v33  ;;  %v1834_v3 = vld [vmem:[#allocation5 + $0x6a0] sm:$0xff] }
 0x50a   :  { %6748 = vmatprep.subr.bf16.mxu0 %v6747_v39  ;;  %v6765_v39 = vpack.c.bf16 %v1794_v37, %v1790_v35  ;;  %v6767_v55 = vpack.c.bf16 %v1803_v44, %v1799_v38  ;;  %v1831_v33 = vld [vmem:[#allocation5 + $0x688] sm:$0xff]  ;;  %v1832_v35 = vld [vmem:[#allocation5 + $0x690] sm:$0xff]  ;;  %v6785_v44 = vpack.c.bf16 %v1834_v3, %v1830_v43 }
 0x50b   :  { %6750 = vmatpush1.bf16.msra.mxu0 %v6749_v28  ;;  %v1813_v28 = vld [vmem:[#allocation5 + $0x5f8] sm:$0xff]  ;;  %v1835_v34 = vld [vmem:[#allocation5 + $0x6a8] sm:$0xff]  ;;  %v1836_v37 = vld [vmem:[#allocation5 + $0x6b0] sm:$0xff] }
 0x50c   :  { %6814 = vmatpush1.bf16.msra.mxu1 %v6813_v54  ;;  %6752 = vmatprep.subr.bf16.mxu0 %v6751_v49  ;;  %v1798_v54 = vld [vmem:[#allocation5 + $0x580] sm:$0xff]  ;;  %v6835_v49 = vpack.c.bf16 %v1813_v28, %v1809_v27  ;;  %v6849_v38 = vpack.c.bf16 %v1836_v37, %v1832_v35  ;;  %v1875_v35 = vld [vmem:[#allocation5 + $0x7e8] sm:$0xff]  ;;  %v1872_v43 = vld [vmem:[#allocation5 + $0x7d0] sm:$0xff] }
 0x50d   :  { %6816 = vmatprep.subr.bf16.mxu1 %v6815_v40  ;;  %v1807_v40 = vld [vmem:[#allocation5 + $0x5c8] sm:$0xff]  ;;  %v6769_v5 = vpack.c.bf16 %v1802_v16, %v1798_v54  ;;  %v1840_v54 = vld [vmem:[#allocation5 + $0x6d0] sm:$0xff]  ;;  %v1838_v27 = vld [vmem:[#allocation5 + $0x6c0] sm:$0xff] }
 0x50e   :  { %v1844_v16 = vld [vmem:[#allocation5 + $0x6f0] sm:$0xff]  ;;  %v1842_v28 = vld [vmem:[#allocation5 + $0x6e0] sm:$0xff] }
 0x50f   :  { %6754 = vmatpush1.bf16.msra.mxu0 %v6753_v17  ;;  %v6837_v17 = vpack.c.bf16 %v1812_v51, %v1808_v42  ;;  %v1847_v42 = vld [vmem:[#allocation5 + $0x708] sm:$0xff]  ;;  %v1876_v3 = vld [vmem:[#allocation5 + $0x7f0] sm:$0xff] }
 0x510   :  { %6818 = vmatpush1.bf16.msra.mxu1 %v6817_v57  ;;  %6756 = vmatprep.subr.bf16.mxu0 %v6755_v50  ;;  %v6771_v57 = vpack.c.bf16 %v1811_v52, %v1807_v40  ;;  %v1816_v50 = vld [vmem:[#allocation5 + $0x610] sm:$0xff]  ;;  %v6853_v40 = vpack.c.bf16 %v1844_v16, %v1840_v54  ;;  %v6789_v52 = vpack.c.bf16 %v1842_v28, %v1838_v27  ;;  %v1851_v51 = vld [vmem:[#allocation5 + $0x728] sm:$0xff]  ;;  %v1377_v54 = vld [vmem:[%s9227_s4] sm:$0xff] }
 0x511   :  { %6820 = vmatprep.subr.bf16.mxu1 %v6819_v60  ;;  %v6773_v60 = vpack.c.bf16 %v1810_v58, %v1806_v56  ;;  %v6841_v8 = vpack.c.bf16 %v1820_v14, %v1816_v50  ;;  %v1848_v56 = vld [vmem:[#allocation5 + $0x710] sm:$0xff]  ;;  %v1855_v50 = vld [vmem:[#allocation5 + $0x748] sm:$0xff]  ;;  %v1580_v28 = vld [vmem:[#allocation7] sm:$0xff] }
 0x512   :  { %v1852_v58 = vld [vmem:[#allocation5 + $0x730] sm:$0xff] }
 0x513   :  { %6758 = vmatpush1.bf16.msra.mxu0 %v6757_v11  ;;  %v1829_v11 = vld [vmem:[#allocation5 + $0x678] sm:$0xff]  ;;  %v1856_v14 = vld [vmem:[#allocation5 + $0x750] sm:$0xff] }
 0x514   :  { %6822 = vmatpush1.bf16.msra.mxu1 %v6821_v10  ;;  %6760 = vmatprep.subr.bf16.mxu0 %v6759_v22  ;;  %v1825_v10 = vld [vmem:[#allocation5 + $0x658] sm:$0xff]  ;;  %v1824_v22 = vld [vmem:[#allocation5 + $0x650] sm:$0xff] }
 0x515   :  { %6824 = vmatprep.subr.bf16.mxu1 %v6823_v12  ;;  %v6843_v12 = vpack.c.bf16 %v1829_v11, %v1825_v10  ;;  %v6845_v25 = vpack.c.bf16 %v1828_v23, %v1824_v22  ;;  %v6861_v10 = vpack.c.bf16 %v1860_v7, %v1856_v14  ;;  %v1867_v22 = vld [vmem:[#allocation5 + $0x7a8] sm:$0xff]  ;;  %v1864_v23 = vld [vmem:[#allocation5 + $0x790] sm:$0xff] }
 0x516   :  { %v6865_v26 = vpack.c.bf16 %v1868_v24, %v1864_v23  ;;  %v2147_v23 = vld [vmem:[#allocation5 + $0x40] sm:$0xff]  ;;  %v2156_v24 = vld [vmem:[#allocation5 + $0x88] sm:$0xff] }
 0x517   :  { %6762 = vmatpush1.bf16.msra.mxu0 %v6761_v31  ;;  %v1837_v31 = vld [vmem:[#allocation5 + $0x6b8] sm:$0xff] }
 0x518   :  { %6826 = vmatpush1.bf16.msra.mxu1 %v6825_v30  ;;  %6764 = vmatprep.subr.bf16.mxu0 %v6763_v36  ;;  %v1833_v30 = vld [vmem:[#allocation5 + $0x698] sm:$0xff]  ;;  %v6783_v36 = vpack.c.bf16 %v1835_v34, %v1831_v33  ;;  %v1871_v34 = vld [vmem:[#allocation5 + $0x7c8] sm:$0xff] }
 0x519   :  { %6828 = vmatprep.subr.bf16.mxu1 %v6827_v32  ;;  %v6847_v32 = vpack.c.bf16 %v1837_v31, %v1833_v30  ;;  %v1866_v30 = vld [vmem:[#allocation5 + $0x7a0] sm:$0xff]  ;;  %v1873_v31 = vld [vmem:[#allocation5 + $0x7d8] sm:$0xff]  ;;  %v6803_v37 = vpack.c.bf16 %v1875_v35, %v1871_v34 }
 0x51a   :  { %v1877_v33 = vld [vmem:[#allocation5 + $0x7f8] sm:$0xff] }
 0x51b   :  { %6766 = vmatpush1.bf16.msra.mxu0 %v6765_v39  ;;  %v1845_v39 = vld [vmem:[#allocation5 + $0x6f8] sm:$0xff] }
 0x51c   :  { %6830 = vmatpush1.bf16.msra.mxu1 %v6829_v15  ;;  %6768 = vmatprep.subr.bf16.mxu0 %v6767_v55  ;;  %v1841_v15 = vld [vmem:[#allocation5 + $0x6d8] sm:$0xff]  ;;  %v6787_v55 = vpack.c.bf16 %v1843_v48, %v1839_v47 }
 0x51d   :  { %6832 = vmatprep.subr.bf16.mxu1 %v6831_v45  ;;  %v6851_v45 = vpack.c.bf16 %v1845_v39, %v1841_v15  ;;  %v2140_v15 = vld [vmem:[#allocation5 + $0x8] sm:$0xff] }
 0x51e   :  { %v2144_v39 = vld [vmem:[#allocation5 + $0x28] sm:$0xff] }
 0x51f   :  { %6770 = vmatpush1.bf16.msra.mxu0 %v6769_v5  ;;  %v1853_v5 = vld [vmem:[#allocation5 + $0x738] sm:$0xff]  ;;  %v6895_v48 = vpack.c.bf16 %v2144_v39, %v2140_v15  ;;  %v2171_v15 = vld [vmem:[#allocation5 + $0x100] sm:$0xff] }
 0x520   :  { %6834 = vmatpush1.bf16.msra.mxu1 %v6833_v53  ;;  %6772 = vmatprep.subr.bf16.mxu0 %v6771_v57  ;;  %v1849_v53 = vld [vmem:[#allocation5 + $0x718] sm:$0xff]  ;;  %v6791_v57 = vpack.c.bf16 %v1851_v51, %v1847_v42  ;;  %v2175_v39 = vld [vmem:[#allocation5 + $0x120] sm:$0xff] }
 0x521   :  { %6836 = vmatprep.subr.bf16.mxu1 %v6835_v49  ;;  %v6855_v49 = vpack.c.bf16 %v1853_v5, %v1849_v53 }
 0x523   :  { %6774 = vmatpush1.bf16.msra.mxu0 %v6773_v60  ;;  %v6793_v60 = vpack.c.bf16 %v1850_v13, %v1846_v59  ;;  %v1583_v59 = vld [vmem:[#allocation7 + $0x18] sm:$0xff] }
 0x524   :  { %6838 = vmatpush1.bf16.msra.mxu1 %v6837_v17  ;;  %6776 = vmatprep.subr.bf16.mxu0 %v6775_v2  ;;  %v6857_v17 = vpack.c.bf16 %v1852_v58, %v1848_v56  ;;  %v1859_v2 = vld [vmem:[#allocation5 + $0x768] sm:$0xff]  ;;  %v1582_v58 = vld [vmem:[#allocation7 + $0x10] sm:$0xff] }
 0x525   :  { %6840 = vmatprep.subr.bf16.mxu1 %v6839_v61  ;;  %v1857_v61 = vld [vmem:[#allocation5 + $0x758] sm:$0xff]  ;;  %v6795_v6 = vpack.c.bf16 %v1859_v2, %v1855_v50 }
 0x526   :  { %v6859_v63 = vpack.c.bf16 %v1861_v62, %v1857_v61 }
 0x527   :  { %6778 = vmatpush1.bf16.msra.mxu0 %v6777_v9  ;;  %v1858_v9 = vld [vmem:[#allocation5 + $0x760] sm:$0xff] }
 0x528   :  { %6842 = vmatpush1.bf16.msra.mxu1 %v6841_v8  ;;  %6780 = vmatprep.subr.bf16.mxu0 %v6779_v20  ;;  %v1854_v8 = vld [vmem:[#allocation5 + $0x740] sm:$0xff] }
 0x529   :  { %6844 = vmatprep.subr.bf16.mxu1 %v6843_v12  ;;  %v6797_v11 = vpack.c.bf16 %v1858_v9, %v1854_v8  ;;  %v1865_v12 = vld [vmem:[#allocation5 + $0x798] sm:$0xff]  ;;  %v2139_v8 = vld [vmem:[#allocation5] sm:$0xff] }
 0x52a   :  { %v6863_v20 = vpack.c.bf16 %v1869_v18, %v1865_v12  ;;  %v2143_v9 = vld [vmem:[#allocation5 + $0x20] sm:$0xff] }
 0x52b   :  { %6782 = vmatpush1.bf16.msra.mxu0 %v6781_v29  ;;  %v1862_v29 = vld [vmem:[#allocation5 + $0x780] sm:$0xff] }
 0x52c   :  { %6846 = vmatpush1.bf16.msra.mxu1 %v6845_v25  ;;  %6784 = vmatprep.subr.bf16.mxu0 %v6783_v36  ;;  %v6799_v25 = vpack.c.bf16 %v1867_v22, %v1863_v19  ;;  %v6867_v36 = vpack.c.bf16 %v1877_v33, %v1873_v31  ;;  %v6897_v19 = vpack.c.bf16 %v2143_v9, %v2139_v8  ;;  %v2159_v31 = vld [vmem:[#allocation5 + $0xa0] sm:$0xff]  ;;  %v2168_v33 = vld [vmem:[#allocation5 + $0xe8] sm:$0xff] }
 0x52d   :  { %6848 = vmatprep.subr.bf16.mxu1 %v6847_v32  ;;  %v6801_v32 = vpack.c.bf16 %v1866_v30, %v1862_v29  ;;  %v2155_v30 = vld [vmem:[#allocation5 + $0x80] sm:$0xff]  ;;  %v2224_v8 = vld [vmem:[#allocation5 + $0x2a8] sm:$0xff] }
 0x52e   :  { %v6905_v34 = vpack.c.bf16 %v2159_v31, %v2155_v30  ;;  %v2235_v31 = vld [vmem:[#allocation5 + $0x300] sm:$0xff] }
 0x52f   :  { %6786 = vmatpush1.bf16.msra.mxu0 %v6785_v44  ;;  %v1874_v44 = vld [vmem:[#allocation5 + $0x7e0] sm:$0xff] }
 0x530   :  { %6850 = vmatpush1.bf16.msra.mxu1 %v6849_v38  ;;  %6788 = vmatprep.subr.bf16.mxu0 %v6787_v55  ;;  %v1870_v38 = vld [vmem:[#allocation5 + $0x7c0] sm:$0xff] }
 0x531   :  { %6852 = vmatprep.subr.bf16.mxu1 %v6851_v45  ;;  %v6869_v45 = vpack.c.bf16 %v1876_v3, %v1872_v43  ;;  %v6805_v47 = vpack.c.bf16 %v1874_v44, %v1870_v38  ;;  %v2172_v43 = vld [vmem:[#allocation5 + $0x108] sm:$0xff] }
 0x532   :  { %v2176_v3 = vld [vmem:[#allocation5 + $0x128] sm:$0xff] }
 0x533   :  { %6790 = vmatpush1.bf16.msra.mxu0 %v6789_v52  ;;  %v1651_v52 = vadd.f32 %v8923_v41, %v1580_v28  ;;  %v6911_v44 = vpack.c.bf16 %v2176_v3, %v2172_v43  ;;  %v2192_v28 = vld [vmem:[#allocation5 + $0x1a8] sm:$0xff]  ;;  %v2247_v43 = vld [vmem:[#allocation5 + $0x360] sm:$0xff] }
 0x534   :  { %6854 = vmatpush1.bf16.msra.mxu1 %v6853_v40  ;;  %6792 = vmatprep.subr.bf16.mxu0 %v6791_v57  ;;  %v1581_v40 = vld [vmem:[#allocation7 + $0x8] sm:$0xff] }
 0x535   :  { %6856 = vmatprep.subr.bf16.mxu1 %v6855_v49  ;;  %v1653_v53 = vadd.f32 %v8925_v21, %v1581_v40  ;;  %v5603_v5 = vmul.f32 -1.442695, %v1651_v52  ;;  %v2252_v3 = vld [vmem:[#allocation5 + $0x388] sm:$0xff] }
 0x537   :  { %6794 = vmatpush1.bf16.msra.mxu0 %v6793_v60  ;;  %v5604_v49 = vmul.f32 -1.442695, %v1653_v53  ;;  %8371 = vpow2.f32 %v5603_v5  ;;  %v2187_v53 = vld [vmem:[#allocation5 + $0x180] sm:$0xff] }
 0x538   :  { %6858 = vmatpush1.bf16.msra.mxu1 %v6857_v17  ;;  %6796 = vmatprep.subr.bf16.mxu0 %v6795_v6  ;;  %v2191_v5 = vld [vmem:[#allocation5 + $0x1a0] sm:$0xff] }
 0x539   :  { %6860 = vmatprep.subr.bf16.mxu1 %v6859_v63  ;;  %8373 = vpow2.f32 %v5604_v49  ;;  %v2196_v49 = vld [vmem:[#allocation5 + $0x1c8] sm:$0xff] }
 0x53b   :  { %6798 = vmatpush1.bf16.msra.mxu0 %v6797_v11  ;;  %v2152_v11 = vld [vmem:[#allocation5 + $0x68] sm:$0xff] }
 0x53c   :  { %6862 = vmatpush1.bf16.msra.mxu1 %v6861_v10  ;;  %6800 = vmatprep.subr.bf16.mxu0 %v6799_v25  ;;  %v2148_v10 = vld [vmem:[#allocation5 + $0x48] sm:$0xff] }
 0x53d   :  { %6864 = vmatprep.subr.bf16.mxu1 %v6863_v20  ;;  %v6899_v22 = vpack.c.bf16 %v2152_v11, %v2148_v10  ;;  %v2160_v25 = vld [vmem:[#allocation5 + $0xa8] sm:$0xff]  ;;  %v2219_v11 = vld [vmem:[#allocation5 + $0x280] sm:$0xff] }
 0x53e   :  { %v6903_v29 = vpack.c.bf16 %v2160_v25, %v2156_v24  ;;  %v2231_v24 = vld [vmem:[#allocation5 + $0x2e0] sm:$0xff]  ;;  %v2236_v25 = vld [vmem:[#allocation5 + $0x308] sm:$0xff] }
 0x53f   :  { %6802 = vmatpush1.bf16.msra.mxu0 %v6801_v32  ;;  %v2164_v32 = vld [vmem:[#allocation5 + $0xc8] sm:$0xff] }
 0x540   :  { %6866 = vmatpush1.bf16.msra.mxu1 %v6865_v26  ;;  %6804 = vmatprep.subr.bf16.mxu0 %v6803_v37  ;;  %v6907_v35 = vpack.c.bf16 %v2168_v33, %v2164_v32  ;;  %v2167_v37 = vld [vmem:[#allocation5 + $0xe0] sm:$0xff]  ;;  %v2244_v33 = vld [vmem:[#allocation5 + $0x348] sm:$0xff] }
 0x541   :  { %6868 = vmatprep.subr.bf16.mxu1 %v6867_v36  ;;  %v8372_v42 = vpop.eup %8371  ;;  %v2163_v36 = vld [vmem:[#allocation5 + $0xc0] sm:$0xff] }
 0x542   :  { %v1729_v56 = vadd.f32 1.0, %v8372_v42  ;;  %v6909_v38 = vpack.c.bf16 %v2167_v37, %v2163_v36  ;;  %v2200_v42 = vld [vmem:[#allocation5 + $0x1e8] sm:$0xff]  ;;  %v2239_v32 = vld [vmem:[#allocation5 + $0x320] sm:$0xff] }
 0x543   :  { %6806 = vmatpush1.bf16.msra.mxu0 %v6805_v47  ;;  %v8374_v51 = vpop.eup %8373  ;;  %v2184_v47 = vld [vmem:[#allocation5 + $0x168] sm:$0xff]  ;;  %v2243_v37 = vld [vmem:[#allocation5 + $0x340] sm:$0xff] }
 0x544   :  { %6870 = vmatpush1.bf16.msra.mxu1 %v6869_v45  ;;  %6871 = vmatprep.subr.bf16.mxu0 %v8692_v4  ;;  %v1735_v57 = vadd.f32 1.0, %v8374_v51  ;;  %8375 = vrcp.f32 %v1729_v56  ;;  %v2180_v45 = vld [vmem:[#allocation5 + $0x148] sm:$0xff]  ;;  %v6921_v51 = vpack.c.bf16 %v2191_v5, %v2187_v53  ;;  %v6923_v56 = vpack.c.bf16 %v2200_v42, %v2196_v49  ;;  %v2050_v49 = vld [vmem:[#allocation8 + $0x10] sm:$0xff]  ;;  %v2051_v42 = vld [vmem:[#allocation8 + $0x18] sm:$0xff] }
 0x545   :  { %6896 = vmatprep.subr.bf16.mxu1 %v6895_v48  ;;  %v6913_v48 = vpack.c.bf16 %v2175_v39, %v2171_v15  ;;  %v2251_v39 = vld [vmem:[#allocation5 + $0x380] sm:$0xff]  ;;  %v2049_v53 = vld [vmem:[#allocation8 + $0x8] sm:$0xff] }
 0x546   :  { %8377 = vrcp.f32 %v1735_v57  ;;  %v2195_v57 = vld [vmem:[#allocation5 + $0x1c0] sm:$0xff] }
 0x54e   :  { %v8376_v21 = vpop.eup %8375 }
 0x550   :  { %v8378_v62 = vpop.eup %8377 }
 0x551   :  { %v1745_v50 = vmul.f32 %v8378_v62, %v8894_v1  ;;  %v2151_v1 = vld [vmem:[#allocation5 + $0x60] sm:$0xff]  ;;  %v2216_v62 = vld [vmem:[#allocation5 + $0x268] sm:$0xff] }
 0x552   :  { %v6901_v26 = vpack.c.bf16 %v2151_v1, %v2147_v23  ;;  %v2227_v1 = vld [vmem:[#allocation5 + $0x2c0] sm:$0xff] }
 0x59a   :  { %v1444_v55 = vpop.f32.mrb[8].mxu1 }
 0x59b   :  { %v1445_v16 = vadd.f32 %v1444_v55, %v1377_v54  ;;  %v5844_v27 = vpop.f32.mrb[9].mxu1  ;;  %v6915_v54 = vpack.c.bf16 %v2184_v47, %v2180_v45  ;;  %v2179_v55 = vld [vmem:[#allocation5 + $0x140] sm:$0xff]  ;;  %v2260_v47 = vld [vmem:[#allocation5 + $0x3c8] sm:$0xff] }
 0x59c   :  { %v2188_v27 = vld [vmem:[#allocation5 + $0x188] sm:$0xff]  ;;  %v2255_v45 = vld [vmem:[#allocation5 + $0x3a0] sm:$0xff] }
 0x59d   :  { %1449 = vst [vmem:[#allocation10 + $0x8] sm:$0xff] %v1445_v16  ;;  %v2183_v16 = vld [vmem:[#allocation5 + $0x160] sm:$0xff]  ;;  %v6919_v52 = vpack.c.bf16 %v2192_v28, %v2188_v27 }
 0x59e   :  { %v6917_v40 = vpack.c.bf16 %v2183_v16, %v2179_v55  ;;  %v2259_v16 = vld [vmem:[#allocation5 + $0x3c0] sm:$0xff] }
 0x59f   :  { %v2263_v27 = vld [vmem:[#allocation5 + $0x3e0] sm:$0xff] }
 0x5a0   :  { %v6957_v28 = vpack.c.bf16 %v2263_v27, %v2259_v16  ;;  %v2145_v16 = vld [vmem:[#allocation5 + $0x30] sm:$0xff]  ;;  %v2150_v27 = vld [vmem:[#allocation5 + $0x58] sm:$0xff] }
 0x5da   :  { %v1721_v13 = vpop.f32.mrb[10].mxu1 }
 0x5db   :  { %v1722_v17 = vadd.f32 %v1721_v13, %v1582_v58  ;;  %v1723_v60 = vpop.f32.mrb[11].mxu1  ;;  %v2199_v58 = vld [vmem:[#allocation5 + $0x1e0] sm:$0xff]  ;;  %v2208_v13 = vld [vmem:[#allocation5 + $0x228] sm:$0xff] }
 0x5dc   :  { %v1724_v61 = vadd.f32 %v1723_v60, %v1583_v59  ;;  %v2204_v59 = vld [vmem:[#allocation5 + $0x208] sm:$0xff] }
 0x5dd   :  { %8379 = vtanh.f32 %v1722_v17  ;;  %v6925_v17 = vpack.c.bf16 %v2199_v58, %v2195_v57  ;;  %v6927_v60 = vpack.c.bf16 %v2208_v13, %v2204_v59  ;;  %v2053_v57 = vld [vmem:[#allocation8 + $0x28] sm:$0xff]  ;;  %v2054_v59 = vld [vmem:[#allocation8 + $0x30] sm:$0xff]  ;;  %v2055_v13 = vld [vmem:[#allocation8 + $0x38] sm:$0xff] }
 0x5de   :  { %v5605_v41 = vmul.f32 -1.442695, %v1724_v61  ;;  %v2203_v61 = vld [vmem:[#allocation5 + $0x200] sm:$0xff] }
 0x5e0   :  { %8381 = vpow2.f32 %v5605_v41  ;;  %v2207_v41 = vld [vmem:[#allocation5 + $0x220] sm:$0xff] }
 0x5e7   :  { %v8380_v63 = vpop.eup %8379 }
 0x5e8   :  { %v1746_v2 = vmul.f32 %v8380_v63, %v8376_v21  ;;  %v2212_v21 = vld [vmem:[#allocation5 + $0x248] sm:$0xff]  ;;  %v6929_v63 = vpack.c.bf16 %v2207_v41, %v2203_v61 }
 0x5e9   :  { %v2057_v61 = vld [vmem:[#allocation8 + $0x48] sm:$0xff] }
 0x5ea   :  { %v8382_v14 = vpop.eup %8381  ;;  %v8936_v6 = vadd.f32 %v1746_v2, %v1745_v50  ;;  %v6931_v50 = vpack.c.bf16 %v2216_v62, %v2212_v21  ;;  %v2211_v2 = vld [vmem:[#allocation5 + $0x240] sm:$0xff]  ;;  %v2058_v21 = vld [vmem:[#allocation8 + $0x50] sm:$0xff]  ;;  %v2059_v62 = vld [vmem:[#allocation8 + $0x58] sm:$0xff] }
 0x5eb   :  { %v1742_v7 = vadd.f32 1.0, %v8382_v14  ;;  %v2215_v14 = vld [vmem:[#allocation5 + $0x260] sm:$0xff] }
 0x5ec   :  { %8383 = vtanh.f32 %v8936_v6  ;;  %v6933_v9 = vpack.c.bf16 %v2215_v14, %v2211_v2  ;;  %v2061_v2 = vld [vmem:[#allocation8 + $0x68] sm:$0xff] }
 0x5ed   :  { %8385 = vrcp.f32 %v1742_v7  ;;  %v2220_v7 = vld [vmem:[#allocation5 + $0x288] sm:$0xff] }
 0x5ee   :  { %v6935_v10 = vpack.c.bf16 %v2224_v8, %v2220_v7  ;;  %v2062_v7 = vld [vmem:[#allocation8 + $0x70] sm:$0xff]  ;;  %v2063_v8 = vld [vmem:[#allocation8 + $0x78] sm:$0xff] }
 0x5f6   :  { %v8384_v12 = vpop.eup %8383 }
 0x5f7   :  { %v8386_v18 = vpop.eup %8385 }
 0x5f8   :  { %v8939_v20 = vmul.f32 %v8386_v18, %v8384_v12  ;;  %v2223_v12 = vld [vmem:[#allocation5 + $0x2a0] sm:$0xff]  ;;  %v2228_v18 = vld [vmem:[#allocation5 + $0x2c8] sm:$0xff] }
 0x5fa   :  { %1947 = vmatmul.mubr.f32.vlgmr.msra.gmra.mrb[12].mxu0 %v8939_v20  ;;  %2018 = vmatmul.mubr.f32.vlgmr.msra.gmra.mrb[12].mxu1 %v8939_v20 }
 0x5fb   :  { %6898 = vmatpush1.bf16.msra.mxu1 %v6897_v19  ;;  %2335 = vmatprep.mubr.f32.mxu1 %v8939_v20  ;;  %v2232_v19 = vld [vmem:[#allocation5 + $0x2e8] sm:$0xff] }
 0x5fc   :  { %6900 = vmatprep.subr.bf16.mxu1 %v6899_v22  ;;  %5877 = vmatprep.mubr.msk.f32.mxu0 %vm8693_vm0, %v8691_v0  ;;  %v6937_v22 = vpack.c.bf16 %v2223_v12, %v2219_v11  ;;  %v6939_v23 = vpack.c.bf16 %v2232_v19, %v2228_v18  ;;  %v6893_v11 = vpack.c.bf16 %v2063_v8, %v2062_v7  ;;  %v1878_v18 = vld [vmem:[#allocation7 + $0x20] sm:$0xff]  ;;  %v1879_v19 = vld [vmem:[#allocation7 + $0x28] sm:$0xff]  ;;  %v2177_v8 = vld [vmem:[#allocation5 + $0x130] sm:$0xff] }
 0x5ff   :  { %6902 = vmatpush1.bf16.msra.mxu1 %v6901_v26  ;;  %v2240_v26 = vld [vmem:[#allocation5 + $0x328] sm:$0xff] }
 0x600   :  { %6904 = vmatprep.subr.bf16.mxu1 %v6903_v29  ;;  %v6941_v29 = vpack.c.bf16 %v2231_v24, %v2227_v1  ;;  %v6943_v30 = vpack.c.bf16 %v2240_v26, %v2236_v25 }
 0x603   :  { %6906 = vmatpush1.bf16.msra.mxu1 %v6905_v34  ;;  %v2248_v34 = vld [vmem:[#allocation5 + $0x368] sm:$0xff] }
 0x604   :  { %6908 = vmatprep.subr.bf16.mxu1 %v6907_v35  ;;  %v6945_v35 = vpack.c.bf16 %v2239_v32, %v2235_v31  ;;  %v6947_v36 = vpack.c.bf16 %v2248_v34, %v2244_v33  ;;  %v1881_v31 = vld [vmem:[#allocation7 + $0x38] sm:$0xff]  ;;  %v1880_v33 = vld [vmem:[#allocation7 + $0x30] sm:$0xff] }
 0x607   :  { %6910 = vmatpush1.bf16.msra.mxu1 %v6909_v38  ;;  %v2256_v38 = vld [vmem:[#allocation5 + $0x3a8] sm:$0xff] }
 0x608   :  { %6912 = vmatprep.subr.bf16.mxu1 %v6911_v44  ;;  %v6949_v44 = vpack.c.bf16 %v2247_v43, %v2243_v37  ;;  %v6951_v15 = vpack.c.bf16 %v2256_v38, %v2252_v3 }
 0x60b   :  { %6914 = vmatpush1.bf16.msra.mxu1 %v6913_v48  ;;  %v2264_v48 = vld [vmem:[#allocation5 + $0x3e8] sm:$0xff] }
 0x60c   :  { %6916 = vmatprep.subr.bf16.mxu1 %v6915_v54  ;;  %v6953_v54 = vpack.c.bf16 %v2255_v45, %v2251_v39  ;;  %v6955_v55 = vpack.c.bf16 %v2264_v48, %v2260_v47 }
 0x60f   :  { %6918 = vmatpush1.bf16.msra.mxu1 %v6917_v40  ;;  %v8946_v40 = vld [vmem:[#allocation2 + $0x18] sm:$0xff] }
 0x610   :  { %6920 = vmatprep.subr.bf16.mxu1 %v6919_v52  ;;  %v2048_v52 = vld [vmem:[#allocation8] sm:$0xff] }
 0x611   :  { %v6872_v5 = vpack.c.bf16 %v2049_v53, %v2048_v52 }
 0x613   :  { %6922 = vmatpush1.bf16.msra.mxu1 %v6921_v51  ;;  %6873 = vmatpush3.bf16.msra.mxu0 %v6872_v5  ;;  %v6875_v51 = vpack.c.bf16 %v2051_v42, %v2050_v49 }
 0x614   :  { %6924 = vmatprep.subr.bf16.mxu1 %v6923_v56  ;;  %6874 = vmatprep.subr.bf16.mxu0 %v8692_v4  ;;  %v2052_v56 = vld [vmem:[#allocation8 + $0x20] sm:$0xff] }
 0x615   :  { %v6878_v58 = vpack.c.bf16 %v2053_v57, %v2052_v56  ;;  %v2153_v56 = vld [vmem:[#allocation5 + $0x70] sm:$0xff]  ;;  %v2158_v57 = vld [vmem:[#allocation5 + $0x98] sm:$0xff] }
 0x617   :  { %6926 = vmatpush1.bf16.msra.mxu1 %v6925_v17  ;;  %6876 = vmatpush3.bf16.msra.mxu0 %v6875_v51  ;;  %v6881_v17 = vpack.c.bf16 %v2055_v13, %v2054_v59  ;;  %v2149_v51 = vld [vmem:[#allocation5 + $0x50] sm:$0xff] }
 0x618   :  { %6928 = vmatprep.subr.bf16.mxu1 %v6927_v60  ;;  %6877 = vmatprep.subr.bf16.mxu0 %v8692_v4  ;;  %v2056_v60 = vld [vmem:[#allocation8 + $0x40] sm:$0xff]  ;;  %v2157_v13 = vld [vmem:[#allocation5 + $0x90] sm:$0xff] }
 0x619   :  { %v6884_v41 = vpack.c.bf16 %v2057_v61, %v2056_v60  ;;  %v2166_v60 = vld [vmem:[#allocation5 + $0xd8] sm:$0xff] }
 0x61a   :  { %v2170_v61 = vld [vmem:[#allocation5 + $0xf8] sm:$0xff] }
 0x61b   :  { %6930 = vmatpush1.bf16.msra.mxu1 %v6929_v63  ;;  %6879 = vmatpush3.bf16.msra.mxu0 %v6878_v58  ;;  %v6887_v63 = vpack.c.bf16 %v2059_v62, %v2058_v21  ;;  %v2162_v58 = vld [vmem:[#allocation5 + $0xb8] sm:$0xff]  ;;  %v6971_v21 = vpack.c.bf16 %v2170_v61, %v2166_v60  ;;  %v2165_v62 = vld [vmem:[#allocation5 + $0xd0] sm:$0xff] }
 0x61c   :  { %6932 = vmatprep.subr.bf16.mxu1 %v6931_v50  ;;  %6880 = vmatprep.subr.bf16.mxu0 %v8692_v4  ;;  %v2060_v50 = vld [vmem:[#allocation8 + $0x60] sm:$0xff]  ;;  %v6967_v59 = vpack.c.bf16 %v2162_v58, %v2158_v57 }
 0x61d   :  { %v6890_v14 = vpack.c.bf16 %v2061_v2, %v2060_v50  ;;  %v2174_v50 = vld [vmem:[#allocation5 + $0x118] sm:$0xff] }
 0x61e   :  { %v2178_v2 = vld [vmem:[#allocation5 + $0x138] sm:$0xff] }
 0x61f   :  { %6934 = vmatpush1.bf16.msra.mxu1 %v6933_v9  ;;  %6882 = vmatpush3.bf16.msra.mxu0 %v6881_v17  ;;  %v2142_v9 = vld [vmem:[#allocation5 + $0x18] sm:$0xff]  ;;  %v2161_v17 = vld [vmem:[#allocation5 + $0xb0] sm:$0xff]  ;;  %v6975_v7 = vpack.c.bf16 %v2178_v2, %v2174_v50 }
 0x620   :  { %6936 = vmatprep.subr.bf16.mxu1 %v6935_v10  ;;  %6883 = vmatprep.subr.bf16.mxu0 %v8692_v4  ;;  %v2146_v10 = vld [vmem:[#allocation5 + $0x38] sm:$0xff] }
 0x621   :  { %v6959_v12 = vpack.c.bf16 %v2146_v10, %v2142_v9  ;;  %v2182_v9 = vld [vmem:[#allocation5 + $0x158] sm:$0xff] }
 0x622   :  { %v2186_v10 = vld [vmem:[#allocation5 + $0x178] sm:$0xff] }
 0x623   :  { %6938 = vmatpush1.bf16.msra.mxu1 %v6937_v22  ;;  %6885 = vmatpush3.bf16.msra.mxu0 %v6884_v41  ;;  %v6969_v41 = vpack.c.bf16 %v2161_v17, %v2157_v13  ;;  %v2238_v13 = vld [vmem:[#allocation5 + $0x318] sm:$0xff] }
 0x624   :  { %6940 = vmatprep.subr.bf16.mxu1 %v6939_v23  ;;  %6886 = vmatprep.subr.bf16.mxu0 %v8692_v4  ;;  %v2242_v17 = vld [vmem:[#allocation5 + $0x338] sm:$0xff] }
 0x625   :  { %v7007_v61 = vpack.c.bf16 %v2242_v17, %v2238_v13  ;;  %v2457_v13 = vld [vmem:[#allocation5 + $0x4a0] sm:$0xff] }
 0x627   :  { %6942 = vmatpush1.bf16.msra.mxu1 %v6941_v29  ;;  %6888 = vmatpush3.bf16.msra.mxu0 %v6887_v63  ;;  %v2169_v63 = vld [vmem:[#allocation5 + $0xf0] sm:$0xff] }
 0x628   :  { %6944 = vmatprep.subr.bf16.mxu1 %v6943_v30  ;;  %6889 = vmatprep.subr.bf16.mxu0 %v8692_v4 }
 0x62b   :  { %6946 = vmatpush1.bf16.msra.mxu1 %v6945_v35  ;;  %6891 = vmatpush3.bf16.msra.mxu0 %v6890_v14  ;;  %v6973_v14 = vpack.c.bf16 %v2169_v63, %v2165_v62  ;;  %v2246_v62 = vld [vmem:[#allocation5 + $0x358] sm:$0xff] }
 0x62c   :  { %6948 = vmatprep.subr.bf16.mxu1 %v6947_v36  ;;  %6892 = vmatprep.subr.bf16.mxu0 %v8692_v4  ;;  %v2250_v63 = vld [vmem:[#allocation5 + $0x378] sm:$0xff] }
 0x62d   :  { %v7011_v2 = vpack.c.bf16 %v2250_v63, %v2246_v62  ;;  %v2466_v63 = vld [vmem:[#allocation5 + $0x4e8] sm:$0xff] }
 0x62f   :  { %6950 = vmatpush1.bf16.msra.mxu1 %v6949_v44  ;;  %6894 = vmatpush3.bf16.msra.mxu0 %v6893_v11 }
 0x630   :  { %6952 = vmatprep.subr.bf16.mxu1 %v6951_v15  ;;  %6960 = vmatprep.subr.bf16.mxu0 %v6959_v12  ;;  %v6979_v12 = vpack.c.bf16 %v2186_v10, %v2182_v9 }
 0x633   :  { %6954 = vmatpush1.bf16.msra.mxu1 %v6953_v54 }
 0x634   :  { %6956 = vmatprep.subr.bf16.mxu1 %v6955_v55  ;;  %v2141_v55 = vld [vmem:[#allocation5 + $0x10] sm:$0xff] }
 0x635   :  { %v6961_v5 = vpack.c.bf16 %v2145_v16, %v2141_v55  ;;  %v2213_v55 = vld [vmem:[#allocation5 + $0x250] sm:$0xff] }
 0x636   :  { %v2217_v16 = vld [vmem:[#allocation5 + $0x270] sm:$0xff] }
 0x637   :  { %6958 = vmatpush1.bf16.msra.mxu1 %v6957_v28  ;;  %v2154_v28 = vld [vmem:[#allocation5 + $0x78] sm:$0xff] }
 0x638   :  { %v6963_v42 = vpack.c.bf16 %v2154_v28, %v2150_v27  ;;  %v2222_v27 = vld [vmem:[#allocation5 + $0x298] sm:$0xff] }
 0x639   :  { %v2226_v28 = vld [vmem:[#allocation5 + $0x2b8] sm:$0xff] }
 0x63a   :  { %2336 = vmatmul.mubr.f32.vlgmr.msra.gmra.mrb[14].mxu1 %v8946_v40 }
 0x6cd   :  { %v1948_v22 = vpop.f32.mrb[12].mxu0  ;;  %v2019_v23 = vpop.f32.mrb[12].mxu1 }
 0x6ce   :  { %v1949_v1 = vadd.f32 %v1948_v22, %v1878_v18  ;;  %v1950_v24 = vpop.f32.mrb[13].mxu0  ;;  %v2021_v25 = vpop.f32.mrb[13].mxu1  ;;  %v2020_v35 = vadd.f32 %v2019_v23, %v1880_v33  ;;  %v2181_v18 = vld [vmem:[#allocation5 + $0x150] sm:$0xff]  ;;  %v2190_v22 = vld [vmem:[#allocation5 + $0x198] sm:$0xff] }
 0x6cf   :  { %v1951_v26 = vadd.f32 %v1950_v24, %v1879_v19  ;;  %v2022_v32 = vadd.f32 %v2021_v25, %v1881_v31  ;;  %v2185_v19 = vld [vmem:[#allocation5 + $0x170] sm:$0xff]  ;;  %v2194_v23 = vld [vmem:[#allocation5 + $0x1b8] sm:$0xff] }
 0x6d0   :  { %v5606_v29 = vmul.f32 -1.442695, %v1949_v1  ;;  %v6981_v24 = vpack.c.bf16 %v2185_v19, %v2181_v18  ;;  %v2198_v31 = vld [vmem:[#allocation5 + $0x1d8] sm:$0xff] }
 0x6d1   :  { %v5607_v30 = vmul.f32 -1.442695, %v1951_v26  ;;  %v5608_v34 = vmul.f32 -1.442695, %v2022_v32  ;;  %v6983_v26 = vpack.c.bf16 %v2194_v23, %v2190_v22  ;;  %v2202_v32 = vld [vmem:[#allocation5 + $0x1f8] sm:$0xff] }
 0x6d2   :  { %8387 = vpow2.f32 %v5606_v29  ;;  %v2189_v29 = vld [vmem:[#allocation5 + $0x190] sm:$0xff]  ;;  %v2262_v18 = vld [vmem:[#allocation5 + $0x3d8] sm:$0xff] }
 0x6d3   :  { %8389 = vpow2.f32 %v5607_v30  ;;  %v2193_v30 = vld [vmem:[#allocation5 + $0x1b0] sm:$0xff]  ;;  %v2266_v19 = vld [vmem:[#allocation5 + $0x3f8] sm:$0xff] }
 0x6d4   :  { %8391 = vpow2.f32 %v5608_v34  ;;  %v6985_v33 = vpack.c.bf16 %v2193_v30, %v2189_v29  ;;  %v6987_v34 = vpack.c.bf16 %v2202_v32, %v2198_v31  ;;  %v7019_v23 = vpack.c.bf16 %v2266_v19, %v2262_v18  ;;  %v2440_v30 = vld [vmem:[#allocation5 + $0x418] sm:$0xff]  ;;  %v2438_v32 = vld [vmem:[#allocation5 + $0x408] sm:$0xff] }
 0x6d5   :  { %8393 = vtanh.f32 %v2020_v35  ;;  %v2197_v35 = vld [vmem:[#allocation5 + $0x1d0] sm:$0xff]  ;;  %v2444_v31 = vld [vmem:[#allocation5 + $0x438] sm:$0xff] }
 0x6dc   :  { %v8388_v36 = vpop.eup %8387 }
 0x6dd   :  { %v8390_v37 = vpop.eup %8389  ;;  %v2027_v43 = vadd.f32 1.0, %v8388_v36  ;;  %v2201_v36 = vld [vmem:[#allocation5 + $0x1f0] sm:$0xff] }
 0x6de   :  { %v2033_v3 = vadd.f32 1.0, %v8390_v37  ;;  %v8392_v38 = vpop.eup %8391  ;;  %v2206_v37 = vld [vmem:[#allocation5 + $0x218] sm:$0xff] }
 0x6df   :  { %8395 = vrcp.f32 %v2027_v43  ;;  %v8394_v44 = vpop.eup %8393  ;;  %v2040_v47 = vadd.f32 1.0, %v8392_v38  ;;  %v2210_v43 = vld [vmem:[#allocation5 + $0x238] sm:$0xff] }
 0x6e0   :  { %8397 = vrcp.f32 %v2033_v3  ;;  %v6989_v3 = vpack.c.bf16 %v2201_v36, %v2197_v35  ;;  %v6991_v38 = vpack.c.bf16 %v2210_v43, %v2206_v37  ;;  %v2439_v35 = vld [vmem:[#allocation5 + $0x410] sm:$0xff] }
 0x6e1   :  { %8399 = vrcp.f32 %v2040_v47  ;;  %v2443_v36 = vld [vmem:[#allocation5 + $0x430] sm:$0xff] }
 0x6e2   :  { %v7089_v43 = vpack.c.bf16 %v2443_v36, %v2439_v35 }
 0x6e9   :  { %v8396_v15 = vpop.eup %8395 }
 0x6ea   :  { %v8398_v39 = vpop.eup %8397  ;;  %v2044_v45 = vmul.f32 %v8396_v15, %v8394_v44  ;;  %v2205_v44 = vld [vmem:[#allocation5 + $0x210] sm:$0xff] }
 0x6eb   :  { %v2043_v48 = vmul.f32 %v8398_v39, %v8915_v46  ;;  %v8400_v52 = vpop.eup %8399  ;;  %v6965_v46 = vpack.c.bf16 %v2153_v56, %v2149_v51  ;;  %v2209_v15 = vld [vmem:[#allocation5 + $0x230] sm:$0xff]  ;;  %v2214_v39 = vld [vmem:[#allocation5 + $0x258] sm:$0xff] }
 0x6ec   :  { %v6993_v47 = vpack.c.bf16 %v2209_v15, %v2205_v44  ;;  %v2230_v51 = vld [vmem:[#allocation5 + $0x2d8] sm:$0xff] }
 0x6ed   :  { %v8957_v54 = vadd.f32 %v2044_v45, %v2043_v48  ;;  %v2218_v45 = vld [vmem:[#allocation5 + $0x278] sm:$0xff] }
 0x6ee   :  { %v6995_v48 = vpack.c.bf16 %v2218_v45, %v2214_v39  ;;  %v2234_v56 = vld [vmem:[#allocation5 + $0x2f8] sm:$0xff]  ;;  %v2446_v45 = vld [vmem:[#allocation5 + $0x448] sm:$0xff] }
 0x6ef   :  { %8401 = vtanh.f32 %v8957_v54  ;;  %v7003_v58 = vpack.c.bf16 %v2234_v56, %v2230_v51  ;;  %v2448_v44 = vld [vmem:[#allocation5 + $0x458] sm:$0xff]  ;;  %v2454_v51 = vld [vmem:[#allocation5 + $0x488] sm:$0xff] }
 0x6f0   :  { %v2452_v39 = vld [vmem:[#allocation5 + $0x478] sm:$0xff]  ;;  %v2458_v56 = vld [vmem:[#allocation5 + $0x4a8] sm:$0xff] }
 0x6f9   :  { %v8402_v53 = vpop.eup %8401 }
 0x6fa   :  { %v8960_v49 = vmul.f32 %v8402_v53, %v8400_v52  ;;  %v6997_v52 = vpack.c.bf16 %v2217_v16, %v2213_v55  ;;  %v6999_v53 = vpack.c.bf16 %v2226_v28, %v2222_v27  ;;  %v2451_v55 = vld [vmem:[#allocation5 + $0x470] sm:$0xff]  ;;  %v2445_v16 = vld [vmem:[#allocation5 + $0x440] sm:$0xff] }
 0x6fb   :  { %v2449_v28 = vld [vmem:[#allocation5 + $0x460] sm:$0xff] }
 0x6fc   :  { %5878 = vmatmul.mubr.f32.vlgmr.msra.gmra.mrb[14].mxu0 %v8960_v49  ;;  %2633 = vmatprep.mubr.f32.mxu1 %v8960_v49 }
 0x6fd   :  { %6962 = vmatpush1.bf16.msra.mxu0 %v6961_v5  ;;  %2406 = vmatprep.mubr.f32.mxu0 %v8939_v20  ;;  %v2173_v20 = vld [vmem:[#allocation5 + $0x110] sm:$0xff] }
 0x6fe   :  { %6964 = vmatprep.subr.bf16.mxu0 %v6963_v42  ;;  %v6977_v11 = vpack.c.bf16 %v2177_v8, %v2173_v20  ;;  %v2221_v5 = vld [vmem:[#allocation5 + $0x290] sm:$0xff]  ;;  %v2254_v20 = vld [vmem:[#allocation5 + $0x398] sm:$0xff] }
 0x6ff   :  { %v2225_v42 = vld [vmem:[#allocation5 + $0x2b0] sm:$0xff]  ;;  %v2258_v8 = vld [vmem:[#allocation5 + $0x3b8] sm:$0xff] }
 0x700   :  { %v7001_v57 = vpack.c.bf16 %v2225_v42, %v2221_v5  ;;  %v7015_v10 = vpack.c.bf16 %v2258_v8, %v2254_v20  ;;  %v7029_v5 = vpack.c.bf16 %v2449_v28, %v2445_v16  ;;  %v2465_v20 = vld [vmem:[#allocation5 + $0x4e0] sm:$0xff]  ;;  %v2472_v8 = vld [vmem:[#allocation5 + $0x518] sm:$0xff]  ;;  %v2491_v16 = vld [vmem:[#allocation5 + $0x5b0] sm:$0xff] }
 0x701   :  { %6966 = vmatpush1.bf16.msra.mxu0 %v6965_v46  ;;  %v2229_v46 = vld [vmem:[#allocation5 + $0x2d0] sm:$0xff] }
 0x702   :  { %6968 = vmatprep.subr.bf16.mxu0 %v6967_v59  ;;  %v2233_v59 = vld [vmem:[#allocation5 + $0x2f0] sm:$0xff] }
 0x703   :  { %v7005_v60 = vpack.c.bf16 %v2233_v59, %v2229_v46  ;;  %v2459_v46 = vld [vmem:[#allocation5 + $0x4b0] sm:$0xff]  ;;  %v2453_v59 = vld [vmem:[#allocation5 + $0x480] sm:$0xff] }
 0x705   :  { %6970 = vmatpush1.bf16.msra.mxu0 %v6969_v41  ;;  %v2237_v41 = vld [vmem:[#allocation5 + $0x310] sm:$0xff] }
 0x706   :  { %6972 = vmatprep.subr.bf16.mxu0 %v6971_v21  ;;  %v2241_v21 = vld [vmem:[#allocation5 + $0x330] sm:$0xff] }
 0x707   :  { %v7009_v50 = vpack.c.bf16 %v2241_v21, %v2237_v41  ;;  %v2462_v41 = vld [vmem:[#allocation5 + $0x4c8] sm:$0xff]  ;;  %v7033_v21 = vpack.c.bf16 %v2457_v13, %v2453_v59  ;;  %v2499_v59 = vld [vmem:[#allocation5 + $0x5f0] sm:$0xff]  ;;  %v2493_v13 = vld [vmem:[#allocation5 + $0x5c0] sm:$0xff] }
 0x709   :  { %6974 = vmatpush1.bf16.msra.mxu0 %v6973_v14  ;;  %v2245_v14 = vld [vmem:[#allocation5 + $0x350] sm:$0xff] }
 0x70a   :  { %6976 = vmatprep.subr.bf16.mxu0 %v6975_v7  ;;  %v2249_v7 = vld [vmem:[#allocation5 + $0x370] sm:$0xff] }
 0x70b   :  { %v7013_v9 = vpack.c.bf16 %v2249_v7, %v2245_v14  ;;  %v7035_v14 = vpack.c.bf16 %v2466_v63, %v2462_v41  ;;  %v2461_v7 = vld [vmem:[#allocation5 + $0x4c0] sm:$0xff]  ;;  %v2508_v41 = vld [vmem:[#allocation5 + $0x638] sm:$0xff] }
 0x70c   :  { %v7037_v18 = vpack.c.bf16 %v2465_v20, %v2461_v7  ;;  %v2507_v20 = vld [vmem:[#allocation5 + $0x630] sm:$0xff] }
 0x70d   :  { %v8965_v1 = vpop.f32.mrb[14].mxu1  ;;  %6978 = vmatpush1.bf16.msra.mxu0 %v6977_v11  ;;  %v2253_v11 = vld [vmem:[#allocation5 + $0x390] sm:$0xff] }
 0x70e   :  { %v8967_v25 = vpop.f32.mrb[15].mxu1  ;;  %6980 = vmatprep.subr.bf16.mxu0 %v6979_v12  ;;  %v2257_v12 = vld [vmem:[#allocation5 + $0x3b0] sm:$0xff] }
 0x70f   :  { %v7017_v22 = vpack.c.bf16 %v2257_v12, %v2253_v11  ;;  %v2474_v11 = vld [vmem:[#allocation5 + $0x528] sm:$0xff] }
 0x711   :  { %6982 = vmatpush1.bf16.msra.mxu0 %v6981_v24  ;;  %v2261_v24 = vld [vmem:[#allocation5 + $0x3d0] sm:$0xff] }
 0x712   :  { %6984 = vmatprep.subr.bf16.mxu0 %v6983_v26  ;;  %v2265_v26 = vld [vmem:[#allocation5 + $0x3f0] sm:$0xff] }
 0x713   :  { %v7021_v29 = vpack.c.bf16 %v2265_v26, %v2261_v24  ;;  %v2469_v24 = vld [vmem:[#allocation5 + $0x500] sm:$0xff] }
 0x715   :  { %6986 = vmatpush1.bf16.msra.mxu0 %v6985_v33  ;;  %v7087_v33 = vpack.c.bf16 %v2444_v31, %v2440_v30  ;;  %v2480_v30 = vld [vmem:[#allocation5 + $0x558] sm:$0xff] }
 0x716   :  { %6988 = vmatprep.subr.bf16.mxu0 %v6987_v34  ;;  %v2442_v34 = vld [vmem:[#allocation5 + $0x428] sm:$0xff]  ;;  %v2484_v31 = vld [vmem:[#allocation5 + $0x578] sm:$0xff] }
 0x717   :  { %v7023_v37 = vpack.c.bf16 %v2442_v34, %v2438_v32  ;;  %v2478_v32 = vld [vmem:[#allocation5 + $0x548] sm:$0xff]  ;;  %v7107_v36 = vpack.c.bf16 %v2484_v31, %v2480_v30  ;;  %v2509_v30 = vld [vmem:[#allocation5 + $0x640] sm:$0xff] }
 0x719   :  { %6990 = vmatpush1.bf16.msra.mxu0 %v6989_v3  ;;  %v2437_v3 = vld [vmem:[#allocation5 + $0x400] sm:$0xff]  ;;  %7024 = vmatprep.subr.bf16.mxu1 %v7023_v37  ;;  %v2479_v37 = vld [vmem:[#allocation5 + $0x550] sm:$0xff] }
 0x71a   :  { %6992 = vmatprep.subr.bf16.mxu0 %v6991_v38  ;;  %v2441_v38 = vld [vmem:[#allocation5 + $0x420] sm:$0xff] }
 0x71b   :  { %v7025_v15 = vpack.c.bf16 %v2441_v38, %v2437_v3  ;;  %v2477_v3 = vld [vmem:[#allocation5 + $0x540] sm:$0xff] }
 0x71d   :  { %6994 = vmatpush1.bf16.msra.mxu0 %v6993_v47  ;;  %v2450_v47 = vld [vmem:[#allocation5 + $0x468] sm:$0xff]  ;;  %7026 = vmatpush1.bf16.msra.mxu1 %v7025_v15  ;;  %v2488_v15 = vld [vmem:[#allocation5 + $0x598] sm:$0xff] }
 0x71e   :  { %6996 = vmatprep.subr.bf16.mxu0 %v6995_v48  ;;  %v2447_v48 = vld [vmem:[#allocation5 + $0x450] sm:$0xff] }
 0x71f   :  { %v7093_v27 = vpack.c.bf16 %v2451_v55, %v2447_v48  ;;  %v2487_v55 = vld [vmem:[#allocation5 + $0x590] sm:$0xff] }
 0x721   :  { %6998 = vmatpush1.bf16.msra.mxu0 %v6997_v52  ;;  %v2456_v52 = vld [vmem:[#allocation5 + $0x498] sm:$0xff] }
 0x722   :  { %7000 = vmatprep.subr.bf16.mxu0 %v6999_v53  ;;  %v2460_v53 = vld [vmem:[#allocation5 + $0x4b8] sm:$0xff] }
 0x723   :  { %v7095_v42 = vpack.c.bf16 %v2460_v53, %v2456_v52  ;;  %v2489_v52 = vld [vmem:[#allocation5 + $0x5a0] sm:$0xff]  ;;  %v2496_v53 = vld [vmem:[#allocation5 + $0x5d8] sm:$0xff] }
 0x725   :  { %7002 = vmatpush1.bf16.msra.mxu0 %v7001_v57  ;;  %v2455_v57 = vld [vmem:[#allocation5 + $0x490] sm:$0xff] }
 0x726   :  { %7004 = vmatprep.subr.bf16.mxu0 %v7003_v58  ;;  %v7031_v58 = vpack.c.bf16 %v2458_v56, %v2454_v51  ;;  %v7097_v17 = vpack.c.bf16 %v2459_v46, %v2455_v57  ;;  %v2498_v51 = vld [vmem:[#allocation5 + $0x5e8] sm:$0xff]  ;;  %v7113_v56 = vpack.c.bf16 %v2491_v16, %v2487_v55  ;;  %v2495_v46 = vld [vmem:[#allocation5 + $0x5d0] sm:$0xff] }
 0x727   :  { %v2526_v55 = vld [vmem:[#allocation5 + $0x6c8] sm:$0xff] }
 0x728   :  { %v2530_v16 = vld [vmem:[#allocation5 + $0x6e8] sm:$0xff] }
 0x729   :  { %7006 = vmatpush1.bf16.msra.mxu0 %v7005_v60  ;;  %v2464_v60 = vld [vmem:[#allocation5 + $0x4d8] sm:$0xff] }
 0x72a   :  { %7008 = vmatprep.subr.bf16.mxu0 %v7007_v61  ;;  %v2468_v61 = vld [vmem:[#allocation5 + $0x4f8] sm:$0xff] }
 0x72b   :  { %v7099_v62 = vpack.c.bf16 %v2468_v61, %v2464_v60  ;;  %v2497_v60 = vld [vmem:[#allocation5 + $0x5e0] sm:$0xff]  ;;  %v2504_v61 = vld [vmem:[#allocation5 + $0x618] sm:$0xff] }
 0x72c   :  { %v7119_v63 = vpack.c.bf16 %v2508_v41, %v2504_v61  ;;  %v2533_v61 = vld [vmem:[#allocation5 + $0x700] sm:$0xff] }
 0x72d   :  { %7010 = vmatpush1.bf16.msra.mxu0 %v7009_v50  ;;  %v2463_v50 = vld [vmem:[#allocation5 + $0x4d0] sm:$0xff]  ;;  %v2537_v41 = vld [vmem:[#allocation5 + $0x720] sm:$0xff] }
 0x72e   :  { %7012 = vmatprep.subr.bf16.mxu0 %v7011_v2  ;;  %v2467_v2 = vld [vmem:[#allocation5 + $0x4f0] sm:$0xff] }
 0x72f   :  { %v7101_v12 = vpack.c.bf16 %v2467_v2, %v2463_v50  ;;  %v2502_v50 = vld [vmem:[#allocation5 + $0x608] sm:$0xff] }
 0x730   :  { %v2506_v2 = vld [vmem:[#allocation5 + $0x628] sm:$0xff] }
 0x731   :  { %7014 = vmatpush1.bf16.msra.mxu0 %v7013_v9  ;;  %v2476_v9 = vld [vmem:[#allocation5 + $0x538] sm:$0xff]  ;;  %v7055_v7 = vpack.c.bf16 %v2506_v2, %v2502_v50 }
 0x732   :  { %7016 = vmatprep.subr.bf16.mxu0 %v7015_v10  ;;  %v2470_v10 = vld [vmem:[#allocation5 + $0x508] sm:$0xff]  ;;  %v7103_v19 = vpack.c.bf16 %v2476_v9, %v2472_v8  ;;  %v2501_v8 = vld [vmem:[#allocation5 + $0x600] sm:$0xff]  ;;  %v2548_v50 = vld [vmem:[#allocation5 + $0x778] sm:$0xff] }
 0x733   :  { %v7039_v26 = vpack.c.bf16 %v2474_v11, %v2470_v10  ;;  %v2505_v9 = vld [vmem:[#allocation5 + $0x620] sm:$0xff] }
 0x734   :  { %v7057_v11 = vpack.c.bf16 %v2505_v9, %v2501_v8  ;;  %v2547_v9 = vld [vmem:[#allocation5 + $0x770] sm:$0xff] }
 0x735   :  { %7018 = vmatpush1.bf16.msra.mxu0 %v7017_v22  ;;  %v2471_v22 = vld [vmem:[#allocation5 + $0x510] sm:$0xff] }
 0x736   :  { %7020 = vmatprep.subr.bf16.mxu0 %v7019_v23  ;;  %v2475_v23 = vld [vmem:[#allocation5 + $0x530] sm:$0xff] }
 0x737   :  { %v7105_v34 = vpack.c.bf16 %v2475_v23, %v2471_v22  ;;  %v2510_v22 = vld [vmem:[#allocation5 + $0x648] sm:$0xff] }
 0x738   :  { %v2514_v23 = vld [vmem:[#allocation5 + $0x668] sm:$0xff] }
 0x739   :  { %7022 = vmatpush1.bf16.msra.mxu0 %v7021_v29  ;;  %v2473_v29 = vld [vmem:[#allocation5 + $0x520] sm:$0xff] }
 0x73a   :  { %7088 = vmatprep.subr.bf16.mxu0 %v7087_v33  ;;  %v2482_v33 = vld [vmem:[#allocation5 + $0x568] sm:$0xff]  ;;  %v7041_v35 = vpack.c.bf16 %v2473_v29, %v2469_v24  ;;  %v7059_v24 = vpack.c.bf16 %v2514_v23, %v2510_v22  ;;  %v2515_v29 = vld [vmem:[#allocation5 + $0x670] sm:$0xff]  ;;  %v2556_v22 = vld [vmem:[#allocation5 + $0x7b8] sm:$0xff] }
 0x73b   :  { %v7043_v38 = vpack.c.bf16 %v2482_v33, %v2478_v32  ;;  %v2513_v32 = vld [vmem:[#allocation5 + $0x660] sm:$0xff]  ;;  %v2550_v23 = vld [vmem:[#allocation5 + $0x788] sm:$0xff] }
 0x73c   :  { %2407 = vmatmul.mubr.f32.vlgmr.msra.gmra.mrb[16].mxu0 %v8946_v40  ;;  %v7091_v40 = vpack.c.bf16 %v2452_v39, %v2448_v44  ;;  %v2481_v44 = vld [vmem:[#allocation5 + $0x560] sm:$0xff]  ;;  %v2492_v39 = vld [vmem:[#allocation5 + $0x5b8] sm:$0xff]  ;;  %v7061_v33 = vpack.c.bf16 %v2513_v32, %v2509_v30  ;;  %v2555_v30 = vld [vmem:[#allocation5 + $0x7b0] sm:$0xff] }
 0x73d   :  { %2704 = vmatprep.mubr.f32.mxu0 %v8960_v49  ;;  %7090 = vmatpush1.bf16.msra.mxu0 %v7089_v43  ;;  %v7027_v49 = vpack.c.bf16 %v2450_v47, %v2446_v45  ;;  %v2483_v43 = vld [vmem:[#allocation5 + $0x570] sm:$0xff]  ;;  %v2486_v45 = vld [vmem:[#allocation5 + $0x588] sm:$0xff]  ;;  %v7111_v48 = vpack.c.bf16 %v2492_v39, %v2488_v15  ;;  %v2517_v15 = vld [vmem:[#allocation5 + $0x680] sm:$0xff] }
 0x73e   :  { %7092 = vmatprep.subr.bf16.mxu0 %v7091_v40  ;;  %v2490_v47 = vld [vmem:[#allocation5 + $0x5a8] sm:$0xff]  ;;  %v7109_v40 = vpack.c.bf16 %v2483_v43, %v2479_v37  ;;  %v2521_v39 = vld [vmem:[#allocation5 + $0x6a0] sm:$0xff] }
 0x73f   :  { %7028 = vmatprep.subr.bf16.mxu1 %v7027_v49  ;;  %v7045_v49 = vpack.c.bf16 %v2481_v44, %v2477_v3  ;;  %v7047_v28 = vpack.c.bf16 %v2490_v47, %v2486_v45  ;;  %v2518_v37 = vld [vmem:[#allocation5 + $0x688] sm:$0xff]  ;;  %v2519_v3 = vld [vmem:[#allocation5 + $0x690] sm:$0xff]  ;;  %v7065_v47 = vpack.c.bf16 %v2521_v39, %v2517_v15 }
 0x740   :  { %7030 = vmatpush1.bf16.msra.mxu1 %v7029_v5  ;;  %v2500_v5 = vld [vmem:[#allocation5 + $0x5f8] sm:$0xff]  ;;  %v2522_v43 = vld [vmem:[#allocation5 + $0x6a8] sm:$0xff]  ;;  %v2523_v44 = vld [vmem:[#allocation5 + $0x6b0] sm:$0xff] }
 0x741   :  { %7094 = vmatpush1.bf16.msra.mxu0 %v7093_v27  ;;  %7032 = vmatprep.subr.bf16.mxu1 %v7031_v58  ;;  %v2485_v27 = vld [vmem:[#allocation5 + $0x580] sm:$0xff]  ;;  %v7115_v58 = vpack.c.bf16 %v2500_v5, %v2496_v53  ;;  %v7129_v45 = vpack.c.bf16 %v2523_v44, %v2519_v3  ;;  %v2562_v3 = vld [vmem:[#allocation5 + $0x7e8] sm:$0xff]  ;;  %v2559_v15 = vld [vmem:[#allocation5 + $0x7d0] sm:$0xff] }
 0x742   :  { %7096 = vmatprep.subr.bf16.mxu0 %v7095_v42  ;;  %v2494_v42 = vld [vmem:[#allocation5 + $0x5c8] sm:$0xff]  ;;  %v7049_v57 = vpack.c.bf16 %v2489_v52, %v2485_v27  ;;  %v2527_v27 = vld [vmem:[#allocation5 + $0x6d0] sm:$0xff]  ;;  %v2525_v53 = vld [vmem:[#allocation5 + $0x6c0] sm:$0xff] }
 0x743   :  { %v2531_v52 = vld [vmem:[#allocation5 + $0x6f0] sm:$0xff]  ;;  %v2529_v5 = vld [vmem:[#allocation5 + $0x6e0] sm:$0xff] }
 0x744   :  { %7034 = vmatpush1.bf16.msra.mxu1 %v7033_v21  ;;  %v7117_v21 = vpack.c.bf16 %v2499_v59, %v2495_v46  ;;  %v2534_v46 = vld [vmem:[#allocation5 + $0x708] sm:$0xff]  ;;  %v2563_v39 = vld [vmem:[#allocation5 + $0x7f0] sm:$0xff] }
 0x745   :  { %7098 = vmatpush1.bf16.msra.mxu0 %v7097_v17  ;;  %7036 = vmatprep.subr.bf16.mxu1 %v7035_v14  ;;  %v7051_v17 = vpack.c.bf16 %v2498_v51, %v2494_v42  ;;  %v2503_v14 = vld [vmem:[#allocation5 + $0x610] sm:$0xff]  ;;  %v7133_v42 = vpack.c.bf16 %v2531_v52, %v2527_v27  ;;  %v7069_v51 = vpack.c.bf16 %v2529_v5, %v2525_v53  ;;  %v2538_v59 = vld [vmem:[#allocation5 + $0x728] sm:$0xff]  ;;  %v2064_v27 = vld [vmem:[%s9227_s4] sm:$0xff] }
 0x746   :  { %7100 = vmatprep.subr.bf16.mxu0 %v7099_v62  ;;  %v7053_v62 = vpack.c.bf16 %v2497_v60, %v2493_v13  ;;  %v7121_v10 = vpack.c.bf16 %v2507_v20, %v2503_v14  ;;  %v2535_v13 = vld [vmem:[#allocation5 + $0x710] sm:$0xff]  ;;  %v2542_v14 = vld [vmem:[#allocation5 + $0x748] sm:$0xff]  ;;  %v2267_v5 = vld [vmem:[#allocation7] sm:$0xff] }
 0x747   :  { %v2539_v60 = vld [vmem:[#allocation5 + $0x730] sm:$0xff] }
 0x748   :  { %7038 = vmatpush1.bf16.msra.mxu1 %v7037_v18  ;;  %v2516_v18 = vld [vmem:[#allocation5 + $0x678] sm:$0xff]  ;;  %v2543_v20 = vld [vmem:[#allocation5 + $0x750] sm:$0xff] }
 0x749   :  { %7102 = vmatpush1.bf16.msra.mxu0 %v7101_v12  ;;  %7040 = vmatprep.subr.bf16.mxu1 %v7039_v26  ;;  %v2512_v12 = vld [vmem:[#allocation5 + $0x658] sm:$0xff]  ;;  %v2511_v26 = vld [vmem:[#allocation5 + $0x650] sm:$0xff] }
 0x74a   :  { %7104 = vmatprep.subr.bf16.mxu0 %v7103_v19  ;;  %v7123_v19 = vpack.c.bf16 %v2516_v18, %v2512_v12  ;;  %v7125_v31 = vpack.c.bf16 %v2515_v29, %v2511_v26  ;;  %v7141_v12 = vpack.c.bf16 %v2547_v9, %v2543_v20  ;;  %v2554_v26 = vld [vmem:[#allocation5 + $0x7a8] sm:$0xff]  ;;  %v2551_v29 = vld [vmem:[#allocation5 + $0x790] sm:$0xff] }
 0x74b   :  { %v7145_v32 = vpack.c.bf16 %v2555_v30, %v2551_v29  ;;  %v2834_v29 = vld [vmem:[#allocation5 + $0x40] sm:$0xff]  ;;  %v2843_v30 = vld [vmem:[#allocation5 + $0x88] sm:$0xff] }
 0x74c   :  { %7042 = vmatpush1.bf16.msra.mxu1 %v7041_v35  ;;  %v2524_v35 = vld [vmem:[#allocation5 + $0x6b8] sm:$0xff] }
 0x74d   :  { %7106 = vmatpush1.bf16.msra.mxu0 %v7105_v34  ;;  %7044 = vmatprep.subr.bf16.mxu1 %v7043_v38  ;;  %v2520_v34 = vld [vmem:[#allocation5 + $0x698] sm:$0xff]  ;;  %v7063_v38 = vpack.c.bf16 %v2522_v43, %v2518_v37  ;;  %v2558_v43 = vld [vmem:[#allocation5 + $0x7c8] sm:$0xff] }
 0x74e   :  { %7108 = vmatprep.subr.bf16.mxu0 %v7107_v36  ;;  %v7127_v36 = vpack.c.bf16 %v2524_v35, %v2520_v34  ;;  %v2553_v34 = vld [vmem:[#allocation5 + $0x7a0] sm:$0xff]  ;;  %v2560_v35 = vld [vmem:[#allocation5 + $0x7d8] sm:$0xff]  ;;  %v7083_v44 = vpack.c.bf16 %v2562_v3, %v2558_v43 }
 0x74f   :  { %v2564_v37 = vld [vmem:[#allocation5 + $0x7f8] sm:$0xff] }
 0x750   :  { %7046 = vmatpush1.bf16.msra.mxu1 %v7045_v49  ;;  %v2532_v49 = vld [vmem:[#allocation5 + $0x6f8] sm:$0xff] }
 0x751   :  { %7110 = vmatpush1.bf16.msra.mxu0 %v7109_v40  ;;  %7048 = vmatprep.subr.bf16.mxu1 %v7047_v28  ;;  %v2528_v40 = vld [vmem:[#allocation5 + $0x6d8] sm:$0xff]  ;;  %v7067_v28 = vpack.c.bf16 %v2530_v16, %v2526_v55 }
 0x752   :  { %7112 = vmatprep.subr.bf16.mxu0 %v7111_v48  ;;  %v7131_v48 = vpack.c.bf16 %v2532_v49, %v2528_v40  ;;  %v2827_v40 = vld [vmem:[#allocation5 + $0x8] sm:$0xff] }
 0x753   :  { %v2831_v49 = vld [vmem:[#allocation5 + $0x28] sm:$0xff] }
 0x754   :  { %7050 = vmatpush1.bf16.msra.mxu1 %v7049_v57  ;;  %v2540_v57 = vld [vmem:[#allocation5 + $0x738] sm:$0xff]  ;;  %v7175_v16 = vpack.c.bf16 %v2831_v49, %v2827_v40  ;;  %v2858_v40 = vld [vmem:[#allocation5 + $0x100] sm:$0xff] }
 0x755   :  { %7114 = vmatpush1.bf16.msra.mxu0 %v7113_v56  ;;  %7052 = vmatprep.subr.bf16.mxu1 %v7051_v17  ;;  %v2536_v56 = vld [vmem:[#allocation5 + $0x718] sm:$0xff]  ;;  %v7071_v17 = vpack.c.bf16 %v2538_v59, %v2534_v46  ;;  %v2862_v49 = vld [vmem:[#allocation5 + $0x120] sm:$0xff] }
 0x756   :  { %7116 = vmatprep.subr.bf16.mxu0 %v7115_v58  ;;  %v7135_v58 = vpack.c.bf16 %v2540_v57, %v2536_v56 }
 0x758   :  { %7054 = vmatpush1.bf16.msra.mxu1 %v7053_v62  ;;  %v7073_v62 = vpack.c.bf16 %v2537_v41, %v2533_v61  ;;  %v2270_v61 = vld [vmem:[#allocation7 + $0x18] sm:$0xff] }
 0x759   :  { %7118 = vmatpush1.bf16.msra.mxu0 %v7117_v21  ;;  %7056 = vmatprep.subr.bf16.mxu1 %v7055_v7  ;;  %v7137_v21 = vpack.c.bf16 %v2539_v60, %v2535_v13  ;;  %v2546_v7 = vld [vmem:[#allocation5 + $0x768] sm:$0xff]  ;;  %v2269_v60 = vld [vmem:[#allocation7 + $0x10] sm:$0xff] }
 0x75a   :  { %7120 = vmatprep.subr.bf16.mxu0 %v7119_v63  ;;  %v2544_v63 = vld [vmem:[#allocation5 + $0x758] sm:$0xff]  ;;  %v7075_v8 = vpack.c.bf16 %v2546_v7, %v2542_v14 }
 0x75b   :  { %v7139_v2 = vpack.c.bf16 %v2548_v50, %v2544_v63 }
 0x75c   :  { %7058 = vmatpush1.bf16.msra.mxu1 %v7057_v11  ;;  %v2545_v11 = vld [vmem:[#allocation5 + $0x760] sm:$0xff] }
 0x75d   :  { %7122 = vmatpush1.bf16.msra.mxu0 %v7121_v10  ;;  %7060 = vmatprep.subr.bf16.mxu1 %v7059_v24  ;;  %v2541_v10 = vld [vmem:[#allocation5 + $0x740] sm:$0xff] }
 0x75e   :  { %7124 = vmatprep.subr.bf16.mxu0 %v7123_v19  ;;  %v7077_v18 = vpack.c.bf16 %v2545_v11, %v2541_v10  ;;  %v2552_v19 = vld [vmem:[#allocation5 + $0x798] sm:$0xff]  ;;  %v2826_v10 = vld [vmem:[#allocation5] sm:$0xff] }
 0x75f   :  { %v7143_v24 = vpack.c.bf16 %v2556_v22, %v2552_v19  ;;  %v2830_v11 = vld [vmem:[#allocation5 + $0x20] sm:$0xff] }
 0x760   :  { %7062 = vmatpush1.bf16.msra.mxu1 %v7061_v33  ;;  %v2549_v33 = vld [vmem:[#allocation5 + $0x780] sm:$0xff] }
 0x761   :  { %7126 = vmatpush1.bf16.msra.mxu0 %v7125_v31  ;;  %7064 = vmatprep.subr.bf16.mxu1 %v7063_v38  ;;  %v7079_v31 = vpack.c.bf16 %v2554_v26, %v2550_v23  ;;  %v7147_v38 = vpack.c.bf16 %v2564_v37, %v2560_v35  ;;  %v7177_v23 = vpack.c.bf16 %v2830_v11, %v2826_v10  ;;  %v2846_v35 = vld [vmem:[#allocation5 + $0xa0] sm:$0xff]  ;;  %v2855_v37 = vld [vmem:[#allocation5 + $0xe8] sm:$0xff] }
 0x762   :  { %7128 = vmatprep.subr.bf16.mxu0 %v7127_v36  ;;  %v7081_v36 = vpack.c.bf16 %v2553_v34, %v2549_v33  ;;  %v2842_v34 = vld [vmem:[#allocation5 + $0x80] sm:$0xff]  ;;  %v2911_v10 = vld [vmem:[#allocation5 + $0x2a8] sm:$0xff] }
 0x763   :  { %v7185_v43 = vpack.c.bf16 %v2846_v35, %v2842_v34  ;;  %v2922_v35 = vld [vmem:[#allocation5 + $0x300] sm:$0xff] }
 0x764   :  { %7066 = vmatpush1.bf16.msra.mxu1 %v7065_v47  ;;  %v2561_v47 = vld [vmem:[#allocation5 + $0x7e0] sm:$0xff] }
 0x765   :  { %7130 = vmatpush1.bf16.msra.mxu0 %v7129_v45  ;;  %7068 = vmatprep.subr.bf16.mxu1 %v7067_v28  ;;  %v2557_v45 = vld [vmem:[#allocation5 + $0x7c0] sm:$0xff] }
 0x766   :  { %7132 = vmatprep.subr.bf16.mxu0 %v7131_v48  ;;  %v7149_v48 = vpack.c.bf16 %v2563_v39, %v2559_v15  ;;  %v7085_v55 = vpack.c.bf16 %v2561_v47, %v2557_v45  ;;  %v2859_v15 = vld [vmem:[#allocation5 + $0x108] sm:$0xff] }
 0x767   :  { %v2863_v39 = vld [vmem:[#allocation5 + $0x128] sm:$0xff] }
 0x768   :  { %7070 = vmatpush1.bf16.msra.mxu1 %v7069_v51  ;;  %v2338_v51 = vadd.f32 %v8965_v1, %v2267_v5  ;;  %v7191_v47 = vpack.c.bf16 %v2863_v39, %v2859_v15  ;;  %v2879_v5 = vld [vmem:[#allocation5 + $0x1a8] sm:$0xff]  ;;  %v2934_v15 = vld [vmem:[#allocation5 + $0x360] sm:$0xff] }
 0x769   :  { %7134 = vmatpush1.bf16.msra.mxu0 %v7133_v42  ;;  %7072 = vmatprep.subr.bf16.mxu1 %v7071_v17  ;;  %v2268_v42 = vld [vmem:[#allocation7 + $0x8] sm:$0xff] }
 0x76a   :  { %7136 = vmatprep.subr.bf16.mxu0 %v7135_v58  ;;  %v2340_v56 = vadd.f32 %v8967_v25, %v2268_v42  ;;  %v5609_v57 = vmul.f32 -1.442695, %v2338_v51  ;;  %v2939_v39 = vld [vmem:[#allocation5 + $0x388] sm:$0xff] }
 0x76c   :  { %7074 = vmatpush1.bf16.msra.mxu1 %v7073_v62  ;;  %v5610_v58 = vmul.f32 -1.442695, %v2340_v56  ;;  %8403 = vpow2.f32 %v5609_v57  ;;  %v2874_v56 = vld [vmem:[#allocation5 + $0x180] sm:$0xff] }
 0x76d   :  { %7138 = vmatpush1.bf16.msra.mxu0 %v7137_v21  ;;  %7076 = vmatprep.subr.bf16.mxu1 %v7075_v8  ;;  %v2878_v57 = vld [vmem:[#allocation5 + $0x1a0] sm:$0xff] }
 0x76e   :  { %7140 = vmatprep.subr.bf16.mxu0 %v7139_v2  ;;  %8405 = vpow2.f32 %v5610_v58  ;;  %v2883_v58 = vld [vmem:[#allocation5 + $0x1c8] sm:$0xff] }
 0x770   :  { %7078 = vmatpush1.bf16.msra.mxu1 %v7077_v18  ;;  %v2839_v18 = vld [vmem:[#allocation5 + $0x68] sm:$0xff] }
 0x771   :  { %7142 = vmatpush1.bf16.msra.mxu0 %v7141_v12  ;;  %7080 = vmatprep.subr.bf16.mxu1 %v7079_v31  ;;  %v2835_v12 = vld [vmem:[#allocation5 + $0x48] sm:$0xff] }
 0x772   :  { %7144 = vmatprep.subr.bf16.mxu0 %v7143_v24  ;;  %v7179_v26 = vpack.c.bf16 %v2839_v18, %v2835_v12  ;;  %v2847_v31 = vld [vmem:[#allocation5 + $0xa8] sm:$0xff]  ;;  %v2906_v18 = vld [vmem:[#allocation5 + $0x280] sm:$0xff] }
 0x773   :  { %v7183_v33 = vpack.c.bf16 %v2847_v31, %v2843_v30  ;;  %v2918_v30 = vld [vmem:[#allocation5 + $0x2e0] sm:$0xff]  ;;  %v2923_v31 = vld [vmem:[#allocation5 + $0x308] sm:$0xff] }
 0x774   :  { %7082 = vmatpush1.bf16.msra.mxu1 %v7081_v36  ;;  %v2851_v36 = vld [vmem:[#allocation5 + $0xc8] sm:$0xff] }
 0x775   :  { %7146 = vmatpush1.bf16.msra.mxu0 %v7145_v32  ;;  %7084 = vmatprep.subr.bf16.mxu1 %v7083_v44  ;;  %v7187_v3 = vpack.c.bf16 %v2855_v37, %v2851_v36  ;;  %v2854_v44 = vld [vmem:[#allocation5 + $0xe0] sm:$0xff]  ;;  %v2931_v37 = vld [vmem:[#allocation5 + $0x348] sm:$0xff] }
 0x776   :  { %7148 = vmatprep.subr.bf16.mxu0 %v7147_v38  ;;  %v8404_v46 = vpop.eup %8403  ;;  %v2850_v38 = vld [vmem:[#allocation5 + $0xc0] sm:$0xff] }
 0x777   :  { %v2416_v13 = vadd.f32 1.0, %v8404_v46  ;;  %v7189_v45 = vpack.c.bf16 %v2854_v44, %v2850_v38  ;;  %v2887_v46 = vld [vmem:[#allocation5 + $0x1e8] sm:$0xff]  ;;  %v2926_v36 = vld [vmem:[#allocation5 + $0x320] sm:$0xff] }
 0x778   :  { %7086 = vmatpush1.bf16.msra.mxu1 %v7085_v55  ;;  %v8406_v59 = vpop.eup %8405  ;;  %v2871_v55 = vld [vmem:[#allocation5 + $0x168] sm:$0xff]  ;;  %v2930_v44 = vld [vmem:[#allocation5 + $0x340] sm:$0xff] }
 0x779   :  { %7150 = vmatpush1.bf16.msra.mxu0 %v7149_v48  ;;  %7151 = vmatprep.subr.bf16.mxu1 %v8692_v4  ;;  %v2422_v17 = vadd.f32 1.0, %v8406_v59  ;;  %8407 = vrcp.f32 %v2416_v13  ;;  %v2867_v48 = vld [vmem:[#allocation5 + $0x148] sm:$0xff]  ;;  %v7201_v59 = vpack.c.bf16 %v2878_v57, %v2874_v56  ;;  %v7203_v13 = vpack.c.bf16 %v2887_v46, %v2883_v58  ;;  %v2737_v58 = vld [vmem:[#allocation8 + $0x10] sm:$0xff]  ;;  %v2738_v46 = vld [vmem:[#allocation8 + $0x18] sm:$0xff] }
 0x77a   :  { %7176 = vmatprep.subr.bf16.mxu0 %v7175_v16  ;;  %v7193_v16 = vpack.c.bf16 %v2862_v49, %v2858_v40  ;;  %v2938_v49 = vld [vmem:[#allocation5 + $0x380] sm:$0xff]  ;;  %v2736_v56 = vld [vmem:[#allocation8 + $0x8] sm:$0xff] }
 0x77b   :  { %8409 = vrcp.f32 %v2422_v17  ;;  %v2882_v17 = vld [vmem:[#allocation5 + $0x1c0] sm:$0xff] }
 0x783   :  { %v8408_v25 = vpop.eup %8407 }
 0x785   :  { %v8410_v50 = vpop.eup %8409 }
 0x786   :  { %v2432_v14 = vmul.f32 %v8410_v50, %v8936_v6  ;;  %v2838_v6 = vld [vmem:[#allocation5 + $0x60] sm:$0xff]  ;;  %v2903_v50 = vld [vmem:[#allocation5 + $0x268] sm:$0xff] }
 0x787   :  { %v7181_v32 = vpack.c.bf16 %v2838_v6, %v2834_v29  ;;  %v2914_v6 = vld [vmem:[#allocation5 + $0x2c0] sm:$0xff] }
 0x7cf   :  { %v2131_v28 = vpop.f32.mrb[14].mxu0 }
 0x7d0   :  { %v2132_v52 = vadd.f32 %v2131_v28, %v2064_v27  ;;  %v5879_v53 = vpop.f32.mrb[15].mxu0  ;;  %v7195_v27 = vpack.c.bf16 %v2871_v55, %v2867_v48  ;;  %v2866_v28 = vld [vmem:[#allocation5 + $0x140] sm:$0xff]  ;;  %v2947_v55 = vld [vmem:[#allocation5 + $0x3c8] sm:$0xff] }
 0x7d1   :  { %v2875_v53 = vld [vmem:[#allocation5 + $0x188] sm:$0xff]  ;;  %v2942_v48 = vld [vmem:[#allocation5 + $0x3a0] sm:$0xff] }
 0x7d2   :  { %2136 = vst [vmem:[#allocation10 + $0x10] sm:$0xff] %v2132_v52  ;;  %v2870_v52 = vld [vmem:[#allocation5 + $0x160] sm:$0xff]  ;;  %v7199_v51 = vpack.c.bf16 %v2879_v5, %v2875_v53 }
 0x7d3   :  { %v7197_v42 = vpack.c.bf16 %v2870_v52, %v2866_v28  ;;  %v2946_v52 = vld [vmem:[#allocation5 + $0x3c0] sm:$0xff] }
 0x7d4   :  { %v2950_v53 = vld [vmem:[#allocation5 + $0x3e0] sm:$0xff] }
 0x7d5   :  { %v7237_v5 = vpack.c.bf16 %v2950_v53, %v2946_v52  ;;  %v2832_v52 = vld [vmem:[#allocation5 + $0x30] sm:$0xff]  ;;  %v2837_v53 = vld [vmem:[#allocation5 + $0x58] sm:$0xff] }
 0x80f   :  { %v2408_v41 = vpop.f32.mrb[16].mxu0 }
 0x810   :  { %v2409_v21 = vadd.f32 %v2408_v41, %v2269_v60  ;;  %v2410_v62 = vpop.f32.mrb[17].mxu0  ;;  %v2886_v60 = vld [vmem:[#allocation5 + $0x1e0] sm:$0xff]  ;;  %v2895_v41 = vld [vmem:[#allocation5 + $0x228] sm:$0xff] }
 0x811   :  { %v2411_v63 = vadd.f32 %v2410_v62, %v2270_v61  ;;  %v2891_v61 = vld [vmem:[#allocation5 + $0x208] sm:$0xff] }
 0x812   :  { %8411 = vtanh.f32 %v2409_v21  ;;  %v7205_v21 = vpack.c.bf16 %v2886_v60, %v2882_v17  ;;  %v7207_v62 = vpack.c.bf16 %v2895_v41, %v2891_v61  ;;  %v2740_v17 = vld [vmem:[#allocation8 + $0x28] sm:$0xff]  ;;  %v2741_v61 = vld [vmem:[#allocation8 + $0x30] sm:$0xff]  ;;  %v2742_v41 = vld [vmem:[#allocation8 + $0x38] sm:$0xff] }
 0x813   :  { %v5611_v1 = vmul.f32 -1.442695, %v2411_v63  ;;  %v2890_v63 = vld [vmem:[#allocation5 + $0x200] sm:$0xff] }
 0x815   :  { %8413 = vpow2.f32 %v5611_v1  ;;  %v2894_v1 = vld [vmem:[#allocation5 + $0x220] sm:$0xff] }
 0x81c   :  { %v8412_v2 = vpop.eup %8411 }
 0x81d   :  { %v2433_v7 = vmul.f32 %v8412_v2, %v8408_v25  ;;  %v2899_v25 = vld [vmem:[#allocation5 + $0x248] sm:$0xff]  ;;  %v7209_v2 = vpack.c.bf16 %v2894_v1, %v2890_v63 }
 0x81e   :  { %v2744_v63 = vld [vmem:[#allocation8 + $0x48] sm:$0xff] }
 0x81f   :  { %v8414_v20 = vpop.eup %8413  ;;  %v8978_v8 = vadd.f32 %v2433_v7, %v2432_v14  ;;  %v7211_v14 = vpack.c.bf16 %v2903_v50, %v2899_v25  ;;  %v2898_v7 = vld [vmem:[#allocation5 + $0x240] sm:$0xff]  ;;  %v2745_v25 = vld [vmem:[#allocation8 + $0x50] sm:$0xff]  ;;  %v2746_v50 = vld [vmem:[#allocation8 + $0x58] sm:$0xff] }
 0x820   :  { %v2429_v9 = vadd.f32 1.0, %v8414_v20  ;;  %v2902_v20 = vld [vmem:[#allocation5 + $0x260] sm:$0xff] }
 0x821   :  { %8415 = vtanh.f32 %v8978_v8  ;;  %v7213_v11 = vpack.c.bf16 %v2902_v20, %v2898_v7  ;;  %v2748_v7 = vld [vmem:[#allocation8 + $0x68] sm:$0xff] }
 0x822   :  { %8417 = vrcp.f32 %v2429_v9  ;;  %v2907_v9 = vld [vmem:[#allocation5 + $0x288] sm:$0xff] }
 0x823   :  { %v7215_v12 = vpack.c.bf16 %v2911_v10, %v2907_v9  ;;  %v2749_v9 = vld [vmem:[#allocation8 + $0x70] sm:$0xff]  ;;  %v2750_v10 = vld [vmem:[#allocation8 + $0x78] sm:$0xff] }
 0x82b   :  { %v8416_v19 = vpop.eup %8415 }
 0x82c   :  { %v8418_v22 = vpop.eup %8417 }
 0x82d   :  { %v8981_v24 = vmul.f32 %v8418_v22, %v8416_v19  ;;  %v2910_v19 = vld [vmem:[#allocation5 + $0x2a0] sm:$0xff]  ;;  %v2915_v22 = vld [vmem:[#allocation5 + $0x2c8] sm:$0xff] }
 0x82f   :  { %2634 = vmatmul.mubr.f32.vlgmr.msra.gmra.mrb[16].mxu1 %v8981_v24  ;;  %2705 = vmatmul.mubr.f32.vlgmr.msra.gmra.mrb[18].mxu0 %v8981_v24 }
 0x830   :  { %7178 = vmatpush1.bf16.msra.mxu0 %v7177_v23  ;;  %3022 = vmatprep.mubr.f32.mxu0 %v8981_v24  ;;  %v2919_v23 = vld [vmem:[#allocation5 + $0x2e8] sm:$0xff] }
 0x831   :  { %7180 = vmatprep.subr.bf16.mxu0 %v7179_v26  ;;  %5912 = vmatprep.mubr.msk.f32.mxu1 %vm8693_vm0, %v8691_v0  ;;  %v7217_v26 = vpack.c.bf16 %v2910_v19, %v2906_v18  ;;  %v7219_v29 = vpack.c.bf16 %v2919_v23, %v2915_v22  ;;  %v7173_v18 = vpack.c.bf16 %v2750_v10, %v2749_v9  ;;  %v2565_v22 = vld [vmem:[#allocation7 + $0x20] sm:$0xff]  ;;  %v2566_v23 = vld [vmem:[#allocation7 + $0x28] sm:$0xff]  ;;  %v2864_v10 = vld [vmem:[#allocation5 + $0x130] sm:$0xff] }
 0x834   :  { %7182 = vmatpush1.bf16.msra.mxu0 %v7181_v32  ;;  %v2927_v32 = vld [vmem:[#allocation5 + $0x328] sm:$0xff] }
 0x835   :  { %7184 = vmatprep.subr.bf16.mxu0 %v7183_v33  ;;  %v7221_v33 = vpack.c.bf16 %v2918_v30, %v2914_v6  ;;  %v7223_v34 = vpack.c.bf16 %v2927_v32, %v2923_v31 }
 0x838   :  { %7186 = vmatpush1.bf16.msra.mxu0 %v7185_v43  ;;  %v2935_v43 = vld [vmem:[#allocation5 + $0x368] sm:$0xff] }
 0x839   :  { %7188 = vmatprep.subr.bf16.mxu0 %v7187_v3  ;;  %v7225_v3 = vpack.c.bf16 %v2926_v36, %v2922_v35  ;;  %v7227_v38 = vpack.c.bf16 %v2935_v43, %v2931_v37  ;;  %v2568_v35 = vld [vmem:[#allocation7 + $0x38] sm:$0xff]  ;;  %v2567_v37 = vld [vmem:[#allocation7 + $0x30] sm:$0xff] }
 0x83c   :  { %7190 = vmatpush1.bf16.msra.mxu0 %v7189_v45  ;;  %v2943_v45 = vld [vmem:[#allocation5 + $0x3a8] sm:$0xff] }
 0x83d   :  { %7192 = vmatprep.subr.bf16.mxu0 %v7191_v47  ;;  %v7229_v47 = vpack.c.bf16 %v2934_v15, %v2930_v44  ;;  %v7231_v40 = vpack.c.bf16 %v2943_v45, %v2939_v39 }
 0x840   :  { %7194 = vmatpush1.bf16.msra.mxu0 %v7193_v16  ;;  %v2951_v16 = vld [vmem:[#allocation5 + $0x3e8] sm:$0xff] }
 0x841   :  { %7196 = vmatprep.subr.bf16.mxu0 %v7195_v27  ;;  %v7233_v27 = vpack.c.bf16 %v2942_v48, %v2938_v49  ;;  %v7235_v28 = vpack.c.bf16 %v2951_v16, %v2947_v55 }
 0x844   :  { %7198 = vmatpush1.bf16.msra.mxu0 %v7197_v42  ;;  %v8988_v42 = vld [vmem:[#allocation2 + $0x20] sm:$0xff] }
 0x845   :  { %7200 = vmatprep.subr.bf16.mxu0 %v7199_v51  ;;  %v2735_v51 = vld [vmem:[#allocation8] sm:$0xff] }
 0x846   :  { %v7152_v57 = vpack.c.bf16 %v2736_v56, %v2735_v51 }
 0x848   :  { %7202 = vmatpush1.bf16.msra.mxu0 %v7201_v59  ;;  %7153 = vmatpush3.bf16.msra.mxu1 %v7152_v57  ;;  %v7155_v59 = vpack.c.bf16 %v2738_v46, %v2737_v58 }
 0x849   :  { %7204 = vmatprep.subr.bf16.mxu0 %v7203_v13  ;;  %7154 = vmatprep.subr.bf16.mxu1 %v8692_v4  ;;  %v2739_v13 = vld [vmem:[#allocation8 + $0x20] sm:$0xff] }
 0x84a   :  { %v7158_v60 = vpack.c.bf16 %v2740_v17, %v2739_v13  ;;  %v2840_v13 = vld [vmem:[#allocation5 + $0x70] sm:$0xff]  ;;  %v2845_v17 = vld [vmem:[#allocation5 + $0x98] sm:$0xff] }
 0x84c   :  { %7206 = vmatpush1.bf16.msra.mxu0 %v7205_v21  ;;  %7156 = vmatpush3.bf16.msra.mxu1 %v7155_v59  ;;  %v7161_v21 = vpack.c.bf16 %v2742_v41, %v2741_v61  ;;  %v2836_v59 = vld [vmem:[#allocation5 + $0x50] sm:$0xff] }
 0x84d   :  { %7208 = vmatprep.subr.bf16.mxu0 %v7207_v62  ;;  %7157 = vmatprep.subr.bf16.mxu1 %v8692_v4  ;;  %v2743_v62 = vld [vmem:[#allocation8 + $0x40] sm:$0xff]  ;;  %v2844_v41 = vld [vmem:[#allocation5 + $0x90] sm:$0xff] }
 0x84e   :  { %v7164_v1 = vpack.c.bf16 %v2744_v63, %v2743_v62  ;;  %v2853_v62 = vld [vmem:[#allocation5 + $0xd8] sm:$0xff] }
 0x84f   :  { %v2857_v63 = vld [vmem:[#allocation5 + $0xf8] sm:$0xff] }
 0x850   :  { %7210 = vmatpush1.bf16.msra.mxu0 %v7209_v2  ;;  %7159 = vmatpush3.bf16.msra.mxu1 %v7158_v60  ;;  %v7167_v2 = vpack.c.bf16 %v2746_v50, %v2745_v25  ;;  %v2849_v60 = vld [vmem:[#allocation5 + $0xb8] sm:$0xff]  ;;  %v7251_v25 = vpack.c.bf16 %v2857_v63, %v2853_v62  ;;  %v2852_v50 = vld [vmem:[#allocation5 + $0xd0] sm:$0xff] }
 0x851   :  { %7212 = vmatprep.subr.bf16.mxu0 %v7211_v14  ;;  %7160 = vmatprep.subr.bf16.mxu1 %v8692_v4  ;;  %v2747_v14 = vld [vmem:[#allocation8 + $0x60] sm:$0xff]  ;;  %v7247_v61 = vpack.c.bf16 %v2849_v60, %v2845_v17 }
 0x852   :  { %v7170_v20 = vpack.c.bf16 %v2748_v7, %v2747_v14  ;;  %v2861_v14 = vld [vmem:[#allocation5 + $0x118] sm:$0xff] }
 0x853   :  { %v2865_v7 = vld [vmem:[#allocation5 + $0x138] sm:$0xff] }
 0x854   :  { %7214 = vmatpush1.bf16.msra.mxu0 %v7213_v11  ;;  %7162 = vmatpush3.bf16.msra.mxu1 %v7161_v21  ;;  %v2829_v11 = vld [vmem:[#allocation5 + $0x18] sm:$0xff]  ;;  %v2848_v21 = vld [vmem:[#allocation5 + $0xb0] sm:$0xff]  ;;  %v7255_v9 = vpack.c.bf16 %v2865_v7, %v2861_v14 }
 0x855   :  { %7216 = vmatprep.subr.bf16.mxu0 %v7215_v12  ;;  %7163 = vmatprep.subr.bf16.mxu1 %v8692_v4  ;;  %v2833_v12 = vld [vmem:[#allocation5 + $0x38] sm:$0xff] }
 0x856   :  { %v7239_v19 = vpack.c.bf16 %v2833_v12, %v2829_v11  ;;  %v2869_v11 = vld [vmem:[#allocation5 + $0x158] sm:$0xff] }
 0x857   :  { %v2873_v12 = vld [vmem:[#allocation5 + $0x178] sm:$0xff] }
 0x858   :  { %7218 = vmatpush1.bf16.msra.mxu0 %v7217_v26  ;;  %7165 = vmatpush3.bf16.msra.mxu1 %v7164_v1  ;;  %v7249_v1 = vpack.c.bf16 %v2848_v21, %v2844_v41  ;;  %v2925_v41 = vld [vmem:[#allocation5 + $0x318] sm:$0xff] }
 0x859   :  { %7220 = vmatprep.subr.bf16.mxu0 %v7219_v29  ;;  %7166 = vmatprep.subr.bf16.mxu1 %v8692_v4  ;;  %v2929_v21 = vld [vmem:[#allocation5 + $0x338] sm:$0xff] }
 0x85a   :  { %v7287_v63 = vpack.c.bf16 %v2929_v21, %v2925_v41  ;;  %v3144_v41 = vld [vmem:[#allocation5 + $0x4a0] sm:$0xff] }
 0x85c   :  { %7222 = vmatpush1.bf16.msra.mxu0 %v7221_v33  ;;  %7168 = vmatpush3.bf16.msra.mxu1 %v7167_v2  ;;  %v2856_v2 = vld [vmem:[#allocation5 + $0xf0] sm:$0xff] }
 0x85d   :  { %7224 = vmatprep.subr.bf16.mxu0 %v7223_v34  ;;  %7169 = vmatprep.subr.bf16.mxu1 %v8692_v4 }
 0x860   :  { %7226 = vmatpush1.bf16.msra.mxu0 %v7225_v3  ;;  %7171 = vmatpush3.bf16.msra.mxu1 %v7170_v20  ;;  %v7253_v20 = vpack.c.bf16 %v2856_v2, %v2852_v50  ;;  %v2933_v50 = vld [vmem:[#allocation5 + $0x358] sm:$0xff] }
 0x861   :  { %7228 = vmatprep.subr.bf16.mxu0 %v7227_v38  ;;  %7172 = vmatprep.subr.bf16.mxu1 %v8692_v4  ;;  %v2937_v2 = vld [vmem:[#allocation5 + $0x378] sm:$0xff] }
 0x862   :  { %v7291_v7 = vpack.c.bf16 %v2937_v2, %v2933_v50  ;;  %v3153_v2 = vld [vmem:[#allocation5 + $0x4e8] sm:$0xff] }
 0x864   :  { %7230 = vmatpush1.bf16.msra.mxu0 %v7229_v47  ;;  %7174 = vmatpush3.bf16.msra.mxu1 %v7173_v18 }
 0x865   :  { %7232 = vmatprep.subr.bf16.mxu0 %v7231_v40  ;;  %7240 = vmatprep.subr.bf16.mxu1 %v7239_v19  ;;  %v7259_v19 = vpack.c.bf16 %v2873_v12, %v2869_v11 }
 0x868   :  { %7234 = vmatpush1.bf16.msra.mxu0 %v7233_v27 }
 0x869   :  { %7236 = vmatprep.subr.bf16.mxu0 %v7235_v28  ;;  %v2828_v28 = vld [vmem:[#allocation5 + $0x10] sm:$0xff] }
 0x86a   :  { %v7241_v57 = vpack.c.bf16 %v2832_v52, %v2828_v28  ;;  %v2900_v28 = vld [vmem:[#allocation5 + $0x250] sm:$0xff] }
 0x86b   :  { %v2904_v52 = vld [vmem:[#allocation5 + $0x270] sm:$0xff] }
 0x86c   :  { %7238 = vmatpush1.bf16.msra.mxu0 %v7237_v5  ;;  %v2841_v5 = vld [vmem:[#allocation5 + $0x78] sm:$0xff] }
 0x86d   :  { %v7243_v46 = vpack.c.bf16 %v2841_v5, %v2837_v53  ;;  %v2909_v53 = vld [vmem:[#allocation5 + $0x298] sm:$0xff] }
 0x86e   :  { %v2913_v5 = vld [vmem:[#allocation5 + $0x2b8] sm:$0xff] }
 0x86f   :  { %3023 = vmatmul.mubr.f32.vlgmr.msra.gmra.mrb[20].mxu0 %v8988_v42 }
 0x902   :  { %v2635_v26 = vpop.f32.mrb[16].mxu1  ;;  %v2706_v29 = vpop.f32.mrb[18].mxu0 }
 0x903   :  { %v2636_v6 = vadd.f32 %v2635_v26, %v2565_v22  ;;  %v2637_v30 = vpop.f32.mrb[17].mxu1  ;;  %v2708_v31 = vpop.f32.mrb[19].mxu0  ;;  %v2707_v3 = vadd.f32 %v2706_v29, %v2567_v37  ;;  %v2868_v22 = vld [vmem:[#allocation5 + $0x150] sm:$0xff]  ;;  %v2877_v26 = vld [vmem:[#allocation5 + $0x198] sm:$0xff] }
 0x904   :  { %v2638_v32 = vadd.f32 %v2637_v30, %v2566_v23  ;;  %v2709_v36 = vadd.f32 %v2708_v31, %v2568_v35  ;;  %v2872_v23 = vld [vmem:[#allocation5 + $0x170] sm:$0xff]  ;;  %v2881_v29 = vld [vmem:[#allocation5 + $0x1b8] sm:$0xff] }
 0x905   :  { %v5612_v33 = vmul.f32 -1.442695, %v2636_v6  ;;  %v7261_v30 = vpack.c.bf16 %v2872_v23, %v2868_v22  ;;  %v2885_v35 = vld [vmem:[#allocation5 + $0x1d8] sm:$0xff] }
 0x906   :  { %v5613_v34 = vmul.f32 -1.442695, %v2638_v32  ;;  %v5614_v43 = vmul.f32 -1.442695, %v2709_v36  ;;  %v7263_v32 = vpack.c.bf16 %v2881_v29, %v2877_v26  ;;  %v2889_v36 = vld [vmem:[#allocation5 + $0x1f8] sm:$0xff] }
 0x907   :  { %8419 = vpow2.f32 %v5612_v33  ;;  %v2876_v33 = vld [vmem:[#allocation5 + $0x190] sm:$0xff]  ;;  %v2949_v22 = vld [vmem:[#allocation5 + $0x3d8] sm:$0xff] }
 0x908   :  { %8421 = vpow2.f32 %v5613_v34  ;;  %v2880_v34 = vld [vmem:[#allocation5 + $0x1b0] sm:$0xff]  ;;  %v2953_v23 = vld [vmem:[#allocation5 + $0x3f8] sm:$0xff] }
 0x909   :  { %8423 = vpow2.f32 %v5614_v43  ;;  %v7265_v37 = vpack.c.bf16 %v2880_v34, %v2876_v33  ;;  %v7267_v43 = vpack.c.bf16 %v2889_v36, %v2885_v35  ;;  %v7299_v29 = vpack.c.bf16 %v2953_v23, %v2949_v22  ;;  %v3127_v34 = vld [vmem:[#allocation5 + $0x418] sm:$0xff]  ;;  %v3125_v36 = vld [vmem:[#allocation5 + $0x408] sm:$0xff] }
 0x90a   :  { %8425 = vtanh.f32 %v2707_v3  ;;  %v2884_v3 = vld [vmem:[#allocation5 + $0x1d0] sm:$0xff]  ;;  %v3131_v35 = vld [vmem:[#allocation5 + $0x438] sm:$0xff] }
 0x911   :  { %v8420_v38 = vpop.eup %8419 }
 0x912   :  { %v8422_v44 = vpop.eup %8421  ;;  %v2714_v15 = vadd.f32 1.0, %v8420_v38  ;;  %v2888_v38 = vld [vmem:[#allocation5 + $0x1f0] sm:$0xff] }
 0x913   :  { %v2720_v39 = vadd.f32 1.0, %v8422_v44  ;;  %v8424_v45 = vpop.eup %8423  ;;  %v2893_v44 = vld [vmem:[#allocation5 + $0x218] sm:$0xff] }
 0x914   :  { %8427 = vrcp.f32 %v2714_v15  ;;  %v8426_v47 = vpop.eup %8425  ;;  %v2727_v55 = vadd.f32 1.0, %v8424_v45  ;;  %v2897_v15 = vld [vmem:[#allocation5 + $0x238] sm:$0xff] }
 0x915   :  { %8429 = vrcp.f32 %v2720_v39  ;;  %v7269_v39 = vpack.c.bf16 %v2888_v38, %v2884_v3  ;;  %v7271_v45 = vpack.c.bf16 %v2897_v15, %v2893_v44  ;;  %v3126_v3 = vld [vmem:[#allocation5 + $0x410] sm:$0xff] }
 0x916   :  { %8431 = vrcp.f32 %v2727_v55  ;;  %v3130_v38 = vld [vmem:[#allocation5 + $0x430] sm:$0xff] }
 0x917   :  { %v7369_v15 = vpack.c.bf16 %v3130_v38, %v3126_v3 }
 0x91e   :  { %v8428_v40 = vpop.eup %8427 }
 0x91f   :  { %v8430_v49 = vpop.eup %8429  ;;  %v2731_v48 = vmul.f32 %v8428_v40, %v8426_v47  ;;  %v2892_v47 = vld [vmem:[#allocation5 + $0x210] sm:$0xff] }
 0x920   :  { %v2730_v16 = vmul.f32 %v8430_v49, %v8957_v54  ;;  %v8432_v51 = vpop.eup %8431  ;;  %v7245_v54 = vpack.c.bf16 %v2840_v13, %v2836_v59  ;;  %v2896_v40 = vld [vmem:[#allocation5 + $0x230] sm:$0xff]  ;;  %v2901_v49 = vld [vmem:[#allocation5 + $0x258] sm:$0xff] }
 0x921   :  { %v7273_v55 = vpack.c.bf16 %v2896_v40, %v2892_v47  ;;  %v2917_v59 = vld [vmem:[#allocation5 + $0x2d8] sm:$0xff] }
 0x922   :  { %v8999_v27 = vadd.f32 %v2731_v48, %v2730_v16  ;;  %v2905_v48 = vld [vmem:[#allocation5 + $0x278] sm:$0xff] }
 0x923   :  { %v7275_v16 = vpack.c.bf16 %v2905_v48, %v2901_v49  ;;  %v2921_v13 = vld [vmem:[#allocation5 + $0x2f8] sm:$0xff]  ;;  %v3133_v48 = vld [vmem:[#allocation5 + $0x448] sm:$0xff] }
 0x924   :  { %8433 = vtanh.f32 %v8999_v27  ;;  %v7283_v60 = vpack.c.bf16 %v2921_v13, %v2917_v59  ;;  %v3135_v47 = vld [vmem:[#allocation5 + $0x458] sm:$0xff]  ;;  %v3141_v59 = vld [vmem:[#allocation5 + $0x488] sm:$0xff] }
 0x925   :  { %v3139_v49 = vld [vmem:[#allocation5 + $0x478] sm:$0xff]  ;;  %v3145_v13 = vld [vmem:[#allocation5 + $0x4a8] sm:$0xff] }
 0x92e   :  { %v8434_v56 = vpop.eup %8433 }
 0x92f   :  { %v9002_v58 = vmul.f32 %v8434_v56, %v8432_v51  ;;  %v7277_v51 = vpack.c.bf16 %v2904_v52, %v2900_v28  ;;  %v7279_v56 = vpack.c.bf16 %v2913_v5, %v2909_v53  ;;  %v3138_v28 = vld [vmem:[#allocation5 + $0x470] sm:$0xff]  ;;  %v3132_v52 = vld [vmem:[#allocation5 + $0x440] sm:$0xff] }
 0x930   :  { %v3136_v5 = vld [vmem:[#allocation5 + $0x460] sm:$0xff] }
 0x931   :  { %5913 = vmatmul.mubr.f32.vlgmr.msra.gmra.mrb[18].mxu1 %v9002_v58  ;;  %3320 = vmatprep.mubr.f32.mxu0 %v9002_v58 }
 0x932   :  { %7242 = vmatpush1.bf16.msra.mxu1 %v7241_v57  ;;  %3093 = vmatprep.mubr.f32.mxu1 %v8981_v24  ;;  %v2860_v24 = vld [vmem:[#allocation5 + $0x110] sm:$0xff] }
 0x933   :  { %7244 = vmatprep.subr.bf16.mxu1 %v7243_v46  ;;  %v7257_v18 = vpack.c.bf16 %v2864_v10, %v2860_v24  ;;  %v2908_v57 = vld [vmem:[#allocation5 + $0x290] sm:$0xff]  ;;  %v2941_v24 = vld [vmem:[#allocation5 + $0x398] sm:$0xff] }
 0x934   :  { %v2912_v46 = vld [vmem:[#allocation5 + $0x2b0] sm:$0xff]  ;;  %v2945_v10 = vld [vmem:[#allocation5 + $0x3b8] sm:$0xff] }
 0x935   :  { %v7281_v17 = vpack.c.bf16 %v2912_v46, %v2908_v57  ;;  %v7295_v12 = vpack.c.bf16 %v2945_v10, %v2941_v24  ;;  %v7309_v57 = vpack.c.bf16 %v3136_v5, %v3132_v52  ;;  %v3152_v24 = vld [vmem:[#allocation5 + $0x4e0] sm:$0xff]  ;;  %v3159_v10 = vld [vmem:[#allocation5 + $0x518] sm:$0xff]  ;;  %v3178_v52 = vld [vmem:[#allocation5 + $0x5b0] sm:$0xff] }
 0x936   :  { %7246 = vmatpush1.bf16.msra.mxu1 %v7245_v54  ;;  %v2916_v54 = vld [vmem:[#allocation5 + $0x2d0] sm:$0xff] }
 0x937   :  { %7248 = vmatprep.subr.bf16.mxu1 %v7247_v61  ;;  %v2920_v61 = vld [vmem:[#allocation5 + $0x2f0] sm:$0xff] }
 0x938   :  { %v7285_v62 = vpack.c.bf16 %v2920_v61, %v2916_v54  ;;  %v3146_v54 = vld [vmem:[#allocation5 + $0x4b0] sm:$0xff]  ;;  %v3140_v61 = vld [vmem:[#allocation5 + $0x480] sm:$0xff] }
 0x93a   :  { %7250 = vmatpush1.bf16.msra.mxu1 %v7249_v1  ;;  %v2924_v1 = vld [vmem:[#allocation5 + $0x310] sm:$0xff] }
 0x93b   :  { %7252 = vmatprep.subr.bf16.mxu1 %v7251_v25  ;;  %v2928_v25 = vld [vmem:[#allocation5 + $0x330] sm:$0xff] }
 0x93c   :  { %v7289_v14 = vpack.c.bf16 %v2928_v25, %v2924_v1  ;;  %v3149_v1 = vld [vmem:[#allocation5 + $0x4c8] sm:$0xff]  ;;  %v7313_v25 = vpack.c.bf16 %v3144_v41, %v3140_v61  ;;  %v3186_v61 = vld [vmem:[#allocation5 + $0x5f0] sm:$0xff]  ;;  %v3180_v41 = vld [vmem:[#allocation5 + $0x5c0] sm:$0xff] }
 0x93e   :  { %7254 = vmatpush1.bf16.msra.mxu1 %v7253_v20  ;;  %v2932_v20 = vld [vmem:[#allocation5 + $0x350] sm:$0xff] }
 0x93f   :  { %7256 = vmatprep.subr.bf16.mxu1 %v7255_v9  ;;  %v2936_v9 = vld [vmem:[#allocation5 + $0x370] sm:$0xff] }
 0x940   :  { %v7293_v11 = vpack.c.bf16 %v2936_v9, %v2932_v20  ;;  %v7315_v20 = vpack.c.bf16 %v3153_v2, %v3149_v1  ;;  %v3148_v9 = vld [vmem:[#allocation5 + $0x4c0] sm:$0xff]  ;;  %v3195_v1 = vld [vmem:[#allocation5 + $0x638] sm:$0xff] }
 0x941   :  { %v7317_v22 = vpack.c.bf16 %v3152_v24, %v3148_v9  ;;  %v3194_v24 = vld [vmem:[#allocation5 + $0x630] sm:$0xff] }
 0x942   :  { %v9007_v6 = vpop.f32.mrb[20].mxu0  ;;  %7258 = vmatpush1.bf16.msra.mxu1 %v7257_v18  ;;  %v2940_v18 = vld [vmem:[#allocation5 + $0x390] sm:$0xff] }
 0x943   :  { %v9009_v31 = vpop.f32.mrb[21].mxu0  ;;  %7260 = vmatprep.subr.bf16.mxu1 %v7259_v19  ;;  %v2944_v19 = vld [vmem:[#allocation5 + $0x3b0] sm:$0xff] }
 0x944   :  { %v7297_v26 = vpack.c.bf16 %v2944_v19, %v2940_v18  ;;  %v3161_v18 = vld [vmem:[#allocation5 + $0x528] sm:$0xff] }
 0x946   :  { %7262 = vmatpush1.bf16.msra.mxu1 %v7261_v30  ;;  %v2948_v30 = vld [vmem:[#allocation5 + $0x3d0] sm:$0xff] }
 0x947   :  { %7264 = vmatprep.subr.bf16.mxu1 %v7263_v32  ;;  %v2952_v32 = vld [vmem:[#allocation5 + $0x3f0] sm:$0xff] }
 0x948   :  { %v7301_v33 = vpack.c.bf16 %v2952_v32, %v2948_v30  ;;  %v3156_v30 = vld [vmem:[#allocation5 + $0x500] sm:$0xff] }
 0x94a   :  { %7266 = vmatpush1.bf16.msra.mxu1 %v7265_v37  ;;  %v7367_v37 = vpack.c.bf16 %v3131_v35, %v3127_v34  ;;  %v3167_v34 = vld [vmem:[#allocation5 + $0x558] sm:$0xff] }
 0x94b   :  { %7268 = vmatprep.subr.bf16.mxu1 %v7267_v43  ;;  %v3129_v43 = vld [vmem:[#allocation5 + $0x428] sm:$0xff]  ;;  %v3171_v35 = vld [vmem:[#allocation5 + $0x578] sm:$0xff] }
 0x94c   :  { %v7303_v44 = vpack.c.bf16 %v3129_v43, %v3125_v36  ;;  %v3165_v36 = vld [vmem:[#allocation5 + $0x548] sm:$0xff]  ;;  %v7387_v38 = vpack.c.bf16 %v3171_v35, %v3167_v34  ;;  %v3196_v34 = vld [vmem:[#allocation5 + $0x640] sm:$0xff] }
 0x94e   :  { %7270 = vmatpush1.bf16.msra.mxu1 %v7269_v39  ;;  %v3124_v39 = vld [vmem:[#allocation5 + $0x400] sm:$0xff]  ;;  %7304 = vmatprep.subr.bf16.mxu0 %v7303_v44  ;;  %v3166_v44 = vld [vmem:[#allocation5 + $0x550] sm:$0xff] }
 0x94f   :  { %7272 = vmatprep.subr.bf16.mxu1 %v7271_v45  ;;  %v3128_v45 = vld [vmem:[#allocation5 + $0x420] sm:$0xff] }
 0x950   :  { %v7305_v40 = vpack.c.bf16 %v3128_v45, %v3124_v39  ;;  %v3164_v39 = vld [vmem:[#allocation5 + $0x540] sm:$0xff] }
 0x952   :  { %7274 = vmatpush1.bf16.msra.mxu1 %v7273_v55  ;;  %v3137_v55 = vld [vmem:[#allocation5 + $0x468] sm:$0xff]  ;;  %7306 = vmatpush1.bf16.msra.mxu0 %v7305_v40  ;;  %v3175_v40 = vld [vmem:[#allocation5 + $0x598] sm:$0xff] }
 0x953   :  { %7276 = vmatprep.subr.bf16.mxu1 %v7275_v16  ;;  %v3134_v16 = vld [vmem:[#allocation5 + $0x450] sm:$0xff] }
 0x954   :  { %v7373_v53 = vpack.c.bf16 %v3138_v28, %v3134_v16  ;;  %v3174_v28 = vld [vmem:[#allocation5 + $0x590] sm:$0xff] }
 0x956   :  { %7278 = vmatpush1.bf16.msra.mxu1 %v7277_v51  ;;  %v3143_v51 = vld [vmem:[#allocation5 + $0x498] sm:$0xff] }
 0x957   :  { %7280 = vmatprep.subr.bf16.mxu1 %v7279_v56  ;;  %v3147_v56 = vld [vmem:[#allocation5 + $0x4b8] sm:$0xff] }
 0x958   :  { %v7375_v46 = vpack.c.bf16 %v3147_v56, %v3143_v51  ;;  %v3176_v51 = vld [vmem:[#allocation5 + $0x5a0] sm:$0xff]  ;;  %v3183_v56 = vld [vmem:[#allocation5 + $0x5d8] sm:$0xff] }
 0x95a   :  { %7282 = vmatpush1.bf16.msra.mxu1 %v7281_v17  ;;  %v3142_v17 = vld [vmem:[#allocation5 + $0x490] sm:$0xff] }
 0x95b   :  { %7284 = vmatprep.subr.bf16.mxu1 %v7283_v60  ;;  %v7311_v60 = vpack.c.bf16 %v3145_v13, %v3141_v59  ;;  %v7377_v21 = vpack.c.bf16 %v3146_v54, %v3142_v17  ;;  %v3185_v59 = vld [vmem:[#allocation5 + $0x5e8] sm:$0xff]  ;;  %v7393_v13 = vpack.c.bf16 %v3178_v52, %v3174_v28  ;;  %v3182_v54 = vld [vmem:[#allocation5 + $0x5d0] sm:$0xff] }
 0x95c   :  { %v3213_v28 = vld [vmem:[#allocation5 + $0x6c8] sm:$0xff] }
 0x95d   :  { %v3217_v52 = vld [vmem:[#allocation5 + $0x6e8] sm:$0xff] }
 0x95e   :  { %7286 = vmatpush1.bf16.msra.mxu1 %v7285_v62  ;;  %v3151_v62 = vld [vmem:[#allocation5 + $0x4d8] sm:$0xff] }
 0x95f   :  { %7288 = vmatprep.subr.bf16.mxu1 %v7287_v63  ;;  %v3155_v63 = vld [vmem:[#allocation5 + $0x4f8] sm:$0xff] }
 0x960   :  { %v7379_v50 = vpack.c.bf16 %v3155_v63, %v3151_v62  ;;  %v3184_v62 = vld [vmem:[#allocation5 + $0x5e0] sm:$0xff]  ;;  %v3191_v63 = vld [vmem:[#allocation5 + $0x618] sm:$0xff] }
 0x961   :  { %v7399_v2 = vpack.c.bf16 %v3195_v1, %v3191_v63  ;;  %v3220_v63 = vld [vmem:[#allocation5 + $0x700] sm:$0xff] }
 0x962   :  { %7290 = vmatpush1.bf16.msra.mxu1 %v7289_v14  ;;  %v3150_v14 = vld [vmem:[#allocation5 + $0x4d0] sm:$0xff]  ;;  %v3224_v1 = vld [vmem:[#allocation5 + $0x720] sm:$0xff] }
 0x963   :  { %7292 = vmatprep.subr.bf16.mxu1 %v7291_v7  ;;  %v3154_v7 = vld [vmem:[#allocation5 + $0x4f0] sm:$0xff] }
 0x964   :  { %v7381_v19 = vpack.c.bf16 %v3154_v7, %v3150_v14  ;;  %v3189_v14 = vld [vmem:[#allocation5 + $0x608] sm:$0xff] }
 0x965   :  { %v3193_v7 = vld [vmem:[#allocation5 + $0x628] sm:$0xff] }
 0x966   :  { %7294 = vmatpush1.bf16.msra.mxu1 %v7293_v11  ;;  %v3163_v11 = vld [vmem:[#allocation5 + $0x538] sm:$0xff]  ;;  %v7335_v9 = vpack.c.bf16 %v3193_v7, %v3189_v14 }
 0x967   :  { %7296 = vmatprep.subr.bf16.mxu1 %v7295_v12  ;;  %v3157_v12 = vld [vmem:[#allocation5 + $0x508] sm:$0xff]  ;;  %v7383_v23 = vpack.c.bf16 %v3163_v11, %v3159_v10  ;;  %v3188_v10 = vld [vmem:[#allocation5 + $0x600] sm:$0xff]  ;;  %v3235_v14 = vld [vmem:[#allocation5 + $0x778] sm:$0xff] }
 0x968   :  { %v7319_v32 = vpack.c.bf16 %v3161_v18, %v3157_v12  ;;  %v3192_v11 = vld [vmem:[#allocation5 + $0x620] sm:$0xff] }
 0x969   :  { %v7337_v18 = vpack.c.bf16 %v3192_v11, %v3188_v10  ;;  %v3234_v11 = vld [vmem:[#allocation5 + $0x770] sm:$0xff] }
 0x96a   :  { %7298 = vmatpush1.bf16.msra.mxu1 %v7297_v26  ;;  %v3158_v26 = vld [vmem:[#allocation5 + $0x510] sm:$0xff] }
 0x96b   :  { %7300 = vmatprep.subr.bf16.mxu1 %v7299_v29  ;;  %v3162_v29 = vld [vmem:[#allocation5 + $0x530] sm:$0xff] }
 0x96c   :  { %v7385_v43 = vpack.c.bf16 %v3162_v29, %v3158_v26  ;;  %v3197_v26 = vld [vmem:[#allocation5 + $0x648] sm:$0xff] }
 0x96d   :  { %v3201_v29 = vld [vmem:[#allocation5 + $0x668] sm:$0xff] }
 0x96e   :  { %7302 = vmatpush1.bf16.msra.mxu1 %v7301_v33  ;;  %v3160_v33 = vld [vmem:[#allocation5 + $0x520] sm:$0xff] }
 0x96f   :  { %7368 = vmatprep.subr.bf16.mxu1 %v7367_v37  ;;  %v3169_v37 = vld [vmem:[#allocation5 + $0x568] sm:$0xff]  ;;  %v7321_v3 = vpack.c.bf16 %v3160_v33, %v3156_v30  ;;  %v7339_v30 = vpack.c.bf16 %v3201_v29, %v3197_v26  ;;  %v3202_v33 = vld [vmem:[#allocation5 + $0x670] sm:$0xff]  ;;  %v3243_v26 = vld [vmem:[#allocation5 + $0x7b8] sm:$0xff] }
 0x970   :  { %v7323_v45 = vpack.c.bf16 %v3169_v37, %v3165_v36  ;;  %v3200_v36 = vld [vmem:[#allocation5 + $0x660] sm:$0xff]  ;;  %v3237_v29 = vld [vmem:[#allocation5 + $0x788] sm:$0xff] }
 0x971   :  { %3094 = vmatmul.mubr.f32.vlgmr.msra.gmra.mrb[20].mxu1 %v8988_v42  ;;  %v7371_v42 = vpack.c.bf16 %v3139_v49, %v3135_v47  ;;  %v3168_v47 = vld [vmem:[#allocation5 + $0x560] sm:$0xff]  ;;  %v3179_v49 = vld [vmem:[#allocation5 + $0x5b8] sm:$0xff]  ;;  %v7341_v37 = vpack.c.bf16 %v3200_v36, %v3196_v34  ;;  %v3242_v34 = vld [vmem:[#allocation5 + $0x7b0] sm:$0xff] }
 0x972   :  { %3391 = vmatprep.mubr.f32.mxu1 %v9002_v58  ;;  %7370 = vmatpush1.bf16.msra.mxu1 %v7369_v15  ;;  %v7307_v58 = vpack.c.bf16 %v3137_v55, %v3133_v48  ;;  %v3170_v15 = vld [vmem:[#allocation5 + $0x570] sm:$0xff]  ;;  %v3173_v48 = vld [vmem:[#allocation5 + $0x588] sm:$0xff]  ;;  %v7391_v16 = vpack.c.bf16 %v3179_v49, %v3175_v40  ;;  %v3204_v40 = vld [vmem:[#allocation5 + $0x680] sm:$0xff] }
 0x973   :  { %7372 = vmatprep.subr.bf16.mxu1 %v7371_v42  ;;  %v3177_v55 = vld [vmem:[#allocation5 + $0x5a8] sm:$0xff]  ;;  %v7389_v42 = vpack.c.bf16 %v3170_v15, %v3166_v44  ;;  %v3208_v49 = vld [vmem:[#allocation5 + $0x6a0] sm:$0xff] }
 0x974   :  { %7308 = vmatprep.subr.bf16.mxu0 %v7307_v58  ;;  %v7325_v58 = vpack.c.bf16 %v3168_v47, %v3164_v39  ;;  %v7327_v5 = vpack.c.bf16 %v3177_v55, %v3173_v48  ;;  %v3205_v44 = vld [vmem:[#allocation5 + $0x688] sm:$0xff]  ;;  %v3206_v39 = vld [vmem:[#allocation5 + $0x690] sm:$0xff]  ;;  %v7345_v55 = vpack.c.bf16 %v3208_v49, %v3204_v40 }
 0x975   :  { %7310 = vmatpush1.bf16.msra.mxu0 %v7309_v57  ;;  %v3187_v57 = vld [vmem:[#allocation5 + $0x5f8] sm:$0xff]  ;;  %v3209_v15 = vld [vmem:[#allocation5 + $0x6a8] sm:$0xff]  ;;  %v3210_v47 = vld [vmem:[#allocation5 + $0x6b0] sm:$0xff] }
 0x976   :  { %7374 = vmatpush1.bf16.msra.mxu1 %v7373_v53  ;;  %7312 = vmatprep.subr.bf16.mxu0 %v7311_v60  ;;  %v3172_v53 = vld [vmem:[#allocation5 + $0x580] sm:$0xff]  ;;  %v7395_v60 = vpack.c.bf16 %v3187_v57, %v3183_v56  ;;  %v7409_v48 = vpack.c.bf16 %v3210_v47, %v3206_v39  ;;  %v3249_v39 = vld [vmem:[#allocation5 + $0x7e8] sm:$0xff]  ;;  %v3246_v40 = vld [vmem:[#allocation5 + $0x7d0] sm:$0xff] }
 0x977   :  { %7376 = vmatprep.subr.bf16.mxu1 %v7375_v46  ;;  %v3181_v46 = vld [vmem:[#allocation5 + $0x5c8] sm:$0xff]  ;;  %v7329_v17 = vpack.c.bf16 %v3176_v51, %v3172_v53  ;;  %v3214_v53 = vld [vmem:[#allocation5 + $0x6d0] sm:$0xff]  ;;  %v3212_v56 = vld [vmem:[#allocation5 + $0x6c0] sm:$0xff] }
 0x978   :  { %v3218_v51 = vld [vmem:[#allocation5 + $0x6f0] sm:$0xff]  ;;  %v3216_v57 = vld [vmem:[#allocation5 + $0x6e0] sm:$0xff] }
 0x979   :  { %7314 = vmatpush1.bf16.msra.mxu0 %v7313_v25  ;;  %v7397_v25 = vpack.c.bf16 %v3186_v61, %v3182_v54  ;;  %v3221_v54 = vld [vmem:[#allocation5 + $0x708] sm:$0xff]  ;;  %v3250_v49 = vld [vmem:[#allocation5 + $0x7f0] sm:$0xff] }
 0x97a   :  { %7378 = vmatpush1.bf16.msra.mxu1 %v7377_v21  ;;  %7316 = vmatprep.subr.bf16.mxu0 %v7315_v20  ;;  %v7331_v21 = vpack.c.bf16 %v3185_v59, %v3181_v46  ;;  %v3190_v20 = vld [vmem:[#allocation5 + $0x610] sm:$0xff]  ;;  %v7413_v46 = vpack.c.bf16 %v3218_v51, %v3214_v53  ;;  %v7349_v59 = vpack.c.bf16 %v3216_v57, %v3212_v56  ;;  %v3225_v61 = vld [vmem:[#allocation5 + $0x728] sm:$0xff]  ;;  %v2751_v53 = vld [vmem:[%s9227_s4] sm:$0xff] }
 0x97b   :  { %7380 = vmatprep.subr.bf16.mxu1 %v7379_v50  ;;  %v7333_v50 = vpack.c.bf16 %v3184_v62, %v3180_v41  ;;  %v7401_v12 = vpack.c.bf16 %v3194_v24, %v3190_v20  ;;  %v3222_v41 = vld [vmem:[#allocation5 + $0x710] sm:$0xff]  ;;  %v3229_v20 = vld [vmem:[#allocation5 + $0x748] sm:$0xff]  ;;  %v2954_v57 = vld [vmem:[#allocation7] sm:$0xff] }
 0x97c   :  { %v3226_v62 = vld [vmem:[#allocation5 + $0x730] sm:$0xff] }
 0x97d   :  { %7318 = vmatpush1.bf16.msra.mxu0 %v7317_v22  ;;  %v3203_v22 = vld [vmem:[#allocation5 + $0x678] sm:$0xff]  ;;  %v3230_v24 = vld [vmem:[#allocation5 + $0x750] sm:$0xff] }
 0x97e   :  { %7382 = vmatpush1.bf16.msra.mxu1 %v7381_v19  ;;  %7320 = vmatprep.subr.bf16.mxu0 %v7319_v32  ;;  %v3199_v19 = vld [vmem:[#allocation5 + $0x658] sm:$0xff]  ;;  %v3198_v32 = vld [vmem:[#allocation5 + $0x650] sm:$0xff] }
 0x97f   :  { %7384 = vmatprep.subr.bf16.mxu1 %v7383_v23  ;;  %v7403_v23 = vpack.c.bf16 %v3203_v22, %v3199_v19  ;;  %v7405_v35 = vpack.c.bf16 %v3202_v33, %v3198_v32  ;;  %v7421_v19 = vpack.c.bf16 %v3234_v11, %v3230_v24  ;;  %v3241_v32 = vld [vmem:[#allocation5 + $0x7a8] sm:$0xff]  ;;  %v3238_v33 = vld [vmem:[#allocation5 + $0x790] sm:$0xff] }
 0x980   :  { %v7425_v36 = vpack.c.bf16 %v3242_v34, %v3238_v33  ;;  %v3521_v33 = vld [vmem:[#allocation5 + $0x40] sm:$0xff]  ;;  %v3530_v34 = vld [vmem:[#allocation5 + $0x88] sm:$0xff] }
 0x981   :  { %7322 = vmatpush1.bf16.msra.mxu0 %v7321_v3  ;;  %v3211_v3 = vld [vmem:[#allocation5 + $0x6b8] sm:$0xff] }
 0x982   :  { %7386 = vmatpush1.bf16.msra.mxu1 %v7385_v43  ;;  %7324 = vmatprep.subr.bf16.mxu0 %v7323_v45  ;;  %v3207_v43 = vld [vmem:[#allocation5 + $0x698] sm:$0xff]  ;;  %v7343_v45 = vpack.c.bf16 %v3209_v15, %v3205_v44  ;;  %v3245_v15 = vld [vmem:[#allocation5 + $0x7c8] sm:$0xff] }
 0x983   :  { %7388 = vmatprep.subr.bf16.mxu1 %v7387_v38  ;;  %v7407_v38 = vpack.c.bf16 %v3211_v3, %v3207_v43  ;;  %v3240_v43 = vld [vmem:[#allocation5 + $0x7a0] sm:$0xff]  ;;  %v3247_v3 = vld [vmem:[#allocation5 + $0x7d8] sm:$0xff]  ;;  %v7363_v47 = vpack.c.bf16 %v3249_v39, %v3245_v15 }
 0x984   :  { %v3251_v44 = vld [vmem:[#allocation5 + $0x7f8] sm:$0xff] }
 0x985   :  { %7326 = vmatpush1.bf16.msra.mxu0 %v7325_v58  ;;  %v3219_v58 = vld [vmem:[#allocation5 + $0x6f8] sm:$0xff] }
 0x986   :  { %7390 = vmatpush1.bf16.msra.mxu1 %v7389_v42  ;;  %7328 = vmatprep.subr.bf16.mxu0 %v7327_v5  ;;  %v3215_v42 = vld [vmem:[#allocation5 + $0x6d8] sm:$0xff]  ;;  %v7347_v5 = vpack.c.bf16 %v3217_v52, %v3213_v28 }
 0x987   :  { %7392 = vmatprep.subr.bf16.mxu1 %v7391_v16  ;;  %v7411_v16 = vpack.c.bf16 %v3219_v58, %v3215_v42  ;;  %v3514_v42 = vld [vmem:[#allocation5 + $0x8] sm:$0xff] }
 0x988   :  { %v3518_v58 = vld [vmem:[#allocation5 + $0x28] sm:$0xff] }
 0x989   :  { %7330 = vmatpush1.bf16.msra.mxu0 %v7329_v17  ;;  %v3227_v17 = vld [vmem:[#allocation5 + $0x738] sm:$0xff]  ;;  %v7455_v52 = vpack.c.bf16 %v3518_v58, %v3514_v42  ;;  %v3545_v42 = vld [vmem:[#allocation5 + $0x100] sm:$0xff] }
 0x98a   :  { %7394 = vmatpush1.bf16.msra.mxu1 %v7393_v13  ;;  %7332 = vmatprep.subr.bf16.mxu0 %v7331_v21  ;;  %v3223_v13 = vld [vmem:[#allocation5 + $0x718] sm:$0xff]  ;;  %v7351_v21 = vpack.c.bf16 %v3225_v61, %v3221_v54  ;;  %v3549_v58 = vld [vmem:[#allocation5 + $0x120] sm:$0xff] }
 0x98b   :  { %7396 = vmatprep.subr.bf16.mxu1 %v7395_v60  ;;  %v7415_v60 = vpack.c.bf16 %v3227_v17, %v3223_v13 }
 0x98d   :  { %7334 = vmatpush1.bf16.msra.mxu0 %v7333_v50  ;;  %v7353_v50 = vpack.c.bf16 %v3224_v1, %v3220_v63  ;;  %v2957_v63 = vld [vmem:[#allocation7 + $0x18] sm:$0xff] }
 0x98e   :  { %7398 = vmatpush1.bf16.msra.mxu1 %v7397_v25  ;;  %7336 = vmatprep.subr.bf16.mxu0 %v7335_v9  ;;  %v7417_v25 = vpack.c.bf16 %v3226_v62, %v3222_v41  ;;  %v3233_v9 = vld [vmem:[#allocation5 + $0x768] sm:$0xff]  ;;  %v2956_v62 = vld [vmem:[#allocation7 + $0x10] sm:$0xff] }
 0x98f   :  { %7400 = vmatprep.subr.bf16.mxu1 %v7399_v2  ;;  %v3231_v2 = vld [vmem:[#allocation5 + $0x758] sm:$0xff]  ;;  %v7355_v10 = vpack.c.bf16 %v3233_v9, %v3229_v20 }
 0x990   :  { %v7419_v7 = vpack.c.bf16 %v3235_v14, %v3231_v2 }
 0x991   :  { %7338 = vmatpush1.bf16.msra.mxu0 %v7337_v18  ;;  %v3232_v18 = vld [vmem:[#allocation5 + $0x760] sm:$0xff] }
 0x992   :  { %7402 = vmatpush1.bf16.msra.mxu1 %v7401_v12  ;;  %7340 = vmatprep.subr.bf16.mxu0 %v7339_v30  ;;  %v3228_v12 = vld [vmem:[#allocation5 + $0x740] sm:$0xff] }
 0x993   :  { %7404 = vmatprep.subr.bf16.mxu1 %v7403_v23  ;;  %v7357_v22 = vpack.c.bf16 %v3232_v18, %v3228_v12  ;;  %v3239_v23 = vld [vmem:[#allocation5 + $0x798] sm:$0xff]  ;;  %v3513_v12 = vld [vmem:[#allocation5] sm:$0xff] }
 0x994   :  { %v7423_v30 = vpack.c.bf16 %v3243_v26, %v3239_v23  ;;  %v3517_v18 = vld [vmem:[#allocation5 + $0x20] sm:$0xff] }
 0x995   :  { %7342 = vmatpush1.bf16.msra.mxu0 %v7341_v37  ;;  %v3236_v37 = vld [vmem:[#allocation5 + $0x780] sm:$0xff] }
 0x996   :  { %7406 = vmatpush1.bf16.msra.mxu1 %v7405_v35  ;;  %7344 = vmatprep.subr.bf16.mxu0 %v7343_v45  ;;  %v7359_v35 = vpack.c.bf16 %v3241_v32, %v3237_v29  ;;  %v7427_v45 = vpack.c.bf16 %v3251_v44, %v3247_v3  ;;  %v7457_v29 = vpack.c.bf16 %v3517_v18, %v3513_v12  ;;  %v3533_v3 = vld [vmem:[#allocation5 + $0xa0] sm:$0xff]  ;;  %v3542_v44 = vld [vmem:[#allocation5 + $0xe8] sm:$0xff] }
 0x997   :  { %7408 = vmatprep.subr.bf16.mxu1 %v7407_v38  ;;  %v7361_v38 = vpack.c.bf16 %v3240_v43, %v3236_v37  ;;  %v3529_v43 = vld [vmem:[#allocation5 + $0x80] sm:$0xff]  ;;  %v3598_v12 = vld [vmem:[#allocation5 + $0x2a8] sm:$0xff] }
 0x998   :  { %v7465_v15 = vpack.c.bf16 %v3533_v3, %v3529_v43  ;;  %v3609_v3 = vld [vmem:[#allocation5 + $0x300] sm:$0xff] }
 0x999   :  { %7346 = vmatpush1.bf16.msra.mxu0 %v7345_v55  ;;  %v3248_v55 = vld [vmem:[#allocation5 + $0x7e0] sm:$0xff] }
 0x99a   :  { %7410 = vmatpush1.bf16.msra.mxu1 %v7409_v48  ;;  %7348 = vmatprep.subr.bf16.mxu0 %v7347_v5  ;;  %v3244_v48 = vld [vmem:[#allocation5 + $0x7c0] sm:$0xff] }
 0x99b   :  { %7412 = vmatprep.subr.bf16.mxu1 %v7411_v16  ;;  %v7429_v16 = vpack.c.bf16 %v3250_v49, %v3246_v40  ;;  %v7365_v28 = vpack.c.bf16 %v3248_v55, %v3244_v48  ;;  %v3546_v40 = vld [vmem:[#allocation5 + $0x108] sm:$0xff] }
 0x99c   :  { %v3550_v49 = vld [vmem:[#allocation5 + $0x128] sm:$0xff] }
 0x99d   :  { %7350 = vmatpush1.bf16.msra.mxu0 %v7349_v59  ;;  %v3025_v59 = vadd.f32 %v9007_v6, %v2954_v57  ;;  %v7471_v55 = vpack.c.bf16 %v3550_v49, %v3546_v40  ;;  %v3566_v57 = vld [vmem:[#allocation5 + $0x1a8] sm:$0xff]  ;;  %v3621_v40 = vld [vmem:[#allocation5 + $0x360] sm:$0xff] }
 0x99e   :  { %7414 = vmatpush1.bf16.msra.mxu1 %v7413_v46  ;;  %7352 = vmatprep.subr.bf16.mxu0 %v7351_v21  ;;  %v2955_v46 = vld [vmem:[#allocation7 + $0x8] sm:$0xff] }
 0x99f   :  { %7416 = vmatprep.subr.bf16.mxu1 %v7415_v60  ;;  %v3027_v13 = vadd.f32 %v9009_v31, %v2955_v46  ;;  %v5615_v17 = vmul.f32 -1.442695, %v3025_v59  ;;  %v3626_v49 = vld [vmem:[#allocation5 + $0x388] sm:$0xff] }
 0x9a1   :  { %7354 = vmatpush1.bf16.msra.mxu0 %v7353_v50  ;;  %v5616_v60 = vmul.f32 -1.442695, %v3027_v13  ;;  %8435 = vpow2.f32 %v5615_v17  ;;  %v3561_v13 = vld [vmem:[#allocation5 + $0x180] sm:$0xff] }
 0x9a2   :  { %7418 = vmatpush1.bf16.msra.mxu1 %v7417_v25  ;;  %7356 = vmatprep.subr.bf16.mxu0 %v7355_v10  ;;  %v3565_v17 = vld [vmem:[#allocation5 + $0x1a0] sm:$0xff] }
 0x9a3   :  { %7420 = vmatprep.subr.bf16.mxu1 %v7419_v7  ;;  %8437 = vpow2.f32 %v5616_v60  ;;  %v3570_v60 = vld [vmem:[#allocation5 + $0x1c8] sm:$0xff] }
 0x9a5   :  { %7358 = vmatpush1.bf16.msra.mxu0 %v7357_v22  ;;  %v3526_v22 = vld [vmem:[#allocation5 + $0x68] sm:$0xff] }
 0x9a6   :  { %7422 = vmatpush1.bf16.msra.mxu1 %v7421_v19  ;;  %7360 = vmatprep.subr.bf16.mxu0 %v7359_v35  ;;  %v3522_v19 = vld [vmem:[#allocation5 + $0x48] sm:$0xff] }
 0x9a7   :  { %7424 = vmatprep.subr.bf16.mxu1 %v7423_v30  ;;  %v7459_v32 = vpack.c.bf16 %v3526_v22, %v3522_v19  ;;  %v3534_v35 = vld [vmem:[#allocation5 + $0xa8] sm:$0xff]  ;;  %v3593_v22 = vld [vmem:[#allocation5 + $0x280] sm:$0xff] }
 0x9a8   :  { %v7463_v37 = vpack.c.bf16 %v3534_v35, %v3530_v34  ;;  %v3605_v34 = vld [vmem:[#allocation5 + $0x2e0] sm:$0xff]  ;;  %v3610_v35 = vld [vmem:[#allocation5 + $0x308] sm:$0xff] }
 0x9a9   :  { %7362 = vmatpush1.bf16.msra.mxu0 %v7361_v38  ;;  %v3538_v38 = vld [vmem:[#allocation5 + $0xc8] sm:$0xff] }
 0x9aa   :  { %7426 = vmatpush1.bf16.msra.mxu1 %v7425_v36  ;;  %7364 = vmatprep.subr.bf16.mxu0 %v7363_v47  ;;  %v7467_v39 = vpack.c.bf16 %v3542_v44, %v3538_v38  ;;  %v3541_v47 = vld [vmem:[#allocation5 + $0xe0] sm:$0xff]  ;;  %v3618_v44 = vld [vmem:[#allocation5 + $0x348] sm:$0xff] }
 0x9ab   :  { %7428 = vmatprep.subr.bf16.mxu1 %v7427_v45  ;;  %v8436_v54 = vpop.eup %8435  ;;  %v3537_v45 = vld [vmem:[#allocation5 + $0xc0] sm:$0xff] }
 0x9ac   :  { %v3103_v41 = vadd.f32 1.0, %v8436_v54  ;;  %v7469_v48 = vpack.c.bf16 %v3541_v47, %v3537_v45  ;;  %v3574_v54 = vld [vmem:[#allocation5 + $0x1e8] sm:$0xff]  ;;  %v3613_v38 = vld [vmem:[#allocation5 + $0x320] sm:$0xff] }
 0x9ad   :  { %7366 = vmatpush1.bf16.msra.mxu0 %v7365_v28  ;;  %v8438_v61 = vpop.eup %8437  ;;  %v3558_v28 = vld [vmem:[#allocation5 + $0x168] sm:$0xff]  ;;  %v3617_v47 = vld [vmem:[#allocation5 + $0x340] sm:$0xff] }
 0x9ae   :  { %7430 = vmatpush1.bf16.msra.mxu1 %v7429_v16  ;;  %7431 = vmatprep.subr.bf16.mxu0 %v8692_v4  ;;  %v3109_v21 = vadd.f32 1.0, %v8438_v61  ;;  %8439 = vrcp.f32 %v3103_v41  ;;  %v3554_v16 = vld [vmem:[#allocation5 + $0x148] sm:$0xff]  ;;  %v7481_v61 = vpack.c.bf16 %v3565_v17, %v3561_v13  ;;  %v7483_v41 = vpack.c.bf16 %v3574_v54, %v3570_v60  ;;  %v3424_v60 = vld [vmem:[#allocation8 + $0x10] sm:$0xff]  ;;  %v3425_v54 = vld [vmem:[#allocation8 + $0x18] sm:$0xff] }
 0x9af   :  { %7456 = vmatprep.subr.bf16.mxu1 %v7455_v52  ;;  %v7473_v52 = vpack.c.bf16 %v3549_v58, %v3545_v42  ;;  %v3625_v58 = vld [vmem:[#allocation5 + $0x380] sm:$0xff]  ;;  %v3423_v13 = vld [vmem:[#allocation8 + $0x8] sm:$0xff] }
 0x9b0   :  { %8441 = vrcp.f32 %v3109_v21  ;;  %v3569_v21 = vld [vmem:[#allocation5 + $0x1c0] sm:$0xff] }
 0x9b8   :  { %v8440_v31 = vpop.eup %8439 }
 0x9ba   :  { %v8442_v14 = vpop.eup %8441 }
 0x9bb   :  { %v3119_v20 = vmul.f32 %v8442_v14, %v8978_v8  ;;  %v3525_v8 = vld [vmem:[#allocation5 + $0x60] sm:$0xff]  ;;  %v3590_v14 = vld [vmem:[#allocation5 + $0x268] sm:$0xff] }
 0x9bc   :  { %v7461_v36 = vpack.c.bf16 %v3525_v8, %v3521_v33  ;;  %v3601_v8 = vld [vmem:[#allocation5 + $0x2c0] sm:$0xff] }
 0xa04   :  { %v2818_v5 = vpop.f32.mrb[18].mxu1 }
 0xa05   :  { %v2819_v51 = vadd.f32 %v2818_v5, %v2751_v53  ;;  %v5914_v56 = vpop.f32.mrb[19].mxu1  ;;  %v7475_v53 = vpack.c.bf16 %v3558_v28, %v3554_v16  ;;  %v3553_v5 = vld [vmem:[#allocation5 + $0x140] sm:$0xff]  ;;  %v3634_v28 = vld [vmem:[#allocation5 + $0x3c8] sm:$0xff] }
 0xa06   :  { %v3562_v56 = vld [vmem:[#allocation5 + $0x188] sm:$0xff]  ;;  %v3629_v16 = vld [vmem:[#allocation5 + $0x3a0] sm:$0xff] }
 0xa07   :  { %2823 = vst [vmem:[#allocation10 + $0x18] sm:$0xff] %v2819_v51  ;;  %v3557_v51 = vld [vmem:[#allocation5 + $0x160] sm:$0xff]  ;;  %v7479_v59 = vpack.c.bf16 %v3566_v57, %v3562_v56 }
 0xa08   :  { %v7477_v46 = vpack.c.bf16 %v3557_v51, %v3553_v5  ;;  %v3633_v51 = vld [vmem:[#allocation5 + $0x3c0] sm:$0xff] }
 0xa09   :  { %v3637_v56 = vld [vmem:[#allocation5 + $0x3e0] sm:$0xff] }
 0xa0a   :  { %v7517_v57 = vpack.c.bf16 %v3637_v56, %v3633_v51  ;;  %v3519_v51 = vld [vmem:[#allocation5 + $0x30] sm:$0xff]  ;;  %v3524_v56 = vld [vmem:[#allocation5 + $0x58] sm:$0xff] }
 0xa44   :  { %v3095_v1 = vpop.f32.mrb[20].mxu1 }
 0xa45   :  { %v3096_v25 = vadd.f32 %v3095_v1, %v2956_v62  ;;  %v3097_v50 = vpop.f32.mrb[21].mxu1  ;;  %v3573_v62 = vld [vmem:[#allocation5 + $0x1e0] sm:$0xff]  ;;  %v3582_v1 = vld [vmem:[#allocation5 + $0x228] sm:$0xff] }
 0xa46   :  { %v3098_v2 = vadd.f32 %v3097_v50, %v2957_v63  ;;  %v3578_v63 = vld [vmem:[#allocation5 + $0x208] sm:$0xff] }
 0xa47   :  { %8443 = vtanh.f32 %v3096_v25  ;;  %v7485_v25 = vpack.c.bf16 %v3573_v62, %v3569_v21  ;;  %v7487_v50 = vpack.c.bf16 %v3582_v1, %v3578_v63  ;;  %v3427_v21 = vld [vmem:[#allocation8 + $0x28] sm:$0xff]  ;;  %v3428_v63 = vld [vmem:[#allocation8 + $0x30] sm:$0xff]  ;;  %v3429_v1 = vld [vmem:[#allocation8 + $0x38] sm:$0xff] }
 0xa48   :  { %v5617_v6 = vmul.f32 -1.442695, %v3098_v2  ;;  %v3577_v2 = vld [vmem:[#allocation5 + $0x200] sm:$0xff] }
 0xa4a   :  { %8445 = vpow2.f32 %v5617_v6  ;;  %v3581_v6 = vld [vmem:[#allocation5 + $0x220] sm:$0xff] }
 0xa51   :  { %v8444_v7 = vpop.eup %8443 }
 0xa52   :  { %v3120_v9 = vmul.f32 %v8444_v7, %v8440_v31  ;;  %v3586_v31 = vld [vmem:[#allocation5 + $0x248] sm:$0xff]  ;;  %v7489_v7 = vpack.c.bf16 %v3581_v6, %v3577_v2 }
 0xa53   :  { %v3431_v2 = vld [vmem:[#allocation8 + $0x48] sm:$0xff] }
 0xa54   :  { %v8446_v24 = vpop.eup %8445  ;;  %v9020_v10 = vadd.f32 %v3120_v9, %v3119_v20  ;;  %v7491_v20 = vpack.c.bf16 %v3590_v14, %v3586_v31  ;;  %v3585_v9 = vld [vmem:[#allocation5 + $0x240] sm:$0xff]  ;;  %v3432_v31 = vld [vmem:[#allocation8 + $0x50] sm:$0xff]  ;;  %v3433_v14 = vld [vmem:[#allocation8 + $0x58] sm:$0xff] }
 0xa55   :  { %v3116_v11 = vadd.f32 1.0, %v8446_v24  ;;  %v3589_v24 = vld [vmem:[#allocation5 + $0x260] sm:$0xff] }
 0xa56   :  { %8447 = vtanh.f32 %v9020_v10  ;;  %v7493_v18 = vpack.c.bf16 %v3589_v24, %v3585_v9  ;;  %v3435_v9 = vld [vmem:[#allocation8 + $0x68] sm:$0xff] }
 0xa57   :  { %8449 = vrcp.f32 %v3116_v11  ;;  %v3594_v11 = vld [vmem:[#allocation5 + $0x288] sm:$0xff] }
 0xa58   :  { %v7495_v19 = vpack.c.bf16 %v3598_v12, %v3594_v11  ;;  %v3436_v11 = vld [vmem:[#allocation8 + $0x70] sm:$0xff]  ;;  %v3437_v12 = vld [vmem:[#allocation8 + $0x78] sm:$0xff] }
 0xa60   :  { %v8448_v23 = vpop.eup %8447 }
 0xa61   :  { %v8450_v26 = vpop.eup %8449 }
 0xa62   :  { %v9023_v30 = vmul.f32 %v8450_v26, %v8448_v23  ;;  %v3597_v23 = vld [vmem:[#allocation5 + $0x2a0] sm:$0xff]  ;;  %v3602_v26 = vld [vmem:[#allocation5 + $0x2c8] sm:$0xff] }
 0xa64   :  { %3321 = vmatmul.mubr.f32.vlgmr.msra.gmra.mrb[22].mxu0 %v9023_v30  ;;  %3392 = vmatmul.mubr.f32.vlgmr.msra.gmra.mrb[22].mxu1 %v9023_v30 }
 0xa65   :  { %7458 = vmatpush1.bf16.msra.mxu1 %v7457_v29  ;;  %3709 = vmatprep.mubr.f32.mxu1 %v9023_v30  ;;  %v3606_v29 = vld [vmem:[#allocation5 + $0x2e8] sm:$0xff] }
 0xa66   :  { %7460 = vmatprep.subr.bf16.mxu1 %v7459_v32  ;;  %5947 = vmatprep.mubr.msk.f32.mxu0 %vm8693_vm0, %v8691_v0  ;;  %v7497_v32 = vpack.c.bf16 %v3597_v23, %v3593_v22  ;;  %v7499_v33 = vpack.c.bf16 %v3606_v29, %v3602_v26  ;;  %v7453_v22 = vpack.c.bf16 %v3437_v12, %v3436_v11  ;;  %v3252_v26 = vld [vmem:[#allocation7 + $0x20] sm:$0xff]  ;;  %v3253_v29 = vld [vmem:[#allocation7 + $0x28] sm:$0xff]  ;;  %v3551_v12 = vld [vmem:[#allocation5 + $0x130] sm:$0xff] }
 0xa69   :  { %7462 = vmatpush1.bf16.msra.mxu1 %v7461_v36  ;;  %v3614_v36 = vld [vmem:[#allocation5 + $0x328] sm:$0xff] }
 0xa6a   :  { %7464 = vmatprep.subr.bf16.mxu1 %v7463_v37  ;;  %v7501_v37 = vpack.c.bf16 %v3605_v34, %v3601_v8  ;;  %v7503_v43 = vpack.c.bf16 %v3614_v36, %v3610_v35 }
 0xa6d   :  { %7466 = vmatpush1.bf16.msra.mxu1 %v7465_v15  ;;  %v3622_v15 = vld [vmem:[#allocation5 + $0x368] sm:$0xff] }
 0xa6e   :  { %7468 = vmatprep.subr.bf16.mxu1 %v7467_v39  ;;  %v7505_v39 = vpack.c.bf16 %v3613_v38, %v3609_v3  ;;  %v7507_v45 = vpack.c.bf16 %v3622_v15, %v3618_v44  ;;  %v3255_v3 = vld [vmem:[#allocation7 + $0x38] sm:$0xff]  ;;  %v3254_v44 = vld [vmem:[#allocation7 + $0x30] sm:$0xff] }
 0xa71   :  { %7470 = vmatpush1.bf16.msra.mxu1 %v7469_v48  ;;  %v3630_v48 = vld [vmem:[#allocation5 + $0x3a8] sm:$0xff] }
 0xa72   :  { %7472 = vmatprep.subr.bf16.mxu1 %v7471_v55  ;;  %v7509_v55 = vpack.c.bf16 %v3621_v40, %v3617_v47  ;;  %v7511_v42 = vpack.c.bf16 %v3630_v48, %v3626_v49 }
 0xa75   :  { %7474 = vmatpush1.bf16.msra.mxu1 %v7473_v52  ;;  %v3638_v52 = vld [vmem:[#allocation5 + $0x3e8] sm:$0xff] }
 0xa76   :  { %7476 = vmatprep.subr.bf16.mxu1 %v7475_v53  ;;  %v7513_v53 = vpack.c.bf16 %v3629_v16, %v3625_v58  ;;  %v7515_v5 = vpack.c.bf16 %v3638_v52, %v3634_v28 }
 0xa79   :  { %7478 = vmatpush1.bf16.msra.mxu1 %v7477_v46  ;;  %v9030_v46 = vld [vmem:[#allocation2 + $0x28] sm:$0xff] }
 0xa7a   :  { %7480 = vmatprep.subr.bf16.mxu1 %v7479_v59  ;;  %v3422_v59 = vld [vmem:[#allocation8] sm:$0xff] }
 0xa7b   :  { %v7432_v17 = vpack.c.bf16 %v3423_v13, %v3422_v59 }
 0xa7d   :  { %7482 = vmatpush1.bf16.msra.mxu1 %v7481_v61  ;;  %7433 = vmatpush3.bf16.msra.mxu0 %v7432_v17  ;;  %v7435_v61 = vpack.c.bf16 %v3425_v54, %v3424_v60 }
 0xa7e   :  { %7484 = vmatprep.subr.bf16.mxu1 %v7483_v41  ;;  %7434 = vmatprep.subr.bf16.mxu0 %v8692_v4  ;;  %v3426_v41 = vld [vmem:[#allocation8 + $0x20] sm:$0xff] }
 0xa7f   :  { %v7438_v62 = vpack.c.bf16 %v3427_v21, %v3426_v41  ;;  %v3527_v41 = vld [vmem:[#allocation5 + $0x70] sm:$0xff]  ;;  %v3532_v21 = vld [vmem:[#allocation5 + $0x98] sm:$0xff] }
 0xa81   :  { %7486 = vmatpush1.bf16.msra.mxu1 %v7485_v25  ;;  %7436 = vmatpush3.bf16.msra.mxu0 %v7435_v61  ;;  %v7441_v25 = vpack.c.bf16 %v3429_v1, %v3428_v63  ;;  %v3523_v61 = vld [vmem:[#allocation5 + $0x50] sm:$0xff] }
 0xa82   :  { %7488 = vmatprep.subr.bf16.mxu1 %v7487_v50  ;;  %7437 = vmatprep.subr.bf16.mxu0 %v8692_v4  ;;  %v3430_v50 = vld [vmem:[#allocation8 + $0x40] sm:$0xff]  ;;  %v3531_v1 = vld [vmem:[#allocation5 + $0x90] sm:$0xff] }
 0xa83   :  { %v7444_v6 = vpack.c.bf16 %v3431_v2, %v3430_v50  ;;  %v3540_v50 = vld [vmem:[#allocation5 + $0xd8] sm:$0xff] }
 0xa84   :  { %v3544_v2 = vld [vmem:[#allocation5 + $0xf8] sm:$0xff] }
 0xa85   :  { %7490 = vmatpush1.bf16.msra.mxu1 %v7489_v7  ;;  %7439 = vmatpush3.bf16.msra.mxu0 %v7438_v62  ;;  %v7447_v7 = vpack.c.bf16 %v3433_v14, %v3432_v31  ;;  %v3536_v62 = vld [vmem:[#allocation5 + $0xb8] sm:$0xff]  ;;  %v7531_v31 = vpack.c.bf16 %v3544_v2, %v3540_v50  ;;  %v3539_v14 = vld [vmem:[#allocation5 + $0xd0] sm:$0xff] }
 0xa86   :  { %7492 = vmatprep.subr.bf16.mxu1 %v7491_v20  ;;  %7440 = vmatprep.subr.bf16.mxu0 %v8692_v4  ;;  %v3434_v20 = vld [vmem:[#allocation8 + $0x60] sm:$0xff]  ;;  %v7527_v63 = vpack.c.bf16 %v3536_v62, %v3532_v21 }
 0xa87   :  { %v7450_v24 = vpack.c.bf16 %v3435_v9, %v3434_v20  ;;  %v3548_v20 = vld [vmem:[#allocation5 + $0x118] sm:$0xff] }
 0xa88   :  { %v3552_v9 = vld [vmem:[#allocation5 + $0x138] sm:$0xff] }
 0xa89   :  { %7494 = vmatpush1.bf16.msra.mxu1 %v7493_v18  ;;  %7442 = vmatpush3.bf16.msra.mxu0 %v7441_v25  ;;  %v3516_v18 = vld [vmem:[#allocation5 + $0x18] sm:$0xff]  ;;  %v3535_v25 = vld [vmem:[#allocation5 + $0xb0] sm:$0xff]  ;;  %v7535_v11 = vpack.c.bf16 %v3552_v9, %v3548_v20 }
 0xa8a   :  { %7496 = vmatprep.subr.bf16.mxu1 %v7495_v19  ;;  %7443 = vmatprep.subr.bf16.mxu0 %v8692_v4  ;;  %v3520_v19 = vld [vmem:[#allocation5 + $0x38] sm:$0xff] }
 0xa8b   :  { %v7519_v23 = vpack.c.bf16 %v3520_v19, %v3516_v18  ;;  %v3556_v18 = vld [vmem:[#allocation5 + $0x158] sm:$0xff] }
 0xa8c   :  { %v3560_v19 = vld [vmem:[#allocation5 + $0x178] sm:$0xff] }
 0xa8d   :  { %7498 = vmatpush1.bf16.msra.mxu1 %v7497_v32  ;;  %7445 = vmatpush3.bf16.msra.mxu0 %v7444_v6  ;;  %v7529_v6 = vpack.c.bf16 %v3535_v25, %v3531_v1  ;;  %v3612_v1 = vld [vmem:[#allocation5 + $0x318] sm:$0xff] }
 0xa8e   :  { %7500 = vmatprep.subr.bf16.mxu1 %v7499_v33  ;;  %7446 = vmatprep.subr.bf16.mxu0 %v8692_v4  ;;  %v3616_v25 = vld [vmem:[#allocation5 + $0x338] sm:$0xff] }
 0xa8f   :  { %v7567_v2 = vpack.c.bf16 %v3616_v25, %v3612_v1  ;;  %v3831_v1 = vld [vmem:[#allocation5 + $0x4a0] sm:$0xff] }
 0xa91   :  { %7502 = vmatpush1.bf16.msra.mxu1 %v7501_v37  ;;  %7448 = vmatpush3.bf16.msra.mxu0 %v7447_v7  ;;  %v3543_v7 = vld [vmem:[#allocation5 + $0xf0] sm:$0xff] }
 0xa92   :  { %7504 = vmatprep.subr.bf16.mxu1 %v7503_v43  ;;  %7449 = vmatprep.subr.bf16.mxu0 %v8692_v4 }
 0xa95   :  { %7506 = vmatpush1.bf16.msra.mxu1 %v7505_v39  ;;  %7451 = vmatpush3.bf16.msra.mxu0 %v7450_v24  ;;  %v7533_v24 = vpack.c.bf16 %v3543_v7, %v3539_v14  ;;  %v3620_v14 = vld [vmem:[#allocation5 + $0x358] sm:$0xff] }
 0xa96   :  { %7508 = vmatprep.subr.bf16.mxu1 %v7507_v45  ;;  %7452 = vmatprep.subr.bf16.mxu0 %v8692_v4  ;;  %v3624_v7 = vld [vmem:[#allocation5 + $0x378] sm:$0xff] }
 0xa97   :  { %v7571_v9 = vpack.c.bf16 %v3624_v7, %v3620_v14  ;;  %v3840_v7 = vld [vmem:[#allocation5 + $0x4e8] sm:$0xff] }
 0xa99   :  { %7510 = vmatpush1.bf16.msra.mxu1 %v7509_v55  ;;  %7454 = vmatpush3.bf16.msra.mxu0 %v7453_v22 }
 0xa9a   :  { %7512 = vmatprep.subr.bf16.mxu1 %v7511_v42  ;;  %7520 = vmatprep.subr.bf16.mxu0 %v7519_v23  ;;  %v7539_v23 = vpack.c.bf16 %v3560_v19, %v3556_v18 }
 0xa9d   :  { %7514 = vmatpush1.bf16.msra.mxu1 %v7513_v53 }
 0xa9e   :  { %7516 = vmatprep.subr.bf16.mxu1 %v7515_v5  ;;  %v3515_v5 = vld [vmem:[#allocation5 + $0x10] sm:$0xff] }
 0xa9f   :  { %v7521_v17 = vpack.c.bf16 %v3519_v51, %v3515_v5  ;;  %v3587_v5 = vld [vmem:[#allocation5 + $0x250] sm:$0xff] }
 0xaa0   :  { %v3591_v51 = vld [vmem:[#allocation5 + $0x270] sm:$0xff] }
 0xaa1   :  { %7518 = vmatpush1.bf16.msra.mxu1 %v7517_v57  ;;  %v3528_v57 = vld [vmem:[#allocation5 + $0x78] sm:$0xff] }
 0xaa2   :  { %v7523_v54 = vpack.c.bf16 %v3528_v57, %v3524_v56  ;;  %v3596_v56 = vld [vmem:[#allocation5 + $0x298] sm:$0xff] }
 0xaa3   :  { %v3600_v57 = vld [vmem:[#allocation5 + $0x2b8] sm:$0xff] }
 0xaa4   :  { %3710 = vmatmul.mubr.f32.vlgmr.msra.gmra.mrb[24].mxu1 %v9030_v46 }
 0xb37   :  { %v3322_v32 = vpop.f32.mrb[22].mxu0  ;;  %v3393_v33 = vpop.f32.mrb[22].mxu1 }
 0xb38   :  { %v3323_v8 = vadd.f32 %v3322_v32, %v3252_v26  ;;  %v3324_v34 = vpop.f32.mrb[23].mxu0  ;;  %v3395_v35 = vpop.f32.mrb[23].mxu1  ;;  %v3394_v39 = vadd.f32 %v3393_v33, %v3254_v44  ;;  %v3555_v26 = vld [vmem:[#allocation5 + $0x150] sm:$0xff]  ;;  %v3564_v32 = vld [vmem:[#allocation5 + $0x198] sm:$0xff] }
 0xb39   :  { %v3325_v36 = vadd.f32 %v3324_v34, %v3253_v29  ;;  %v3396_v38 = vadd.f32 %v3395_v35, %v3255_v3  ;;  %v3559_v29 = vld [vmem:[#allocation5 + $0x170] sm:$0xff]  ;;  %v3568_v33 = vld [vmem:[#allocation5 + $0x1b8] sm:$0xff] }
 0xb3a   :  { %v5618_v37 = vmul.f32 -1.442695, %v3323_v8  ;;  %v7541_v34 = vpack.c.bf16 %v3559_v29, %v3555_v26  ;;  %v3572_v3 = vld [vmem:[#allocation5 + $0x1d8] sm:$0xff] }
 0xb3b   :  { %v5619_v43 = vmul.f32 -1.442695, %v3325_v36  ;;  %v5620_v15 = vmul.f32 -1.442695, %v3396_v38  ;;  %v7543_v36 = vpack.c.bf16 %v3568_v33, %v3564_v32  ;;  %v3576_v38 = vld [vmem:[#allocation5 + $0x1f8] sm:$0xff] }
 0xb3c   :  { %8451 = vpow2.f32 %v5618_v37  ;;  %v3563_v37 = vld [vmem:[#allocation5 + $0x190] sm:$0xff]  ;;  %v3636_v26 = vld [vmem:[#allocation5 + $0x3d8] sm:$0xff] }
 0xb3d   :  { %8453 = vpow2.f32 %v5619_v43  ;;  %v3567_v43 = vld [vmem:[#allocation5 + $0x1b0] sm:$0xff]  ;;  %v3640_v29 = vld [vmem:[#allocation5 + $0x3f8] sm:$0xff] }
 0xb3e   :  { %8455 = vpow2.f32 %v5620_v15  ;;  %v7545_v44 = vpack.c.bf16 %v3567_v43, %v3563_v37  ;;  %v7547_v15 = vpack.c.bf16 %v3576_v38, %v3572_v3  ;;  %v7579_v33 = vpack.c.bf16 %v3640_v29, %v3636_v26  ;;  %v3814_v43 = vld [vmem:[#allocation5 + $0x418] sm:$0xff]  ;;  %v3812_v38 = vld [vmem:[#allocation5 + $0x408] sm:$0xff] }
 0xb3f   :  { %8457 = vtanh.f32 %v3394_v39  ;;  %v3571_v39 = vld [vmem:[#allocation5 + $0x1d0] sm:$0xff]  ;;  %v3818_v3 = vld [vmem:[#allocation5 + $0x438] sm:$0xff] }
 0xb46   :  { %v8452_v45 = vpop.eup %8451 }
 0xb47   :  { %v8454_v47 = vpop.eup %8453  ;;  %v3401_v40 = vadd.f32 1.0, %v8452_v45  ;;  %v3575_v45 = vld [vmem:[#allocation5 + $0x1f0] sm:$0xff] }
 0xb48   :  { %v3407_v49 = vadd.f32 1.0, %v8454_v47  ;;  %v8456_v48 = vpop.eup %8455  ;;  %v3580_v47 = vld [vmem:[#allocation5 + $0x218] sm:$0xff] }
 0xb49   :  { %8459 = vrcp.f32 %v3401_v40  ;;  %v8458_v55 = vpop.eup %8457  ;;  %v3414_v28 = vadd.f32 1.0, %v8456_v48  ;;  %v3584_v40 = vld [vmem:[#allocation5 + $0x238] sm:$0xff] }
 0xb4a   :  { %8461 = vrcp.f32 %v3407_v49  ;;  %v7549_v49 = vpack.c.bf16 %v3575_v45, %v3571_v39  ;;  %v7551_v48 = vpack.c.bf16 %v3584_v40, %v3580_v47  ;;  %v3813_v39 = vld [vmem:[#allocation5 + $0x410] sm:$0xff] }
 0xb4b   :  { %8463 = vrcp.f32 %v3414_v28  ;;  %v3817_v45 = vld [vmem:[#allocation5 + $0x430] sm:$0xff] }
 0xb4c   :  { %v7649_v40 = vpack.c.bf16 %v3817_v45, %v3813_v39 }
 0xb53   :  { %v8460_v42 = vpop.eup %8459 }
 0xb54   :  { %v8462_v58 = vpop.eup %8461  ;;  %v3418_v16 = vmul.f32 %v8460_v42, %v8458_v55  ;;  %v3579_v55 = vld [vmem:[#allocation5 + $0x210] sm:$0xff] }
 0xb55   :  { %v3417_v52 = vmul.f32 %v8462_v58, %v8999_v27  ;;  %v8464_v59 = vpop.eup %8463  ;;  %v7525_v27 = vpack.c.bf16 %v3527_v41, %v3523_v61  ;;  %v3583_v42 = vld [vmem:[#allocation5 + $0x230] sm:$0xff]  ;;  %v3588_v58 = vld [vmem:[#allocation5 + $0x258] sm:$0xff] }
 0xb56   :  { %v7553_v28 = vpack.c.bf16 %v3583_v42, %v3579_v55  ;;  %v3604_v61 = vld [vmem:[#allocation5 + $0x2d8] sm:$0xff] }
 0xb57   :  { %v9041_v53 = vadd.f32 %v3418_v16, %v3417_v52  ;;  %v3592_v16 = vld [vmem:[#allocation5 + $0x278] sm:$0xff] }
 0xb58   :  { %v7555_v52 = vpack.c.bf16 %v3592_v16, %v3588_v58  ;;  %v3608_v41 = vld [vmem:[#allocation5 + $0x2f8] sm:$0xff]  ;;  %v3820_v16 = vld [vmem:[#allocation5 + $0x448] sm:$0xff] }
 0xb59   :  { %8465 = vtanh.f32 %v9041_v53  ;;  %v7563_v62 = vpack.c.bf16 %v3608_v41, %v3604_v61  ;;  %v3822_v55 = vld [vmem:[#allocation5 + $0x458] sm:$0xff]  ;;  %v3828_v61 = vld [vmem:[#allocation5 + $0x488] sm:$0xff] }
 0xb5a   :  { %v3826_v58 = vld [vmem:[#allocation5 + $0x478] sm:$0xff]  ;;  %v3832_v41 = vld [vmem:[#allocation5 + $0x4a8] sm:$0xff] }
 0xb63   :  { %v8466_v13 = vpop.eup %8465 }
 0xb64   :  { %v9044_v60 = vmul.f32 %v8466_v13, %v8464_v59  ;;  %v7557_v59 = vpack.c.bf16 %v3591_v51, %v3587_v5  ;;  %v7559_v13 = vpack.c.bf16 %v3600_v57, %v3596_v56  ;;  %v3825_v5 = vld [vmem:[#allocation5 + $0x470] sm:$0xff]  ;;  %v3819_v51 = vld [vmem:[#allocation5 + $0x440] sm:$0xff] }
 0xb65   :  { %v3823_v57 = vld [vmem:[#allocation5 + $0x460] sm:$0xff] }
 0xb66   :  { %5948 = vmatmul.mubr.f32.vlgmr.msra.gmra.mrb[24].mxu0 %v9044_v60  ;;  %4007 = vmatprep.mubr.f32.mxu1 %v9044_v60 }
 0xb67   :  { %7522 = vmatpush1.bf16.msra.mxu0 %v7521_v17  ;;  %3780 = vmatprep.mubr.f32.mxu0 %v9023_v30  ;;  %v3547_v30 = vld [vmem:[#allocation5 + $0x110] sm:$0xff] }
 0xb68   :  { %7524 = vmatprep.subr.bf16.mxu0 %v7523_v54  ;;  %v7537_v22 = vpack.c.bf16 %v3551_v12, %v3547_v30  ;;  %v3595_v17 = vld [vmem:[#allocation5 + $0x290] sm:$0xff]  ;;  %v3628_v30 = vld [vmem:[#allocation5 + $0x398] sm:$0xff] }
 0xb69   :  { %v3599_v54 = vld [vmem:[#allocation5 + $0x2b0] sm:$0xff]  ;;  %v3632_v12 = vld [vmem:[#allocation5 + $0x3b8] sm:$0xff] }
 0xb6a   :  { %v7561_v21 = vpack.c.bf16 %v3599_v54, %v3595_v17  ;;  %v7575_v19 = vpack.c.bf16 %v3632_v12, %v3628_v30  ;;  %v7589_v17 = vpack.c.bf16 %v3823_v57, %v3819_v51  ;;  %v3839_v30 = vld [vmem:[#allocation5 + $0x4e0] sm:$0xff]  ;;  %v3846_v12 = vld [vmem:[#allocation5 + $0x518] sm:$0xff]  ;;  %v3865_v51 = vld [vmem:[#allocation5 + $0x5b0] sm:$0xff] }
 0xb6b   :  { %7526 = vmatpush1.bf16.msra.mxu0 %v7525_v27  ;;  %v3603_v27 = vld [vmem:[#allocation5 + $0x2d0] sm:$0xff] }
 0xb6c   :  { %7528 = vmatprep.subr.bf16.mxu0 %v7527_v63  ;;  %v3607_v63 = vld [vmem:[#allocation5 + $0x2f0] sm:$0xff] }
 0xb6d   :  { %v7565_v50 = vpack.c.bf16 %v3607_v63, %v3603_v27  ;;  %v3833_v27 = vld [vmem:[#allocation5 + $0x4b0] sm:$0xff]  ;;  %v3827_v63 = vld [vmem:[#allocation5 + $0x480] sm:$0xff] }
 0xb6f   :  { %7530 = vmatpush1.bf16.msra.mxu0 %v7529_v6  ;;  %v3611_v6 = vld [vmem:[#allocation5 + $0x310] sm:$0xff] }
 0xb70   :  { %7532 = vmatprep.subr.bf16.mxu0 %v7531_v31  ;;  %v3615_v31 = vld [vmem:[#allocation5 + $0x330] sm:$0xff] }
 0xb71   :  { %v7569_v20 = vpack.c.bf16 %v3615_v31, %v3611_v6  ;;  %v3836_v6 = vld [vmem:[#allocation5 + $0x4c8] sm:$0xff]  ;;  %v7593_v31 = vpack.c.bf16 %v3831_v1, %v3827_v63  ;;  %v3873_v63 = vld [vmem:[#allocation5 + $0x5f0] sm:$0xff]  ;;  %v3867_v1 = vld [vmem:[#allocation5 + $0x5c0] sm:$0xff] }
 0xb73   :  { %7534 = vmatpush1.bf16.msra.mxu0 %v7533_v24  ;;  %v3619_v24 = vld [vmem:[#allocation5 + $0x350] sm:$0xff] }
 0xb74   :  { %7536 = vmatprep.subr.bf16.mxu0 %v7535_v11  ;;  %v3623_v11 = vld [vmem:[#allocation5 + $0x370] sm:$0xff] }
 0xb75   :  { %v7573_v18 = vpack.c.bf16 %v3623_v11, %v3619_v24  ;;  %v7595_v24 = vpack.c.bf16 %v3840_v7, %v3836_v6  ;;  %v3835_v11 = vld [vmem:[#allocation5 + $0x4c0] sm:$0xff]  ;;  %v3882_v6 = vld [vmem:[#allocation5 + $0x638] sm:$0xff] }
 0xb76   :  { %v7597_v26 = vpack.c.bf16 %v3839_v30, %v3835_v11  ;;  %v3881_v30 = vld [vmem:[#allocation5 + $0x630] sm:$0xff] }
 0xb77   :  { %v9049_v8 = vpop.f32.mrb[24].mxu1  ;;  %7538 = vmatpush1.bf16.msra.mxu0 %v7537_v22  ;;  %v3627_v22 = vld [vmem:[#allocation5 + $0x390] sm:$0xff] }
 0xb78   :  { %v9051_v35 = vpop.f32.mrb[25].mxu1  ;;  %7540 = vmatprep.subr.bf16.mxu0 %v7539_v23  ;;  %v3631_v23 = vld [vmem:[#allocation5 + $0x3b0] sm:$0xff] }
 0xb79   :  { %v7577_v32 = vpack.c.bf16 %v3631_v23, %v3627_v22  ;;  %v3848_v22 = vld [vmem:[#allocation5 + $0x528] sm:$0xff] }
 0xb7b   :  { %7542 = vmatpush1.bf16.msra.mxu0 %v7541_v34  ;;  %v3635_v34 = vld [vmem:[#allocation5 + $0x3d0] sm:$0xff] }
 0xb7c   :  { %7544 = vmatprep.subr.bf16.mxu0 %v7543_v36  ;;  %v3639_v36 = vld [vmem:[#allocation5 + $0x3f0] sm:$0xff] }
 0xb7d   :  { %v7581_v37 = vpack.c.bf16 %v3639_v36, %v3635_v34  ;;  %v3843_v34 = vld [vmem:[#allocation5 + $0x500] sm:$0xff] }
 0xb7f   :  { %7546 = vmatpush1.bf16.msra.mxu0 %v7545_v44  ;;  %v7647_v44 = vpack.c.bf16 %v3818_v3, %v3814_v43  ;;  %v3854_v43 = vld [vmem:[#allocation5 + $0x558] sm:$0xff] }
 0xb80   :  { %7548 = vmatprep.subr.bf16.mxu0 %v7547_v15  ;;  %v3816_v15 = vld [vmem:[#allocation5 + $0x428] sm:$0xff]  ;;  %v3858_v3 = vld [vmem:[#allocation5 + $0x578] sm:$0xff] }
 0xb81   :  { %v7583_v47 = vpack.c.bf16 %v3816_v15, %v3812_v38  ;;  %v3852_v38 = vld [vmem:[#allocation5 + $0x548] sm:$0xff]  ;;  %v7667_v45 = vpack.c.bf16 %v3858_v3, %v3854_v43  ;;  %v3883_v43 = vld [vmem:[#allocation5 + $0x640] sm:$0xff] }
 0xb83   :  { %7550 = vmatpush1.bf16.msra.mxu0 %v7549_v49  ;;  %v3811_v49 = vld [vmem:[#allocation5 + $0x400] sm:$0xff]  ;;  %7584 = vmatprep.subr.bf16.mxu1 %v7583_v47  ;;  %v3853_v47 = vld [vmem:[#allocation5 + $0x550] sm:$0xff] }
 0xb84   :  { %7552 = vmatprep.subr.bf16.mxu0 %v7551_v48  ;;  %v3815_v48 = vld [vmem:[#allocation5 + $0x420] sm:$0xff] }
 0xb85   :  { %v7585_v42 = vpack.c.bf16 %v3815_v48, %v3811_v49  ;;  %v3851_v49 = vld [vmem:[#allocation5 + $0x540] sm:$0xff] }
 0xb87   :  { %7554 = vmatpush1.bf16.msra.mxu0 %v7553_v28  ;;  %v3824_v28 = vld [vmem:[#allocation5 + $0x468] sm:$0xff]  ;;  %7586 = vmatpush1.bf16.msra.mxu1 %v7585_v42  ;;  %v3862_v42 = vld [vmem:[#allocation5 + $0x598] sm:$0xff] }
 0xb88   :  { %7556 = vmatprep.subr.bf16.mxu0 %v7555_v52  ;;  %v3821_v52 = vld [vmem:[#allocation5 + $0x450] sm:$0xff] }
 0xb89   :  { %v7653_v56 = vpack.c.bf16 %v3825_v5, %v3821_v52  ;;  %v3861_v5 = vld [vmem:[#allocation5 + $0x590] sm:$0xff] }
 0xb8b   :  { %7558 = vmatpush1.bf16.msra.mxu0 %v7557_v59  ;;  %v3830_v59 = vld [vmem:[#allocation5 + $0x498] sm:$0xff] }
 0xb8c   :  { %7560 = vmatprep.subr.bf16.mxu0 %v7559_v13  ;;  %v3834_v13 = vld [vmem:[#allocation5 + $0x4b8] sm:$0xff] }
 0xb8d   :  { %v7655_v54 = vpack.c.bf16 %v3834_v13, %v3830_v59  ;;  %v3863_v59 = vld [vmem:[#allocation5 + $0x5a0] sm:$0xff]  ;;  %v3870_v13 = vld [vmem:[#allocation5 + $0x5d8] sm:$0xff] }
 0xb8f   :  { %7562 = vmatpush1.bf16.msra.mxu0 %v7561_v21  ;;  %v3829_v21 = vld [vmem:[#allocation5 + $0x490] sm:$0xff] }
 0xb90   :  { %7564 = vmatprep.subr.bf16.mxu0 %v7563_v62  ;;  %v7591_v62 = vpack.c.bf16 %v3832_v41, %v3828_v61  ;;  %v7657_v25 = vpack.c.bf16 %v3833_v27, %v3829_v21  ;;  %v3872_v61 = vld [vmem:[#allocation5 + $0x5e8] sm:$0xff]  ;;  %v7673_v41 = vpack.c.bf16 %v3865_v51, %v3861_v5  ;;  %v3869_v27 = vld [vmem:[#allocation5 + $0x5d0] sm:$0xff] }
 0xb91   :  { %v3900_v5 = vld [vmem:[#allocation5 + $0x6c8] sm:$0xff] }
 0xb92   :  { %v3904_v51 = vld [vmem:[#allocation5 + $0x6e8] sm:$0xff] }
 0xb93   :  { %7566 = vmatpush1.bf16.msra.mxu0 %v7565_v50  ;;  %v3838_v50 = vld [vmem:[#allocation5 + $0x4d8] sm:$0xff] }
 0xb94   :  { %7568 = vmatprep.subr.bf16.mxu0 %v7567_v2  ;;  %v3842_v2 = vld [vmem:[#allocation5 + $0x4f8] sm:$0xff] }
 0xb95   :  { %v7659_v14 = vpack.c.bf16 %v3842_v2, %v3838_v50  ;;  %v3871_v50 = vld [vmem:[#allocation5 + $0x5e0] sm:$0xff]  ;;  %v3878_v2 = vld [vmem:[#allocation5 + $0x618] sm:$0xff] }
 0xb96   :  { %v7679_v7 = vpack.c.bf16 %v3882_v6, %v3878_v2  ;;  %v3907_v2 = vld [vmem:[#allocation5 + $0x700] sm:$0xff] }
 0xb97   :  { %7570 = vmatpush1.bf16.msra.mxu0 %v7569_v20  ;;  %v3837_v20 = vld [vmem:[#allocation5 + $0x4d0] sm:$0xff]  ;;  %v3911_v6 = vld [vmem:[#allocation5 + $0x720] sm:$0xff] }
 0xb98   :  { %7572 = vmatprep.subr.bf16.mxu0 %v7571_v9  ;;  %v3841_v9 = vld [vmem:[#allocation5 + $0x4f0] sm:$0xff] }
 0xb99   :  { %v7661_v23 = vpack.c.bf16 %v3841_v9, %v3837_v20  ;;  %v3876_v20 = vld [vmem:[#allocation5 + $0x608] sm:$0xff] }
 0xb9a   :  { %v3880_v9 = vld [vmem:[#allocation5 + $0x628] sm:$0xff] }
 0xb9b   :  { %7574 = vmatpush1.bf16.msra.mxu0 %v7573_v18  ;;  %v3850_v18 = vld [vmem:[#allocation5 + $0x538] sm:$0xff]  ;;  %v7615_v11 = vpack.c.bf16 %v3880_v9, %v3876_v20 }
 0xb9c   :  { %7576 = vmatprep.subr.bf16.mxu0 %v7575_v19  ;;  %v3844_v19 = vld [vmem:[#allocation5 + $0x508] sm:$0xff]  ;;  %v7663_v29 = vpack.c.bf16 %v3850_v18, %v3846_v12  ;;  %v3875_v12 = vld [vmem:[#allocation5 + $0x600] sm:$0xff]  ;;  %v3922_v20 = vld [vmem:[#allocation5 + $0x778] sm:$0xff] }
 0xb9d   :  { %v7599_v36 = vpack.c.bf16 %v3848_v22, %v3844_v19  ;;  %v3879_v18 = vld [vmem:[#allocation5 + $0x620] sm:$0xff] }
 0xb9e   :  { %v7617_v22 = vpack.c.bf16 %v3879_v18, %v3875_v12  ;;  %v3921_v18 = vld [vmem:[#allocation5 + $0x770] sm:$0xff] }
 0xb9f   :  { %7578 = vmatpush1.bf16.msra.mxu0 %v7577_v32  ;;  %v3845_v32 = vld [vmem:[#allocation5 + $0x510] sm:$0xff] }
 0xba0   :  { %7580 = vmatprep.subr.bf16.mxu0 %v7579_v33  ;;  %v3849_v33 = vld [vmem:[#allocation5 + $0x530] sm:$0xff] }
 0xba1   :  { %v7665_v15 = vpack.c.bf16 %v3849_v33, %v3845_v32  ;;  %v3884_v32 = vld [vmem:[#allocation5 + $0x648] sm:$0xff] }
 0xba2   :  { %v3888_v33 = vld [vmem:[#allocation5 + $0x668] sm:$0xff] }
 0xba3   :  { %7582 = vmatpush1.bf16.msra.mxu0 %v7581_v37  ;;  %v3847_v37 = vld [vmem:[#allocation5 + $0x520] sm:$0xff] }
 0xba4   :  { %7648 = vmatprep.subr.bf16.mxu0 %v7647_v44  ;;  %v3856_v44 = vld [vmem:[#allocation5 + $0x568] sm:$0xff]  ;;  %v7601_v39 = vpack.c.bf16 %v3847_v37, %v3843_v34  ;;  %v7619_v34 = vpack.c.bf16 %v3888_v33, %v3884_v32  ;;  %v3889_v37 = vld [vmem:[#allocation5 + $0x670] sm:$0xff]  ;;  %v3930_v32 = vld [vmem:[#allocation5 + $0x7b8] sm:$0xff] }
 0xba5   :  { %v7603_v48 = vpack.c.bf16 %v3856_v44, %v3852_v38  ;;  %v3887_v38 = vld [vmem:[#allocation5 + $0x660] sm:$0xff]  ;;  %v3924_v33 = vld [vmem:[#allocation5 + $0x788] sm:$0xff] }
 0xba6   :  { %3781 = vmatmul.mubr.f32.vlgmr.msra.gmra.mrb[26].mxu0 %v9030_v46  ;;  %v7651_v46 = vpack.c.bf16 %v3826_v58, %v3822_v55  ;;  %v3855_v55 = vld [vmem:[#allocation5 + $0x560] sm:$0xff]  ;;  %v3866_v58 = vld [vmem:[#allocation5 + $0x5b8] sm:$0xff]  ;;  %v7621_v44 = vpack.c.bf16 %v3887_v38, %v3883_v43  ;;  %v3929_v43 = vld [vmem:[#allocation5 + $0x7b0] sm:$0xff] }
 0xba7   :  { %4078 = vmatprep.mubr.f32.mxu0 %v9044_v60  ;;  %7650 = vmatpush1.bf16.msra.mxu0 %v7649_v40  ;;  %v7587_v60 = vpack.c.bf16 %v3824_v28, %v3820_v16  ;;  %v3857_v40 = vld [vmem:[#allocation5 + $0x570] sm:$0xff]  ;;  %v3860_v16 = vld [vmem:[#allocation5 + $0x588] sm:$0xff]  ;;  %v7671_v52 = vpack.c.bf16 %v3866_v58, %v3862_v42  ;;  %v3891_v42 = vld [vmem:[#allocation5 + $0x680] sm:$0xff] }
 0xba8   :  { %7652 = vmatprep.subr.bf16.mxu0 %v7651_v46  ;;  %v3864_v28 = vld [vmem:[#allocation5 + $0x5a8] sm:$0xff]  ;;  %v7669_v46 = vpack.c.bf16 %v3857_v40, %v3853_v47  ;;  %v3895_v58 = vld [vmem:[#allocation5 + $0x6a0] sm:$0xff] }
 0xba9   :  { %7588 = vmatprep.subr.bf16.mxu1 %v7587_v60  ;;  %v7605_v60 = vpack.c.bf16 %v3855_v55, %v3851_v49  ;;  %v7607_v57 = vpack.c.bf16 %v3864_v28, %v3860_v16  ;;  %v3892_v47 = vld [vmem:[#allocation5 + $0x688] sm:$0xff]  ;;  %v3893_v49 = vld [vmem:[#allocation5 + $0x690] sm:$0xff]  ;;  %v7625_v28 = vpack.c.bf16 %v3895_v58, %v3891_v42 }
 0xbaa   :  { %7590 = vmatpush1.bf16.msra.mxu1 %v7589_v17  ;;  %v3874_v17 = vld [vmem:[#allocation5 + $0x5f8] sm:$0xff]  ;;  %v3896_v40 = vld [vmem:[#allocation5 + $0x6a8] sm:$0xff]  ;;  %v3897_v55 = vld [vmem:[#allocation5 + $0x6b0] sm:$0xff] }
 0xbab   :  { %7654 = vmatpush1.bf16.msra.mxu0 %v7653_v56  ;;  %7592 = vmatprep.subr.bf16.mxu1 %v7591_v62  ;;  %v3859_v56 = vld [vmem:[#allocation5 + $0x580] sm:$0xff]  ;;  %v7675_v62 = vpack.c.bf16 %v3874_v17, %v3870_v13  ;;  %v7689_v16 = vpack.c.bf16 %v3897_v55, %v3893_v49  ;;  %v3936_v49 = vld [vmem:[#allocation5 + $0x7e8] sm:$0xff]  ;;  %v3933_v42 = vld [vmem:[#allocation5 + $0x7d0] sm:$0xff] }
 0xbac   :  { %7656 = vmatprep.subr.bf16.mxu0 %v7655_v54  ;;  %v3868_v54 = vld [vmem:[#allocation5 + $0x5c8] sm:$0xff]  ;;  %v7609_v21 = vpack.c.bf16 %v3863_v59, %v3859_v56  ;;  %v3901_v56 = vld [vmem:[#allocation5 + $0x6d0] sm:$0xff]  ;;  %v3899_v13 = vld [vmem:[#allocation5 + $0x6c0] sm:$0xff] }
 0xbad   :  { %v3905_v59 = vld [vmem:[#allocation5 + $0x6f0] sm:$0xff]  ;;  %v3903_v17 = vld [vmem:[#allocation5 + $0x6e0] sm:$0xff] }
 0xbae   :  { %7594 = vmatpush1.bf16.msra.mxu1 %v7593_v31  ;;  %v7677_v31 = vpack.c.bf16 %v3873_v63, %v3869_v27  ;;  %v3908_v27 = vld [vmem:[#allocation5 + $0x708] sm:$0xff]  ;;  %v3937_v58 = vld [vmem:[#allocation5 + $0x7f0] sm:$0xff] }
 0xbaf   :  { %7658 = vmatpush1.bf16.msra.mxu0 %v7657_v25  ;;  %7596 = vmatprep.subr.bf16.mxu1 %v7595_v24  ;;  %v7611_v25 = vpack.c.bf16 %v3872_v61, %v3868_v54  ;;  %v3877_v24 = vld [vmem:[#allocation5 + $0x610] sm:$0xff]  ;;  %v7693_v54 = vpack.c.bf16 %v3905_v59, %v3901_v56  ;;  %v7629_v61 = vpack.c.bf16 %v3903_v17, %v3899_v13  ;;  %v3912_v63 = vld [vmem:[#allocation5 + $0x728] sm:$0xff]  ;;  %v3438_v56 = vld [vmem:[%s9227_s4] sm:$0xff] }
 0xbb0   :  { %7660 = vmatprep.subr.bf16.mxu0 %v7659_v14  ;;  %v7613_v14 = vpack.c.bf16 %v3871_v50, %v3867_v1  ;;  %v7681_v19 = vpack.c.bf16 %v3881_v30, %v3877_v24  ;;  %v3909_v1 = vld [vmem:[#allocation5 + $0x710] sm:$0xff]  ;;  %v3916_v24 = vld [vmem:[#allocation5 + $0x748] sm:$0xff]  ;;  %v3641_v17 = vld [vmem:[#allocation7] sm:$0xff] }
 0xbb1   :  { %v3913_v50 = vld [vmem:[#allocation5 + $0x730] sm:$0xff] }
 0xbb2   :  { %7598 = vmatpush1.bf16.msra.mxu1 %v7597_v26  ;;  %v3890_v26 = vld [vmem:[#allocation5 + $0x678] sm:$0xff]  ;;  %v3917_v30 = vld [vmem:[#allocation5 + $0x750] sm:$0xff] }
 0xbb3   :  { %7662 = vmatpush1.bf16.msra.mxu0 %v7661_v23  ;;  %7600 = vmatprep.subr.bf16.mxu1 %v7599_v36  ;;  %v3886_v23 = vld [vmem:[#allocation5 + $0x658] sm:$0xff]  ;;  %v3885_v36 = vld [vmem:[#allocation5 + $0x650] sm:$0xff] }
 0xbb4   :  { %7664 = vmatprep.subr.bf16.mxu0 %v7663_v29  ;;  %v7683_v29 = vpack.c.bf16 %v3890_v26, %v3886_v23  ;;  %v7685_v3 = vpack.c.bf16 %v3889_v37, %v3885_v36  ;;  %v7701_v23 = vpack.c.bf16 %v3921_v18, %v3917_v30  ;;  %v3928_v36 = vld [vmem:[#allocation5 + $0x7a8] sm:$0xff]  ;;  %v3925_v37 = vld [vmem:[#allocation5 + $0x790] sm:$0xff] }
 0xbb5   :  { %v7705_v38 = vpack.c.bf16 %v3929_v43, %v3925_v37  ;;  %v4208_v37 = vld [vmem:[#allocation5 + $0x40] sm:$0xff]  ;;  %v4217_v43 = vld [vmem:[#allocation5 + $0x88] sm:$0xff] }
 0xbb6   :  { %7602 = vmatpush1.bf16.msra.mxu1 %v7601_v39  ;;  %v3898_v39 = vld [vmem:[#allocation5 + $0x6b8] sm:$0xff] }
 0xbb7   :  { %7666 = vmatpush1.bf16.msra.mxu0 %v7665_v15  ;;  %7604 = vmatprep.subr.bf16.mxu1 %v7603_v48  ;;  %v3894_v15 = vld [vmem:[#allocation5 + $0x698] sm:$0xff]  ;;  %v7623_v48 = vpack.c.bf16 %v3896_v40, %v3892_v47  ;;  %v3932_v40 = vld [vmem:[#allocation5 + $0x7c8] sm:$0xff] }
 0xbb8   :  { %7668 = vmatprep.subr.bf16.mxu0 %v7667_v45  ;;  %v7687_v45 = vpack.c.bf16 %v3898_v39, %v3894_v15  ;;  %v3927_v15 = vld [vmem:[#allocation5 + $0x7a0] sm:$0xff]  ;;  %v3934_v39 = vld [vmem:[#allocation5 + $0x7d8] sm:$0xff]  ;;  %v7643_v55 = vpack.c.bf16 %v3936_v49, %v3932_v40 }
 0xbb9   :  { %v3938_v47 = vld [vmem:[#allocation5 + $0x7f8] sm:$0xff] }
 0xbba   :  { %7606 = vmatpush1.bf16.msra.mxu1 %v7605_v60  ;;  %v3906_v60 = vld [vmem:[#allocation5 + $0x6f8] sm:$0xff] }
 0xbbb   :  { %7670 = vmatpush1.bf16.msra.mxu0 %v7669_v46  ;;  %7608 = vmatprep.subr.bf16.mxu1 %v7607_v57  ;;  %v3902_v46 = vld [vmem:[#allocation5 + $0x6d8] sm:$0xff]  ;;  %v7627_v57 = vpack.c.bf16 %v3904_v51, %v3900_v5 }
 0xbbc   :  { %7672 = vmatprep.subr.bf16.mxu0 %v7671_v52  ;;  %v7691_v52 = vpack.c.bf16 %v3906_v60, %v3902_v46  ;;  %v4201_v46 = vld [vmem:[#allocation5 + $0x8] sm:$0xff] }
 0xbbd   :  { %v4205_v60 = vld [vmem:[#allocation5 + $0x28] sm:$0xff] }
 0xbbe   :  { %7610 = vmatpush1.bf16.msra.mxu1 %v7609_v21  ;;  %v3914_v21 = vld [vmem:[#allocation5 + $0x738] sm:$0xff]  ;;  %v7735_v51 = vpack.c.bf16 %v4205_v60, %v4201_v46  ;;  %v4232_v46 = vld [vmem:[#allocation5 + $0x100] sm:$0xff] }
 0xbbf   :  { %7674 = vmatpush1.bf16.msra.mxu0 %v7673_v41  ;;  %7612 = vmatprep.subr.bf16.mxu1 %v7611_v25  ;;  %v3910_v41 = vld [vmem:[#allocation5 + $0x718] sm:$0xff]  ;;  %v7631_v25 = vpack.c.bf16 %v3912_v63, %v3908_v27  ;;  %v4236_v60 = vld [vmem:[#allocation5 + $0x120] sm:$0xff] }
 0xbc0   :  { %7676 = vmatprep.subr.bf16.mxu0 %v7675_v62  ;;  %v7695_v62 = vpack.c.bf16 %v3914_v21, %v3910_v41 }
 0xbc2   :  { %7614 = vmatpush1.bf16.msra.mxu1 %v7613_v14  ;;  %v7633_v14 = vpack.c.bf16 %v3911_v6, %v3907_v2  ;;  %v3644_v2 = vld [vmem:[#allocation7 + $0x18] sm:$0xff] }
 0xbc3   :  { %7678 = vmatpush1.bf16.msra.mxu0 %v7677_v31  ;;  %7616 = vmatprep.subr.bf16.mxu1 %v7615_v11  ;;  %v7697_v31 = vpack.c.bf16 %v3913_v50, %v3909_v1  ;;  %v3920_v11 = vld [vmem:[#allocation5 + $0x768] sm:$0xff]  ;;  %v3643_v50 = vld [vmem:[#allocation7 + $0x10] sm:$0xff] }
 0xbc4   :  { %7680 = vmatprep.subr.bf16.mxu0 %v7679_v7  ;;  %v3918_v7 = vld [vmem:[#allocation5 + $0x758] sm:$0xff]  ;;  %v7635_v12 = vpack.c.bf16 %v3920_v11, %v3916_v24 }
 0xbc5   :  { %v7699_v9 = vpack.c.bf16 %v3922_v20, %v3918_v7 }
 0xbc6   :  { %7618 = vmatpush1.bf16.msra.mxu1 %v7617_v22  ;;  %v3919_v22 = vld [vmem:[#allocation5 + $0x760] sm:$0xff] }
 0xbc7   :  { %7682 = vmatpush1.bf16.msra.mxu0 %v7681_v19  ;;  %7620 = vmatprep.subr.bf16.mxu1 %v7619_v34  ;;  %v3915_v19 = vld [vmem:[#allocation5 + $0x740] sm:$0xff] }
 0xbc8   :  { %7684 = vmatprep.subr.bf16.mxu0 %v7683_v29  ;;  %v7637_v26 = vpack.c.bf16 %v3919_v22, %v3915_v19  ;;  %v3926_v29 = vld [vmem:[#allocation5 + $0x798] sm:$0xff]  ;;  %v4200_v19 = vld [vmem:[#allocation5] sm:$0xff] }
 0xbc9   :  { %v7703_v34 = vpack.c.bf16 %v3930_v32, %v3926_v29  ;;  %v4204_v22 = vld [vmem:[#allocation5 + $0x20] sm:$0xff] }
 0xbca   :  { %7622 = vmatpush1.bf16.msra.mxu1 %v7621_v44  ;;  %v3923_v44 = vld [vmem:[#allocation5 + $0x780] sm:$0xff] }
 0xbcb   :  { %7686 = vmatpush1.bf16.msra.mxu0 %v7685_v3  ;;  %7624 = vmatprep.subr.bf16.mxu1 %v7623_v48  ;;  %v7639_v3 = vpack.c.bf16 %v3928_v36, %v3924_v33  ;;  %v7707_v48 = vpack.c.bf16 %v3938_v47, %v3934_v39  ;;  %v7737_v33 = vpack.c.bf16 %v4204_v22, %v4200_v19  ;;  %v4220_v39 = vld [vmem:[#allocation5 + $0xa0] sm:$0xff]  ;;  %v4229_v47 = vld [vmem:[#allocation5 + $0xe8] sm:$0xff] }
 0xbcc   :  { %7688 = vmatprep.subr.bf16.mxu0 %v7687_v45  ;;  %v7641_v45 = vpack.c.bf16 %v3927_v15, %v3923_v44  ;;  %v4216_v15 = vld [vmem:[#allocation5 + $0x80] sm:$0xff]  ;;  %v4285_v19 = vld [vmem:[#allocation5 + $0x2a8] sm:$0xff] }
 0xbcd   :  { %v7745_v40 = vpack.c.bf16 %v4220_v39, %v4216_v15  ;;  %v4296_v39 = vld [vmem:[#allocation5 + $0x300] sm:$0xff] }
 0xbce   :  { %7626 = vmatpush1.bf16.msra.mxu1 %v7625_v28  ;;  %v3935_v28 = vld [vmem:[#allocation5 + $0x7e0] sm:$0xff] }
 0xbcf   :  { %7690 = vmatpush1.bf16.msra.mxu0 %v7689_v16  ;;  %7628 = vmatprep.subr.bf16.mxu1 %v7627_v57  ;;  %v3931_v16 = vld [vmem:[#allocation5 + $0x7c0] sm:$0xff] }
 0xbd0   :  { %7692 = vmatprep.subr.bf16.mxu0 %v7691_v52  ;;  %v7709_v52 = vpack.c.bf16 %v3937_v58, %v3933_v42  ;;  %v7645_v5 = vpack.c.bf16 %v3935_v28, %v3931_v16  ;;  %v4233_v42 = vld [vmem:[#allocation5 + $0x108] sm:$0xff] }
 0xbd1   :  { %v4237_v58 = vld [vmem:[#allocation5 + $0x128] sm:$0xff] }
 0xbd2   :  { %7630 = vmatpush1.bf16.msra.mxu1 %v7629_v61  ;;  %v3712_v61 = vadd.f32 %v9049_v8, %v3641_v17  ;;  %v7751_v28 = vpack.c.bf16 %v4237_v58, %v4233_v42  ;;  %v4253_v17 = vld [vmem:[#allocation5 + $0x1a8] sm:$0xff]  ;;  %v4308_v42 = vld [vmem:[#allocation5 + $0x360] sm:$0xff] }
 0xbd3   :  { %7694 = vmatpush1.bf16.msra.mxu0 %v7693_v54  ;;  %7632 = vmatprep.subr.bf16.mxu1 %v7631_v25  ;;  %v3642_v54 = vld [vmem:[#allocation7 + $0x8] sm:$0xff] }
 0xbd4   :  { %7696 = vmatprep.subr.bf16.mxu0 %v7695_v62  ;;  %v3714_v41 = vadd.f32 %v9051_v35, %v3642_v54  ;;  %v5621_v21 = vmul.f32 -1.442695, %v3712_v61  ;;  %v4313_v58 = vld [vmem:[#allocation5 + $0x388] sm:$0xff] }
 0xbd6   :  { %7634 = vmatpush1.bf16.msra.mxu1 %v7633_v14  ;;  %v5622_v62 = vmul.f32 -1.442695, %v3714_v41  ;;  %8467 = vpow2.f32 %v5621_v21  ;;  %v4248_v41 = vld [vmem:[#allocation5 + $0x180] sm:$0xff] }
 0xbd7   :  { %7698 = vmatpush1.bf16.msra.mxu0 %v7697_v31  ;;  %7636 = vmatprep.subr.bf16.mxu1 %v7635_v12  ;;  %v4252_v21 = vld [vmem:[#allocation5 + $0x1a0] sm:$0xff] }
 0xbd8   :  { %7700 = vmatprep.subr.bf16.mxu0 %v7699_v9  ;;  %8469 = vpow2.f32 %v5622_v62  ;;  %v4257_v62 = vld [vmem:[#allocation5 + $0x1c8] sm:$0xff] }
 0xbda   :  { %7638 = vmatpush1.bf16.msra.mxu1 %v7637_v26  ;;  %v4213_v26 = vld [vmem:[#allocation5 + $0x68] sm:$0xff] }
 0xbdb   :  { %7702 = vmatpush1.bf16.msra.mxu0 %v7701_v23  ;;  %7640 = vmatprep.subr.bf16.mxu1 %v7639_v3  ;;  %v4209_v23 = vld [vmem:[#allocation5 + $0x48] sm:$0xff] }
 0xbdc   :  { %7704 = vmatprep.subr.bf16.mxu0 %v7703_v34  ;;  %v7739_v36 = vpack.c.bf16 %v4213_v26, %v4209_v23  ;;  %v4221_v3 = vld [vmem:[#allocation5 + $0xa8] sm:$0xff]  ;;  %v4280_v26 = vld [vmem:[#allocation5 + $0x280] sm:$0xff] }
 0xbdd   :  { %v7743_v44 = vpack.c.bf16 %v4221_v3, %v4217_v43  ;;  %v4292_v43 = vld [vmem:[#allocation5 + $0x2e0] sm:$0xff]  ;;  %v4297_v3 = vld [vmem:[#allocation5 + $0x308] sm:$0xff] }
 0xbde   :  { %7642 = vmatpush1.bf16.msra.mxu1 %v7641_v45  ;;  %v4225_v45 = vld [vmem:[#allocation5 + $0xc8] sm:$0xff] }
 0xbdf   :  { %7706 = vmatpush1.bf16.msra.mxu0 %v7705_v38  ;;  %7644 = vmatprep.subr.bf16.mxu1 %v7643_v55  ;;  %v7747_v49 = vpack.c.bf16 %v4229_v47, %v4225_v45  ;;  %v4228_v55 = vld [vmem:[#allocation5 + $0xe0] sm:$0xff]  ;;  %v4305_v47 = vld [vmem:[#allocation5 + $0x348] sm:$0xff] }
 0xbe0   :  { %7708 = vmatprep.subr.bf16.mxu0 %v7707_v48  ;;  %v8468_v27 = vpop.eup %8467  ;;  %v4224_v48 = vld [vmem:[#allocation5 + $0xc0] sm:$0xff] }
 0xbe1   :  { %v3790_v1 = vadd.f32 1.0, %v8468_v27  ;;  %v7749_v16 = vpack.c.bf16 %v4228_v55, %v4224_v48  ;;  %v4261_v27 = vld [vmem:[#allocation5 + $0x1e8] sm:$0xff]  ;;  %v4300_v45 = vld [vmem:[#allocation5 + $0x320] sm:$0xff] }
 0xbe2   :  { %7646 = vmatpush1.bf16.msra.mxu1 %v7645_v5  ;;  %v8470_v63 = vpop.eup %8469  ;;  %v4245_v5 = vld [vmem:[#allocation5 + $0x168] sm:$0xff]  ;;  %v4304_v55 = vld [vmem:[#allocation5 + $0x340] sm:$0xff] }
 0xbe3   :  { %7710 = vmatpush1.bf16.msra.mxu0 %v7709_v52  ;;  %7711 = vmatprep.subr.bf16.mxu1 %v8692_v4  ;;  %v3796_v25 = vadd.f32 1.0, %v8470_v63  ;;  %8471 = vrcp.f32 %v3790_v1  ;;  %v4241_v52 = vld [vmem:[#allocation5 + $0x148] sm:$0xff]  ;;  %v7761_v63 = vpack.c.bf16 %v4252_v21, %v4248_v41  ;;  %v7763_v1 = vpack.c.bf16 %v4261_v27, %v4257_v62  ;;  %v4111_v62 = vld [vmem:[#allocation8 + $0x10] sm:$0xff]  ;;  %v4112_v27 = vld [vmem:[#allocation8 + $0x18] sm:$0xff] }
 0xbe4   :  { %7736 = vmatprep.subr.bf16.mxu0 %v7735_v51  ;;  %v7753_v51 = vpack.c.bf16 %v4236_v60, %v4232_v46  ;;  %v4312_v60 = vld [vmem:[#allocation5 + $0x380] sm:$0xff]  ;;  %v4110_v41 = vld [vmem:[#allocation8 + $0x8] sm:$0xff] }
 0xbe5   :  { %8473 = vrcp.f32 %v3796_v25  ;;  %v4256_v25 = vld [vmem:[#allocation5 + $0x1c0] sm:$0xff] }
 0xbed   :  { %v8472_v35 = vpop.eup %8471 }
 0xbef   :  { %v8474_v20 = vpop.eup %8473 }
 0xbf0   :  { %v3806_v24 = vmul.f32 %v8474_v20, %v9020_v10  ;;  %v4212_v10 = vld [vmem:[#allocation5 + $0x60] sm:$0xff]  ;;  %v4277_v20 = vld [vmem:[#allocation5 + $0x268] sm:$0xff] }
 0xbf1   :  { %v7741_v38 = vpack.c.bf16 %v4212_v10, %v4208_v37  ;;  %v4288_v10 = vld [vmem:[#allocation5 + $0x2c0] sm:$0xff] }
 0xc39   :  { %v3505_v57 = vpop.f32.mrb[24].mxu0 }
 0xc3a   :  { %v3506_v59 = vadd.f32 %v3505_v57, %v3438_v56  ;;  %v5949_v13 = vpop.f32.mrb[25].mxu0  ;;  %v7755_v56 = vpack.c.bf16 %v4245_v5, %v4241_v52  ;;  %v4240_v57 = vld [vmem:[#allocation5 + $0x140] sm:$0xff]  ;;  %v4321_v5 = vld [vmem:[#allocation5 + $0x3c8] sm:$0xff] }
 0xc3b   :  { %v4249_v13 = vld [vmem:[#allocation5 + $0x188] sm:$0xff]  ;;  %v4316_v52 = vld [vmem:[#allocation5 + $0x3a0] sm:$0xff] }
 0xc3c   :  { %3510 = vst [vmem:[#allocation10 + $0x20] sm:$0xff] %v3506_v59  ;;  %v4244_v59 = vld [vmem:[#allocation5 + $0x160] sm:$0xff]  ;;  %v7759_v61 = vpack.c.bf16 %v4253_v17, %v4249_v13 }
 0xc3d   :  { %v7757_v54 = vpack.c.bf16 %v4244_v59, %v4240_v57  ;;  %v4320_v59 = vld [vmem:[#allocation5 + $0x3c0] sm:$0xff] }
 0xc3e   :  { %v4324_v13 = vld [vmem:[#allocation5 + $0x3e0] sm:$0xff] }
 0xc3f   :  { %v7797_v17 = vpack.c.bf16 %v4324_v13, %v4320_v59  ;;  %v4206_v59 = vld [vmem:[#allocation5 + $0x30] sm:$0xff]  ;;  %v4211_v13 = vld [vmem:[#allocation5 + $0x58] sm:$0xff] }
 0xc79   :  { %v3782_v6 = vpop.f32.mrb[26].mxu0 }
 0xc7a   :  { %v3783_v31 = vadd.f32 %v3782_v6, %v3643_v50  ;;  %v3784_v14 = vpop.f32.mrb[27].mxu0  ;;  %v4260_v50 = vld [vmem:[#allocation5 + $0x1e0] sm:$0xff]  ;;  %v4269_v6 = vld [vmem:[#allocation5 + $0x228] sm:$0xff] }
 0xc7b   :  { %v3785_v7 = vadd.f32 %v3784_v14, %v3644_v2  ;;  %v4265_v2 = vld [vmem:[#allocation5 + $0x208] sm:$0xff] }
 0xc7c   :  { %8475 = vtanh.f32 %v3783_v31  ;;  %v7765_v31 = vpack.c.bf16 %v4260_v50, %v4256_v25  ;;  %v7767_v14 = vpack.c.bf16 %v4269_v6, %v4265_v2  ;;  %v4114_v25 = vld [vmem:[#allocation8 + $0x28] sm:$0xff]  ;;  %v4115_v2 = vld [vmem:[#allocation8 + $0x30] sm:$0xff]  ;;  %v4116_v6 = vld [vmem:[#allocation8 + $0x38] sm:$0xff] }
 0xc7d   :  { %v5623_v8 = vmul.f32 -1.442695, %v3785_v7  ;;  %v4264_v7 = vld [vmem:[#allocation5 + $0x200] sm:$0xff] }
 0xc7f   :  { %8477 = vpow2.f32 %v5623_v8  ;;  %v4268_v8 = vld [vmem:[#allocation5 + $0x220] sm:$0xff] }
 0xc86   :  { %v8476_v9 = vpop.eup %8475 }
 0xc87   :  { %v3807_v11 = vmul.f32 %v8476_v9, %v8472_v35  ;;  %v4273_v35 = vld [vmem:[#allocation5 + $0x248] sm:$0xff]  ;;  %v7769_v9 = vpack.c.bf16 %v4268_v8, %v4264_v7 }
 0xc88   :  { %v4118_v7 = vld [vmem:[#allocation8 + $0x48] sm:$0xff] }
 0xc89   :  { %v8478_v30 = vpop.eup %8477  ;;  %v9062_v12 = vadd.f32 %v3807_v11, %v3806_v24  ;;  %v7771_v24 = vpack.c.bf16 %v4277_v20, %v4273_v35  ;;  %v4272_v11 = vld [vmem:[#allocation5 + $0x240] sm:$0xff]  ;;  %v4119_v35 = vld [vmem:[#allocation8 + $0x50] sm:$0xff]  ;;  %v4120_v20 = vld [vmem:[#allocation8 + $0x58] sm:$0xff] }
 0xc8a   :  { %v3803_v18 = vadd.f32 1.0, %v8478_v30  ;;  %v4276_v30 = vld [vmem:[#allocation5 + $0x260] sm:$0xff] }
 0xc8b   :  { %8479 = vtanh.f32 %v9062_v12  ;;  %v7773_v22 = vpack.c.bf16 %v4276_v30, %v4272_v11  ;;  %v4122_v11 = vld [vmem:[#allocation8 + $0x68] sm:$0xff] }
 0xc8c   :  { %8481 = vrcp.f32 %v3803_v18  ;;  %v4281_v18 = vld [vmem:[#allocation5 + $0x288] sm:$0xff] }
 0xc8d   :  { %v7775_v23 = vpack.c.bf16 %v4285_v19, %v4281_v18  ;;  %v4123_v18 = vld [vmem:[#allocation8 + $0x70] sm:$0xff]  ;;  %v4124_v19 = vld [vmem:[#allocation8 + $0x78] sm:$0xff] }
 0xc95   :  { %v8480_v29 = vpop.eup %8479 }
 0xc96   :  { %v8482_v32 = vpop.eup %8481 }
 0xc97   :  { %v9065_v34 = vmul.f32 %v8482_v32, %v8480_v29  ;;  %v4284_v29 = vld [vmem:[#allocation5 + $0x2a0] sm:$0xff]  ;;  %v4289_v32 = vld [vmem:[#allocation5 + $0x2c8] sm:$0xff] }
 0xc99   :  { %4008 = vmatmul.mubr.f32.vlgmr.msra.gmra.mrb[26].mxu1 %v9065_v34  ;;  %4079 = vmatmul.mubr.f32.vlgmr.msra.gmra.mrb[28].mxu0 %v9065_v34 }
 0xc9a   :  { %7738 = vmatpush1.bf16.msra.mxu0 %v7737_v33  ;;  %4396 = vmatprep.mubr.f32.mxu0 %v9065_v34  ;;  %v4293_v33 = vld [vmem:[#allocation5 + $0x2e8] sm:$0xff] }
 0xc9b   :  { %7740 = vmatprep.subr.bf16.mxu0 %v7739_v36  ;;  %5982 = vmatprep.mubr.msk.f32.mxu1 %vm8693_vm0, %v8691_v0  ;;  %v7777_v36 = vpack.c.bf16 %v4284_v29, %v4280_v26  ;;  %v7779_v37 = vpack.c.bf16 %v4293_v33, %v4289_v32  ;;  %v7733_v26 = vpack.c.bf16 %v4124_v19, %v4123_v18  ;;  %v3939_v32 = vld [vmem:[#allocation7 + $0x20] sm:$0xff]  ;;  %v3940_v33 = vld [vmem:[#allocation7 + $0x28] sm:$0xff]  ;;  %v4238_v19 = vld [vmem:[#allocation5 + $0x130] sm:$0xff] }
 0xc9e   :  { %7742 = vmatpush1.bf16.msra.mxu0 %v7741_v38  ;;  %v4301_v38 = vld [vmem:[#allocation5 + $0x328] sm:$0xff] }
 0xc9f   :  { %7744 = vmatprep.subr.bf16.mxu0 %v7743_v44  ;;  %v7781_v44 = vpack.c.bf16 %v4292_v43, %v4288_v10  ;;  %v7783_v15 = vpack.c.bf16 %v4301_v38, %v4297_v3 }
 0xca2   :  { %7746 = vmatpush1.bf16.msra.mxu0 %v7745_v40  ;;  %v4309_v40 = vld [vmem:[#allocation5 + $0x368] sm:$0xff] }
 0xca3   :  { %7748 = vmatprep.subr.bf16.mxu0 %v7747_v49  ;;  %v7785_v49 = vpack.c.bf16 %v4300_v45, %v4296_v39  ;;  %v7787_v48 = vpack.c.bf16 %v4309_v40, %v4305_v47  ;;  %v3942_v39 = vld [vmem:[#allocation7 + $0x38] sm:$0xff]  ;;  %v3941_v47 = vld [vmem:[#allocation7 + $0x30] sm:$0xff] }
 0xca6   :  { %7750 = vmatpush1.bf16.msra.mxu0 %v7749_v16  ;;  %v4317_v16 = vld [vmem:[#allocation5 + $0x3a8] sm:$0xff] }
 0xca7   :  { %7752 = vmatprep.subr.bf16.mxu0 %v7751_v28  ;;  %v7789_v28 = vpack.c.bf16 %v4308_v42, %v4304_v55  ;;  %v7791_v46 = vpack.c.bf16 %v4317_v16, %v4313_v58 }
 0xcaa   :  { %7754 = vmatpush1.bf16.msra.mxu0 %v7753_v51  ;;  %v4325_v51 = vld [vmem:[#allocation5 + $0x3e8] sm:$0xff] }
 0xcab   :  { %7756 = vmatprep.subr.bf16.mxu0 %v7755_v56  ;;  %v7793_v56 = vpack.c.bf16 %v4316_v52, %v4312_v60  ;;  %v7795_v57 = vpack.c.bf16 %v4325_v51, %v4321_v5 }
 0xcae   :  { %7758 = vmatpush1.bf16.msra.mxu0 %v7757_v54  ;;  %v9072_v54 = vld [vmem:[#allocation2 + $0x30] sm:$0xff] }
 0xcaf   :  { %7760 = vmatprep.subr.bf16.mxu0 %v7759_v61  ;;  %v4109_v61 = vld [vmem:[#allocation8] sm:$0xff] }
 0xcb0   :  { %v7712_v21 = vpack.c.bf16 %v4110_v41, %v4109_v61 }
 0xcb2   :  { %7762 = vmatpush1.bf16.msra.mxu0 %v7761_v63  ;;  %7713 = vmatpush3.bf16.msra.mxu1 %v7712_v21  ;;  %v7715_v63 = vpack.c.bf16 %v4112_v27, %v4111_v62 }
 0xcb3   :  { %7764 = vmatprep.subr.bf16.mxu0 %v7763_v1  ;;  %7714 = vmatprep.subr.bf16.mxu1 %v8692_v4  ;;  %v4113_v1 = vld [vmem:[#allocation8 + $0x20] sm:$0xff] }
 0xcb4   :  { %v7718_v50 = vpack.c.bf16 %v4114_v25, %v4113_v1  ;;  %v4214_v1 = vld [vmem:[#allocation5 + $0x70] sm:$0xff]  ;;  %v4219_v25 = vld [vmem:[#allocation5 + $0x98] sm:$0xff] }
 0xcb6   :  { %7766 = vmatpush1.bf16.msra.mxu0 %v7765_v31  ;;  %7716 = vmatpush3.bf16.msra.mxu1 %v7715_v63  ;;  %v7721_v31 = vpack.c.bf16 %v4116_v6, %v4115_v2  ;;  %v4210_v63 = vld [vmem:[#allocation5 + $0x50] sm:$0xff] }
 0xcb7   :  { %7768 = vmatprep.subr.bf16.mxu0 %v7767_v14  ;;  %7717 = vmatprep.subr.bf16.mxu1 %v8692_v4  ;;  %v4117_v14 = vld [vmem:[#allocation8 + $0x40] sm:$0xff]  ;;  %v4218_v6 = vld [vmem:[#allocation5 + $0x90] sm:$0xff] }
 0xcb8   :  { %v7724_v8 = vpack.c.bf16 %v4118_v7, %v4117_v14  ;;  %v4227_v14 = vld [vmem:[#allocation5 + $0xd8] sm:$0xff] }
 0xcb9   :  { %v4231_v7 = vld [vmem:[#allocation5 + $0xf8] sm:$0xff] }
 0xcba   :  { %7770 = vmatpush1.bf16.msra.mxu0 %v7769_v9  ;;  %7719 = vmatpush3.bf16.msra.mxu1 %v7718_v50  ;;  %v7727_v9 = vpack.c.bf16 %v4120_v20, %v4119_v35  ;;  %v4223_v50 = vld [vmem:[#allocation5 + $0xb8] sm:$0xff]  ;;  %v7811_v35 = vpack.c.bf16 %v4231_v7, %v4227_v14  ;;  %v4226_v20 = vld [vmem:[#allocation5 + $0xd0] sm:$0xff] }
 0xcbb   :  { %7772 = vmatprep.subr.bf16.mxu0 %v7771_v24  ;;  %7720 = vmatprep.subr.bf16.mxu1 %v8692_v4  ;;  %v4121_v24 = vld [vmem:[#allocation8 + $0x60] sm:$0xff]  ;;  %v7807_v2 = vpack.c.bf16 %v4223_v50, %v4219_v25 }
 0xcbc   :  { %v7730_v30 = vpack.c.bf16 %v4122_v11, %v4121_v24  ;;  %v4235_v24 = vld [vmem:[#allocation5 + $0x118] sm:$0xff] }
 0xcbd   :  { %v4239_v11 = vld [vmem:[#allocation5 + $0x138] sm:$0xff] }
 0xcbe   :  { %7774 = vmatpush1.bf16.msra.mxu0 %v7773_v22  ;;  %7722 = vmatpush3.bf16.msra.mxu1 %v7721_v31  ;;  %v4203_v22 = vld [vmem:[#allocation5 + $0x18] sm:$0xff]  ;;  %v4222_v31 = vld [vmem:[#allocation5 + $0xb0] sm:$0xff]  ;;  %v7815_v18 = vpack.c.bf16 %v4239_v11, %v4235_v24 }
 0xcbf   :  { %7776 = vmatprep.subr.bf16.mxu0 %v7775_v23  ;;  %7723 = vmatprep.subr.bf16.mxu1 %v8692_v4  ;;  %v4207_v23 = vld [vmem:[#allocation5 + $0x38] sm:$0xff] }
 0xcc0   :  { %v7799_v29 = vpack.c.bf16 %v4207_v23, %v4203_v22  ;;  %v4243_v22 = vld [vmem:[#allocation5 + $0x158] sm:$0xff] }
 0xcc1   :  { %v4247_v23 = vld [vmem:[#allocation5 + $0x178] sm:$0xff] }
 0xcc2   :  { %7778 = vmatpush1.bf16.msra.mxu0 %v7777_v36  ;;  %7725 = vmatpush3.bf16.msra.mxu1 %v7724_v8  ;;  %v7809_v8 = vpack.c.bf16 %v4222_v31, %v4218_v6  ;;  %v4299_v6 = vld [vmem:[#allocation5 + $0x318] sm:$0xff] }
 0xcc3   :  { %7780 = vmatprep.subr.bf16.mxu0 %v7779_v37  ;;  %7726 = vmatprep.subr.bf16.mxu1 %v8692_v4  ;;  %v4303_v31 = vld [vmem:[#allocation5 + $0x338] sm:$0xff] }
 0xcc4   :  { %v7847_v7 = vpack.c.bf16 %v4303_v31, %v4299_v6  ;;  %v4518_v6 = vld [vmem:[#allocation5 + $0x4a0] sm:$0xff] }
 0xcc6   :  { %7782 = vmatpush1.bf16.msra.mxu0 %v7781_v44  ;;  %7728 = vmatpush3.bf16.msra.mxu1 %v7727_v9  ;;  %v4230_v9 = vld [vmem:[#allocation5 + $0xf0] sm:$0xff] }
 0xcc7   :  { %7784 = vmatprep.subr.bf16.mxu0 %v7783_v15  ;;  %7729 = vmatprep.subr.bf16.mxu1 %v8692_v4 }
 0xcca   :  { %7786 = vmatpush1.bf16.msra.mxu0 %v7785_v49  ;;  %7731 = vmatpush3.bf16.msra.mxu1 %v7730_v30  ;;  %v7813_v30 = vpack.c.bf16 %v4230_v9, %v4226_v20  ;;  %v4307_v20 = vld [vmem:[#allocation5 + $0x358] sm:$0xff] }
 0xccb   :  { %7788 = vmatprep.subr.bf16.mxu0 %v7787_v48  ;;  %7732 = vmatprep.subr.bf16.mxu1 %v8692_v4  ;;  %v4311_v9 = vld [vmem:[#allocation5 + $0x378] sm:$0xff] }
 0xccc   :  { %v7851_v11 = vpack.c.bf16 %v4311_v9, %v4307_v20  ;;  %v4527_v9 = vld [vmem:[#allocation5 + $0x4e8] sm:$0xff] }
 0xcce   :  { %7790 = vmatpush1.bf16.msra.mxu0 %v7789_v28  ;;  %7734 = vmatpush3.bf16.msra.mxu1 %v7733_v26 }
 0xccf   :  { %7792 = vmatprep.subr.bf16.mxu0 %v7791_v46  ;;  %7800 = vmatprep.subr.bf16.mxu1 %v7799_v29  ;;  %v7819_v29 = vpack.c.bf16 %v4247_v23, %v4243_v22 }
 0xcd2   :  { %7794 = vmatpush1.bf16.msra.mxu0 %v7793_v56 }
 0xcd3   :  { %7796 = vmatprep.subr.bf16.mxu0 %v7795_v57  ;;  %v4202_v57 = vld [vmem:[#allocation5 + $0x10] sm:$0xff] }
 0xcd4   :  { %v7801_v21 = vpack.c.bf16 %v4206_v59, %v4202_v57  ;;  %v4274_v57 = vld [vmem:[#allocation5 + $0x250] sm:$0xff] }
 0xcd5   :  { %v4278_v59 = vld [vmem:[#allocation5 + $0x270] sm:$0xff] }
 0xcd6   :  { %7798 = vmatpush1.bf16.msra.mxu0 %v7797_v17  ;;  %v4215_v17 = vld [vmem:[#allocation5 + $0x78] sm:$0xff] }
 0xcd7   :  { %v7803_v27 = vpack.c.bf16 %v4215_v17, %v4211_v13  ;;  %v4283_v13 = vld [vmem:[#allocation5 + $0x298] sm:$0xff] }
 0xcd8   :  { %v4287_v17 = vld [vmem:[#allocation5 + $0x2b8] sm:$0xff] }
 0xcd9   :  { %4397 = vmatmul.mubr.f32.vlgmr.msra.gmra.mrb[30].mxu0 %v9072_v54 }
 0xd6c   :  { %v4009_v36 = vpop.f32.mrb[26].mxu1  ;;  %v4080_v37 = vpop.f32.mrb[28].mxu0 }
 0xd6d   :  { %v4010_v10 = vadd.f32 %v4009_v36, %v3939_v32  ;;  %v4011_v43 = vpop.f32.mrb[27].mxu1  ;;  %v4082_v3 = vpop.f32.mrb[29].mxu0  ;;  %v4081_v49 = vadd.f32 %v4080_v37, %v3941_v47  ;;  %v4242_v32 = vld [vmem:[#allocation5 + $0x150] sm:$0xff]  ;;  %v4251_v36 = vld [vmem:[#allocation5 + $0x198] sm:$0xff] }
 0xd6e   :  { %v4012_v38 = vadd.f32 %v4011_v43, %v3940_v33  ;;  %v4083_v45 = vadd.f32 %v4082_v3, %v3942_v39  ;;  %v4246_v33 = vld [vmem:[#allocation5 + $0x170] sm:$0xff]  ;;  %v4255_v37 = vld [vmem:[#allocation5 + $0x1b8] sm:$0xff] }
 0xd6f   :  { %v5624_v44 = vmul.f32 -1.442695, %v4010_v10  ;;  %v7821_v43 = vpack.c.bf16 %v4246_v33, %v4242_v32  ;;  %v4259_v39 = vld [vmem:[#allocation5 + $0x1d8] sm:$0xff] }
 0xd70   :  { %v5625_v15 = vmul.f32 -1.442695, %v4012_v38  ;;  %v5626_v40 = vmul.f32 -1.442695, %v4083_v45  ;;  %v7823_v38 = vpack.c.bf16 %v4255_v37, %v4251_v36  ;;  %v4263_v45 = vld [vmem:[#allocation5 + $0x1f8] sm:$0xff] }
 0xd71   :  { %8483 = vpow2.f32 %v5624_v44  ;;  %v4250_v44 = vld [vmem:[#allocation5 + $0x190] sm:$0xff]  ;;  %v4323_v32 = vld [vmem:[#allocation5 + $0x3d8] sm:$0xff] }
 0xd72   :  { %8485 = vpow2.f32 %v5625_v15  ;;  %v4254_v15 = vld [vmem:[#allocation5 + $0x1b0] sm:$0xff]  ;;  %v4327_v33 = vld [vmem:[#allocation5 + $0x3f8] sm:$0xff] }
 0xd73   :  { %8487 = vpow2.f32 %v5626_v40  ;;  %v7825_v47 = vpack.c.bf16 %v4254_v15, %v4250_v44  ;;  %v7827_v40 = vpack.c.bf16 %v4263_v45, %v4259_v39  ;;  %v7859_v37 = vpack.c.bf16 %v4327_v33, %v4323_v32  ;;  %v4501_v15 = vld [vmem:[#allocation5 + $0x418] sm:$0xff]  ;;  %v4499_v45 = vld [vmem:[#allocation5 + $0x408] sm:$0xff] }
 0xd74   :  { %8489 = vtanh.f32 %v4081_v49  ;;  %v4258_v49 = vld [vmem:[#allocation5 + $0x1d0] sm:$0xff]  ;;  %v4505_v39 = vld [vmem:[#allocation5 + $0x438] sm:$0xff] }
 0xd7b   :  { %v8484_v48 = vpop.eup %8483 }
 0xd7c   :  { %v8486_v55 = vpop.eup %8485  ;;  %v4088_v42 = vadd.f32 1.0, %v8484_v48  ;;  %v4262_v48 = vld [vmem:[#allocation5 + $0x1f0] sm:$0xff] }
 0xd7d   :  { %v4094_v58 = vadd.f32 1.0, %v8486_v55  ;;  %v8488_v16 = vpop.eup %8487  ;;  %v4267_v55 = vld [vmem:[#allocation5 + $0x218] sm:$0xff] }
 0xd7e   :  { %8491 = vrcp.f32 %v4088_v42  ;;  %v8490_v28 = vpop.eup %8489  ;;  %v4101_v5 = vadd.f32 1.0, %v8488_v16  ;;  %v4271_v42 = vld [vmem:[#allocation5 + $0x238] sm:$0xff] }
 0xd7f   :  { %8493 = vrcp.f32 %v4094_v58  ;;  %v7829_v58 = vpack.c.bf16 %v4262_v48, %v4258_v49  ;;  %v7831_v16 = vpack.c.bf16 %v4271_v42, %v4267_v55  ;;  %v4500_v49 = vld [vmem:[#allocation5 + $0x410] sm:$0xff] }
 0xd80   :  { %8495 = vrcp.f32 %v4101_v5  ;;  %v4504_v48 = vld [vmem:[#allocation5 + $0x430] sm:$0xff] }
 0xd81   :  { %v7929_v42 = vpack.c.bf16 %v4504_v48, %v4500_v49 }
 0xd88   :  { %v8492_v46 = vpop.eup %8491 }
 0xd89   :  { %v8494_v60 = vpop.eup %8493  ;;  %v4105_v52 = vmul.f32 %v8492_v46, %v8490_v28  ;;  %v4266_v28 = vld [vmem:[#allocation5 + $0x210] sm:$0xff] }
 0xd8a   :  { %v4104_v51 = vmul.f32 %v8494_v60, %v9041_v53  ;;  %v8496_v61 = vpop.eup %8495  ;;  %v7805_v53 = vpack.c.bf16 %v4214_v1, %v4210_v63  ;;  %v4270_v46 = vld [vmem:[#allocation5 + $0x230] sm:$0xff]  ;;  %v4275_v60 = vld [vmem:[#allocation5 + $0x258] sm:$0xff] }
 0xd8b   :  { %v7833_v5 = vpack.c.bf16 %v4270_v46, %v4266_v28  ;;  %v4291_v63 = vld [vmem:[#allocation5 + $0x2d8] sm:$0xff] }
 0xd8c   :  { %v9083_v56 = vadd.f32 %v4105_v52, %v4104_v51  ;;  %v4279_v52 = vld [vmem:[#allocation5 + $0x278] sm:$0xff] }
 0xd8d   :  { %v7835_v51 = vpack.c.bf16 %v4279_v52, %v4275_v60  ;;  %v4295_v1 = vld [vmem:[#allocation5 + $0x2f8] sm:$0xff]  ;;  %v4507_v52 = vld [vmem:[#allocation5 + $0x448] sm:$0xff] }
 0xd8e   :  { %8497 = vtanh.f32 %v9083_v56  ;;  %v7843_v50 = vpack.c.bf16 %v4295_v1, %v4291_v63  ;;  %v4509_v28 = vld [vmem:[#allocation5 + $0x458] sm:$0xff]  ;;  %v4515_v63 = vld [vmem:[#allocation5 + $0x488] sm:$0xff] }
 0xd8f   :  { %v4513_v60 = vld [vmem:[#allocation5 + $0x478] sm:$0xff]  ;;  %v4519_v1 = vld [vmem:[#allocation5 + $0x4a8] sm:$0xff] }
 0xd98   :  { %v8498_v41 = vpop.eup %8497 }
 0xd99   :  { %v9086_v62 = vmul.f32 %v8498_v41, %v8496_v61  ;;  %v7837_v61 = vpack.c.bf16 %v4278_v59, %v4274_v57  ;;  %v7839_v41 = vpack.c.bf16 %v4287_v17, %v4283_v13  ;;  %v4512_v57 = vld [vmem:[#allocation5 + $0x470] sm:$0xff]  ;;  %v4506_v59 = vld [vmem:[#allocation5 + $0x440] sm:$0xff] }
 0xd9a   :  { %v4510_v17 = vld [vmem:[#allocation5 + $0x460] sm:$0xff] }
 0xd9b   :  { %5983 = vmatmul.mubr.f32.vlgmr.msra.gmra.mrb[28].mxu1 %v9086_v62  ;;  %4694 = vmatprep.mubr.f32.mxu0 %v9086_v62 }
 0xd9c   :  { %7802 = vmatpush1.bf16.msra.mxu1 %v7801_v21  ;;  %4467 = vmatprep.mubr.f32.mxu1 %v9065_v34  ;;  %v4234_v34 = vld [vmem:[#allocation5 + $0x110] sm:$0xff] }
 0xd9d   :  { %7804 = vmatprep.subr.bf16.mxu1 %v7803_v27  ;;  %v7817_v26 = vpack.c.bf16 %v4238_v19, %v4234_v34  ;;  %v4282_v21 = vld [vmem:[#allocation5 + $0x290] sm:$0xff]  ;;  %v4315_v34 = vld [vmem:[#allocation5 + $0x398] sm:$0xff] }
 0xd9e   :  { %v4286_v27 = vld [vmem:[#allocation5 + $0x2b0] sm:$0xff]  ;;  %v4319_v19 = vld [vmem:[#allocation5 + $0x3b8] sm:$0xff] }
 0xd9f   :  { %v7841_v25 = vpack.c.bf16 %v4286_v27, %v4282_v21  ;;  %v7855_v23 = vpack.c.bf16 %v4319_v19, %v4315_v34  ;;  %v7869_v21 = vpack.c.bf16 %v4510_v17, %v4506_v59  ;;  %v4526_v34 = vld [vmem:[#allocation5 + $0x4e0] sm:$0xff]  ;;  %v4533_v19 = vld [vmem:[#allocation5 + $0x518] sm:$0xff]  ;;  %v4552_v59 = vld [vmem:[#allocation5 + $0x5b0] sm:$0xff] }
 0xda0   :  { %7806 = vmatpush1.bf16.msra.mxu1 %v7805_v53  ;;  %v4290_v53 = vld [vmem:[#allocation5 + $0x2d0] sm:$0xff] }
 0xda1   :  { %7808 = vmatprep.subr.bf16.mxu1 %v7807_v2  ;;  %v4294_v2 = vld [vmem:[#allocation5 + $0x2f0] sm:$0xff] }
 0xda2   :  { %v7845_v14 = vpack.c.bf16 %v4294_v2, %v4290_v53  ;;  %v4520_v53 = vld [vmem:[#allocation5 + $0x4b0] sm:$0xff]  ;;  %v4514_v2 = vld [vmem:[#allocation5 + $0x480] sm:$0xff] }
 0xda4   :  { %7810 = vmatpush1.bf16.msra.mxu1 %v7809_v8  ;;  %v4298_v8 = vld [vmem:[#allocation5 + $0x310] sm:$0xff] }
 0xda5   :  { %7812 = vmatprep.subr.bf16.mxu1 %v7811_v35  ;;  %v4302_v35 = vld [vmem:[#allocation5 + $0x330] sm:$0xff] }
 0xda6   :  { %v7849_v24 = vpack.c.bf16 %v4302_v35, %v4298_v8  ;;  %v4523_v8 = vld [vmem:[#allocation5 + $0x4c8] sm:$0xff]  ;;  %v7873_v35 = vpack.c.bf16 %v4518_v6, %v4514_v2  ;;  %v4560_v2 = vld [vmem:[#allocation5 + $0x5f0] sm:$0xff]  ;;  %v4554_v6 = vld [vmem:[#allocation5 + $0x5c0] sm:$0xff] }
 0xda8   :  { %7814 = vmatpush1.bf16.msra.mxu1 %v7813_v30  ;;  %v4306_v30 = vld [vmem:[#allocation5 + $0x350] sm:$0xff] }
 0xda9   :  { %7816 = vmatprep.subr.bf16.mxu1 %v7815_v18  ;;  %v4310_v18 = vld [vmem:[#allocation5 + $0x370] sm:$0xff] }
 0xdaa   :  { %v7853_v22 = vpack.c.bf16 %v4310_v18, %v4306_v30  ;;  %v7875_v30 = vpack.c.bf16 %v4527_v9, %v4523_v8  ;;  %v4522_v18 = vld [vmem:[#allocation5 + $0x4c0] sm:$0xff]  ;;  %v4569_v8 = vld [vmem:[#allocation5 + $0x638] sm:$0xff] }
 0xdab   :  { %v7877_v32 = vpack.c.bf16 %v4526_v34, %v4522_v18  ;;  %v4568_v34 = vld [vmem:[#allocation5 + $0x630] sm:$0xff] }
 0xdac   :  { %v9091_v10 = vpop.f32.mrb[30].mxu0  ;;  %7818 = vmatpush1.bf16.msra.mxu1 %v7817_v26  ;;  %v4314_v26 = vld [vmem:[#allocation5 + $0x390] sm:$0xff] }
 0xdad   :  { %v9093_v3 = vpop.f32.mrb[31].mxu0  ;;  %7820 = vmatprep.subr.bf16.mxu1 %v7819_v29  ;;  %v4318_v29 = vld [vmem:[#allocation5 + $0x3b0] sm:$0xff] }
 0xdae   :  { %v7857_v36 = vpack.c.bf16 %v4318_v29, %v4314_v26  ;;  %v4535_v26 = vld [vmem:[#allocation5 + $0x528] sm:$0xff] }
 0xdb0   :  { %7822 = vmatpush1.bf16.msra.mxu1 %v7821_v43  ;;  %v4322_v43 = vld [vmem:[#allocation5 + $0x3d0] sm:$0xff] }
 0xdb1   :  { %7824 = vmatprep.subr.bf16.mxu1 %v7823_v38  ;;  %v4326_v38 = vld [vmem:[#allocation5 + $0x3f0] sm:$0xff] }
 0xdb2   :  { %v7861_v44 = vpack.c.bf16 %v4326_v38, %v4322_v43  ;;  %v4530_v43 = vld [vmem:[#allocation5 + $0x500] sm:$0xff] }
 0xdb4   :  { %7826 = vmatpush1.bf16.msra.mxu1 %v7825_v47  ;;  %v7927_v47 = vpack.c.bf16 %v4505_v39, %v4501_v15  ;;  %v4541_v15 = vld [vmem:[#allocation5 + $0x558] sm:$0xff] }
 0xdb5   :  { %7828 = vmatprep.subr.bf16.mxu1 %v7827_v40  ;;  %v4503_v40 = vld [vmem:[#allocation5 + $0x428] sm:$0xff]  ;;  %v4545_v39 = vld [vmem:[#allocation5 + $0x578] sm:$0xff] }
 0xdb6   :  { %v7863_v55 = vpack.c.bf16 %v4503_v40, %v4499_v45  ;;  %v4539_v45 = vld [vmem:[#allocation5 + $0x548] sm:$0xff]  ;;  %v7947_v48 = vpack.c.bf16 %v4545_v39, %v4541_v15  ;;  %v4570_v15 = vld [vmem:[#allocation5 + $0x640] sm:$0xff] }
 0xdb8   :  { %7830 = vmatpush1.bf16.msra.mxu1 %v7829_v58  ;;  %v4498_v58 = vld [vmem:[#allocation5 + $0x400] sm:$0xff]  ;;  %7864 = vmatprep.subr.bf16.mxu0 %v7863_v55  ;;  %v4540_v55 = vld [vmem:[#allocation5 + $0x550] sm:$0xff] }
 0xdb9   :  { %7832 = vmatprep.subr.bf16.mxu1 %v7831_v16  ;;  %v4502_v16 = vld [vmem:[#allocation5 + $0x420] sm:$0xff] }
 0xdba   :  { %v7865_v46 = vpack.c.bf16 %v4502_v16, %v4498_v58  ;;  %v4538_v58 = vld [vmem:[#allocation5 + $0x540] sm:$0xff] }
 0xdbc   :  { %7834 = vmatpush1.bf16.msra.mxu1 %v7833_v5  ;;  %v4511_v5 = vld [vmem:[#allocation5 + $0x468] sm:$0xff]  ;;  %7866 = vmatpush1.bf16.msra.mxu0 %v7865_v46  ;;  %v4549_v46 = vld [vmem:[#allocation5 + $0x598] sm:$0xff] }
 0xdbd   :  { %7836 = vmatprep.subr.bf16.mxu1 %v7835_v51  ;;  %v4508_v51 = vld [vmem:[#allocation5 + $0x450] sm:$0xff] }
 0xdbe   :  { %v7933_v13 = vpack.c.bf16 %v4512_v57, %v4508_v51  ;;  %v4548_v57 = vld [vmem:[#allocation5 + $0x590] sm:$0xff] }
 0xdc0   :  { %7838 = vmatpush1.bf16.msra.mxu1 %v7837_v61  ;;  %v4517_v61 = vld [vmem:[#allocation5 + $0x498] sm:$0xff] }
 0xdc1   :  { %7840 = vmatprep.subr.bf16.mxu1 %v7839_v41  ;;  %v4521_v41 = vld [vmem:[#allocation5 + $0x4b8] sm:$0xff] }
 0xdc2   :  { %v7935_v27 = vpack.c.bf16 %v4521_v41, %v4517_v61  ;;  %v4550_v61 = vld [vmem:[#allocation5 + $0x5a0] sm:$0xff]  ;;  %v4557_v41 = vld [vmem:[#allocation5 + $0x5d8] sm:$0xff] }
 0xdc4   :  { %7842 = vmatpush1.bf16.msra.mxu1 %v7841_v25  ;;  %v4516_v25 = vld [vmem:[#allocation5 + $0x490] sm:$0xff] }
 0xdc5   :  { %7844 = vmatprep.subr.bf16.mxu1 %v7843_v50  ;;  %v7871_v50 = vpack.c.bf16 %v4519_v1, %v4515_v63  ;;  %v7937_v31 = vpack.c.bf16 %v4520_v53, %v4516_v25  ;;  %v4559_v63 = vld [vmem:[#allocation5 + $0x5e8] sm:$0xff]  ;;  %v7953_v1 = vpack.c.bf16 %v4552_v59, %v4548_v57  ;;  %v4556_v53 = vld [vmem:[#allocation5 + $0x5d0] sm:$0xff] }
 0xdc6   :  { %v4587_v57 = vld [vmem:[#allocation5 + $0x6c8] sm:$0xff] }
 0xdc7   :  { %v4591_v59 = vld [vmem:[#allocation5 + $0x6e8] sm:$0xff] }
 0xdc8   :  { %7846 = vmatpush1.bf16.msra.mxu1 %v7845_v14  ;;  %v4525_v14 = vld [vmem:[#allocation5 + $0x4d8] sm:$0xff] }
 0xdc9   :  { %7848 = vmatprep.subr.bf16.mxu1 %v7847_v7  ;;  %v4529_v7 = vld [vmem:[#allocation5 + $0x4f8] sm:$0xff] }
 0xdca   :  { %v7939_v20 = vpack.c.bf16 %v4529_v7, %v4525_v14  ;;  %v4558_v14 = vld [vmem:[#allocation5 + $0x5e0] sm:$0xff]  ;;  %v4565_v7 = vld [vmem:[#allocation5 + $0x618] sm:$0xff] }
 0xdcb   :  { %v7959_v9 = vpack.c.bf16 %v4569_v8, %v4565_v7  ;;  %v4594_v7 = vld [vmem:[#allocation5 + $0x700] sm:$0xff] }
 0xdcc   :  { %7850 = vmatpush1.bf16.msra.mxu1 %v7849_v24  ;;  %v4524_v24 = vld [vmem:[#allocation5 + $0x4d0] sm:$0xff]  ;;  %v4598_v8 = vld [vmem:[#allocation5 + $0x720] sm:$0xff] }
 0xdcd   :  { %7852 = vmatprep.subr.bf16.mxu1 %v7851_v11  ;;  %v4528_v11 = vld [vmem:[#allocation5 + $0x4f0] sm:$0xff] }
 0xdce   :  { %v7941_v29 = vpack.c.bf16 %v4528_v11, %v4524_v24  ;;  %v4563_v24 = vld [vmem:[#allocation5 + $0x608] sm:$0xff] }
 0xdcf   :  { %v4567_v11 = vld [vmem:[#allocation5 + $0x628] sm:$0xff] }
 0xdd0   :  { %7854 = vmatpush1.bf16.msra.mxu1 %v7853_v22  ;;  %v4537_v22 = vld [vmem:[#allocation5 + $0x538] sm:$0xff]  ;;  %v7895_v18 = vpack.c.bf16 %v4567_v11, %v4563_v24 }
 0xdd1   :  { %7856 = vmatprep.subr.bf16.mxu1 %v7855_v23  ;;  %v4531_v23 = vld [vmem:[#allocation5 + $0x508] sm:$0xff]  ;;  %v7943_v33 = vpack.c.bf16 %v4537_v22, %v4533_v19  ;;  %v4562_v19 = vld [vmem:[#allocation5 + $0x600] sm:$0xff]  ;;  %v4609_v24 = vld [vmem:[#allocation5 + $0x778] sm:$0xff] }
 0xdd2   :  { %v7879_v38 = vpack.c.bf16 %v4535_v26, %v4531_v23  ;;  %v4566_v22 = vld [vmem:[#allocation5 + $0x620] sm:$0xff] }
 0xdd3   :  { %v7897_v26 = vpack.c.bf16 %v4566_v22, %v4562_v19  ;;  %v4608_v22 = vld [vmem:[#allocation5 + $0x770] sm:$0xff] }
 0xdd4   :  { %7858 = vmatpush1.bf16.msra.mxu1 %v7857_v36  ;;  %v4532_v36 = vld [vmem:[#allocation5 + $0x510] sm:$0xff] }
 0xdd5   :  { %7860 = vmatprep.subr.bf16.mxu1 %v7859_v37  ;;  %v4536_v37 = vld [vmem:[#allocation5 + $0x530] sm:$0xff] }
 0xdd6   :  { %v7945_v40 = vpack.c.bf16 %v4536_v37, %v4532_v36  ;;  %v4571_v36 = vld [vmem:[#allocation5 + $0x648] sm:$0xff] }
 0xdd7   :  { %v4575_v37 = vld [vmem:[#allocation5 + $0x668] sm:$0xff] }
 0xdd8   :  { %7862 = vmatpush1.bf16.msra.mxu1 %v7861_v44  ;;  %v4534_v44 = vld [vmem:[#allocation5 + $0x520] sm:$0xff] }
 0xdd9   :  { %7928 = vmatprep.subr.bf16.mxu1 %v7927_v47  ;;  %v4543_v47 = vld [vmem:[#allocation5 + $0x568] sm:$0xff]  ;;  %v7881_v49 = vpack.c.bf16 %v4534_v44, %v4530_v43  ;;  %v7899_v43 = vpack.c.bf16 %v4575_v37, %v4571_v36  ;;  %v4576_v44 = vld [vmem:[#allocation5 + $0x670] sm:$0xff]  ;;  %v4617_v36 = vld [vmem:[#allocation5 + $0x7b8] sm:$0xff] }
 0xdda   :  { %v7883_v16 = vpack.c.bf16 %v4543_v47, %v4539_v45  ;;  %v4574_v45 = vld [vmem:[#allocation5 + $0x660] sm:$0xff]  ;;  %v4611_v37 = vld [vmem:[#allocation5 + $0x788] sm:$0xff] }
 0xddb   :  { %4468 = vmatmul.mubr.f32.vlgmr.msra.gmra.mrb[30].mxu1 %v9072_v54  ;;  %v7931_v54 = vpack.c.bf16 %v4513_v60, %v4509_v28  ;;  %v4542_v28 = vld [vmem:[#allocation5 + $0x560] sm:$0xff]  ;;  %v4553_v60 = vld [vmem:[#allocation5 + $0x5b8] sm:$0xff]  ;;  %v7901_v47 = vpack.c.bf16 %v4574_v45, %v4570_v15  ;;  %v4616_v15 = vld [vmem:[#allocation5 + $0x7b0] sm:$0xff] }
 0xddc   :  { %4765 = vmatprep.mubr.f32.mxu1 %v9086_v62  ;;  %7930 = vmatpush1.bf16.msra.mxu1 %v7929_v42  ;;  %v7867_v62 = vpack.c.bf16 %v4511_v5, %v4507_v52  ;;  %v4544_v42 = vld [vmem:[#allocation5 + $0x570] sm:$0xff]  ;;  %v4547_v52 = vld [vmem:[#allocation5 + $0x588] sm:$0xff]  ;;  %v7951_v51 = vpack.c.bf16 %v4553_v60, %v4549_v46  ;;  %v4578_v46 = vld [vmem:[#allocation5 + $0x680] sm:$0xff] }
 0xddd   :  { %7932 = vmatprep.subr.bf16.mxu1 %v7931_v54  ;;  %v4551_v5 = vld [vmem:[#allocation5 + $0x5a8] sm:$0xff]  ;;  %v7949_v54 = vpack.c.bf16 %v4544_v42, %v4540_v55  ;;  %v4582_v60 = vld [vmem:[#allocation5 + $0x6a0] sm:$0xff] }
 0xdde   :  { %7868 = vmatprep.subr.bf16.mxu0 %v7867_v62  ;;  %v7885_v62 = vpack.c.bf16 %v4542_v28, %v4538_v58  ;;  %v7887_v17 = vpack.c.bf16 %v4551_v5, %v4547_v52  ;;  %v4579_v55 = vld [vmem:[#allocation5 + $0x688] sm:$0xff]  ;;  %v4580_v58 = vld [vmem:[#allocation5 + $0x690] sm:$0xff]  ;;  %v7905_v5 = vpack.c.bf16 %v4582_v60, %v4578_v46 }
 0xddf   :  { %7870 = vmatpush1.bf16.msra.mxu0 %v7869_v21  ;;  %v4561_v21 = vld [vmem:[#allocation5 + $0x5f8] sm:$0xff]  ;;  %v4583_v42 = vld [vmem:[#allocation5 + $0x6a8] sm:$0xff]  ;;  %v4584_v28 = vld [vmem:[#allocation5 + $0x6b0] sm:$0xff] }
 0xde0   :  { %7934 = vmatpush1.bf16.msra.mxu1 %v7933_v13  ;;  %7872 = vmatprep.subr.bf16.mxu0 %v7871_v50  ;;  %v4546_v13 = vld [vmem:[#allocation5 + $0x580] sm:$0xff]  ;;  %v7955_v50 = vpack.c.bf16 %v4561_v21, %v4557_v41  ;;  %v7969_v52 = vpack.c.bf16 %v4584_v28, %v4580_v58  ;;  %v4623_v58 = vld [vmem:[#allocation5 + $0x7e8] sm:$0xff]  ;;  %v4620_v46 = vld [vmem:[#allocation5 + $0x7d0] sm:$0xff] }
 0xde1   :  { %7936 = vmatprep.subr.bf16.mxu1 %v7935_v27  ;;  %v4555_v27 = vld [vmem:[#allocation5 + $0x5c8] sm:$0xff]  ;;  %v7889_v25 = vpack.c.bf16 %v4550_v61, %v4546_v13  ;;  %v4588_v13 = vld [vmem:[#allocation5 + $0x6d0] sm:$0xff]  ;;  %v4586_v41 = vld [vmem:[#allocation5 + $0x6c0] sm:$0xff] }
 0xde2   :  { %v4592_v61 = vld [vmem:[#allocation5 + $0x6f0] sm:$0xff]  ;;  %v4590_v21 = vld [vmem:[#allocation5 + $0x6e0] sm:$0xff] }
 0xde3   :  { %7874 = vmatpush1.bf16.msra.mxu0 %v7873_v35  ;;  %v7957_v35 = vpack.c.bf16 %v4560_v2, %v4556_v53  ;;  %v4595_v53 = vld [vmem:[#allocation5 + $0x708] sm:$0xff]  ;;  %v4624_v60 = vld [vmem:[#allocation5 + $0x7f0] sm:$0xff] }
 0xde4   :  { %7938 = vmatpush1.bf16.msra.mxu1 %v7937_v31  ;;  %7876 = vmatprep.subr.bf16.mxu0 %v7875_v30  ;;  %v7891_v31 = vpack.c.bf16 %v4559_v63, %v4555_v27  ;;  %v4564_v30 = vld [vmem:[#allocation5 + $0x610] sm:$0xff]  ;;  %v7973_v27 = vpack.c.bf16 %v4592_v61, %v4588_v13  ;;  %v7909_v63 = vpack.c.bf16 %v4590_v21, %v4586_v41  ;;  %v4599_v2 = vld [vmem:[#allocation5 + $0x728] sm:$0xff]  ;;  %v4125_v13 = vld [vmem:[%s9227_s4] sm:$0xff] }
 0xde5   :  { %7940 = vmatprep.subr.bf16.mxu1 %v7939_v20  ;;  %v7893_v20 = vpack.c.bf16 %v4558_v14, %v4554_v6  ;;  %v7961_v23 = vpack.c.bf16 %v4568_v34, %v4564_v30  ;;  %v4596_v6 = vld [vmem:[#allocation5 + $0x710] sm:$0xff]  ;;  %v4603_v30 = vld [vmem:[#allocation5 + $0x748] sm:$0xff]  ;;  %v4328_v21 = vld [vmem:[#allocation7] sm:$0xff] }
 0xde6   :  { %v4600_v14 = vld [vmem:[#allocation5 + $0x730] sm:$0xff] }
 0xde7   :  { %7878 = vmatpush1.bf16.msra.mxu0 %v7877_v32  ;;  %v4577_v32 = vld [vmem:[#allocation5 + $0x678] sm:$0xff]  ;;  %v4604_v34 = vld [vmem:[#allocation5 + $0x750] sm:$0xff] }
 0xde8   :  { %7942 = vmatpush1.bf16.msra.mxu1 %v7941_v29  ;;  %7880 = vmatprep.subr.bf16.mxu0 %v7879_v38  ;;  %v4573_v29 = vld [vmem:[#allocation5 + $0x658] sm:$0xff]  ;;  %v4572_v38 = vld [vmem:[#allocation5 + $0x650] sm:$0xff] }
 0xde9   :  { %7944 = vmatprep.subr.bf16.mxu1 %v7943_v33  ;;  %v7963_v33 = vpack.c.bf16 %v4577_v32, %v4573_v29  ;;  %v7965_v39 = vpack.c.bf16 %v4576_v44, %v4572_v38  ;;  %v7981_v29 = vpack.c.bf16 %v4608_v22, %v4604_v34  ;;  %v4615_v38 = vld [vmem:[#allocation5 + $0x7a8] sm:$0xff]  ;;  %v4612_v44 = vld [vmem:[#allocation5 + $0x790] sm:$0xff] }
 0xdea   :  { %v7985_v45 = vpack.c.bf16 %v4616_v15, %v4612_v44  ;;  %v4895_v44 = vld [vmem:[#allocation5 + $0x40] sm:$0xff]  ;;  %v4904_v15 = vld [vmem:[#allocation5 + $0x88] sm:$0xff] }
 0xdeb   :  { %7882 = vmatpush1.bf16.msra.mxu0 %v7881_v49  ;;  %v4585_v49 = vld [vmem:[#allocation5 + $0x6b8] sm:$0xff] }
 0xdec   :  { %7946 = vmatpush1.bf16.msra.mxu1 %v7945_v40  ;;  %7884 = vmatprep.subr.bf16.mxu0 %v7883_v16  ;;  %v4581_v40 = vld [vmem:[#allocation5 + $0x698] sm:$0xff]  ;;  %v7903_v16 = vpack.c.bf16 %v4583_v42, %v4579_v55  ;;  %v4619_v42 = vld [vmem:[#allocation5 + $0x7c8] sm:$0xff] }
 0xded   :  { %7948 = vmatprep.subr.bf16.mxu1 %v7947_v48  ;;  %v7967_v48 = vpack.c.bf16 %v4585_v49, %v4581_v40  ;;  %v4614_v40 = vld [vmem:[#allocation5 + $0x7a0] sm:$0xff]  ;;  %v4621_v49 = vld [vmem:[#allocation5 + $0x7d8] sm:$0xff]  ;;  %v7923_v28 = vpack.c.bf16 %v4623_v58, %v4619_v42 }
 0xdee   :  { %v4625_v55 = vld [vmem:[#allocation5 + $0x7f8] sm:$0xff] }
 0xdef   :  { %7886 = vmatpush1.bf16.msra.mxu0 %v7885_v62  ;;  %v4593_v62 = vld [vmem:[#allocation5 + $0x6f8] sm:$0xff] }
 0xdf0   :  { %7950 = vmatpush1.bf16.msra.mxu1 %v7949_v54  ;;  %7888 = vmatprep.subr.bf16.mxu0 %v7887_v17  ;;  %v4589_v54 = vld [vmem:[#allocation5 + $0x6d8] sm:$0xff]  ;;  %v7907_v17 = vpack.c.bf16 %v4591_v59, %v4587_v57 }
 0xdf1   :  { %7952 = vmatprep.subr.bf16.mxu1 %v7951_v51  ;;  %v7971_v51 = vpack.c.bf16 %v4593_v62, %v4589_v54  ;;  %v4888_v54 = vld [vmem:[#allocation5 + $0x8] sm:$0xff] }
 0xdf2   :  { %v4892_v62 = vld [vmem:[#allocation5 + $0x28] sm:$0xff] }
 0xdf3   :  { %7890 = vmatpush1.bf16.msra.mxu0 %v7889_v25  ;;  %v4601_v25 = vld [vmem:[#allocation5 + $0x738] sm:$0xff]  ;;  %v8015_v59 = vpack.c.bf16 %v4892_v62, %v4888_v54  ;;  %v4919_v54 = vld [vmem:[#allocation5 + $0x100] sm:$0xff] }
 0xdf4   :  { %7954 = vmatpush1.bf16.msra.mxu1 %v7953_v1  ;;  %7892 = vmatprep.subr.bf16.mxu0 %v7891_v31  ;;  %v4597_v1 = vld [vmem:[#allocation5 + $0x718] sm:$0xff]  ;;  %v7911_v31 = vpack.c.bf16 %v4599_v2, %v4595_v53  ;;  %v4923_v62 = vld [vmem:[#allocation5 + $0x120] sm:$0xff] }
 0xdf5   :  { %7956 = vmatprep.subr.bf16.mxu1 %v7955_v50  ;;  %v7975_v50 = vpack.c.bf16 %v4601_v25, %v4597_v1 }
 0xdf7   :  { %7894 = vmatpush1.bf16.msra.mxu0 %v7893_v20  ;;  %v7913_v20 = vpack.c.bf16 %v4598_v8, %v4594_v7  ;;  %v4331_v7 = vld [vmem:[#allocation7 + $0x18] sm:$0xff] }
 0xdf8   :  { %7958 = vmatpush1.bf16.msra.mxu1 %v7957_v35  ;;  %7896 = vmatprep.subr.bf16.mxu0 %v7895_v18  ;;  %v7977_v35 = vpack.c.bf16 %v4600_v14, %v4596_v6  ;;  %v4607_v18 = vld [vmem:[#allocation5 + $0x768] sm:$0xff]  ;;  %v4330_v14 = vld [vmem:[#allocation7 + $0x10] sm:$0xff] }
 0xdf9   :  { %7960 = vmatprep.subr.bf16.mxu1 %v7959_v9  ;;  %v4605_v9 = vld [vmem:[#allocation5 + $0x758] sm:$0xff]  ;;  %v7915_v19 = vpack.c.bf16 %v4607_v18, %v4603_v30 }
 0xdfa   :  { %v7979_v11 = vpack.c.bf16 %v4609_v24, %v4605_v9 }
 0xdfb   :  { %7898 = vmatpush1.bf16.msra.mxu0 %v7897_v26  ;;  %v4606_v26 = vld [vmem:[#allocation5 + $0x760] sm:$0xff] }
 0xdfc   :  { %7962 = vmatpush1.bf16.msra.mxu1 %v7961_v23  ;;  %7900 = vmatprep.subr.bf16.mxu0 %v7899_v43  ;;  %v4602_v23 = vld [vmem:[#allocation5 + $0x740] sm:$0xff] }
 0xdfd   :  { %7964 = vmatprep.subr.bf16.mxu1 %v7963_v33  ;;  %v7917_v32 = vpack.c.bf16 %v4606_v26, %v4602_v23  ;;  %v4613_v33 = vld [vmem:[#allocation5 + $0x798] sm:$0xff]  ;;  %v4887_v23 = vld [vmem:[#allocation5] sm:$0xff] }
 0xdfe   :  { %v7983_v43 = vpack.c.bf16 %v4617_v36, %v4613_v33  ;;  %v4891_v26 = vld [vmem:[#allocation5 + $0x20] sm:$0xff] }
 0xdff   :  { %7902 = vmatpush1.bf16.msra.mxu0 %v7901_v47  ;;  %v4610_v47 = vld [vmem:[#allocation5 + $0x780] sm:$0xff] }
 0xe00   :  { %7966 = vmatpush1.bf16.msra.mxu1 %v7965_v39  ;;  %7904 = vmatprep.subr.bf16.mxu0 %v7903_v16  ;;  %v7919_v39 = vpack.c.bf16 %v4615_v38, %v4611_v37  ;;  %v7987_v16 = vpack.c.bf16 %v4625_v55, %v4621_v49  ;;  %v8017_v37 = vpack.c.bf16 %v4891_v26, %v4887_v23  ;;  %v4907_v49 = vld [vmem:[#allocation5 + $0xa0] sm:$0xff]  ;;  %v4916_v55 = vld [vmem:[#allocation5 + $0xe8] sm:$0xff] }
 0xe01   :  { %7968 = vmatprep.subr.bf16.mxu1 %v7967_v48  ;;  %v7921_v48 = vpack.c.bf16 %v4614_v40, %v4610_v47  ;;  %v4903_v40 = vld [vmem:[#allocation5 + $0x80] sm:$0xff]  ;;  %v4972_v23 = vld [vmem:[#allocation5 + $0x2a8] sm:$0xff] }
 0xe02   :  { %v8025_v42 = vpack.c.bf16 %v4907_v49, %v4903_v40  ;;  %v4983_v49 = vld [vmem:[#allocation5 + $0x300] sm:$0xff] }
 0xe03   :  { %7906 = vmatpush1.bf16.msra.mxu0 %v7905_v5  ;;  %v4622_v5 = vld [vmem:[#allocation5 + $0x7e0] sm:$0xff] }
 0xe04   :  { %7970 = vmatpush1.bf16.msra.mxu1 %v7969_v52  ;;  %7908 = vmatprep.subr.bf16.mxu0 %v7907_v17  ;;  %v4618_v52 = vld [vmem:[#allocation5 + $0x7c0] sm:$0xff] }
 0xe05   :  { %7972 = vmatprep.subr.bf16.mxu1 %v7971_v51  ;;  %v7989_v51 = vpack.c.bf16 %v4624_v60, %v4620_v46  ;;  %v7925_v57 = vpack.c.bf16 %v4622_v5, %v4618_v52  ;;  %v4920_v46 = vld [vmem:[#allocation5 + $0x108] sm:$0xff] }
 0xe06   :  { %v4924_v60 = vld [vmem:[#allocation5 + $0x128] sm:$0xff] }
 0xe07   :  { %7910 = vmatpush1.bf16.msra.mxu0 %v7909_v63  ;;  %v4399_v63 = vadd.f32 %v9091_v10, %v4328_v21  ;;  %v8031_v5 = vpack.c.bf16 %v4924_v60, %v4920_v46  ;;  %v4940_v21 = vld [vmem:[#allocation5 + $0x1a8] sm:$0xff]  ;;  %v4995_v46 = vld [vmem:[#allocation5 + $0x360] sm:$0xff] }
 0xe08   :  { %7974 = vmatpush1.bf16.msra.mxu1 %v7973_v27  ;;  %7912 = vmatprep.subr.bf16.mxu0 %v7911_v31  ;;  %v4329_v27 = vld [vmem:[#allocation7 + $0x8] sm:$0xff] }
 0xe09   :  { %7976 = vmatprep.subr.bf16.mxu1 %v7975_v50  ;;  %v4401_v1 = vadd.f32 %v9093_v3, %v4329_v27  ;;  %v5627_v25 = vmul.f32 -1.442695, %v4399_v63  ;;  %v5000_v60 = vld [vmem:[#allocation5 + $0x388] sm:$0xff] }
 0xe0b   :  { %7914 = vmatpush1.bf16.msra.mxu0 %v7913_v20  ;;  %v5628_v50 = vmul.f32 -1.442695, %v4401_v1  ;;  %8499 = vpow2.f32 %v5627_v25  ;;  %v4935_v1 = vld [vmem:[#allocation5 + $0x180] sm:$0xff] }
 0xe0c   :  { %7978 = vmatpush1.bf16.msra.mxu1 %v7977_v35  ;;  %7916 = vmatprep.subr.bf16.mxu0 %v7915_v19  ;;  %v4939_v25 = vld [vmem:[#allocation5 + $0x1a0] sm:$0xff] }
 0xe0d   :  { %7980 = vmatprep.subr.bf16.mxu1 %v7979_v11  ;;  %8501 = vpow2.f32 %v5628_v50  ;;  %v4944_v50 = vld [vmem:[#allocation5 + $0x1c8] sm:$0xff] }
 0xe0f   :  { %7918 = vmatpush1.bf16.msra.mxu0 %v7917_v32  ;;  %v4900_v32 = vld [vmem:[#allocation5 + $0x68] sm:$0xff] }
 0xe10   :  { %7982 = vmatpush1.bf16.msra.mxu1 %v7981_v29  ;;  %7920 = vmatprep.subr.bf16.mxu0 %v7919_v39  ;;  %v4896_v29 = vld [vmem:[#allocation5 + $0x48] sm:$0xff] }
 0xe11   :  { %7984 = vmatprep.subr.bf16.mxu1 %v7983_v43  ;;  %v8019_v38 = vpack.c.bf16 %v4900_v32, %v4896_v29  ;;  %v4908_v39 = vld [vmem:[#allocation5 + $0xa8] sm:$0xff]  ;;  %v4967_v32 = vld [vmem:[#allocation5 + $0x280] sm:$0xff] }
 0xe12   :  { %v8023_v47 = vpack.c.bf16 %v4908_v39, %v4904_v15  ;;  %v4979_v15 = vld [vmem:[#allocation5 + $0x2e0] sm:$0xff]  ;;  %v4984_v39 = vld [vmem:[#allocation5 + $0x308] sm:$0xff] }
 0xe13   :  { %7922 = vmatpush1.bf16.msra.mxu0 %v7921_v48  ;;  %v4912_v48 = vld [vmem:[#allocation5 + $0xc8] sm:$0xff] }
 0xe14   :  { %7986 = vmatpush1.bf16.msra.mxu1 %v7985_v45  ;;  %7924 = vmatprep.subr.bf16.mxu0 %v7923_v28  ;;  %v8027_v58 = vpack.c.bf16 %v4916_v55, %v4912_v48  ;;  %v4915_v28 = vld [vmem:[#allocation5 + $0xe0] sm:$0xff]  ;;  %v4992_v55 = vld [vmem:[#allocation5 + $0x348] sm:$0xff] }
 0xe15   :  { %7988 = vmatprep.subr.bf16.mxu1 %v7987_v16  ;;  %v8500_v53 = vpop.eup %8499  ;;  %v4911_v16 = vld [vmem:[#allocation5 + $0xc0] sm:$0xff] }
 0xe16   :  { %v4477_v6 = vadd.f32 1.0, %v8500_v53  ;;  %v8029_v52 = vpack.c.bf16 %v4915_v28, %v4911_v16  ;;  %v4948_v53 = vld [vmem:[#allocation5 + $0x1e8] sm:$0xff]  ;;  %v4987_v48 = vld [vmem:[#allocation5 + $0x320] sm:$0xff] }
 0xe17   :  { %7926 = vmatpush1.bf16.msra.mxu0 %v7925_v57  ;;  %v8502_v2 = vpop.eup %8501  ;;  %v4932_v57 = vld [vmem:[#allocation5 + $0x168] sm:$0xff]  ;;  %v4991_v28 = vld [vmem:[#allocation5 + $0x340] sm:$0xff] }
 0xe18   :  { %7990 = vmatpush1.bf16.msra.mxu1 %v7989_v51  ;;  %7991 = vmatprep.subr.bf16.mxu0 %v8692_v4  ;;  %v4483_v31 = vadd.f32 1.0, %v8502_v2  ;;  %8503 = vrcp.f32 %v4477_v6  ;;  %v4928_v51 = vld [vmem:[#allocation5 + $0x148] sm:$0xff]  ;;  %v8041_v2 = vpack.c.bf16 %v4939_v25, %v4935_v1  ;;  %v8043_v6 = vpack.c.bf16 %v4948_v53, %v4944_v50  ;;  %v4798_v50 = vld [vmem:[#allocation8 + $0x10] sm:$0xff]  ;;  %v4799_v53 = vld [vmem:[#allocation8 + $0x18] sm:$0xff] }
 0xe19   :  { %8016 = vmatprep.subr.bf16.mxu1 %v8015_v59  ;;  %v8033_v59 = vpack.c.bf16 %v4923_v62, %v4919_v54  ;;  %v4999_v62 = vld [vmem:[#allocation5 + $0x380] sm:$0xff]  ;;  %v4797_v1 = vld [vmem:[#allocation8 + $0x8] sm:$0xff] }
 0xe1a   :  { %8505 = vrcp.f32 %v4483_v31  ;;  %v4943_v31 = vld [vmem:[#allocation5 + $0x1c0] sm:$0xff] }
 0xe22   :  { %v8504_v3 = vpop.eup %8503 }
 0xe24   :  { %v8506_v24 = vpop.eup %8505 }
 0xe25   :  { %v4493_v30 = vmul.f32 %v8506_v24, %v9062_v12  ;;  %v4899_v12 = vld [vmem:[#allocation5 + $0x60] sm:$0xff]  ;;  %v4964_v24 = vld [vmem:[#allocation5 + $0x268] sm:$0xff] }
 0xe26   :  { %v8021_v45 = vpack.c.bf16 %v4899_v12, %v4895_v44  ;;  %v4975_v12 = vld [vmem:[#allocation5 + $0x2c0] sm:$0xff] }
 0xe6e   :  { %v4192_v17 = vpop.f32.mrb[28].mxu1 }
 0xe6f   :  { %v4193_v61 = vadd.f32 %v4192_v17, %v4125_v13  ;;  %v5984_v41 = vpop.f32.mrb[29].mxu1  ;;  %v8035_v13 = vpack.c.bf16 %v4932_v57, %v4928_v51  ;;  %v4927_v17 = vld [vmem:[#allocation5 + $0x140] sm:$0xff]  ;;  %v5008_v57 = vld [vmem:[#allocation5 + $0x3c8] sm:$0xff] }
 0xe70   :  { %v4936_v41 = vld [vmem:[#allocation5 + $0x188] sm:$0xff]  ;;  %v5003_v51 = vld [vmem:[#allocation5 + $0x3a0] sm:$0xff] }
 0xe71   :  { %4197 = vst [vmem:[#allocation10 + $0x28] sm:$0xff] %v4193_v61  ;;  %v4931_v61 = vld [vmem:[#allocation5 + $0x160] sm:$0xff]  ;;  %v8039_v63 = vpack.c.bf16 %v4940_v21, %v4936_v41 }
 0xe72   :  { %v8037_v27 = vpack.c.bf16 %v4931_v61, %v4927_v17  ;;  %v5007_v61 = vld [vmem:[#allocation5 + $0x3c0] sm:$0xff] }
 0xe73   :  { %v5011_v41 = vld [vmem:[#allocation5 + $0x3e0] sm:$0xff] }
 0xe74   :  { %v8077_v21 = vpack.c.bf16 %v5011_v41, %v5007_v61  ;;  %v4893_v61 = vld [vmem:[#allocation5 + $0x30] sm:$0xff]  ;;  %v4898_v41 = vld [vmem:[#allocation5 + $0x58] sm:$0xff] }
 0xeae   :  { %v4469_v8 = vpop.f32.mrb[30].mxu1 }
 0xeaf   :  { %v4470_v35 = vadd.f32 %v4469_v8, %v4330_v14  ;;  %v4471_v20 = vpop.f32.mrb[31].mxu1  ;;  %v4947_v14 = vld [vmem:[#allocation5 + $0x1e0] sm:$0xff]  ;;  %v4956_v8 = vld [vmem:[#allocation5 + $0x228] sm:$0xff] }
 0xeb0   :  { %v4472_v9 = vadd.f32 %v4471_v20, %v4331_v7  ;;  %v4952_v7 = vld [vmem:[#allocation5 + $0x208] sm:$0xff] }
 0xeb1   :  { %8507 = vtanh.f32 %v4470_v35  ;;  %v8045_v35 = vpack.c.bf16 %v4947_v14, %v4943_v31  ;;  %v8047_v20 = vpack.c.bf16 %v4956_v8, %v4952_v7  ;;  %v4801_v31 = vld [vmem:[#allocation8 + $0x28] sm:$0xff]  ;;  %v4802_v7 = vld [vmem:[#allocation8 + $0x30] sm:$0xff]  ;;  %v4803_v8 = vld [vmem:[#allocation8 + $0x38] sm:$0xff] }
 0xeb2   :  { %v5629_v10 = vmul.f32 -1.442695, %v4472_v9  ;;  %v4951_v9 = vld [vmem:[#allocation5 + $0x200] sm:$0xff] }
 0xeb4   :  { %8509 = vpow2.f32 %v5629_v10  ;;  %v4955_v10 = vld [vmem:[#allocation5 + $0x220] sm:$0xff] }
 0xebb   :  { %v8508_v11 = vpop.eup %8507 }
 0xebc   :  { %v4494_v18 = vmul.f32 %v8508_v11, %v8504_v3  ;;  %v4960_v3 = vld [vmem:[#allocation5 + $0x248] sm:$0xff]  ;;  %v8049_v11 = vpack.c.bf16 %v4955_v10, %v4951_v9 }
 0xebd   :  { %v4805_v9 = vld [vmem:[#allocation8 + $0x48] sm:$0xff] }
 0xebe   :  { %v8510_v34 = vpop.eup %8509  ;;  %v9104_v19 = vadd.f32 %v4494_v18, %v4493_v30  ;;  %v8051_v30 = vpack.c.bf16 %v4964_v24, %v4960_v3  ;;  %v4959_v18 = vld [vmem:[#allocation5 + $0x240] sm:$0xff]  ;;  %v4806_v3 = vld [vmem:[#allocation8 + $0x50] sm:$0xff]  ;;  %v4807_v24 = vld [vmem:[#allocation8 + $0x58] sm:$0xff] }
 0xebf   :  { %v4490_v22 = vadd.f32 1.0, %v8510_v34  ;;  %v4963_v34 = vld [vmem:[#allocation5 + $0x260] sm:$0xff] }
 0xec0   :  { %8511 = vtanh.f32 %v9104_v19  ;;  %v8053_v26 = vpack.c.bf16 %v4963_v34, %v4959_v18  ;;  %v4809_v18 = vld [vmem:[#allocation8 + $0x68] sm:$0xff] }
 0xec1   :  { %8513 = vrcp.f32 %v4490_v22  ;;  %v4968_v22 = vld [vmem:[#allocation5 + $0x288] sm:$0xff] }
 0xec2   :  { %v8055_v29 = vpack.c.bf16 %v4972_v23, %v4968_v22  ;;  %v4810_v22 = vld [vmem:[#allocation8 + $0x70] sm:$0xff]  ;;  %v4811_v23 = vld [vmem:[#allocation8 + $0x78] sm:$0xff] }
 0xeca   :  { %v8512_v33 = vpop.eup %8511 }
 0xecb   :  { %v8514_v36 = vpop.eup %8513 }
 0xecc   :  { %v9107_v43 = vmul.f32 %v8514_v36, %v8512_v33  ;;  %v4971_v33 = vld [vmem:[#allocation5 + $0x2a0] sm:$0xff]  ;;  %v4976_v36 = vld [vmem:[#allocation5 + $0x2c8] sm:$0xff] }
 0xece   :  { %4695 = vmatmul.mubr.f32.vlgmr.msra.gmra.mrb[32].mxu0 %v9107_v43  ;;  %4766 = vmatmul.mubr.f32.vlgmr.msra.gmra.mrb[32].mxu1 %v9107_v43 }
 0xecf   :  { %8018 = vmatpush1.bf16.msra.mxu1 %v8017_v37  ;;  %5083 = vmatprep.mubr.f32.mxu1 %v9107_v43  ;;  %v4980_v37 = vld [vmem:[#allocation5 + $0x2e8] sm:$0xff] }
 0xed0   :  { %8020 = vmatprep.subr.bf16.mxu1 %v8019_v38  ;;  %6017 = vmatprep.mubr.msk.f32.mxu0 %vm8693_vm0, %v8691_v0  ;;  %v8057_v38 = vpack.c.bf16 %v4971_v33, %v4967_v32  ;;  %v8059_v44 = vpack.c.bf16 %v4980_v37, %v4976_v36  ;;  %v9144_v32 = vpack.c.bf16 %v4811_v23, %v4810_v22  ;;  %v9148_v36 = vld [vmem:[#allocation7 + $0x20] sm:$0xff]  ;;  %v9150_v37 = vld [vmem:[#allocation7 + $0x28] sm:$0xff] }
 0xed3   :  { %8022 = vmatpush1.bf16.msra.mxu1 %v8021_v45  ;;  %v4988_v45 = vld [vmem:[#allocation5 + $0x328] sm:$0xff] }
 0xed4   :  { %8024 = vmatprep.subr.bf16.mxu1 %v8023_v47  ;;  %v8061_v47 = vpack.c.bf16 %v4979_v15, %v4975_v12  ;;  %v8063_v40 = vpack.c.bf16 %v4988_v45, %v4984_v39 }
 0xed7   :  { %8026 = vmatpush1.bf16.msra.mxu1 %v8025_v42  ;;  %v4996_v42 = vld [vmem:[#allocation5 + $0x368] sm:$0xff] }
 0xed8   :  { %8028 = vmatprep.subr.bf16.mxu1 %v8027_v58  ;;  %v8065_v58 = vpack.c.bf16 %v4987_v48, %v4983_v49  ;;  %v8067_v16 = vpack.c.bf16 %v4996_v42, %v4992_v55  ;;  %v9154_v49 = vld [vmem:[#allocation7 + $0x38] sm:$0xff]  ;;  %v9157_v55 = vld [vmem:[#allocation7 + $0x30] sm:$0xff] }
 0xedb   :  { %8030 = vmatpush1.bf16.msra.mxu1 %v8029_v52  ;;  %v5004_v52 = vld [vmem:[#allocation5 + $0x3a8] sm:$0xff] }
 0xedc   :  { %8032 = vmatprep.subr.bf16.mxu1 %v8031_v5  ;;  %v8069_v5 = vpack.c.bf16 %v4995_v46, %v4991_v28  ;;  %v8071_v54 = vpack.c.bf16 %v5004_v52, %v5000_v60 }
 0xedf   :  { %8034 = vmatpush1.bf16.msra.mxu1 %v8033_v59  ;;  %v5012_v59 = vld [vmem:[#allocation5 + $0x3e8] sm:$0xff] }
 0xee0   :  { %8036 = vmatprep.subr.bf16.mxu1 %v8035_v13  ;;  %v8073_v13 = vpack.c.bf16 %v5003_v51, %v4999_v62  ;;  %v8075_v17 = vpack.c.bf16 %v5012_v59, %v5008_v57 }
 0xee3   :  { %8038 = vmatpush1.bf16.msra.mxu1 %v8037_v27  ;;  %v9114_v27 = vld [vmem:[#allocation2 + $0x38] sm:$0xff] }
 0xee4   :  { %8040 = vmatprep.subr.bf16.mxu1 %v8039_v63  ;;  %v4796_v63 = vld [vmem:[#allocation8] sm:$0xff] }
 0xee5   :  { %v9117_v25 = vpack.c.bf16 %v4797_v1, %v4796_v63 }
 0xee7   :  { %8042 = vmatpush1.bf16.msra.mxu1 %v8041_v2  ;;  %7993 = vmatpush3.bf16.msra.mxu0 %v9117_v25  ;;  %v9121_v2 = vpack.c.bf16 %v4799_v53, %v4798_v50 }
 0xee8   :  { %8044 = vmatprep.subr.bf16.mxu1 %v8043_v6  ;;  %7994 = vmatprep.subr.bf16.mxu0 %v8692_v4  ;;  %v4800_v6 = vld [vmem:[#allocation8 + $0x20] sm:$0xff] }
 0xee9   :  { %v9125_v14 = vpack.c.bf16 %v4801_v31, %v4800_v6  ;;  %v4897_v31 = vld [vmem:[#allocation5 + $0x50] sm:$0xff] }
 0xeeb   :  { %8046 = vmatpush1.bf16.msra.mxu1 %v8045_v35  ;;  %7996 = vmatpush3.bf16.msra.mxu0 %v9121_v2  ;;  %v9129_v35 = vpack.c.bf16 %v4803_v8, %v4802_v7  ;;  %v4901_v7 = vld [vmem:[#allocation5 + $0x70] sm:$0xff]  ;;  %v4906_v8 = vld [vmem:[#allocation5 + $0x98] sm:$0xff] }
 0xeec   :  { %8048 = vmatprep.subr.bf16.mxu1 %v8047_v20  ;;  %7997 = vmatprep.subr.bf16.mxu0 %v8692_v4  ;;  %v4804_v20 = vld [vmem:[#allocation8 + $0x40] sm:$0xff] }
 0xeed   :  { %v9133_v10 = vpack.c.bf16 %v4805_v9, %v4804_v20  ;;  %v4910_v20 = vld [vmem:[#allocation5 + $0xb8] sm:$0xff] }
 0xeee   :  { %v8087_v9 = vpack.c.bf16 %v4910_v20, %v4906_v8 }
 0xeef   :  { %8050 = vmatpush1.bf16.msra.mxu1 %v8049_v11  ;;  %7999 = vmatpush3.bf16.msra.mxu0 %v9125_v14  ;;  %v9137_v11 = vpack.c.bf16 %v4807_v24, %v4806_v3  ;;  %v4905_v3 = vld [vmem:[#allocation5 + $0x90] sm:$0xff] }
 0xef0   :  { %8052 = vmatprep.subr.bf16.mxu1 %v8051_v30  ;;  %8000 = vmatprep.subr.bf16.mxu0 %v8692_v4  ;;  %v4808_v30 = vld [vmem:[#allocation8 + $0x60] sm:$0xff]  ;;  %v4909_v24 = vld [vmem:[#allocation5 + $0xb0] sm:$0xff] }
 0xef1   :  { %v9140_v34 = vpack.c.bf16 %v4809_v18, %v4808_v30  ;;  %v4914_v30 = vld [vmem:[#allocation5 + $0xd8] sm:$0xff]  ;;  %v8089_v22 = vpack.c.bf16 %v4909_v24, %v4905_v3 }
 0xef2   :  { %v4918_v18 = vld [vmem:[#allocation5 + $0xf8] sm:$0xff] }
 0xef3   :  { %8054 = vmatpush1.bf16.msra.mxu1 %v8053_v26  ;;  %8002 = vmatpush3.bf16.msra.mxu0 %v9129_v35  ;;  %v4890_v26 = vld [vmem:[#allocation5 + $0x18] sm:$0xff]  ;;  %v8091_v23 = vpack.c.bf16 %v4918_v18, %v4914_v30 }
 0xef4   :  { %8056 = vmatprep.subr.bf16.mxu1 %v8055_v29  ;;  %8003 = vmatprep.subr.bf16.mxu0 %v8692_v4  ;;  %v4894_v29 = vld [vmem:[#allocation5 + $0x38] sm:$0xff] }
 0xef5   :  { %v8079_v33 = vpack.c.bf16 %v4894_v29, %v4890_v26  ;;  %v4913_v26 = vld [vmem:[#allocation5 + $0xd0] sm:$0xff]  ;;  %v4970_v3 = vld [vmem:[#allocation5 + $0x298] sm:$0xff] }
 0xef6   :  { %v4917_v29 = vld [vmem:[#allocation5 + $0xf0] sm:$0xff]  ;;  %v4974_v24 = vld [vmem:[#allocation5 + $0x2b8] sm:$0xff] }
 0xef7   :  { %8058 = vmatpush1.bf16.msra.mxu1 %v8057_v38  ;;  %8005 = vmatpush3.bf16.msra.mxu0 %v9133_v10  ;;  %v8119_v18 = vpack.c.bf16 %v4974_v24, %v4970_v3 }
 0xef8   :  { %8060 = vmatprep.subr.bf16.mxu1 %v8059_v44  ;;  %8006 = vmatprep.subr.bf16.mxu0 %v8692_v4 }
 0xefb   :  { %8062 = vmatpush1.bf16.msra.mxu1 %v8061_v47  ;;  %8008 = vmatpush3.bf16.msra.mxu0 %v9137_v11 }
 0xefc   :  { %8064 = vmatprep.subr.bf16.mxu1 %v8063_v40  ;;  %8009 = vmatprep.subr.bf16.mxu0 %v8692_v4 }
 0xeff   :  { %8066 = vmatpush1.bf16.msra.mxu1 %v8065_v58  ;;  %8011 = vmatpush3.bf16.msra.mxu0 %v9140_v34 }
 0xf00   :  { %8068 = vmatprep.subr.bf16.mxu1 %v8067_v16  ;;  %8012 = vmatprep.subr.bf16.mxu0 %v8692_v4 }
 0xf03   :  { %8070 = vmatpush1.bf16.msra.mxu1 %v8069_v5  ;;  %8014 = vmatpush3.bf16.msra.mxu0 %v9144_v32 }
 0xf04   :  { %8072 = vmatprep.subr.bf16.mxu1 %v8071_v54  ;;  %8080 = vmatprep.subr.bf16.mxu0 %v8079_v33  ;;  %v4922_v33 = vld [vmem:[#allocation5 + $0x118] sm:$0xff] }
 0xf07   :  { %8074 = vmatpush1.bf16.msra.mxu1 %v8073_v13 }
 0xf08   :  { %8076 = vmatprep.subr.bf16.mxu1 %v8075_v17  ;;  %v4889_v17 = vld [vmem:[#allocation5 + $0x10] sm:$0xff] }
 0xf09   :  { %v8081_v50 = vpack.c.bf16 %v4893_v61, %v4889_v17  ;;  %v4945_v17 = vld [vmem:[#allocation5 + $0x1d0] sm:$0xff] }
 0xf0a   :  { %v4949_v61 = vld [vmem:[#allocation5 + $0x1f0] sm:$0xff] }
 0xf0b   :  { %8078 = vmatpush1.bf16.msra.mxu1 %v8077_v21  ;;  %v4902_v21 = vld [vmem:[#allocation5 + $0x78] sm:$0xff] }
 0xf0c   :  { %v8083_v6 = vpack.c.bf16 %v4902_v21, %v4898_v41  ;;  %v4954_v41 = vld [vmem:[#allocation5 + $0x218] sm:$0xff] }
 0xf0d   :  { %v4958_v21 = vld [vmem:[#allocation5 + $0x238] sm:$0xff] }
 0xf0e   :  { %5084 = vmatmul.mubr.f32.vlgmr.msra.gmra.mrb[34].mxu1 %v9114_v27 }
 0xfa1   :  { %v4696_v38 = vpop.f32.mrb[32].mxu0  ;;  %v4767_v44 = vpop.f32.mrb[32].mxu1 }
 0xfa2   :  { %v4697_v12 = vadd.f32 %v4696_v38, %v9148_v36  ;;  %v4698_v15 = vpop.f32.mrb[33].mxu0  ;;  %v4769_v39 = vpop.f32.mrb[33].mxu1  ;;  %v4768_v58 = vadd.f32 %v4767_v44, %v9157_v55  ;;  %v4926_v38 = vld [vmem:[#allocation5 + $0x138] sm:$0xff]  ;;  %v8093_v44 = vpack.c.bf16 %v4917_v29, %v4913_v26 }
 0xfa3   :  { %v4699_v45 = vadd.f32 %v4698_v15, %v9150_v37  ;;  %v4770_v48 = vadd.f32 %v4769_v39, %v9154_v49  ;;  %v4925_v15 = vld [vmem:[#allocation5 + $0x130] sm:$0xff]  ;;  %v4930_v39 = vld [vmem:[#allocation5 + $0x158] sm:$0xff] }
 0xfa4   :  { %v5630_v47 = vmul.f32 -1.442695, %v4697_v12  ;;  %v8095_v12 = vpack.c.bf16 %v4926_v38, %v4922_v33  ;;  %v4978_v26 = vld [vmem:[#allocation5 + $0x2d8] sm:$0xff] }
 0xfa5   :  { %v5631_v40 = vmul.f32 -1.442695, %v4699_v45  ;;  %v5632_v42 = vmul.f32 -1.442695, %v4770_v48  ;;  %v4934_v45 = vld [vmem:[#allocation5 + $0x178] sm:$0xff]  ;;  %v4929_v48 = vld [vmem:[#allocation5 + $0x150] sm:$0xff] }
 0xfa6   :  { %8515 = vpow2.f32 %v5630_v47  ;;  %v4982_v29 = vld [vmem:[#allocation5 + $0x2f8] sm:$0xff] }
 0xfa7   :  { %8517 = vpow2.f32 %v5631_v40  ;;  %v8099_v40 = vpack.c.bf16 %v4934_v45, %v4930_v39  ;;  %v8123_v38 = vpack.c.bf16 %v4982_v29, %v4978_v26  ;;  %v5198_v26 = vld [vmem:[#allocation5 + $0x468] sm:$0xff]  ;;  %v5196_v29 = vld [vmem:[#allocation5 + $0x458] sm:$0xff] }
 0xfa8   :  { %8519 = vpow2.f32 %v5632_v42  ;;  %v4933_v42 = vld [vmem:[#allocation5 + $0x170] sm:$0xff] }
 0xfa9   :  { %8521 = vtanh.f32 %v4768_v58  ;;  %v4938_v58 = vld [vmem:[#allocation5 + $0x198] sm:$0xff] }
 0xfb0   :  { %v8516_v16 = vpop.eup %8515 }
 0xfb1   :  { %v8518_v28 = vpop.eup %8517  ;;  %v4775_v46 = vadd.f32 1.0, %v8516_v16  ;;  %v4942_v16 = vld [vmem:[#allocation5 + $0x1b8] sm:$0xff] }
 0xfb2   :  { %v4781_v60 = vadd.f32 1.0, %v8518_v28  ;;  %v8520_v52 = vpop.eup %8519 }
 0xfb3   :  { %8523 = vrcp.f32 %v4775_v46  ;;  %v8522_v5 = vpop.eup %8521  ;;  %v4788_v57 = vadd.f32 1.0, %v8520_v52  ;;  %v8101_v46 = vpack.c.bf16 %v4933_v42, %v4929_v48  ;;  %v8103_v52 = vpack.c.bf16 %v4942_v16, %v4938_v58  ;;  %v4994_v48 = vld [vmem:[#allocation5 + $0x358] sm:$0xff] }
 0xfb4   :  { %8525 = vrcp.f32 %v4781_v60  ;;  %v4998_v42 = vld [vmem:[#allocation5 + $0x378] sm:$0xff] }
 0xfb5   :  { %8527 = vrcp.f32 %v4788_v57  ;;  %v8131_v16 = vpack.c.bf16 %v4998_v42, %v4994_v48  ;;  %v5204_v48 = vld [vmem:[#allocation5 + $0x498] sm:$0xff] }
 0xfb6   :  { %v5208_v42 = vld [vmem:[#allocation5 + $0x4b8] sm:$0xff] }
 0xfbd   :  { %v8524_v54 = vpop.eup %8523 }
 0xfbe   :  { %v8526_v62 = vpop.eup %8525  ;;  %v4792_v51 = vmul.f32 %v8524_v54, %v8522_v5  ;;  %v4937_v5 = vld [vmem:[#allocation5 + $0x190] sm:$0xff] }
 0xfbf   :  { %v4791_v59 = vmul.f32 %v8526_v62, %v9083_v56  ;;  %v8528_v63 = vpop.eup %8527  ;;  %v8085_v56 = vpack.c.bf16 %v4901_v7, %v4897_v31  ;;  %v4941_v54 = vld [vmem:[#allocation5 + $0x1b0] sm:$0xff]  ;;  %v4946_v62 = vld [vmem:[#allocation5 + $0x1d8] sm:$0xff] }
 0xfc0   :  { %v8105_v57 = vpack.c.bf16 %v4941_v54, %v4937_v5  ;;  %v4962_v31 = vld [vmem:[#allocation5 + $0x258] sm:$0xff] }
 0xfc1   :  { %v9161_v13 = vadd.f32 %v4792_v51, %v4791_v59  ;;  %v4950_v51 = vld [vmem:[#allocation5 + $0x1f8] sm:$0xff] }
 0xfc2   :  { %v8107_v59 = vpack.c.bf16 %v4950_v51, %v4946_v62  ;;  %v4966_v7 = vld [vmem:[#allocation5 + $0x278] sm:$0xff] }
 0xfc3   :  { %8529 = vtanh.f32 %v9161_v13  ;;  %v8115_v20 = vpack.c.bf16 %v4966_v7, %v4962_v31  ;;  %v5002_v5 = vld [vmem:[#allocation5 + $0x398] sm:$0xff]  ;;  %v5190_v31 = vld [vmem:[#allocation5 + $0x428] sm:$0xff] }
 0xfc4   :  { %v5006_v54 = vld [vmem:[#allocation5 + $0x3b8] sm:$0xff] }
 0xfc5   :  { %v8135_v51 = vpack.c.bf16 %v5006_v54, %v5002_v5  ;;  %v5188_v7 = vld [vmem:[#allocation5 + $0x418] sm:$0xff]  ;;  %v5207_v5 = vld [vmem:[#allocation5 + $0x4b0] sm:$0xff] }
 0xfcd   :  { %v8530_v1 = vpop.eup %8529 }
 0xfce   :  { %v9164_v53 = vmul.f32 %v8530_v1, %v8528_v63  ;;  %v8109_v63 = vpack.c.bf16 %v4949_v61, %v4945_v17  ;;  %v8111_v1 = vpack.c.bf16 %v4958_v21, %v4954_v41  ;;  %v5010_v17 = vld [vmem:[#allocation5 + $0x3d8] sm:$0xff] }
 0xfcf   :  { %v5014_v61 = vld [vmem:[#allocation5 + $0x3f8] sm:$0xff] }
 0xfd0   :  { %6018 = vmatmul.mubr.f32.vlgmr.msra.gmra.mrb[34].mxu0 %v9164_v53  ;;  %5381 = vmatprep.mubr.f32.mxu1 %v9164_v53  ;;  %v8139_v21 = vpack.c.bf16 %v5014_v61, %v5010_v17  ;;  %v5216_v61 = vld [vmem:[#allocation5 + $0x4f8] sm:$0xff] }
 0xfd1   :  { %8082 = vmatpush1.bf16.msra.mxu0 %v8081_v50  ;;  %5154 = vmatprep.mubr.f32.mxu0 %v9107_v43  ;;  %v4921_v43 = vld [vmem:[#allocation5 + $0x110] sm:$0xff] }
 0xfd2   :  { %8084 = vmatprep.subr.bf16.mxu0 %v8083_v6  ;;  %v8097_v47 = vpack.c.bf16 %v4925_v15, %v4921_v43  ;;  %v4953_v50 = vld [vmem:[#allocation5 + $0x210] sm:$0xff]  ;;  %v4986_v43 = vld [vmem:[#allocation5 + $0x318] sm:$0xff] }
 0xfd3   :  { %v4957_v6 = vld [vmem:[#allocation5 + $0x230] sm:$0xff]  ;;  %v4990_v15 = vld [vmem:[#allocation5 + $0x338] sm:$0xff] }
 0xfd4   :  { %v8113_v8 = vpack.c.bf16 %v4957_v6, %v4953_v50  ;;  %v8127_v45 = vpack.c.bf16 %v4990_v15, %v4986_v43  ;;  %v5186_v6 = vld [vmem:[#allocation5 + $0x408] sm:$0xff]  ;;  %v5199_v15 = vld [vmem:[#allocation5 + $0x470] sm:$0xff] }
 0xfd5   :  { %8086 = vmatpush1.bf16.msra.mxu0 %v8085_v56  ;;  %v4961_v56 = vld [vmem:[#allocation5 + $0x250] sm:$0xff] }
 0xfd6   :  { %8088 = vmatprep.subr.bf16.mxu0 %v8087_v9  ;;  %v4965_v9 = vld [vmem:[#allocation5 + $0x270] sm:$0xff] }
 0xfd7   :  { %v8117_v30 = vpack.c.bf16 %v4965_v9, %v4961_v56  ;;  %v5185_v56 = vld [vmem:[#allocation5 + $0x400] sm:$0xff] }
 0xfd8   :  { %v5189_v9 = vld [vmem:[#allocation5 + $0x420] sm:$0xff] }
 0xfd9   :  { %8090 = vmatpush1.bf16.msra.mxu0 %v8089_v22  ;;  %v4969_v22 = vld [vmem:[#allocation5 + $0x290] sm:$0xff]  ;;  %v8145_v24 = vpack.c.bf16 %v5189_v9, %v5185_v56 }
 0xfda   :  { %8092 = vmatprep.subr.bf16.mxu0 %v8091_v23  ;;  %v4973_v23 = vld [vmem:[#allocation5 + $0x2b0] sm:$0xff] }
 0xfdb   :  { %v8121_v33 = vpack.c.bf16 %v4973_v23, %v4969_v22  ;;  %v5194_v22 = vld [vmem:[#allocation5 + $0x448] sm:$0xff] }
 0xfdd   :  { %8094 = vmatpush1.bf16.msra.mxu0 %v8093_v44  ;;  %v4977_v44 = vld [vmem:[#allocation5 + $0x2d0] sm:$0xff] }
 0xfde   :  { %8096 = vmatprep.subr.bf16.mxu0 %v8095_v12  ;;  %v4981_v12 = vld [vmem:[#allocation5 + $0x2f0] sm:$0xff] }
 0xfdf   :  { %v8125_v39 = vpack.c.bf16 %v4981_v12, %v4977_v44  ;;  %v5197_v44 = vld [vmem:[#allocation5 + $0x460] sm:$0xff]  ;;  %v5195_v12 = vld [vmem:[#allocation5 + $0x450] sm:$0xff] }
 0xfe1   :  { %v9169_v28 = vpop.f32.mrb[34].mxu1  ;;  %8098 = vmatpush1.bf16.msra.mxu0 %v8097_v47  ;;  %v4985_v47 = vld [vmem:[#allocation5 + $0x310] sm:$0xff] }
 0xfe2   :  { %v9171_v60 = vpop.f32.mrb[35].mxu1  ;;  %8100 = vmatprep.subr.bf16.mxu0 %v8099_v40  ;;  %v4989_v40 = vld [vmem:[#allocation5 + $0x330] sm:$0xff] }
 0xfe3   :  { %v8129_v58 = vpack.c.bf16 %v4989_v40, %v4985_v47  ;;  %v8213_v47 = vpack.c.bf16 %v5199_v15, %v5195_v12  ;;  %v5229_v12 = vld [vmem:[#allocation5 + $0x560] sm:$0xff] }
 0xfe5   :  { %8102 = vmatpush1.bf16.msra.mxu0 %v8101_v46  ;;  %v4993_v46 = vld [vmem:[#allocation5 + $0x350] sm:$0xff] }
 0xfe6   :  { %8104 = vmatprep.subr.bf16.mxu0 %v8103_v52  ;;  %v4997_v52 = vld [vmem:[#allocation5 + $0x370] sm:$0xff] }
 0xfe7   :  { %v8133_v62 = vpack.c.bf16 %v4997_v52, %v4993_v46  ;;  %v5205_v46 = vld [vmem:[#allocation5 + $0x4a0] sm:$0xff]  ;;  %v5203_v52 = vld [vmem:[#allocation5 + $0x490] sm:$0xff] }
 0xfe9   :  { %8106 = vmatpush1.bf16.msra.mxu0 %v8105_v57  ;;  %v5001_v57 = vld [vmem:[#allocation5 + $0x390] sm:$0xff] }
 0xfea   :  { %8108 = vmatprep.subr.bf16.mxu0 %v8107_v59  ;;  %v5005_v59 = vld [vmem:[#allocation5 + $0x3b0] sm:$0xff] }
 0xfeb   :  { %v8137_v41 = vpack.c.bf16 %v5005_v59, %v5001_v57  ;;  %v5212_v57 = vld [vmem:[#allocation5 + $0x4d8] sm:$0xff]  ;;  %v8217_v59 = vpack.c.bf16 %v5207_v5, %v5203_v52  ;;  %v5237_v52 = vld [vmem:[#allocation5 + $0x5a0] sm:$0xff]  ;;  %v5235_v5 = vld [vmem:[#allocation5 + $0x590] sm:$0xff] }
 0xfed   :  { %8110 = vmatpush1.bf16.msra.mxu0 %v8109_v63  ;;  %v5009_v63 = vld [vmem:[#allocation5 + $0x3d0] sm:$0xff] }
 0xfee   :  { %8112 = vmatprep.subr.bf16.mxu0 %v8111_v1  ;;  %v5013_v1 = vld [vmem:[#allocation5 + $0x3f0] sm:$0xff] }
 0xfef   :  { %v8141_v50 = vpack.c.bf16 %v5013_v1, %v5009_v63  ;;  %v8219_v63 = vpack.c.bf16 %v5216_v61, %v5212_v57  ;;  %v5211_v1 = vld [vmem:[#allocation5 + $0x4d0] sm:$0xff]  ;;  %v5246_v57 = vld [vmem:[#allocation5 + $0x5e8] sm:$0xff] }
 0xff1   :  { %8114 = vmatpush1.bf16.msra.mxu0 %v8113_v8  ;;  %v8143_v8 = vpack.c.bf16 %v5190_v31, %v5186_v6  ;;  %v5218_v6 = vld [vmem:[#allocation5 + $0x508] sm:$0xff] }
 0xff2   :  { %8116 = vmatprep.subr.bf16.mxu0 %v8115_v20  ;;  %v5192_v20 = vld [vmem:[#allocation5 + $0x438] sm:$0xff]  ;;  %v5222_v31 = vld [vmem:[#allocation5 + $0x528] sm:$0xff] }
 0xff3   :  { %v8207_v3 = vpack.c.bf16 %v5192_v20, %v5188_v7  ;;  %8144 = vmatprep.subr.bf16.mxu1 %v8143_v8  ;;  %v5220_v7 = vld [vmem:[#allocation5 + $0x518] sm:$0xff]  ;;  %v8159_v9 = vpack.c.bf16 %v5222_v31, %v5218_v6  ;;  %v5243_v6 = vld [vmem:[#allocation5 + $0x5d0] sm:$0xff] }
 0xff4   :  { %8146 = vmatpush1.bf16.msra.mxu1 %v8145_v24  ;;  %v5224_v8 = vld [vmem:[#allocation5 + $0x538] sm:$0xff]  ;;  %v5221_v24 = vld [vmem:[#allocation5 + $0x520] sm:$0xff]  ;;  %v5247_v31 = vld [vmem:[#allocation5 + $0x5f0] sm:$0xff] }
 0xff5   :  { %8118 = vmatpush1.bf16.msra.mxu0 %v8117_v30  ;;  %v5187_v30 = vld [vmem:[#allocation5 + $0x410] sm:$0xff] }
 0xff6   :  { %8120 = vmatprep.subr.bf16.mxu0 %v8119_v18  ;;  %v5191_v18 = vld [vmem:[#allocation5 + $0x430] sm:$0xff] }
 0xff7   :  { %v8209_v23 = vpack.c.bf16 %v5191_v18, %v5187_v30  ;;  %v5219_v30 = vld [vmem:[#allocation5 + $0x510] sm:$0xff]  ;;  %v8223_v18 = vpack.c.bf16 %v5224_v8, %v5220_v7  ;;  %v8237_v8 = vpack.c.bf16 %v5247_v31, %v5243_v6  ;;  %v5277_v6 = vld [vmem:[#allocation5 + $0x6e0] sm:$0xff] }
 0xff9   :  { %8122 = vmatpush1.bf16.msra.mxu0 %v8121_v33  ;;  %v5200_v33 = vld [vmem:[#allocation5 + $0x478] sm:$0xff] }
 0xffa   :  { %8124 = vmatprep.subr.bf16.mxu0 %v8123_v38  ;;  %v5193_v38 = vld [vmem:[#allocation5 + $0x440] sm:$0xff] }
 0xffb   :  { %v8149_v43 = vpack.c.bf16 %v5197_v44, %v5193_v38  ;;  %v5225_v44 = vld [vmem:[#allocation5 + $0x540] sm:$0xff] }
 0xffd   :  { %8126 = vmatpush1.bf16.msra.mxu0 %v8125_v39  ;;  %v5202_v39 = vld [vmem:[#allocation5 + $0x488] sm:$0xff] }
 0xffe   :  { %8128 = vmatprep.subr.bf16.mxu0 %v8127_v45  ;;  %v5206_v45 = vld [vmem:[#allocation5 + $0x4a8] sm:$0xff] }
 0xfff   :  { %v8151_v40 = vpack.c.bf16 %v5206_v45, %v5202_v39  ;;  %v5231_v39 = vld [vmem:[#allocation5 + $0x570] sm:$0xff]  ;;  %v5234_v45 = vld [vmem:[#allocation5 + $0x588] sm:$0xff] }
0x1001   :  { %8130 = vmatpush1.bf16.msra.mxu0 %v8129_v58  ;;  %v5201_v58 = vld [vmem:[#allocation5 + $0x480] sm:$0xff] }
0x1002   :  { %8132 = vmatprep.subr.bf16.mxu0 %v8131_v16  ;;  %v8215_v16 = vpack.c.bf16 %v5208_v42, %v5204_v48  ;;  %v8153_v54 = vpack.c.bf16 %v5205_v46, %v5201_v58  ;;  %v5240_v48 = vld [vmem:[#allocation5 + $0x5b8] sm:$0xff]  ;;  %v8165_v42 = vpack.c.bf16 %v5229_v12, %v5225_v44  ;;  %v5233_v46 = vld [vmem:[#allocation5 + $0x580] sm:$0xff] }
0x1003   :  { %v8169_v61 = vpack.c.bf16 %v5237_v52, %v5233_v46  ;;  %v5260_v44 = vld [vmem:[#allocation5 + $0x658] sm:$0xff] }
0x1004   :  { %v5264_v12 = vld [vmem:[#allocation5 + $0x678] sm:$0xff] }
0x1005   :  { %8134 = vmatpush1.bf16.msra.mxu0 %v8133_v62  ;;  %v5210_v62 = vld [vmem:[#allocation5 + $0x4c8] sm:$0xff]  ;;  %v5272_v52 = vld [vmem:[#allocation5 + $0x6b8] sm:$0xff] }
0x1006   :  { %8136 = vmatprep.subr.bf16.mxu0 %v8135_v51  ;;  %v5214_v51 = vld [vmem:[#allocation5 + $0x4e8] sm:$0xff] }
0x1007   :  { %v8155_v17 = vpack.c.bf16 %v5214_v51, %v5210_v62  ;;  %v5239_v62 = vld [vmem:[#allocation5 + $0x5b0] sm:$0xff]  ;;  %v5242_v51 = vld [vmem:[#allocation5 + $0x5c8] sm:$0xff] }
0x1009   :  { %8138 = vmatpush1.bf16.msra.mxu0 %v8137_v41  ;;  %v5209_v41 = vld [vmem:[#allocation5 + $0x4c0] sm:$0xff] }
0x100a   :  { %8140 = vmatprep.subr.bf16.mxu0 %v8139_v21  ;;  %v5213_v21 = vld [vmem:[#allocation5 + $0x4e0] sm:$0xff] }
0x100b   :  { %v8157_v20 = vpack.c.bf16 %v5213_v21, %v5209_v41  ;;  %v8233_v41 = vpack.c.bf16 %v5239_v62, %v5235_v5  ;;  %v8171_v21 = vpack.c.bf16 %v5246_v57, %v5242_v51  ;;  %v5265_v5 = vld [vmem:[#allocation5 + $0x680] sm:$0xff]  ;;  %v5267_v57 = vld [vmem:[#allocation5 + $0x690] sm:$0xff] }
0x100d   :  { %8142 = vmatpush1.bf16.msra.mxu0 %v8141_v50  ;;  %v5215_v50 = vld [vmem:[#allocation5 + $0x4f0] sm:$0xff] }
0x100e   :  { %8208 = vmatprep.subr.bf16.mxu0 %v8207_v3  ;;  %v8221_v56 = vpack.c.bf16 %v5215_v50, %v5211_v1  ;;  %v5217_v3 = vld [vmem:[#allocation5 + $0x500] sm:$0xff] }
0x100f   :  { %v5245_v1 = vld [vmem:[#allocation5 + $0x5e0] sm:$0xff] }
0x1010   :  { %5155 = vmatmul.mubr.f32.vlgmr.msra.gmra.mrb[36].mxu0 %v9114_v27  ;;  %v8147_v27 = vpack.c.bf16 %v5198_v26, %v5194_v22  ;;  %v5223_v22 = vld [vmem:[#allocation5 + $0x530] sm:$0xff]  ;;  %v5230_v26 = vld [vmem:[#allocation5 + $0x568] sm:$0xff] }
0x1011   :  { %5452 = vmatprep.mubr.f32.mxu0 %v9164_v53  ;;  %v8211_v53 = vpack.c.bf16 %v5200_v33, %v5196_v29  ;;  %8210 = vmatpush1.bf16.msra.mxu0 %v8209_v23  ;;  %v5226_v23 = vld [vmem:[#allocation5 + $0x548] sm:$0xff]  ;;  %v5228_v29 = vld [vmem:[#allocation5 + $0x558] sm:$0xff] }
0x1012   :  { %8148 = vmatprep.subr.bf16.mxu1 %v8147_v27  ;;  %v5232_v33 = vld [vmem:[#allocation5 + $0x578] sm:$0xff]  ;;  %v8161_v27 = vpack.c.bf16 %v5221_v24, %v5217_v3  ;;  %v8163_v38 = vpack.c.bf16 %v5230_v26, %v5226_v23  ;;  %v5251_v26 = vld [vmem:[#allocation5 + $0x610] sm:$0xff] }
0x1013   :  { %8212 = vmatprep.subr.bf16.mxu0 %v8211_v53  ;;  %8150 = vmatpush1.bf16.msra.mxu1 %v8149_v43  ;;  %v8225_v53 = vpack.c.bf16 %v5223_v22, %v5219_v30  ;;  %v5227_v43 = vld [vmem:[#allocation5 + $0x550] sm:$0xff]  ;;  %v8227_v15 = vpack.c.bf16 %v5232_v33, %v5228_v29  ;;  %v5256_v24 = vld [vmem:[#allocation5 + $0x638] sm:$0xff]  ;;  %v5249_v30 = vld [vmem:[#allocation5 + $0x600] sm:$0xff] }
0x1014   :  { %8152 = vmatprep.subr.bf16.mxu1 %v8151_v40  ;;  %v5236_v40 = vld [vmem:[#allocation5 + $0x598] sm:$0xff]  ;;  %v8229_v58 = vpack.c.bf16 %v5231_v39, %v5227_v43  ;;  %v5255_v29 = vld [vmem:[#allocation5 + $0x630] sm:$0xff]  ;;  %v5257_v43 = vld [vmem:[#allocation5 + $0x640] sm:$0xff] }
0x1015   :  { %8214 = vmatpush1.bf16.msra.mxu0 %v8213_v47  ;;  %v5238_v47 = vld [vmem:[#allocation5 + $0x5a8] sm:$0xff]  ;;  %v8241_v33 = vpack.c.bf16 %v5255_v29, %v5251_v26  ;;  %v5261_v39 = vld [vmem:[#allocation5 + $0x660] sm:$0xff] }
0x1016   :  { %8216 = vmatprep.subr.bf16.mxu0 %v8215_v16  ;;  %v8167_v16 = vpack.c.bf16 %v5238_v47, %v5234_v45  ;;  %v5259_v45 = vld [vmem:[#allocation5 + $0x650] sm:$0xff] }
0x1017   :  { %8154 = vmatpush1.bf16.msra.mxu1 %v8153_v54  ;;  %v8231_v54 = vpack.c.bf16 %v5240_v48, %v5236_v40  ;;  %v5263_v47 = vld [vmem:[#allocation5 + $0x670] sm:$0xff]  ;;  %v8181_v40 = vpack.c.bf16 %v5261_v39, %v5257_v43  ;;  %v5289_v39 = vld [vmem:[#allocation5 + $0x740] sm:$0xff] }
0x1018   :  { %8156 = vmatprep.subr.bf16.mxu1 %v8155_v17  ;;  %v5248_v17 = vld [vmem:[#allocation5 + $0x5f8] sm:$0xff]  ;;  %v8245_v48 = vpack.c.bf16 %v5263_v47, %v5259_v45  ;;  %v5293_v45 = vld [vmem:[#allocation5 + $0x760] sm:$0xff] }
0x1019   :  { %8218 = vmatpush1.bf16.msra.mxu0 %v8217_v59  ;;  %v5244_v59 = vld [vmem:[#allocation5 + $0x5d8] sm:$0xff] }
0x101a   :  { %8220 = vmatprep.subr.bf16.mxu0 %v8219_v63  ;;  %v5241_v63 = vld [vmem:[#allocation5 + $0x5c0] sm:$0xff]  ;;  %v8235_v50 = vpack.c.bf16 %v5248_v17, %v5244_v59  ;;  %v5271_v59 = vld [vmem:[#allocation5 + $0x6b0] sm:$0xff] }
0x101b   :  { %8158 = vmatpush1.bf16.msra.mxu1 %v8157_v20  ;;  %v8173_v7 = vpack.c.bf16 %v5245_v1, %v5241_v63  ;;  %v5250_v20 = vld [vmem:[#allocation5 + $0x608] sm:$0xff]  ;;  %v8249_v17 = vpack.c.bf16 %v5271_v59, %v5267_v57  ;;  %v5280_v1 = vld [vmem:[#allocation5 + $0x6f8] sm:$0xff]  ;;  %v5301_v57 = vld [vmem:[#allocation5 + $0x7a0] sm:$0xff] }
0x101c   :  { %8160 = vmatprep.subr.bf16.mxu1 %v8159_v9  ;;  %v5252_v9 = vld [vmem:[#allocation5 + $0x618] sm:$0xff]  ;;  %v5299_v59 = vld [vmem:[#allocation5 + $0x790] sm:$0xff] }
0x101d   :  { %8222 = vmatpush1.bf16.msra.mxu0 %v8221_v56  ;;  %v5254_v56 = vld [vmem:[#allocation5 + $0x628] sm:$0xff]  ;;  %v8239_v22 = vpack.c.bf16 %v5256_v24, %v5252_v9  ;;  %v5284_v24 = vld [vmem:[#allocation5 + $0x718] sm:$0xff] }
0x101e   :  { %8224 = vmatprep.subr.bf16.mxu0 %v8223_v18  ;;  %v8175_v3 = vpack.c.bf16 %v5254_v56, %v5250_v20  ;;  %v5253_v18 = vld [vmem:[#allocation5 + $0x620] sm:$0xff]  ;;  %v5279_v20 = vld [vmem:[#allocation5 + $0x6f0] sm:$0xff]  ;;  %v5282_v9 = vld [vmem:[#allocation5 + $0x708] sm:$0xff] }
0x101f   :  { %8162 = vmatpush1.bf16.msra.mxu1 %v8161_v27  ;;  %v8177_v23 = vpack.c.bf16 %v5253_v18, %v5249_v30  ;;  %v5258_v27 = vld [vmem:[#allocation5 + $0x648] sm:$0xff]  ;;  %v5288_v18 = vld [vmem:[#allocation5 + $0x738] sm:$0xff] }
0x1020   :  { %8164 = vmatprep.subr.bf16.mxu1 %v8163_v38  ;;  %v8255_v26 = vpack.c.bf16 %v5288_v18, %v5284_v24  ;;  %v9179_v24 = vld [vmem:[%s9227_s4] sm:$0xff]  ;;  %s8694_s4 = smov [#allocation10]  }
0x1021   :  { %8226 = vmatpush1.bf16.msra.mxu0 %v8225_v53  ;;  %v5262_v53 = vld [vmem:[#allocation5 + $0x668] sm:$0xff]  ;;  %s5577_s0 = sshll.u32 %s8694_s4, 4  ;;  %s5578_s0 = int_to_ptr.vmem [resolvable:$true] %s5577_s0 }
0x1022   :  { %8228 = vmatprep.subr.bf16.mxu0 %v8227_v15  ;;  %v8179_v38 = vpack.c.bf16 %v5262_v53, %v5258_v27  ;;  %v8243_v15 = vpack.c.bf16 %v5264_v12, %v5260_v44  ;;  %v5287_v27 = vld [vmem:[#allocation5 + $0x730] sm:$0xff]  ;;  %v5294_v44 = vld [vmem:[#allocation5 + $0x768] sm:$0xff]  ;;  %v5292_v12 = vld [vmem:[#allocation5 + $0x758] sm:$0xff]  ;;  %s8653_s8 = scalar_lea.vmem %s5578_s0, 1024  ;;  %p8658_p5 = scmp.lt.s32.totalorder %s5578_s0, %s5578_s0 }
0x1023   :  { %8166 = vmatpush1.bf16.msra.mxu1 %v8165_v42  ;;  %v5266_v42 = vld [vmem:[#allocation5 + $0x688] sm:$0xff]  ;;  %p8654_p4 = scmp.ne.s32.totalorder %s5578_s0, %s8653_s8  ;;  %p8659_p6 = scmp.lt.s32.totalorder %s8653_s8, %s8653_s8 }
0x1024   :  { %8168 = vmatprep.subr.bf16.mxu1 %v8167_v16  ;;  %v5268_v16 = vld [vmem:[#allocation5 + $0x698] sm:$0xff] }
0x1025   :  { %8230 = vmatpush1.bf16.msra.mxu0 %v8229_v58  ;;  %v5270_v58 = vld [vmem:[#allocation5 + $0x6a8] sm:$0xff]  ;;  %v8247_v62 = vpack.c.bf16 %v5272_v52, %v5268_v16  ;;  %v5300_v52 = vld [vmem:[#allocation5 + $0x798] sm:$0xff]  ;;  %p8660_p7 = por %p8659_p6, %p8658_p5 }
0x1026   :  { %8232 = vmatprep.subr.bf16.mxu0 %v8231_v54  ;;  %v8183_v46 = vpack.c.bf16 %v5270_v58, %v5266_v42  ;;  %v5269_v54 = vld [vmem:[#allocation5 + $0x6a0] sm:$0xff]  ;;  %v5295_v42 = vld [vmem:[#allocation5 + $0x770] sm:$0xff]  ;;  %v5298_v58 = vld [vmem:[#allocation5 + $0x788] sm:$0xff] }
0x1027   :  { %8170 = vmatpush1.bf16.msra.mxu1 %v8169_v61  ;;  %v8185_v51 = vpack.c.bf16 %v5269_v54, %v5265_v5  ;;  %v5274_v61 = vld [vmem:[#allocation5 + $0x6c8] sm:$0xff]  ;;  %v5304_v5 = vld [vmem:[#allocation5 + $0x7b8] sm:$0xff]  ;;  %p8661_p8 = pnand %p8660_p7, %p8654_p4 }
0x1028   :  { %8172 = vmatprep.subr.bf16.mxu1 %v8171_v21  ;;  %v5276_v21 = vld [vmem:[#allocation5 + $0x6d8] sm:$0xff] }
0x1029   :  { %8234 = vmatpush1.bf16.msra.mxu0 %v8233_v41  ;;  %v5278_v41 = vld [vmem:[#allocation5 + $0x6e8] sm:$0xff]  ;;  %v8251_v31 = vpack.c.bf16 %v5280_v1, %v5276_v21 }
0x102a   :  { %8236 = vmatprep.subr.bf16.mxu0 %v8235_v50  ;;  %v8187_v63 = vpack.c.bf16 %v5278_v41, %v5274_v61  ;;  %v5273_v50 = vld [vmem:[#allocation5 + $0x6c0] sm:$0xff]  ;;  %v5303_v61 = vld [vmem:[#allocation5 + $0x7b0] sm:$0xff]  ;;  %v5306_v41 = vld [vmem:[#allocation5 + $0x7c8] sm:$0xff] }
0x102b   :  { %8174 = vmatpush1.bf16.msra.mxu1 %v8173_v7  ;;  %v8189_v7 = vpack.c.bf16 %v5277_v6, %v5273_v50  ;;  %v5310_v21 = vld [vmem:[#allocation5 + $0x7e8] sm:$0xff]  ;;  %v5308_v50 = vld [vmem:[#allocation5 + $0x7d8] sm:$0xff] }
0x102c   :  { %8176 = vmatprep.subr.bf16.mxu1 %v8175_v3  ;;  %v5286_v3 = vld [vmem:[#allocation5 + $0x728] sm:$0xff]  ;;  %v8203_v1 = vpack.c.bf16 %v5310_v21, %v5306_v41  ;;  %v5312_v6 = vld [vmem:[#allocation5 + $0x7f8] sm:$0xff] }
0x102d   :  { %8238 = vmatpush1.bf16.msra.mxu0 %v8237_v8  ;;  %v5275_v8 = vld [vmem:[#allocation5 + $0x6d0] sm:$0xff]  ;;  %v8191_v30 = vpack.c.bf16 %v5286_v3, %v5282_v9 }
0x102e   :  { %8240 = vmatprep.subr.bf16.mxu0 %v8239_v22  ;;  %v8253_v56 = vpack.c.bf16 %v5279_v20, %v5275_v8  ;;  %v5281_v22 = vld [vmem:[#allocation5 + $0x700] sm:$0xff]  ;;  %v5307_v20 = vld [vmem:[#allocation5 + $0x7d0] sm:$0xff] }
0x102f   :  { %8178 = vmatpush1.bf16.msra.mxu1 %v8177_v23  ;;  %v5285_v23 = vld [vmem:[#allocation5 + $0x720] sm:$0xff] }
0x1030   :  { %8180 = vmatprep.subr.bf16.mxu1 %v8179_v38  ;;  %v8193_v29 = vpack.c.bf16 %v5285_v23, %v5281_v22  ;;  %v5290_v38 = vld [vmem:[#allocation5 + $0x748] sm:$0xff]  ;;  %v5309_v8 = vld [vmem:[#allocation5 + $0x7e0] sm:$0xff] }
0x1031   :  { %8242 = vmatpush1.bf16.msra.mxu0 %v8241_v33  ;;  %v5283_v33 = vld [vmem:[#allocation5 + $0x710] sm:$0xff]  ;;  %v8195_v43 = vpack.c.bf16 %v5294_v44, %v5290_v38  ;;  %v5015_v23 = vld [vmem:[#allocation7] sm:$0xff] }
0x1032   :  { %8244 = vmatprep.subr.bf16.mxu0 %v8243_v15  ;;  %v8257_v53 = vpack.c.bf16 %v5287_v27, %v5283_v33  ;;  %v5296_v15 = vld [vmem:[#allocation5 + $0x778] sm:$0xff] }
0x1033   :  { %8182 = vmatpush1.bf16.msra.mxu1 %v8181_v40  ;;  %v8259_v47 = vpack.c.bf16 %v5296_v15, %v5292_v12  ;;  %v8197_v40 = vpack.c.bf16 %v5293_v45, %v5289_v39  ;;  %v5017_v15 = vld [vmem:[#allocation7 + $0x10] sm:$0xff]  ;;  %v5018_v39 = vld [vmem:[#allocation7 + $0x18] sm:$0xff] }
0x1034   :  { %8184 = vmatprep.subr.bf16.mxu1 %v8183_v46  ;;  %v5302_v46 = vld [vmem:[#allocation5 + $0x7a8] sm:$0xff] }
0x1035   :  { %8246 = vmatpush1.bf16.msra.mxu0 %v8245_v48  ;;  %v5291_v48 = vld [vmem:[#allocation5 + $0x750] sm:$0xff]  ;;  %v8199_v54 = vpack.c.bf16 %v5302_v46, %v5298_v58 }
0x1036   :  { %8248 = vmatprep.subr.bf16.mxu0 %v8247_v62  ;;  %v8261_v16 = vpack.c.bf16 %v5295_v42, %v5291_v48  ;;  %v8263_v62 = vpack.c.bf16 %v5304_v5, %v5300_v52 }
0x1037   :  { %8186 = vmatpush1.bf16.msra.mxu1 %v8185_v51  ;;  %v5297_v51 = vld [vmem:[#allocation5 + $0x780] sm:$0xff] }
0x1038   :  { %8188 = vmatprep.subr.bf16.mxu1 %v8187_v63  ;;  %v8265_v63 = vpack.c.bf16 %v5303_v61, %v5299_v59 }
0x1039   :  { %8250 = vmatpush1.bf16.msra.mxu0 %v8249_v17  ;;  %v8201_v17 = vpack.c.bf16 %v5301_v57, %v5297_v51 }
0x103a   :  { %8252 = vmatprep.subr.bf16.mxu0 %v8251_v31  ;;  %v5305_v31 = vld [vmem:[#allocation5 + $0x7c0] sm:$0xff] }
0x103b   :  { %8190 = vmatpush1.bf16.msra.mxu1 %v8189_v7  ;;  %v8267_v7 = vpack.c.bf16 %v5312_v6, %v5308_v50  ;;  %v8205_v9 = vpack.c.bf16 %v5309_v8, %v5305_v31 }
0x103c   :  { %8192 = vmatprep.subr.bf16.mxu1 %v8191_v30 }
0x103d   :  { %8254 = vmatpush1.bf16.msra.mxu0 %v8253_v56  ;;  %v5311_v56 = vld [vmem:[#allocation5 + $0x7f0] sm:$0xff] }
0x103e   :  { %8256 = vmatprep.subr.bf16.mxu0 %v8255_v26  ;;  %v8269_v3 = vpack.c.bf16 %v5311_v56, %v5307_v20  ;;  %v5016_v26 = vld [vmem:[#allocation7 + $0x8] sm:$0xff] }
0x103f   :  { %8194 = vmatpush1.bf16.msra.mxu1 %v8193_v29  ;;  %v5086_v29 = vadd.f32 %v9169_v28, %v5015_v23  ;;  %v5088_v33 = vadd.f32 %v9171_v60, %v5016_v26 }
0x1040   :  { %8196 = vmatprep.subr.bf16.mxu1 %v8195_v43 }
0x1041   :  { %8258 = vmatpush1.bf16.msra.mxu0 %v8257_v53  ;;  %v5633_v27 = vmul.f32 -1.442695, %v5086_v29  ;;  %v5634_v53 = vmul.f32 -1.442695, %v5088_v33 }
0x1042   :  { %8260 = vmatprep.subr.bf16.mxu0 %v8259_v47 }
0x1043   :  { %8198 = vmatpush1.bf16.msra.mxu1 %v8197_v40  ;;  %8531 = vpow2.f32 %v5633_v27 }
0x1044   :  { %8200 = vmatprep.subr.bf16.mxu1 %v8199_v54  ;;  %8533 = vpow2.f32 %v5634_v53 }
0x1045   :  { %8262 = vmatpush1.bf16.msra.mxu0 %v8261_v16 }
0x1046   :  { %8264 = vmatprep.subr.bf16.mxu0 %v8263_v62 }
0x1047   :  { %8202 = vmatpush1.bf16.msra.mxu1 %v8201_v17 }
0x1048   :  { %8204 = vmatprep.subr.bf16.mxu1 %v8203_v1 }
0x1049   :  { %8266 = vmatpush1.bf16.msra.mxu0 %v8265_v63 }
0x104a   :  { %8268 = vmatprep.subr.bf16.mxu0 %v8267_v7 }
0x104b   :  { %8206 = vmatpush1.bf16.msra.mxu1 %v8205_v9 }
0x104c   :  { %8271 = vmatprep.subr.bf16.mxu1 %v8692_v4 }
0x104d   :  { %8270 = vmatpush1.bf16.msra.mxu0 %v8269_v3  ;;  %v8532_v38 = vpop.eup %8531 }
0x104e   :  { %v8534_v44 = vpop.eup %8533  ;;  %v5164_v12 = vadd.f32 1.0, %v8532_v38 }
0x104f   :  { %v5170_v43 = vadd.f32 1.0, %v8534_v44 }
0x1050   :  { %8535 = vrcp.f32 %v5164_v12 }
0x1051   :  { %8537 = vrcp.f32 %v5170_v43 }
0x105a   :  { %v8536_v60 = vpop.eup %8535 }
0x105b   :  { %v8538_v42 = vpop.eup %8537 }
0x105c   :  { %v5180_v16 = vmul.f32 %v8538_v42, %v9104_v19 }
0x10a3   :  { %v4879_v30 = vpop.f32.mrb[34].mxu0 }
0x10a4   :  { %v4880_v18 = vadd.f32 %v4879_v30, %v9179_v24  ;;  %v6019_v22 = vpop.f32.mrb[35].mxu0 }
0x10a6   :  { %4884 = vst [vmem:[#allocation10 + $0x30] sm:$0xff] %v4880_v18 }
0x10e3   :  { %v5156_v45 = vpop.f32.mrb[36].mxu0 }
0x10e4   :  { %v5157_v47 = vadd.f32 %v5156_v45, %v5017_v15  ;;  %v5158_v40 = vpop.f32.mrb[37].mxu0 }
0x10e5   :  { %v5159_v48 = vadd.f32 %v5158_v40, %v5018_v39 }
0x10e6   :  { %8539 = vtanh.f32 %v5157_v47 }
0x10e7   :  { %v5635_v28 = vmul.f32 -1.442695, %v5159_v48 }
0x10e9   :  { %8541 = vpow2.f32 %v5635_v28 }
0x10f0   :  { %v8540_v58 = vpop.eup %8539 }
0x10f1   :  { %v5181_v46 = vmul.f32 %v8540_v58, %v8536_v60 }
0x10f3   :  { %v8542_v52 = vpop.eup %8541  ;;  %v5182_v5 = vadd.f32 %v5181_v46, %v5180_v16 }
0x10f4   :  { %v5177_v54 = vadd.f32 1.0, %v8542_v52 }
0x10f5   :  { %8543 = vtanh.f32 %v5182_v5 }
0x10f6   :  { %8545 = vrcp.f32 %v5177_v54 }
0x10ff   :  { %v8544_v62 = vpop.eup %8543 }
0x1100   :  { %v8546_v51 = vpop.eup %8545 }
0x1101   :  { %v5184_v57 = vmul.f32 %v8546_v51, %v8544_v62 }
0x1103   :  { %5382 = vmatmul.mubr.f32.vlgmr.msra.gmra.mrb[36].mxu1 %v5184_v57  ;;  %5453 = vmatmul.mubr.f32.vlgmr.msra.gmra.mrb[38].mxu0 %v5184_v57 }
0x1104   :  { %8273 = vmatpush3.bf16.msra.mxu1 %v9117_v25  ;;  %6052 = vmatprep.mubr.msk.f32.mxu1 %vm8693_vm0, %v8691_v0 }
0x1105   :  { %8274 = vmatprep.subr.bf16.mxu1 %v8692_v4 }
0x1108   :  { %8276 = vmatpush3.bf16.msra.mxu1 %v9121_v2 }
0x1109   :  { %8277 = vmatprep.subr.bf16.mxu1 %v8692_v4 }
0x110c   :  { %8279 = vmatpush3.bf16.msra.mxu1 %v9125_v14 }
0x110d   :  { %8280 = vmatprep.subr.bf16.mxu1 %v8692_v4 }
0x1110   :  { %8282 = vmatpush3.bf16.msra.mxu1 %v9129_v35 }
0x1111   :  { %8283 = vmatprep.subr.bf16.mxu1 %v8692_v4 }
0x1114   :  { %8285 = vmatpush3.bf16.msra.mxu1 %v9133_v10 }
0x1115   :  { %8286 = vmatprep.subr.bf16.mxu1 %v8692_v4 }
0x1118   :  { %8288 = vmatpush3.bf16.msra.mxu1 %v9137_v11 }
0x1119   :  { %8289 = vmatprep.subr.bf16.mxu1 %v8692_v4 }
0x111c   :  { %8291 = vmatpush3.bf16.msra.mxu1 %v9140_v34 }
0x111d   :  { %8292 = vmatprep.subr.bf16.mxu1 %v8692_v4 }
0x1120   :  { %8294 = vmatpush3.bf16.msra.mxu1 %v9144_v32 }
0x11d6   :  { %v5383_v0 = vpop.f32.mrb[36].mxu1  ;;  %v5454_v19 = vpop.f32.mrb[38].mxu0 }
0x11d7   :  { %v5384_v25 = vadd.f32 %v5383_v0, %v9148_v36  ;;  %v5385_v2 = vpop.f32.mrb[37].mxu1  ;;  %v5456_v14 = vpop.f32.mrb[39].mxu0  ;;  %v5455_v34 = vadd.f32 %v5454_v19, %v9157_v55 }
0x11d8   :  { %v5386_v35 = vadd.f32 %v5385_v2, %v9150_v37  ;;  %v5457_v11 = vadd.f32 %v5456_v14, %v9154_v49 }
0x11d9   :  { %v5636_v10 = vmul.f32 -1.442695, %v5384_v25 }
0x11da   :  { %v5637_v59 = vmul.f32 -1.442695, %v5386_v35  ;;  %v5638_v17 = vmul.f32 -1.442695, %v5457_v11 }
0x11db   :  { %8547 = vpow2.f32 %v5636_v10 }
0x11dc   :  { %8549 = vpow2.f32 %v5637_v59 }
0x11dd   :  { %8551 = vpow2.f32 %v5638_v17 }
0x11de   :  { %8553 = vtanh.f32 %v5455_v34 }
0x11e5   :  { %v8548_v4 = vpop.eup %8547 }
0x11e6   :  { %v8550_v61 = vpop.eup %8549  ;;  %v5462_v32 = vadd.f32 1.0, %v8548_v4 }
0x11e7   :  { %v5468_v41 = vadd.f32 1.0, %v8550_v61  ;;  %v8552_v36 = vpop.eup %8551 }
0x11e8   :  { %8555 = vrcp.f32 %v5462_v32  ;;  %v8554_v21 = vpop.eup %8553  ;;  %v5475_v50 = vadd.f32 1.0, %v8552_v36 }
0x11e9   :  { %8557 = vrcp.f32 %v5468_v41 }
0x11ea   :  { %8559 = vrcp.f32 %v5475_v50 }
0x11f2   :  { %v8556_v37 = vpop.eup %8555 }
0x11f3   :  { %v8558_v63 = vpop.eup %8557  ;;  %v5479_v1 = vmul.f32 %v8556_v37, %v8554_v21 }
0x11f4   :  { %v5478_v6 = vmul.f32 %v8558_v63, %v9161_v13  ;;  %v8560_v55 = vpop.eup %8559 }
0x11f6   :  { %v5480_v49 = vadd.f32 %v5479_v1, %v5478_v6 }
0x11f8   :  { %8561 = vtanh.f32 %v5480_v49 }
0x1202   :  { %v8562_v31 = vpop.eup %8561 }
0x1203   :  { %v5482_v7 = vmul.f32 %v8562_v31, %v8560_v55 }
0x1205   :  { %6053 = vmatmul.mubr.f32.vlgmr.msra.gmra.mrb[38].mxu1 %v5482_v7 }
0x12d8   :  { %v5566_v8 = vpop.f32.mrb[38].mxu1 }
0x12d9   :  { %v5567_v20 = vadd.f32 %v5566_v8, %v9179_v24  ;;  %v6054_v56 = vpop.f32.mrb[39].mxu1 }
0x12db   :  { %5571 = vst [vmem:[#allocation10 + $0x38] sm:$0xff] %v5567_v20 }
0x12dc   :  { %8664 = shalt.err (!%p8661_p8)
}
0x12dd   :  { %s8665_s11 = scalar_lea.hbm %s9228_s5, 1024 }
0x12de   :  { %p8666_p9 = scmp.ne.s32.totalorder %s9228_s5, %s8665_s11  ;;  %p8669_p10 = scmp.lt.u32.totalorder %s8665_s11, %s9228_s5 }
0x12e0   :  { %p8671_p11 = pnand %p8669_p10, %p8666_p9 }
0x12e2   :  { %8674 = shalt.err (!%p8671_p11)
}
0x12e3   :  { %5583 = dma.vmem_to_hbm [thread:$0]  %s5578_s0, 1024, %s9228_s5, [#allocation4], %s8687_s1, %s8687_s1, %s8688_s17  }
0x12e4   :  { %8681 = dma.done.wait [#allocation4], 1024  }
0x12e5   :  { %8682 = vsyncadd [#allocation4], 4294966272 }
0x12e6   :  { %5587 = vsyncpa [#allocation3], 1 }
0x12e7   :  { %5588 = vsyncpa [#allocation6], 1 }
0x12e8   :  { %5589 = vsyncpa [#allocation9], 1 }
0x12e9   :  { %5590 = vsyncpa [#allocation4], 1 }

</bundles_post_ra>
